<compile_context>
chip_gen: v7x
topology: tpu7x:2x2x1
jax: 0.10.0
libtpu: 0.0.40
codegen_flags: <defaults>
</compile_context>

<pallas_src>
import functools

import jax
import jax.numpy as jnp
from jax.experimental import pallas as pl
from jax.experimental.pallas import tpu as pltpu

EPS = 1e-5
SLOPE = 0.2  # LeakyReLU negative slope


# --------------------------------- Pallas kernels ---------------------------------
def _accumulate_taps(x_ref, w_ref, acc_ref, taps, wy, tile_lo):
    """Sum of per-tap MXU matmuls into the f32 VMEM scratch accumulator.

    x_ref : (1, (tile_ho+kh)*Wy, Ceff) bf16  one halo'd row tile of the padded slab
    w_ref : (T, Ceff, Cout)            bf16  per-tap weight matrices
    Tap offsets a*Wy + b are static; a*Wy is sublane (8) aligned because Wy % 8 == 0.
    """
    for t, (a, b) in enumerate(taps):
        off = a * wy + b
        dot = jnp.dot(x_ref[0, off:off + tile_lo, :], w_ref[t],
                      preferred_element_type=jnp.float32)
        if t == 0:
            acc_ref[...] = dot
        else:
            acc_ref[...] += dot


def _conv_bias_act_kernel(x_ref, w_ref, b_ref, o_ref, acc_ref, *, taps, wy, apply_lrelu):
    """Conv tile + bias (+ LeakyReLU) for the un-normalized blocks; bf16 store."""
    tile_lo = o_ref.shape[1]
    _accumulate_taps(x_ref, w_ref, acc_ref, taps, wy, tile_lo)
    y = acc_ref[...] + b_ref[...]
    if apply_lrelu:
        y = jnp.where(y > 0, y, SLOPE * y)
    o_ref[0] = y.astype(o_ref.dtype)


def _conv_stats_kernel(x_ref, w_ref, o_ref, sum_ref, ssq_ref, acc_ref, *,
                       taps, wy, wo, ho, tile_ho):
    """Conv tile (bias dropped: it cancels under the norm's mean subtraction) plus
    per-tile per-channel sum / sum-of-squares over the valid rows/columns only.
    Junk rows/cols are zeroed once so the stored bf16 conv output is clean."""
    j = pl.program_id(1)
    tile_lo = o_ref.shape[1]
    _accumulate_taps(x_ref, w_ref, acc_ref, taps, wy, tile_lo)
    acc = acc_ref[...]
    row = jax.lax.broadcasted_iota(jnp.int32, (tile_lo, 1), 0)
    ow = row % wy                                   # column inside the padded width
    row_limit = (ho - j * tile_ho) * wy             # flat rows with oh < Ho in this tile
    masked = jnp.where((ow < wo) & (row < row_limit), acc, 0.0)
    o_ref[0] = masked.astype(o_ref.dtype)
    sum_ref[0] = jnp.sum(masked, axis=0, keepdims=True)
    ssq_ref[0] = jnp.sum(masked * masked, axis=0, keepdims=True)


def _scale_shift_lrelu_kernel(x_ref, sc_ref, sh_ref, o_ref):
    """y = leaky_relu(x*scale + shift): folded BatchNorm / InstanceNorm epilogue (bf16)."""
    v = x_ref[0].astype(jnp.float32) * sc_ref[0] + sh_ref[0]
    o_ref[0] = jnp.where(v > 0, v, SLOPE * v).astype(o_ref.dtype)


# ----------------------------------- wrappers --------------------------------------
def _round_up(x, m):
    return (x + m - 1) // m * m


def _vmem_budget_bytes():
    """Per-generation VMEM budget: ~48 MiB on v7x (64 MiB physical), ~100 MiB on v5e/v6e."""
    try:
        cap = int(pltpu.get_tpu_info().vmem_capacity_bytes)
    except Exception:
        cap = 64 << 20
    return int(min(max(cap - (16 << 20), 24 << 20), 100 << 20))


def _cparams(dims, budget):
    return pltpu.CompilerParams(dimension_semantics=dims, vmem_limit_bytes=int(budget))


def _pick_tile_ho(ho, wy, ceff, cout, kh, n_taps, budget, cap):
    """Largest output-row tile whose double-buffered working set fits the VMEM budget."""
    per_row = wy * (4 * ceff + 8 * cout)            # 2x bf16 slab + 2x bf16 out + f32 acc
    fixed = 4 * kh * wy * ceff + 4 * n_taps * ceff * cout + (2 << 20)   # halo + weights
    rows = max(1, (budget - fixed) // per_row)
    rows = min(rows, max(1, 16384 // wy))           # keep flat row tiles <= ~16K rows
    tile_ho = int(max(1, min(ho, rows)))
    if cap is not None:
        tile_ho = max(1, min(tile_ho, int(cap)))
    return tile_ho


def _pad_and_pack(x_nhwc, stride, wy, kh, tile_ho, n_tiles):
    """Zero-pad (torch padding=2), space-to-depth for stride 2 (pure permutation), pad the
    width to Wy (multiple of 8), and gather overlapping (tile_ho + kh)-row tiles.

    Returns a bf16 slab of shape (N*n_tiles, (tile_ho+kh)*Wy, Ceff)."""
    n, h, w, c = x_nhwc.shape
    p = 2
    hyp = n_tiles * tile_ho + kh                    # rows of the (possibly s2d) slab
    if stride == 2:
        xp = jnp.pad(x_nhwc,
                     ((0, 0), (p, 2 * hyp - h - p), (p, 2 * wy - w - p), (0, 0)))
        y = xp.reshape(n, hyp, 2, wy, 2, c).transpose(0, 1, 3, 2, 4, 5)
        y = y.reshape(n, hyp, wy, 4 * c)
    else:
        y = jnp.pad(x_nhwc, ((0, 0), (p, hyp - h - p), (p, wy - w - p), (0, 0)))
    tile_hy = tile_ho + kh
    idx = jnp.arange(n_tiles)[:, None] * tile_ho + jnp.arange(tile_hy)[None, :]
    tiles = jnp.take(y, idx, axis=1)                # (N, n_tiles, tile_hy, Wy, Ceff)
    ceff = y.shape[-1]
    return tiles.reshape(n * n_tiles, tile_hy * wy, ceff).astype(jnp.bfloat16)


def _pack_weight(w_oihw, stride):
    """torch (Cout, Cin, 4, 4) -> bf16 (T, Ceff, Cout) per-tap matrices + tap offsets."""
    cout, cin = w_oihw.shape[0], w_oihw.shape[1]
    wt = jnp.transpose(w_oihw, (2, 3, 1, 0))        # (ky, kx, cin, cout)
    if stride == 2:
        wt = wt.reshape(2, 2, 2, 2, cin, cout)      # (a, py, b, px, cin, cout)
        wt = wt.transpose(0, 2, 1, 3, 4, 5)         # (a, b, py, px, cin, cout)
        wt = wt.reshape(4, 4 * cin, cout)
        taps = tuple((a, b) for a in range(2) for b in range(2))
    else:
        wt = wt.reshape(16, cin, cout)
        taps = tuple((a, b) for a in range(4) for b in range(4))
    return wt.astype(jnp.bfloat16), taps


def _conv_block(x_nhwc, w_oihw, bias, stride, *, with_stats, apply_lrelu, budget,
                tile_ho_cap):
    """One discriminator block's conv as a single pallas_call over grid=(N, n_row_tiles)."""
    n, h, w, cin = x_nhwc.shape
    cout = w_oihw.shape[0]
    k, p = 4, 2
    ho = (h + 2 * p - k) // stride + 1
    wo = (w + 2 * p - k) // stride + 1
    kh = kw = 2 if stride == 2 else 4
    ceff = cin * (4 if stride == 2 else 1)
    wy = _round_up(wo + kw - 1, 8)
    w_packed, taps = _pack_weight(w_oihw, stride)
    tile_ho = _pick_tile_ho(ho, wy, ceff, cout, kh, len(taps), budget, tile_ho_cap)
    n_tiles = -(-ho // tile_ho)
    tile_hy = tile_ho + kh
    tile_lo = tile_ho * wy
    lo_pad = n_tiles * tile_lo
    slab = _pad_and_pack(x_nhwc, stride, wy, kh, tile_ho, n_tiles)

    x_spec = pl.BlockSpec((1, tile_hy * wy, ceff), lambda i, j: (i * n_tiles + j, 0, 0))
    w_spec = pl.BlockSpec((len(taps), ceff, cout), lambda i, j: (0, 0, 0))
    o_spec = pl.BlockSpec((1, tile_lo, cout), lambda i, j: (i, j, 0))
    scratch = [pltpu.VMEM((tile_lo, cout), jnp.float32)]
    geo = dict(ho=ho, wo=wo, wy=wy, tile_lo=tile_lo)

    if with_stats:
        s_spec = pl.BlockSpec((1, 1, cout), lambda i, j: (i, j, 0))
        kernel = functools.partial(_conv_stats_kernel, taps=taps, wy=wy, wo=wo, ho=ho,
                                   tile_ho=tile_ho)
        conv, s, q = pl.pallas_call(
            kernel,
            grid=(n, n_tiles),
            in_specs=[x_spec, w_spec],
            out_specs=(o_spec, s_spec, s_spec),
            out_shape=(jax.ShapeDtypeStruct((n, lo_pad, cout), jnp.bfloat16),
                       jax.ShapeDtypeStruct((n, n_tiles, cout), jnp.float32),
                       jax.ShapeDtypeStruct((n, n_tiles, cout), jnp.float32)),
            scratch_shapes=scratch,
            compiler_params=_cparams(("parallel", "parallel"), budget),
        )(slab, w_packed)
        return conv, jnp.sum(s, axis=1), jnp.sum(q, axis=1), geo

    kernel = functools.partial(_conv_bias_act_kernel, taps=taps, wy=wy,
                               apply_lrelu=apply_lrelu)
    conv = pl.pallas_call(
        kernel,
        grid=(n, n_tiles),
        in_specs=[x_spec, w_spec, pl.BlockSpec((1, cout), lambda i, j: (0, 0))],
        out_specs=o_spec,
        out_shape=jax.ShapeDtypeStruct((n, lo_pad, cout), jnp.bfloat16),
        scratch_shapes=scratch,
        compiler_params=_cparams(("parallel", "parallel"), budget),
    )(slab, w_packed, bias.reshape(1, cout).astype(jnp.float32))
    return conv, geo


def _norm_lrelu(conv_flat, scale, shift, tile_lo, budget):
    """In-place (aliased) y = leaky_relu(x*scale + shift) over the bf16 conv output."""
    n, lo_pad, c = conv_flat.shape
    n_tiles = lo_pad // tile_lo
    per_sample = scale.shape[0] == n                 # 'in' passes (N,1,C); 'bn' (1,1,C)
    sc_map = (lambda i, j: (i, 0, 0)) if per_sample else (lambda i, j: (0, 0, 0))
    return pl.pallas_call(
        _scale_shift_lrelu_kernel,
        grid=(n, n_tiles),
        in_specs=[pl.BlockSpec((1, tile_lo, c), lambda i, j: (i, j, 0)),
                  pl.BlockSpec((1, 1, c), sc_map),
                  pl.BlockSpec((1, 1, c), sc_map)],
        out_specs=pl.BlockSpec((1, tile_lo, c), lambda i, j: (i, j, 0)),
        out_shape=jax.ShapeDtypeStruct((n, lo_pad, c), jnp.bfloat16),
        input_output_aliases={0: 0},
        compiler_params=_cparams(("parallel", "parallel"), budget),
    )(conv_flat, scale, shift)


def nlayer_discriminator_forward(x_nchw, params, *, strides, norm_type="bn",
                                 tile_ho_cap=None):
    """Returns the list of all block outputs (== torch forward's outputs[1:]), NCHW f32."""
    n = x_nchw.shape[0]
    budget = _vmem_budget_bytes()
    x = jnp.transpose(x_nchw, (0, 2, 3, 1)).astype(jnp.bfloat16)   # NHWC bf16 chain
    feats = []
    n_blocks = len(params)
    for idx, p in enumerate(params):
        first, last = idx == 0, idx == n_blocks - 1
        has_norm = (not first) and (not last)
        stride = strides[idx]
        if has_norm:
            conv, s, q, geo = _conv_block(x, p["w"], None, stride, with_stats=True,
                                          apply_lrelu=False, budget=budget,
                                          tile_ho_cap=tile_ho_cap)
            c = conv.shape[-1]
            cnt_ps = float(geo["ho"] * geo["wo"])
            if norm_type == "bn":          # training-mode batch statistics + affine
                cnt = n * cnt_ps
                mean = jnp.sum(s, axis=0) / cnt                       # (C,)
                var = jnp.maximum(jnp.sum(q, axis=0) / cnt - mean * mean, 0.0)
                scale = p["gamma"] * jax.lax.rsqrt(var + EPS)
                shift = p["beta"] - mean * scale
                scale = scale.reshape(1, 1, c)
                shift = shift.reshape(1, 1, c)
            elif norm_type == "in":        # InstanceNorm2d: per-sample stats, no affine
                mean = s / cnt_ps                                     # (N, C)
                var = jnp.maximum(q / cnt_ps - mean * mean, 0.0)
                inv = jax.lax.rsqrt(var + EPS)
                scale = inv[:, None, :]
                shift = (-mean * inv)[:, None, :]
            else:
                raise NotImplementedError(norm_type)
            feat_flat = _norm_lrelu(conv, scale, shift, geo["tile_lo"], budget)
        else:
            feat_flat, geo = _conv_block(x, p["w"], p["b"], stride, with_stats=False,
                                         apply_lrelu=first, budget=budget,
                                         tile_ho_cap=tile_ho_cap)
        cout = feat_flat.shape[-1]
        ho, wo, wy = geo["ho"], geo["wo"], geo["wy"]
        feat = feat_flat.reshape(n, -1, wy, cout)[:, :ho, :wo, :]      # drop junk rows/cols
        feats.append(jnp.transpose(feat, (0, 3, 1, 2)).astype(jnp.float32))  # NCHW, f32
        x = feat                                                       # chain stays NHWC bf16
    return feats


# ------------------------ pure-JAX reference (for verification) --------------------
def _ref_forward(x_nchw, params, *, strides, norm_type="bn"):
    feats, h = [], x_nchw
    nb = len(params)
    for idx, p in enumerate(params):
        s = strides[idx]
        y = jax.lax.conv_general_dilated(
            h, p["w"], (s, s), [(2, 2), (2, 2)],
            dimension_numbers=("NCHW", "OIHW", "NCHW"),
            precision=jax.lax.Precision.HIGHEST,
        ) + p["b"][None, :, None, None]
        first, last = idx == 0, idx == nb - 1
        if (not first) and (not last):
            axes = (0, 2, 3) if norm_type == "bn" else (2, 3)
            mean = y.mean(axis=axes, keepdims=True)
            var = ((y - mean) ** 2).mean(axis=axes, keepdims=True)
            y = (y - mean) * jax.lax.rsqrt(var + EPS)
            if norm_type == "bn":
                y = y * p["gamma"][None, :, None, None] + p["beta"][None, :, None, None]
            y = jnp.where(y > 0, y, SLOPE * y)
        elif first:
            y = jnp.where(y > 0, y, SLOPE * y)
        feats.append(y)
        h = y
    return feats


if __name__ == "__main__":
    N, IN_CH, H, W = 2, 3, 16, 16
    NDF, N_LAYERS = 8, 3

    # Channel / stride plan exactly as in NLayerDiscriminator.__init__
    chans, nf = [IN_CH, NDF], NDF
    for _ in range(1, N_LAYERS):
        nf = min(nf * 2, 512)
        chans.append(nf)
    nf = min(nf * 2, 512)
    chans.append(nf)
    chans.append(1)
    strides = (2,) * N_LAYERS + (1, 1)

    key = jax.random.PRNGKey(0)
    params = []
    for i in range(N_LAYERS + 2):
        cin, cout = chans[i], chans[i + 1]
        key, kw_, kb_, kg_, kbt = jax.random.split(key, 5)
        p = {"w": 0.2 * jax.random.normal(kw_, (cout, cin, 4, 4), jnp.float32),
             "b": 0.1 * jax.random.normal(kb_, (cout,), jnp.float32)}
        if 0 < i < N_LAYERS + 1:   # normalized blocks (gamma/beta used only for 'bn')
            p["gamma"] = 1.0 + 0.1 * jax.random.normal(kg_, (cout,), jnp.float32)
            p["beta"] = 0.1 * jax.random.normal(kbt, (cout,), jnp.float32)
        params.append(p)
    key, kx = jax.random.split(key)
    x = jax.random.normal(kx, (N, IN_CH, H, W), jnp.float32)

    for norm_type in ("bn", "in"):
        refs = _ref_forward(x, params, strides=strides, norm_type=norm_type)
        # cap=None uses the VMEM-derived row tile; cap=4 forces the multi-row-tile path
        for cap in (None, 4):
            fwd = jax.jit(functools.partial(nlayer_discriminator_forward,
                                            strides=strides, norm_type=norm_type,
                                            tile_ho_cap=cap))
            outs = jax.block_until_ready(fwd(x, params))
            assert len(outs) == N_LAYERS + 2
            for o, r in zip(outs, refs):
                assert o.shape == r.shape, (o.shape, r.shape)
                err = float(jnp.max(jnp.abs(o - r)) / (jnp.max(jnp.abs(r)) + 1e-6))
                assert err < 5e-2, f"mismatch ({norm_type}, cap={cap}): rel-err {err}"

    print("KERNEL_OK")
</pallas_src>

<mosaic_0001>
module attributes {stable_mosaic.version = 11 : i64} {
  func.func @_conv_bias_act_kernel(%arg0: i32, %arg1: i32, %arg2: memref<1x176x12xbf16, #tpu.memory_space<vmem>>, %arg3: memref<4x12x8xbf16, #tpu.memory_space<vmem>>, %arg4: memref<1x8xf32, #tpu.memory_space<vmem>>, %arg5: memref<1x144x8xbf16, #tpu.memory_space<vmem>>, %arg6: memref<144x8xf32, #tpu.memory_space<vmem>>) attributes {dimension_semantics = [#tpu.dimension_semantics<parallel>, #tpu.dimension_semantics<parallel>], iteration_bounds = array<i64: 2, 1>, scalar_prefetch = 0 : i64, scratch_operands = 1 : i64, tpu.core_type = #tpu.core_type<tc>, window_params = [{transform_indices = @transform_0, window_bounds = array<i64: 1, 176, 12>}, {pipeline_mode = #tpu.pipeline_mode<synchronous>, transform_indices = @transform_1, window_bounds = array<i64: 4, 12, 8>}, {pipeline_mode = #tpu.pipeline_mode<synchronous>, transform_indices = @transform_2, window_bounds = array<i64: 1, 8>}, {transform_indices = @transform_3, window_bounds = array<i64: 1, 144, 8>}]} {
    %c0 = arith.constant 0 : index
    %c0_0 = arith.constant 0 : index
    %c0_1 = arith.constant 0 : index
    %0 = vector.load %arg2[%c0, %c0_0, %c0_1] : memref<1x176x12xbf16, #tpu.memory_space<vmem>>, vector<1x144x12xbf16>
    %1 = vector.shape_cast %0 : vector<1x144x12xbf16> to vector<144x12xbf16>
    %c0_2 = arith.constant 0 : index
    %c0_3 = arith.constant 0 : index
    %c0_4 = arith.constant 0 : index
    %2 = vector.load %arg3[%c0_2, %c0_3, %c0_4] : memref<4x12x8xbf16, #tpu.memory_space<vmem>>, vector<1x12x8xbf16>
    %3 = vector.shape_cast %2 : vector<1x12x8xbf16> to vector<12x8xbf16>
    %cst = arith.constant dense<0.000000e+00> : vector<144x8xf32>
    %4 = tpu.matmul %1, %3, %cst {dimension_numbers = #tpu.dot_dimension_numbers<[1], [0], [0], [1], [0, 0, 1, 1], [], []>} : vector<144x12xbf16>, vector<12x8xbf16>, vector<144x8xf32> -> vector<144x8xf32>
    %c0_5 = arith.constant 0 : index
    %c0_6 = arith.constant 0 : index
    %5 = vector.load %arg6[%c0_5, %c0_6] : memref<144x8xf32, #tpu.memory_space<vmem>>, vector<144x8xf32>
    tpu.vector_store %arg6[%c0_5, %c0_6], %4 {strides = array<i32>} : memref<144x8xf32, #tpu.memory_space<vmem>>, vector<144x8xf32>,
    %c0_7 = arith.constant 0 : index
    %c1 = arith.constant 1 : index
    %c0_8 = arith.constant 0 : index
    %6 = vector.load %arg2[%c0_7, %c1, %c0_8] : memref<1x176x12xbf16, #tpu.memory_space<vmem>>, vector<1x144x12xbf16>
    %7 = vector.shape_cast %6 : vector<1x144x12xbf16> to vector<144x12xbf16>
    %c1_9 = arith.constant 1 : index
    %c0_10 = arith.constant 0 : index
    %c0_11 = arith.constant 0 : index
    %8 = vector.load %arg3[%c1_9, %c0_10, %c0_11] : memref<4x12x8xbf16, #tpu.memory_space<vmem>>, vector<1x12x8xbf16>
    %9 = vector.shape_cast %8 : vector<1x12x8xbf16> to vector<12x8xbf16>
    %cst_12 = arith.constant dense<0.000000e+00> : vector<144x8xf32>
    %10 = tpu.matmul %7, %9, %cst_12 {dimension_numbers = #tpu.dot_dimension_numbers<[1], [0], [0], [1], [0, 0, 1, 1], [], []>} : vector<144x12xbf16>, vector<12x8xbf16>, vector<144x8xf32> -> vector<144x8xf32>
    %c0_13 = arith.constant 0 : index
    %c0_14 = arith.constant 0 : index
    %11 = vector.load %arg6[%c0_13, %c0_14] : memref<144x8xf32, #tpu.memory_space<vmem>>, vector<144x8xf32>
    %12 = arith.addf %11, %10 : vector<144x8xf32>
    %c0_15 = arith.constant 0 : index
    %c0_16 = arith.constant 0 : index
    %13 = vector.load %arg6[%c0_15, %c0_16] : memref<144x8xf32, #tpu.memory_space<vmem>>, vector<144x8xf32>
    tpu.vector_store %arg6[%c0_15, %c0_16], %12 {strides = array<i32>} : memref<144x8xf32, #tpu.memory_space<vmem>>, vector<144x8xf32>,
    %c0_17 = arith.constant 0 : index
    %c16 = arith.constant 16 : index
    %c0_18 = arith.constant 0 : index
    %14 = vector.load %arg2[%c0_17, %c16, %c0_18] : memref<1x176x12xbf16, #tpu.memory_space<vmem>>, vector<1x144x12xbf16>
    %15 = vector.shape_cast %14 : vector<1x144x12xbf16> to vector<144x12xbf16>
    %c2 = arith.constant 2 : index
    %c0_19 = arith.constant 0 : index
    %c0_20 = arith.constant 0 : index
    %16 = vector.load %arg3[%c2, %c0_19, %c0_20] : memref<4x12x8xbf16, #tpu.memory_space<vmem>>, vector<1x12x8xbf16>
    %17 = vector.shape_cast %16 : vector<1x12x8xbf16> to vector<12x8xbf16>
    %cst_21 = arith.constant dense<0.000000e+00> : vector<144x8xf32>
    %18 = tpu.matmul %15, %17, %cst_21 {dimension_numbers = #tpu.dot_dimension_numbers<[1], [0], [0], [1], [0, 0, 1, 1], [], []>} : vector<144x12xbf16>, vector<12x8xbf16>, vector<144x8xf32> -> vector<144x8xf32>
    %c0_22 = arith.constant 0 : index
    %c0_23 = arith.constant 0 : index
    %19 = vector.load %arg6[%c0_22, %c0_23] : memref<144x8xf32, #tpu.memory_space<vmem>>, vector<144x8xf32>
    %20 = arith.addf %19, %18 : vector<144x8xf32>
    %c0_24 = arith.constant 0 : index
    %c0_25 = arith.constant 0 : index
    %21 = vector.load %arg6[%c0_24, %c0_25] : memref<144x8xf32, #tpu.memory_space<vmem>>, vector<144x8xf32>
    tpu.vector_store %arg6[%c0_24, %c0_25], %20 {strides = array<i32>} : memref<144x8xf32, #tpu.memory_space<vmem>>, vector<144x8xf32>,
    %c0_26 = arith.constant 0 : index
    %c17 = arith.constant 17 : index
    %c0_27 = arith.constant 0 : index
    %22 = vector.load %arg2[%c0_26, %c17, %c0_27] : memref<1x176x12xbf16, #tpu.memory_space<vmem>>, vector<1x144x12xbf16>
    %23 = vector.shape_cast %22 : vector<1x144x12xbf16> to vector<144x12xbf16>
    %c3 = arith.constant 3 : index
    %c0_28 = arith.constant 0 : index
    %c0_29 = arith.constant 0 : index
    %24 = vector.load %arg3[%c3, %c0_28, %c0_29] : memref<4x12x8xbf16, #tpu.memory_space<vmem>>, vector<1x12x8xbf16>
    %25 = vector.shape_cast %24 : vector<1x12x8xbf16> to vector<12x8xbf16>
    %cst_30 = arith.constant dense<0.000000e+00> : vector<144x8xf32>
    %26 = tpu.matmul %23, %25, %cst_30 {dimension_numbers = #tpu.dot_dimension_numbers<[1], [0], [0], [1], [0, 0, 1, 1], [], []>} : vector<144x12xbf16>, vector<12x8xbf16>, vector<144x8xf32> -> vector<144x8xf32>
    %c0_31 = arith.constant 0 : index
    %c0_32 = arith.constant 0 : index
    %27 = vector.load %arg6[%c0_31, %c0_32] : memref<144x8xf32, #tpu.memory_space<vmem>>, vector<144x8xf32>
    %28 = arith.addf %27, %26 : vector<144x8xf32>
    %c0_33 = arith.constant 0 : index
    %c0_34 = arith.constant 0 : index
    %29 = vector.load %arg6[%c0_33, %c0_34] : memref<144x8xf32, #tpu.memory_space<vmem>>, vector<144x8xf32>
    tpu.vector_store %arg6[%c0_33, %c0_34], %28 {strides = array<i32>} : memref<144x8xf32, #tpu.memory_space<vmem>>, vector<144x8xf32>,
    %c0_35 = arith.constant 0 : index
    %c0_36 = arith.constant 0 : index
    %30 = vector.load %arg6[%c0_35, %c0_36] : memref<144x8xf32, #tpu.memory_space<vmem>>, vector<144x8xf32>
    %c0_37 = arith.constant 0 : index
    %c0_38 = arith.constant 0 : index
    %31 = vector.load %arg4[%c0_37, %c0_38] : memref<1x8xf32, #tpu.memory_space<vmem>>, vector<1x8xf32>
    %32 = vector.broadcast %31 : vector<1x8xf32> to vector<144x8xf32>
    %33 = arith.addf %30, %32 : vector<144x8xf32>
    %cst_39 = arith.constant 0.000000e+00 : f32
    %34 = vector.broadcast %cst_39 : f32 to vector<144x8xf32>
    %35 = arith.cmpf ogt, %33, %34 : vector<144x8xf32>
    %cst_40 = arith.constant 2.000000e-01 : f32
    %36 = vector.broadcast %cst_40 : f32 to vector<144x8xf32>
    %37 = arith.mulf %36, %33 : vector<144x8xf32>
    %38 = arith.select %35, %33, %37 : vector<144x8xi1>, vector<144x8xf32>
    %39 = arith.truncf %38 : vector<144x8xf32> to vector<144x8xbf16>
    %c0_41 = arith.constant 0 : index
    %c0_42 = arith.constant 0 : index
    %c0_43 = arith.constant 0 : index
    %40 = vector.load %arg5[%c0_41, %c0_42, %c0_43] : memref<1x144x8xbf16, #tpu.memory_space<vmem>>, vector<1x144x8xbf16>
    %41 = vector.shape_cast %40 : vector<1x144x8xbf16> to vector<144x8xbf16>
    %42 = vector.shape_cast %39 : vector<144x8xbf16> to vector<1x144x8xbf16>
    tpu.vector_store %arg5[%c0_41, %c0_42, %c0_43], %42 {strides = array<i32>} : memref<1x144x8xbf16, #tpu.memory_space<vmem>>, vector<1x144x8xbf16>,
    return
  }
  func.func @transform_0(%arg0: i32, %arg1: i32) -> (i32, i32, i32) {
    %c1_i32 = arith.constant 1 : i32
    %0 = arith.muli %arg0, %c1_i32 : i32
    %1 = arith.addi %0, %arg1 : i32
    %c0_i32 = arith.constant 0 : i32
    %c0_i32_0 = arith.constant 0 : i32
    %c0_i32_1 = arith.constant 0 : i32
    return %1, %c0_i32, %c0_i32_0 : i32, i32, i32
  }
  func.func @transform_1(%arg0: i32, %arg1: i32) -> (i32, i32, i32) {
    %c0_i32 = arith.constant 0 : i32
    %c0_i32_0 = arith.constant 0 : i32
    %c0_i32_1 = arith.constant 0 : i32
    %c0_i32_2 = arith.constant 0 : i32
    return %c0_i32, %c0_i32_0, %c0_i32_1 : i32, i32, i32
  }
  func.func @transform_2(%arg0: i32, %arg1: i32) -> (i32, i32) {
    %c0_i32 = arith.constant 0 : i32
    %c0_i32_0 = arith.constant 0 : i32
    %c0_i32_1 = arith.constant 0 : i32
    return %c0_i32, %c0_i32_0 : i32, i32
  }
  func.func @transform_3(%arg0: i32, %arg1: i32) -> (i32, i32, i32) {
    %c0_i32 = arith.constant 0 : i32
    %c0_i32_0 = arith.constant 0 : i32
    return %arg0, %arg1, %c0_i32 : i32, i32, i32
  }
}

module attributes {stable_mosaic.version = 11 : i64} {
  func.func @_conv_stats_kernel(%arg0: i32, %arg1: i32, %arg2: memref<1x56x32xbf16, #tpu.memory_space<vmem>>, %arg3: memref<4x32x16xbf16, #tpu.memory_space<vmem>>, %arg4: memref<1x40x16xbf16, #tpu.memory_space<vmem>>, %arg5: memref<1x1x16xf32, #tpu.memory_space<vmem>>, %arg6: memref<1x1x16xf32, #tpu.memory_space<vmem>>, %arg7: memref<40x16xf32, #tpu.memory_space<vmem>>) attributes {dimension_semantics = [#tpu.dimension_semantics<parallel>, #tpu.dimension_semantics<parallel>], iteration_bounds = array<i64: 2, 1>, scalar_prefetch = 0 : i64, scratch_operands = 1 : i64, tpu.core_type = #tpu.core_type<tc>, window_params = [{transform_indices = @transform_0, window_bounds = array<i64: 1, 56, 32>}, {pipeline_mode = #tpu.pipeline_mode<synchronous>, transform_indices = @transform_1, window_bounds = array<i64: 4, 32, 16>}, {transform_indices = @transform_2, window_bounds = array<i64: 1, 40, 16>}, {transform_indices = @transform_3, window_bounds = array<i64: 1, 1, 16>}, {transform_indices = @transform_4, window_bounds = array<i64: 1, 1, 16>}]} {
    %c0 = arith.constant 0 : index
    %c0_0 = arith.constant 0 : index
    %c0_1 = arith.constant 0 : index
    %0 = vector.load %arg2[%c0, %c0_0, %c0_1] : memref<1x56x32xbf16, #tpu.memory_space<vmem>>, vector<1x40x32xbf16>
    %1 = vector.shape_cast %0 : vector<1x40x32xbf16> to vector<40x32xbf16>
    %c0_2 = arith.constant 0 : index
    %c0_3 = arith.constant 0 : index
    %c0_4 = arith.constant 0 : index
    %2 = vector.load %arg3[%c0_2, %c0_3, %c0_4] : memref<4x32x16xbf16, #tpu.memory_space<vmem>>, vector<1x32x16xbf16>
    %3 = vector.shape_cast %2 : vector<1x32x16xbf16> to vector<32x16xbf16>
    %cst = arith.constant dense<0.000000e+00> : vector<40x16xf32>
    %4 = tpu.matmul %1, %3, %cst {dimension_numbers = #tpu.dot_dimension_numbers<[1], [0], [0], [1], [0, 0, 1, 1], [], []>} : vector<40x32xbf16>, vector<32x16xbf16>, vector<40x16xf32> -> vector<40x16xf32>
    %c0_5 = arith.constant 0 : index
    %c0_6 = arith.constant 0 : index
    %5 = vector.load %arg7[%c0_5, %c0_6] : memref<40x16xf32, #tpu.memory_space<vmem>>, vector<40x16xf32>
    tpu.vector_store %arg7[%c0_5, %c0_6], %4 {strides = array<i32>} : memref<40x16xf32, #tpu.memory_space<vmem>>, vector<40x16xf32>,
    %c0_7 = arith.constant 0 : index
    %c1 = arith.constant 1 : index
    %c0_8 = arith.constant 0 : index
    %6 = vector.load %arg2[%c0_7, %c1, %c0_8] : memref<1x56x32xbf16, #tpu.memory_space<vmem>>, vector<1x40x32xbf16>
    %7 = vector.shape_cast %6 : vector<1x40x32xbf16> to vector<40x32xbf16>
    %c1_9 = arith.constant 1 : index
    %c0_10 = arith.constant 0 : index
    %c0_11 = arith.constant 0 : index
    %8 = vector.load %arg3[%c1_9, %c0_10, %c0_11] : memref<4x32x16xbf16, #tpu.memory_space<vmem>>, vector<1x32x16xbf16>
    %9 = vector.shape_cast %8 : vector<1x32x16xbf16> to vector<32x16xbf16>
    %cst_12 = arith.constant dense<0.000000e+00> : vector<40x16xf32>
    %10 = tpu.matmul %7, %9, %cst_12 {dimension_numbers = #tpu.dot_dimension_numbers<[1], [0], [0], [1], [0, 0, 1, 1], [], []>} : vector<40x32xbf16>, vector<32x16xbf16>, vector<40x16xf32> -> vector<40x16xf32>
    %c0_13 = arith.constant 0 : index
    %c0_14 = arith.constant 0 : index
    %11 = vector.load %arg7[%c0_13, %c0_14] : memref<40x16xf32, #tpu.memory_space<vmem>>, vector<40x16xf32>
    %12 = arith.addf %11, %10 : vector<40x16xf32>
    %c0_15 = arith.constant 0 : index
    %c0_16 = arith.constant 0 : index
    %13 = vector.load %arg7[%c0_15, %c0_16] : memref<40x16xf32, #tpu.memory_space<vmem>>, vector<40x16xf32>
    tpu.vector_store %arg7[%c0_15, %c0_16], %12 {strides = array<i32>} : memref<40x16xf32, #tpu.memory_space<vmem>>, vector<40x16xf32>,
    %c0_17 = arith.constant 0 : index
    %c8 = arith.constant 8 : index
    %c0_18 = arith.constant 0 : index
    %14 = vector.load %arg2[%c0_17, %c8, %c0_18] : memref<1x56x32xbf16, #tpu.memory_space<vmem>>, vector<1x40x32xbf16>
    %15 = vector.shape_cast %14 : vector<1x40x32xbf16> to vector<40x32xbf16>
    %c2 = arith.constant 2 : index
    %c0_19 = arith.constant 0 : index
    %c0_20 = arith.constant 0 : index
    %16 = vector.load %arg3[%c2, %c0_19, %c0_20] : memref<4x32x16xbf16, #tpu.memory_space<vmem>>, vector<1x32x16xbf16>
    %17 = vector.shape_cast %16 : vector<1x32x16xbf16> to vector<32x16xbf16>
    %cst_21 = arith.constant dense<0.000000e+00> : vector<40x16xf32>
    %18 = tpu.matmul %15, %17, %cst_21 {dimension_numbers = #tpu.dot_dimension_numbers<[1], [0], [0], [1], [0, 0, 1, 1], [], []>} : vector<40x32xbf16>, vector<32x16xbf16>, vector<40x16xf32> -> vector<40x16xf32>
    %c0_22 = arith.constant 0 : index
    %c0_23 = arith.constant 0 : index
    %19 = vector.load %arg7[%c0_22, %c0_23] : memref<40x16xf32, #tpu.memory_space<vmem>>, vector<40x16xf32>
    %20 = arith.addf %19, %18 : vector<40x16xf32>
    %c0_24 = arith.constant 0 : index
    %c0_25 = arith.constant 0 : index
    %21 = vector.load %arg7[%c0_24, %c0_25] : memref<40x16xf32, #tpu.memory_space<vmem>>, vector<40x16xf32>
    tpu.vector_store %arg7[%c0_24, %c0_25], %20 {strides = array<i32>} : memref<40x16xf32, #tpu.memory_space<vmem>>, vector<40x16xf32>,
    %c0_26 = arith.constant 0 : index
    %c9 = arith.constant 9 : index
    %c0_27 = arith.constant 0 : index
    %22 = vector.load %arg2[%c0_26, %c9, %c0_27] : memref<1x56x32xbf16, #tpu.memory_space<vmem>>, vector<1x40x32xbf16>
    %23 = vector.shape_cast %22 : vector<1x40x32xbf16> to vector<40x32xbf16>
    %c3 = arith.constant 3 : index
    %c0_28 = arith.constant 0 : index
    %c0_29 = arith.constant 0 : index
    %24 = vector.load %arg3[%c3, %c0_28, %c0_29] : memref<4x32x16xbf16, #tpu.memory_space<vmem>>, vector<1x32x16xbf16>
    %25 = vector.shape_cast %24 : vector<1x32x16xbf16> to vector<32x16xbf16>
    %cst_30 = arith.constant dense<0.000000e+00> : vector<40x16xf32>
    %26 = tpu.matmul %23, %25, %cst_30 {dimension_numbers = #tpu.dot_dimension_numbers<[1], [0], [0], [1], [0, 0, 1, 1], [], []>} : vector<40x32xbf16>, vector<32x16xbf16>, vector<40x16xf32> -> vector<40x16xf32>
    %c0_31 = arith.constant 0 : index
    %c0_32 = arith.constant 0 : index
    %27 = vector.load %arg7[%c0_31, %c0_32] : memref<40x16xf32, #tpu.memory_space<vmem>>, vector<40x16xf32>
    %28 = arith.addf %27, %26 : vector<40x16xf32>
    %c0_33 = arith.constant 0 : index
    %c0_34 = arith.constant 0 : index
    %29 = vector.load %arg7[%c0_33, %c0_34] : memref<40x16xf32, #tpu.memory_space<vmem>>, vector<40x16xf32>
    tpu.vector_store %arg7[%c0_33, %c0_34], %28 {strides = array<i32>} : memref<40x16xf32, #tpu.memory_space<vmem>>, vector<40x16xf32>,
    %c0_35 = arith.constant 0 : index
    %c0_36 = arith.constant 0 : index
    %30 = vector.load %arg7[%c0_35, %c0_36] : memref<40x16xf32, #tpu.memory_space<vmem>>, vector<40x16xf32>
    %31 = tpu.iota {dimensions = array<i32: 0>} : vector<40x1xi32>
    %c8_i32 = arith.constant 8 : i32
    %c0_i32 = arith.constant 0 : i32
    %32 = arith.cmpi eq, %c8_i32, %c0_i32 : i32
    %c1_i32 = arith.constant 1 : i32
    %33 = arith.select %32, %c1_i32, %c8_i32 : i32
    %34 = vector.broadcast %33 : i32 to vector<40x1xi32>
    %35 = arith.remsi %31, %34 : vector<40x1xi32>
    %c0_i32_37 = arith.constant 0 : i32
    %36 = vector.broadcast %c0_i32_37 : i32 to vector<40x1xi32>
    %37 = arith.cmpi ne, %35, %36 : vector<40x1xi32>
    %c0_i32_38 = arith.constant 0 : i32
    %38 = vector.broadcast %c0_i32_38 : i32 to vector<40x1xi32>
    %39 = arith.cmpi slt, %35, %38 : vector<40x1xi32>
    %c0_i32_39 = arith.constant 0 : i32
    %40 = arith.cmpi slt, %33, %c0_i32_39 : i32
    %41 = vector.broadcast %40 : i1 to vector<40x1xi1>
    %42 = vector.broadcast %41 : vector<40x1xi1> to vector<40x1xi1>
    %43 = arith.xori %39, %42 : vector<40x1xi1>
    %44 = arith.andi %43, %37 : vector<40x1xi1>
    %45 = vector.broadcast %33 : i32 to vector<40x1xi32>
    %46 = arith.addi %35, %45 : vector<40x1xi32>
    %47 = arith.select %44, %46, %35 : vector<40x1xi1>, vector<40x1xi32>
    %c5_i32 = arith.constant 5 : i32
    %48 = arith.muli %arg1, %c5_i32 : i32
    %c5_i32_40 = arith.constant 5 : i32
    %49 = arith.subi %c5_i32_40, %48 : i32
    %c8_i32_41 = arith.constant 8 : i32
    %50 = arith.muli %49, %c8_i32_41 : i32
    %c5_i32_42 = arith.constant 5 : i32
    %51 = vector.broadcast %c5_i32_42 : i32 to vector<40x1xi32>
    %52 = arith.cmpi slt, %47, %51 : vector<40x1xi32>
    %53 = vector.broadcast %50 : i32 to vector<40x1xi32>
    %54 = arith.cmpi slt, %31, %53 : vector<40x1xi32>
    %55 = arith.andi %52, %54 : vector<40x1xi1>
    %cst_43 = arith.constant 0.000000e+00 : f32
    %56 = vector.shape_cast %55 : vector<40x1xi1> to vector<40x1xi1>
    %57 = vector.broadcast %56 : vector<40x1xi1> to vector<40x16xi1>
    %58 = vector.broadcast %cst_43 : f32 to vector<40x16xf32>
    %59 = arith.select %57, %30, %58 : vector<40x16xi1>, vector<40x16xf32>
    %60 = arith.truncf %59 : vector<40x16xf32> to vector<40x16xbf16>
    %c0_44 = arith.constant 0 : index
    %c0_45 = arith.constant 0 : index
    %c0_46 = arith.constant 0 : index
    %61 = vector.load %arg4[%c0_44, %c0_45, %c0_46] : memref<1x40x16xbf16, #tpu.memory_space<vmem>>, vector<1x40x16xbf16>
    %62 = vector.shape_cast %61 : vector<1x40x16xbf16> to vector<40x16xbf16>
    %63 = vector.shape_cast %60 : vector<40x16xbf16> to vector<1x40x16xbf16>
    tpu.vector_store %arg4[%c0_44, %c0_45, %c0_46], %63 {strides = array<i32>} : memref<1x40x16xbf16, #tpu.memory_space<vmem>>, vector<1x40x16xbf16>,
    %cst_47 = arith.constant dense<0.000000e+00> : vector<16xf32>
    %64 = vector.multi_reduction <add>, %59, %cst_47 [0] : vector<40x16xf32> to vector<16xf32>
    %65 = vector.shape_cast %64 : vector<16xf32> to vector<1x16xf32>
    %c0_48 = arith.constant 0 : index
    %c0_49 = arith.constant 0 : index
    %c0_50 = arith.constant 0 : index
    %66 = vector.load %arg5[%c0_48, %c0_49, %c0_50] : memref<1x1x16xf32, #tpu.memory_space<vmem>>, vector<1x1x16xf32>
    %67 = vector.shape_cast %66 : vector<1x1x16xf32> to vector<1x16xf32>
    %68 = vector.shape_cast %65 : vector<1x16xf32> to vector<1x1x16xf32>
    tpu.vector_store %arg5[%c0_48, %c0_49, %c0_50], %68 {strides = array<i32>} : memref<1x1x16xf32, #tpu.memory_space<vmem>>, vector<1x1x16xf32>,
    %69 = arith.mulf %59, %59 : vector<40x16xf32>
    %cst_51 = arith.constant dense<0.000000e+00> : vector<16xf32>
    %70 = vector.multi_reduction <add>, %69, %cst_51 [0] : vector<40x16xf32> to vector<16xf32>
    %71 = vector.shape_cast %70 : vector<16xf32> to vector<1x16xf32>
    %c0_52 = arith.constant 0 : index
    %c0_53 = arith.constant 0 : index
    %c0_54 = arith.constant 0 : index
    %72 = vector.load %arg6[%c0_52, %c0_53, %c0_54] : memref<1x1x16xf32, #tpu.memory_space<vmem>>, vector<1x1x16xf32>
    %73 = vector.shape_cast %72 : vector<1x1x16xf32> to vector<1x16xf32>
    %74 = vector.shape_cast %71 : vector<1x16xf32> to vector<1x1x16xf32>
    tpu.vector_store %arg6[%c0_52, %c0_53, %c0_54], %74 {strides = array<i32>} : memref<1x1x16xf32, #tpu.memory_space<vmem>>, vector<1x1x16xf32>,
    return
  }
  func.func @transform_0(%arg0: i32, %arg1: i32) -> (i32, i32, i32) {
    %c1_i32 = arith.constant 1 : i32
    %0 = arith.muli %arg0, %c1_i32 : i32
    %1 = arith.addi %0, %arg1 : i32
    %c0_i32 = arith.constant 0 : i32
    %c0_i32_0 = arith.constant 0 : i32
    %c0_i32_1 = arith.constant 0 : i32
    return %1, %c0_i32, %c0_i32_0 : i32, i32, i32
  }
  func.func @transform_1(%arg0: i32, %arg1: i32) -> (i32, i32, i32) {
    %c0_i32 = arith.constant 0 : i32
    %c0_i32_0 = arith.constant 0 : i32
    %c0_i32_1 = arith.constant 0 : i32
    %c0_i32_2 = arith.constant 0 : i32
    return %c0_i32, %c0_i32_0, %c0_i32_1 : i32, i32, i32
  }
  func.func @transform_2(%arg0: i32, %arg1: i32) -> (i32, i32, i32) {
    %c0_i32 = arith.constant 0 : i32
    %c0_i32_0 = arith.constant 0 : i32
    return %arg0, %arg1, %c0_i32 : i32, i32, i32
  }
  func.func @transform_3(%arg0: i32, %arg1: i32) -> (i32, i32, i32) {
    %c0_i32 = arith.constant 0 : i32
    %c0_i32_0 = arith.constant 0 : i32
    return %arg0, %arg1, %c0_i32 : i32, i32, i32
  }
  func.func @transform_4(%arg0: i32, %arg1: i32) -> (i32, i32, i32) {
    %c0_i32 = arith.constant 0 : i32
    %c0_i32_0 = arith.constant 0 : i32
    return %arg0, %arg1, %c0_i32 : i32, i32, i32
  }
}

module attributes {stable_mosaic.version = 11 : i64} {
  func.func @_scale_shift_lrelu_kernel(%arg0: i32, %arg1: i32, %arg2: memref<1x40x16xbf16, #tpu.memory_space<vmem>>, %arg3: memref<1x1x16xf32, #tpu.memory_space<vmem>>, %arg4: memref<1x1x16xf32, #tpu.memory_space<vmem>>, %arg5: memref<1x40x16xbf16, #tpu.memory_space<vmem>>) attributes {dimension_semantics = [#tpu.dimension_semantics<parallel>, #tpu.dimension_semantics<parallel>], iteration_bounds = array<i64: 2, 1>, scalar_prefetch = 0 : i64, scratch_operands = 0 : i64, tpu.core_type = #tpu.core_type<tc>, window_params = [{transform_indices = @transform_0, window_bounds = array<i64: 1, 40, 16>}, {pipeline_mode = #tpu.pipeline_mode<synchronous>, transform_indices = @transform_1, window_bounds = array<i64: 1, 1, 16>}, {pipeline_mode = #tpu.pipeline_mode<synchronous>, transform_indices = @transform_2, window_bounds = array<i64: 1, 1, 16>}, {transform_indices = @transform_3, window_bounds = array<i64: 1, 40, 16>}]} {
    %c0 = arith.constant 0 : index
    %c0_0 = arith.constant 0 : index
    %c0_1 = arith.constant 0 : index
    %0 = vector.load %arg2[%c0, %c0_0, %c0_1] : memref<1x40x16xbf16, #tpu.memory_space<vmem>>, vector<1x40x16xbf16>
    %1 = vector.shape_cast %0 : vector<1x40x16xbf16> to vector<40x16xbf16>
    %2 = arith.extf %1 : vector<40x16xbf16> to vector<40x16xf32>
    %c0_2 = arith.constant 0 : index
    %c0_3 = arith.constant 0 : index
    %c0_4 = arith.constant 0 : index
    %3 = vector.load %arg3[%c0_2, %c0_3, %c0_4] : memref<1x1x16xf32, #tpu.memory_space<vmem>>, vector<1x1x16xf32>
    %4 = vector.shape_cast %3 : vector<1x1x16xf32> to vector<1x16xf32>
    %5 = vector.broadcast %4 : vector<1x16xf32> to vector<40x16xf32>
    %6 = arith.mulf %2, %5 : vector<40x16xf32>
    %c0_5 = arith.constant 0 : index
    %c0_6 = arith.constant 0 : index
    %c0_7 = arith.constant 0 : index
    %7 = vector.load %arg4[%c0_5, %c0_6, %c0_7] : memref<1x1x16xf32, #tpu.memory_space<vmem>>, vector<1x1x16xf32>
    %8 = vector.shape_cast %7 : vector<1x1x16xf32> to vector<1x16xf32>
    %9 = vector.broadcast %8 : vector<1x16xf32> to vector<40x16xf32>
    %10 = arith.addf %6, %9 : vector<40x16xf32>
    %cst = arith.constant 0.000000e+00 : f32
    %11 = vector.broadcast %cst : f32 to vector<40x16xf32>
    %12 = arith.cmpf ogt, %10, %11 : vector<40x16xf32>
    %cst_8 = arith.constant 2.000000e-01 : f32
    %13 = vector.broadcast %cst_8 : f32 to vector<40x16xf32>
    %14 = arith.mulf %13, %10 : vector<40x16xf32>
    %15 = arith.select %12, %10, %14 : vector<40x16xi1>, vector<40x16xf32>
    %16 = arith.truncf %15 : vector<40x16xf32> to vector<40x16xbf16>
    %c0_9 = arith.constant 0 : index
    %c0_10 = arith.constant 0 : index
    %c0_11 = arith.constant 0 : index
    %17 = vector.load %arg5[%c0_9, %c0_10, %c0_11] : memref<1x40x16xbf16, #tpu.memory_space<vmem>>, vector<1x40x16xbf16>
    %18 = vector.shape_cast %17 : vector<1x40x16xbf16> to vector<40x16xbf16>
    %19 = vector.shape_cast %16 : vector<40x16xbf16> to vector<1x40x16xbf16>
    tpu.vector_store %arg5[%c0_9, %c0_10, %c0_11], %19 {strides = array<i32>} : memref<1x40x16xbf16, #tpu.memory_space<vmem>>, vector<1x40x16xbf16>,
    return
  }
  func.func @transform_0(%arg0: i32, %arg1: i32) -> (i32, i32, i32) {
    %c0_i32 = arith.constant 0 : i32
    %c0_i32_0 = arith.constant 0 : i32
    return %arg0, %arg1, %c0_i32 : i32, i32, i32
  }
  func.func @transform_1(%arg0: i32, %arg1: i32) -> (i32, i32, i32) {
    %c0_i32 = arith.constant 0 : i32
    %c0_i32_0 = arith.constant 0 : i32
    %c0_i32_1 = arith.constant 0 : i32
    %c0_i32_2 = arith.constant 0 : i32
    return %c0_i32, %c0_i32_0, %c0_i32_1 : i32, i32, i32
  }
  func.func @transform_2(%arg0: i32, %arg1: i32) -> (i32, i32, i32) {
    %c0_i32 = arith.constant 0 : i32
    %c0_i32_0 = arith.constant 0 : i32
    %c0_i32_1 = arith.constant 0 : i32
    %c0_i32_2 = arith.constant 0 : i32
    return %c0_i32, %c0_i32_0, %c0_i32_1 : i32, i32, i32
  }
  func.func @transform_3(%arg0: i32, %arg1: i32) -> (i32, i32, i32) {
    %c0_i32 = arith.constant 0 : i32
    %c0_i32_0 = arith.constant 0 : i32
    return %arg0, %arg1, %c0_i32 : i32, i32, i32
  }
}

module attributes {stable_mosaic.version = 11 : i64} {
  func.func @_conv_stats_kernel(%arg0: i32, %arg1: i32, %arg2: memref<1x40x64xbf16, #tpu.memory_space<vmem>>, %arg3: memref<4x64x32xbf16, #tpu.memory_space<vmem>>, %arg4: memref<1x24x32xbf16, #tpu.memory_space<vmem>>, %arg5: memref<1x1x32xf32, #tpu.memory_space<vmem>>, %arg6: memref<1x1x32xf32, #tpu.memory_space<vmem>>, %arg7: memref<24x32xf32, #tpu.memory_space<vmem>>) attributes {dimension_semantics = [#tpu.dimension_semantics<parallel>, #tpu.dimension_semantics<parallel>], iteration_bounds = array<i64: 2, 1>, scalar_prefetch = 0 : i64, scratch_operands = 1 : i64, tpu.core_type = #tpu.core_type<tc>, window_params = [{transform_indices = @transform_0, window_bounds = array<i64: 1, 40, 64>}, {pipeline_mode = #tpu.pipeline_mode<synchronous>, transform_indices = @transform_1, window_bounds = array<i64: 4, 64, 32>}, {transform_indices = @transform_2, window_bounds = array<i64: 1, 24, 32>}, {transform_indices = @transform_3, window_bounds = array<i64: 1, 1, 32>}, {transform_indices = @transform_4, window_bounds = array<i64: 1, 1, 32>}]} {
    %c0 = arith.constant 0 : index
    %c0_0 = arith.constant 0 : index
    %c0_1 = arith.constant 0 : index
    %0 = vector.load %arg2[%c0, %c0_0, %c0_1] : memref<1x40x64xbf16, #tpu.memory_space<vmem>>, vector<1x24x64xbf16>
    %1 = vector.shape_cast %0 : vector<1x24x64xbf16> to vector<24x64xbf16>
    %c0_2 = arith.constant 0 : index
    %c0_3 = arith.constant 0 : index
    %c0_4 = arith.constant 0 : index
    %2 = vector.load %arg3[%c0_2, %c0_3, %c0_4] : memref<4x64x32xbf16, #tpu.memory_space<vmem>>, vector<1x64x32xbf16>
    %3 = vector.shape_cast %2 : vector<1x64x32xbf16> to vector<64x32xbf16>
    %cst = arith.constant dense<0.000000e+00> : vector<24x32xf32>
    %4 = tpu.matmul %1, %3, %cst {dimension_numbers = #tpu.dot_dimension_numbers<[1], [0], [0], [1], [0, 0, 1, 1], [], []>} : vector<24x64xbf16>, vector<64x32xbf16>, vector<24x32xf32> -> vector<24x32xf32>
    %c0_5 = arith.constant 0 : index
    %c0_6 = arith.constant 0 : index
    %5 = vector.load %arg7[%c0_5, %c0_6] : memref<24x32xf32, #tpu.memory_space<vmem>>, vector<24x32xf32>
    tpu.vector_store %arg7[%c0_5, %c0_6], %4 {strides = array<i32>} : memref<24x32xf32, #tpu.memory_space<vmem>>, vector<24x32xf32>,
    %c0_7 = arith.constant 0 : index
    %c1 = arith.constant 1 : index
    %c0_8 = arith.constant 0 : index
    %6 = vector.load %arg2[%c0_7, %c1, %c0_8] : memref<1x40x64xbf16, #tpu.memory_space<vmem>>, vector<1x24x64xbf16>
    %7 = vector.shape_cast %6 : vector<1x24x64xbf16> to vector<24x64xbf16>
    %c1_9 = arith.constant 1 : index
    %c0_10 = arith.constant 0 : index
    %c0_11 = arith.constant 0 : index
    %8 = vector.load %arg3[%c1_9, %c0_10, %c0_11] : memref<4x64x32xbf16, #tpu.memory_space<vmem>>, vector<1x64x32xbf16>
    %9 = vector.shape_cast %8 : vector<1x64x32xbf16> to vector<64x32xbf16>
    %cst_12 = arith.constant dense<0.000000e+00> : vector<24x32xf32>
    %10 = tpu.matmul %7, %9, %cst_12 {dimension_numbers = #tpu.dot_dimension_numbers<[1], [0], [0], [1], [0, 0, 1, 1], [], []>} : vector<24x64xbf16>, vector<64x32xbf16>, vector<24x32xf32> -> vector<24x32xf32>
    %c0_13 = arith.constant 0 : index
    %c0_14 = arith.constant 0 : index
    %11 = vector.load %arg7[%c0_13, %c0_14] : memref<24x32xf32, #tpu.memory_space<vmem>>, vector<24x32xf32>
    %12 = arith.addf %11, %10 : vector<24x32xf32>
    %c0_15 = arith.constant 0 : index
    %c0_16 = arith.constant 0 : index
    %13 = vector.load %arg7[%c0_15, %c0_16] : memref<24x32xf32, #tpu.memory_space<vmem>>, vector<24x32xf32>
    tpu.vector_store %arg7[%c0_15, %c0_16], %12 {strides = array<i32>} : memref<24x32xf32, #tpu.memory_space<vmem>>, vector<24x32xf32>,
    %c0_17 = arith.constant 0 : index
    %c8 = arith.constant 8 : index
    %c0_18 = arith.constant 0 : index
    %14 = vector.load %arg2[%c0_17, %c8, %c0_18] : memref<1x40x64xbf16, #tpu.memory_space<vmem>>, vector<1x24x64xbf16>
    %15 = vector.shape_cast %14 : vector<1x24x64xbf16> to vector<24x64xbf16>
    %c2 = arith.constant 2 : index
    %c0_19 = arith.constant 0 : index
    %c0_20 = arith.constant 0 : index
    %16 = vector.load %arg3[%c2, %c0_19, %c0_20] : memref<4x64x32xbf16, #tpu.memory_space<vmem>>, vector<1x64x32xbf16>
    %17 = vector.shape_cast %16 : vector<1x64x32xbf16> to vector<64x32xbf16>
    %cst_21 = arith.constant dense<0.000000e+00> : vector<24x32xf32>
    %18 = tpu.matmul %15, %17, %cst_21 {dimension_numbers = #tpu.dot_dimension_numbers<[1], [0], [0], [1], [0, 0, 1, 1], [], []>} : vector<24x64xbf16>, vector<64x32xbf16>, vector<24x32xf32> -> vector<24x32xf32>
    %c0_22 = arith.constant 0 : index
    %c0_23 = arith.constant 0 : index
    %19 = vector.load %arg7[%c0_22, %c0_23] : memref<24x32xf32, #tpu.memory_space<vmem>>, vector<24x32xf32>
    %20 = arith.addf %19, %18 : vector<24x32xf32>
    %c0_24 = arith.constant 0 : index
    %c0_25 = arith.constant 0 : index
    %21 = vector.load %arg7[%c0_24, %c0_25] : memref<24x32xf32, #tpu.memory_space<vmem>>, vector<24x32xf32>
    tpu.vector_store %arg7[%c0_24, %c0_25], %20 {strides = array<i32>} : memref<24x32xf32, #tpu.memory_space<vmem>>, vector<24x32xf32>,
    %c0_26 = arith.constant 0 : index
    %c9 = arith.constant 9 : index
    %c0_27 = arith.constant 0 : index
    %22 = vector.load %arg2[%c0_26, %c9, %c0_27] : memref<1x40x64xbf16, #tpu.memory_space<vmem>>, vector<1x24x64xbf16>
    %23 = vector.shape_cast %22 : vector<1x24x64xbf16> to vector<24x64xbf16>
    %c3 = arith.constant 3 : index
    %c0_28 = arith.constant 0 : index
    %c0_29 = arith.constant 0 : index
    %24 = vector.load %arg3[%c3, %c0_28, %c0_29] : memref<4x64x32xbf16, #tpu.memory_space<vmem>>, vector<1x64x32xbf16>
    %25 = vector.shape_cast %24 : vector<1x64x32xbf16> to vector<64x32xbf16>
    %cst_30 = arith.constant dense<0.000000e+00> : vector<24x32xf32>
    %26 = tpu.matmul %23, %25, %cst_30 {dimension_numbers = #tpu.dot_dimension_numbers<[1], [0], [0], [1], [0, 0, 1, 1], [], []>} : vector<24x64xbf16>, vector<64x32xbf16>, vector<24x32xf32> -> vector<24x32xf32>
    %c0_31 = arith.constant 0 : index
    %c0_32 = arith.constant 0 : index
    %27 = vector.load %arg7[%c0_31, %c0_32] : memref<24x32xf32, #tpu.memory_space<vmem>>, vector<24x32xf32>
    %28 = arith.addf %27, %26 : vector<24x32xf32>
    %c0_33 = arith.constant 0 : index
    %c0_34 = arith.constant 0 : index
    %29 = vector.load %arg7[%c0_33, %c0_34] : memref<24x32xf32, #tpu.memory_space<vmem>>, vector<24x32xf32>
    tpu.vector_store %arg7[%c0_33, %c0_34], %28 {strides = array<i32>} : memref<24x32xf32, #tpu.memory_space<vmem>>, vector<24x32xf32>,
    %c0_35 = arith.constant 0 : index
    %c0_36 = arith.constant 0 : index
    %30 = vector.load %arg7[%c0_35, %c0_36] : memref<24x32xf32, #tpu.memory_space<vmem>>, vector<24x32xf32>
    %31 = tpu.iota {dimensions = array<i32: 0>} : vector<24x1xi32>
    %c8_i32 = arith.constant 8 : i32
    %c0_i32 = arith.constant 0 : i32
    %32 = arith.cmpi eq, %c8_i32, %c0_i32 : i32
    %c1_i32 = arith.constant 1 : i32
    %33 = arith.select %32, %c1_i32, %c8_i32 : i32
    %34 = vector.broadcast %33 : i32 to vector<24x1xi32>
    %35 = arith.remsi %31, %34 : vector<24x1xi32>
    %c0_i32_37 = arith.constant 0 : i32
    %36 = vector.broadcast %c0_i32_37 : i32 to vector<24x1xi32>
    %37 = arith.cmpi ne, %35, %36 : vector<24x1xi32>
    %c0_i32_38 = arith.constant 0 : i32
    %38 = vector.broadcast %c0_i32_38 : i32 to vector<24x1xi32>
    %39 = arith.cmpi slt, %35, %38 : vector<24x1xi32>
    %c0_i32_39 = arith.constant 0 : i32
    %40 = arith.cmpi slt, %33, %c0_i32_39 : i32
    %41 = vector.broadcast %40 : i1 to vector<24x1xi1>
    %42 = vector.broadcast %41 : vector<24x1xi1> to vector<24x1xi1>
    %43 = arith.xori %39, %42 : vector<24x1xi1>
    %44 = arith.andi %43, %37 : vector<24x1xi1>
    %45 = vector.broadcast %33 : i32 to vector<24x1xi32>
    %46 = arith.addi %35, %45 : vector<24x1xi32>
    %47 = arith.select %44, %46, %35 : vector<24x1xi1>, vector<24x1xi32>
    %c3_i32 = arith.constant 3 : i32
    %48 = arith.muli %arg1, %c3_i32 : i32
    %c3_i32_40 = arith.constant 3 : i32
    %49 = arith.subi %c3_i32_40, %48 : i32
    %c8_i32_41 = arith.constant 8 : i32
    %50 = arith.muli %49, %c8_i32_41 : i32
    %c3_i32_42 = arith.constant 3 : i32
    %51 = vector.broadcast %c3_i32_42 : i32 to vector<24x1xi32>
    %52 = arith.cmpi slt, %47, %51 : vector<24x1xi32>
    %53 = vector.broadcast %50 : i32 to vector<24x1xi32>
    %54 = arith.cmpi slt, %31, %53 : vector<24x1xi32>
    %55 = arith.andi %52, %54 : vector<24x1xi1>
    %cst_43 = arith.constant 0.000000e+00 : f32
    %56 = vector.shape_cast %55 : vector<24x1xi1> to vector<24x1xi1>
    %57 = vector.broadcast %56 : vector<24x1xi1> to vector<24x32xi1>
    %58 = vector.broadcast %cst_43 : f32 to vector<24x32xf32>
    %59 = arith.select %57, %30, %58 : vector<24x32xi1>, vector<24x32xf32>
    %60 = arith.truncf %59 : vector<24x32xf32> to vector<24x32xbf16>
    %c0_44 = arith.constant 0 : index
    %c0_45 = arith.constant 0 : index
    %c0_46 = arith.constant 0 : index
    %61 = vector.load %arg4[%c0_44, %c0_45, %c0_46] : memref<1x24x32xbf16, #tpu.memory_space<vmem>>, vector<1x24x32xbf16>
    %62 = vector.shape_cast %61 : vector<1x24x32xbf16> to vector<24x32xbf16>
    %63 = vector.shape_cast %60 : vector<24x32xbf16> to vector<1x24x32xbf16>
    tpu.vector_store %arg4[%c0_44, %c0_45, %c0_46], %63 {strides = array<i32>} : memref<1x24x32xbf16, #tpu.memory_space<vmem>>, vector<1x24x32xbf16>,
    %cst_47 = arith.constant dense<0.000000e+00> : vector<32xf32>
    %64 = vector.multi_reduction <add>, %59, %cst_47 [0] : vector<24x32xf32> to vector<32xf32>
    %65 = vector.shape_cast %64 : vector<32xf32> to vector<1x32xf32>
    %c0_48 = arith.constant 0 : index
    %c0_49 = arith.constant 0 : index
    %c0_50 = arith.constant 0 : index
    %66 = vector.load %arg5[%c0_48, %c0_49, %c0_50] : memref<1x1x32xf32, #tpu.memory_space<vmem>>, vector<1x1x32xf32>
    %67 = vector.shape_cast %66 : vector<1x1x32xf32> to vector<1x32xf32>
    %68 = vector.shape_cast %65 : vector<1x32xf32> to vector<1x1x32xf32>
    tpu.vector_store %arg5[%c0_48, %c0_49, %c0_50], %68 {strides = array<i32>} : memref<1x1x32xf32, #tpu.memory_space<vmem>>, vector<1x1x32xf32>,
    %69 = arith.mulf %59, %59 : vector<24x32xf32>
    %cst_51 = arith.constant dense<0.000000e+00> : vector<32xf32>
    %70 = vector.multi_reduction <add>, %69, %cst_51 [0] : vector<24x32xf32> to vector<32xf32>
    %71 = vector.shape_cast %70 : vector<32xf32> to vector<1x32xf32>
    %c0_52 = arith.constant 0 : index
    %c0_53 = arith.constant 0 : index
    %c0_54 = arith.constant 0 : index
    %72 = vector.load %arg6[%c0_52, %c0_53, %c0_54] : memref<1x1x32xf32, #tpu.memory_space<vmem>>, vector<1x1x32xf32>
    %73 = vector.shape_cast %72 : vector<1x1x32xf32> to vector<1x32xf32>
    %74 = vector.shape_cast %71 : vector<1x32xf32> to vector<1x1x32xf32>
    tpu.vector_store %arg6[%c0_52, %c0_53, %c0_54], %74 {strides = array<i32>} : memref<1x1x32xf32, #tpu.memory_space<vmem>>, vector<1x1x32xf32>,
    return
  }
  func.func @transform_0(%arg0: i32, %arg1: i32) -> (i32, i32, i32) {
    %c1_i32 = arith.constant 1 : i32
    %0 = arith.muli %arg0, %c1_i32 : i32
    %1 = arith.addi %0, %arg1 : i32
    %c0_i32 = arith.constant 0 : i32
    %c0_i32_0 = arith.constant 0 : i32
    %c0_i32_1 = arith.constant 0 : i32
    return %1, %c0_i32, %c0_i32_0 : i32, i32, i32
  }
  func.func @transform_1(%arg0: i32, %arg1: i32) -> (i32, i32, i32) {
    %c0_i32 = arith.constant 0 : i32
    %c0_i32_0 = arith.constant 0 : i32
    %c0_i32_1 = arith.constant 0 : i32
    %c0_i32_2 = arith.constant 0 : i32
    return %c0_i32, %c0_i32_0, %c0_i32_1 : i32, i32, i32
  }
  func.func @transform_2(%arg0: i32, %arg1: i32) -> (i32, i32, i32) {
    %c0_i32 = arith.constant 0 : i32
    %c0_i32_0 = arith.constant 0 : i32
    return %arg0, %arg1, %c0_i32 : i32, i32, i32
  }
  func.func @transform_3(%arg0: i32, %arg1: i32) -> (i32, i32, i32) {
    %c0_i32 = arith.constant 0 : i32
    %c0_i32_0 = arith.constant 0 : i32
    return %arg0, %arg1, %c0_i32 : i32, i32, i32
  }
  func.func @transform_4(%arg0: i32, %arg1: i32) -> (i32, i32, i32) {
    %c0_i32 = arith.constant 0 : i32
    %c0_i32_0 = arith.constant 0 : i32
    return %arg0, %arg1, %c0_i32 : i32, i32, i32
  }
}

module attributes {stable_mosaic.version = 11 : i64} {
  func.func @_scale_shift_lrelu_kernel(%arg0: i32, %arg1: i32, %arg2: memref<1x24x32xbf16, #tpu.memory_space<vmem>>, %arg3: memref<1x1x32xf32, #tpu.memory_space<vmem>>, %arg4: memref<1x1x32xf32, #tpu.memory_space<vmem>>, %arg5: memref<1x24x32xbf16, #tpu.memory_space<vmem>>) attributes {dimension_semantics = [#tpu.dimension_semantics<parallel>, #tpu.dimension_semantics<parallel>], iteration_bounds = array<i64: 2, 1>, scalar_prefetch = 0 : i64, scratch_operands = 0 : i64, tpu.core_type = #tpu.core_type<tc>, window_params = [{transform_indices = @transform_0, window_bounds = array<i64: 1, 24, 32>}, {pipeline_mode = #tpu.pipeline_mode<synchronous>, transform_indices = @transform_1, window_bounds = array<i64: 1, 1, 32>}, {pipeline_mode = #tpu.pipeline_mode<synchronous>, transform_indices = @transform_2, window_bounds = array<i64: 1, 1, 32>}, {transform_indices = @transform_3, window_bounds = array<i64: 1, 24, 32>}]} {
    %c0 = arith.constant 0 : index
    %c0_0 = arith.constant 0 : index
    %c0_1 = arith.constant 0 : index
    %0 = vector.load %arg2[%c0, %c0_0, %c0_1] : memref<1x24x32xbf16, #tpu.memory_space<vmem>>, vector<1x24x32xbf16>
    %1 = vector.shape_cast %0 : vector<1x24x32xbf16> to vector<24x32xbf16>
    %2 = arith.extf %1 : vector<24x32xbf16> to vector<24x32xf32>
    %c0_2 = arith.constant 0 : index
    %c0_3 = arith.constant 0 : index
    %c0_4 = arith.constant 0 : index
    %3 = vector.load %arg3[%c0_2, %c0_3, %c0_4] : memref<1x1x32xf32, #tpu.memory_space<vmem>>, vector<1x1x32xf32>
    %4 = vector.shape_cast %3 : vector<1x1x32xf32> to vector<1x32xf32>
    %5 = vector.broadcast %4 : vector<1x32xf32> to vector<24x32xf32>
    %6 = arith.mulf %2, %5 : vector<24x32xf32>
    %c0_5 = arith.constant 0 : index
    %c0_6 = arith.constant 0 : index
    %c0_7 = arith.constant 0 : index
    %7 = vector.load %arg4[%c0_5, %c0_6, %c0_7] : memref<1x1x32xf32, #tpu.memory_space<vmem>>, vector<1x1x32xf32>
    %8 = vector.shape_cast %7 : vector<1x1x32xf32> to vector<1x32xf32>
    %9 = vector.broadcast %8 : vector<1x32xf32> to vector<24x32xf32>
    %10 = arith.addf %6, %9 : vector<24x32xf32>
    %cst = arith.constant 0.000000e+00 : f32
    %11 = vector.broadcast %cst : f32 to vector<24x32xf32>
    %12 = arith.cmpf ogt, %10, %11 : vector<24x32xf32>
    %cst_8 = arith.constant 2.000000e-01 : f32
    %13 = vector.broadcast %cst_8 : f32 to vector<24x32xf32>
    %14 = arith.mulf %13, %10 : vector<24x32xf32>
    %15 = arith.select %12, %10, %14 : vector<24x32xi1>, vector<24x32xf32>
    %16 = arith.truncf %15 : vector<24x32xf32> to vector<24x32xbf16>
    %c0_9 = arith.constant 0 : index
    %c0_10 = arith.constant 0 : index
    %c0_11 = arith.constant 0 : index
    %17 = vector.load %arg5[%c0_9, %c0_10, %c0_11] : memref<1x24x32xbf16, #tpu.memory_space<vmem>>, vector<1x24x32xbf16>
    %18 = vector.shape_cast %17 : vector<1x24x32xbf16> to vector<24x32xbf16>
    %19 = vector.shape_cast %16 : vector<24x32xbf16> to vector<1x24x32xbf16>
    tpu.vector_store %arg5[%c0_9, %c0_10, %c0_11], %19 {strides = array<i32>} : memref<1x24x32xbf16, #tpu.memory_space<vmem>>, vector<1x24x32xbf16>,
    return
  }
  func.func @transform_0(%arg0: i32, %arg1: i32) -> (i32, i32, i32) {
    %c0_i32 = arith.constant 0 : i32
    %c0_i32_0 = arith.constant 0 : i32
    return %arg0, %arg1, %c0_i32 : i32, i32, i32
  }
  func.func @transform_1(%arg0: i32, %arg1: i32) -> (i32, i32, i32) {
    %c0_i32 = arith.constant 0 : i32
    %c0_i32_0 = arith.constant 0 : i32
    %c0_i32_1 = arith.constant 0 : i32
    %c0_i32_2 = arith.constant 0 : i32
    return %c0_i32, %c0_i32_0, %c0_i32_1 : i32, i32, i32
  }
  func.func @transform_2(%arg0: i32, %arg1: i32) -> (i32, i32, i32) {
    %c0_i32 = arith.constant 0 : i32
    %c0_i32_0 = arith.constant 0 : i32
    %c0_i32_1 = arith.constant 0 : i32
    %c0_i32_2 = arith.constant 0 : i32
    return %c0_i32, %c0_i32_0, %c0_i32_1 : i32, i32, i32
  }
  func.func @transform_3(%arg0: i32, %arg1: i32) -> (i32, i32, i32) {
    %c0_i32 = arith.constant 0 : i32
    %c0_i32_0 = arith.constant 0 : i32
    return %arg0, %arg1, %c0_i32 : i32, i32, i32
  }
}

module attributes {stable_mosaic.version = 11 : i64} {
  func.func @_scale_shift_lrelu_kernel(%arg0: i32, %arg1: i32, %arg2: memref<1x32x64xbf16, #tpu.memory_space<vmem>>, %arg3: memref<1x1x64xf32, #tpu.memory_space<vmem>>, %arg4: memref<1x1x64xf32, #tpu.memory_space<vmem>>, %arg5: memref<1x32x64xbf16, #tpu.memory_space<vmem>>) attributes {dimension_semantics = [#tpu.dimension_semantics<parallel>, #tpu.dimension_semantics<parallel>], iteration_bounds = array<i64: 2, 1>, scalar_prefetch = 0 : i64, scratch_operands = 0 : i64, tpu.core_type = #tpu.core_type<tc>, window_params = [{transform_indices = @transform_0, window_bounds = array<i64: 1, 32, 64>}, {pipeline_mode = #tpu.pipeline_mode<synchronous>, transform_indices = @transform_1, window_bounds = array<i64: 1, 1, 64>}, {pipeline_mode = #tpu.pipeline_mode<synchronous>, transform_indices = @transform_2, window_bounds = array<i64: 1, 1, 64>}, {transform_indices = @transform_3, window_bounds = array<i64: 1, 32, 64>}]} {
    %c0 = arith.constant 0 : index
    %c0_0 = arith.constant 0 : index
    %c0_1 = arith.constant 0 : index
    %0 = vector.load %arg2[%c0, %c0_0, %c0_1] : memref<1x32x64xbf16, #tpu.memory_space<vmem>>, vector<1x32x64xbf16>
    %1 = vector.shape_cast %0 : vector<1x32x64xbf16> to vector<32x64xbf16>
    %2 = arith.extf %1 : vector<32x64xbf16> to vector<32x64xf32>
    %c0_2 = arith.constant 0 : index
    %c0_3 = arith.constant 0 : index
    %c0_4 = arith.constant 0 : index
    %3 = vector.load %arg3[%c0_2, %c0_3, %c0_4] : memref<1x1x64xf32, #tpu.memory_space<vmem>>, vector<1x1x64xf32>
    %4 = vector.shape_cast %3 : vector<1x1x64xf32> to vector<1x64xf32>
    %5 = vector.broadcast %4 : vector<1x64xf32> to vector<32x64xf32>
    %6 = arith.mulf %2, %5 : vector<32x64xf32>
    %c0_5 = arith.constant 0 : index
    %c0_6 = arith.constant 0 : index
    %c0_7 = arith.constant 0 : index
    %7 = vector.load %arg4[%c0_5, %c0_6, %c0_7] : memref<1x1x64xf32, #tpu.memory_space<vmem>>, vector<1x1x64xf32>
    %8 = vector.shape_cast %7 : vector<1x1x64xf32> to vector<1x64xf32>
    %9 = vector.broadcast %8 : vector<1x64xf32> to vector<32x64xf32>
    %10 = arith.addf %6, %9 : vector<32x64xf32>
    %cst = arith.constant 0.000000e+00 : f32
    %11 = vector.broadcast %cst : f32 to vector<32x64xf32>
    %12 = arith.cmpf ogt, %10, %11 : vector<32x64xf32>
    %cst_8 = arith.constant 2.000000e-01 : f32
    %13 = vector.broadcast %cst_8 : f32 to vector<32x64xf32>
    %14 = arith.mulf %13, %10 : vector<32x64xf32>
    %15 = arith.select %12, %10, %14 : vector<32x64xi1>, vector<32x64xf32>
    %16 = arith.truncf %15 : vector<32x64xf32> to vector<32x64xbf16>
    %c0_9 = arith.constant 0 : index
    %c0_10 = arith.constant 0 : index
    %c0_11 = arith.constant 0 : index
    %17 = vector.load %arg5[%c0_9, %c0_10, %c0_11] : memref<1x32x64xbf16, #tpu.memory_space<vmem>>, vector<1x32x64xbf16>
    %18 = vector.shape_cast %17 : vector<1x32x64xbf16> to vector<32x64xbf16>
    %19 = vector.shape_cast %16 : vector<32x64xbf16> to vector<1x32x64xbf16>
    tpu.vector_store %arg5[%c0_9, %c0_10, %c0_11], %19 {strides = array<i32>} : memref<1x32x64xbf16, #tpu.memory_space<vmem>>, vector<1x32x64xbf16>,
    return
  }
  func.func @transform_0(%arg0: i32, %arg1: i32) -> (i32, i32, i32) {
    %c0_i32 = arith.constant 0 : i32
    %c0_i32_0 = arith.constant 0 : i32
    return %arg0, %arg1, %c0_i32 : i32, i32, i32
  }
  func.func @transform_1(%arg0: i32, %arg1: i32) -> (i32, i32, i32) {
    %c0_i32 = arith.constant 0 : i32
    %c0_i32_0 = arith.constant 0 : i32
    %c0_i32_1 = arith.constant 0 : i32
    %c0_i32_2 = arith.constant 0 : i32
    return %c0_i32, %c0_i32_0, %c0_i32_1 : i32, i32, i32
  }
  func.func @transform_2(%arg0: i32, %arg1: i32) -> (i32, i32, i32) {
    %c0_i32 = arith.constant 0 : i32
    %c0_i32_0 = arith.constant 0 : i32
    %c0_i32_1 = arith.constant 0 : i32
    %c0_i32_2 = arith.constant 0 : i32
    return %c0_i32, %c0_i32_0, %c0_i32_1 : i32, i32, i32
  }
  func.func @transform_3(%arg0: i32, %arg1: i32) -> (i32, i32, i32) {
    %c0_i32 = arith.constant 0 : i32
    %c0_i32_0 = arith.constant 0 : i32
    return %arg0, %arg1, %c0_i32 : i32, i32, i32
  }
}

module attributes {stable_mosaic.version = 11 : i64} {
  func.func @_conv_stats_kernel(%arg0: i32, %arg1: i32, %arg2: memref<1x64x32xbf16, #tpu.memory_space<vmem>>, %arg3: memref<16x32x64xbf16, #tpu.memory_space<vmem>>, %arg4: memref<1x32x64xbf16, #tpu.memory_space<vmem>>, %arg5: memref<1x1x64xf32, #tpu.memory_space<vmem>>, %arg6: memref<1x1x64xf32, #tpu.memory_space<vmem>>, %arg7: memref<32x64xf32, #tpu.memory_space<vmem>>) attributes {dimension_semantics = [#tpu.dimension_semantics<parallel>, #tpu.dimension_semantics<parallel>], iteration_bounds = array<i64: 2, 1>, scalar_prefetch = 0 : i64, scratch_operands = 1 : i64, tpu.core_type = #tpu.core_type<tc>, window_params = [{transform_indices = @transform_0, window_bounds = array<i64: 1, 64, 32>}, {pipeline_mode = #tpu.pipeline_mode<synchronous>, transform_indices = @transform_1, window_bounds = array<i64: 16, 32, 64>}, {transform_indices = @transform_2, window_bounds = array<i64: 1, 32, 64>}, {transform_indices = @transform_3, window_bounds = array<i64: 1, 1, 64>}, {transform_indices = @transform_4, window_bounds = array<i64: 1, 1, 64>}]} {
    %c0 = arith.constant 0 : index
    %c0_0 = arith.constant 0 : index
    %c0_1 = arith.constant 0 : index
    %0 = vector.load %arg2[%c0, %c0_0, %c0_1] : memref<1x64x32xbf16, #tpu.memory_space<vmem>>, vector<1x32x32xbf16>
    %1 = vector.shape_cast %0 : vector<1x32x32xbf16> to vector<32x32xbf16>
    %c0_2 = arith.constant 0 : index
    %c0_3 = arith.constant 0 : index
    %c0_4 = arith.constant 0 : index
    %2 = vector.load %arg3[%c0_2, %c0_3, %c0_4] : memref<16x32x64xbf16, #tpu.memory_space<vmem>>, vector<1x32x64xbf16>
    %3 = vector.shape_cast %2 : vector<1x32x64xbf16> to vector<32x64xbf16>
    %cst = arith.constant dense<0.000000e+00> : vector<32x64xf32>
    %4 = tpu.matmul %1, %3, %cst {dimension_numbers = #tpu.dot_dimension_numbers<[1], [0], [0], [1], [0, 0, 1, 1], [], []>} : vector<32x32xbf16>, vector<32x64xbf16>, vector<32x64xf32> -> vector<32x64xf32>
    %c0_5 = arith.constant 0 : index
    %c0_6 = arith.constant 0 : index
    %5 = vector.load %arg7[%c0_5, %c0_6] : memref<32x64xf32, #tpu.memory_space<vmem>>, vector<32x64xf32>
    tpu.vector_store %arg7[%c0_5, %c0_6], %4 {strides = array<i32>} : memref<32x64xf32, #tpu.memory_space<vmem>>, vector<32x64xf32>,
    %c0_7 = arith.constant 0 : index
    %c1 = arith.constant 1 : index
    %c0_8 = arith.constant 0 : index
    %6 = vector.load %arg2[%c0_7, %c1, %c0_8] : memref<1x64x32xbf16, #tpu.memory_space<vmem>>, vector<1x32x32xbf16>
    %7 = vector.shape_cast %6 : vector<1x32x32xbf16> to vector<32x32xbf16>
    %c1_9 = arith.constant 1 : index
    %c0_10 = arith.constant 0 : index
    %c0_11 = arith.constant 0 : index
    %8 = vector.load %arg3[%c1_9, %c0_10, %c0_11] : memref<16x32x64xbf16, #tpu.memory_space<vmem>>, vector<1x32x64xbf16>
    %9 = vector.shape_cast %8 : vector<1x32x64xbf16> to vector<32x64xbf16>
    %cst_12 = arith.constant dense<0.000000e+00> : vector<32x64xf32>
    %10 = tpu.matmul %7, %9, %cst_12 {dimension_numbers = #tpu.dot_dimension_numbers<[1], [0], [0], [1], [0, 0, 1, 1], [], []>} : vector<32x32xbf16>, vector<32x64xbf16>, vector<32x64xf32> -> vector<32x64xf32>
    %c0_13 = arith.constant 0 : index
    %c0_14 = arith.constant 0 : index
    %11 = vector.load %arg7[%c0_13, %c0_14] : memref<32x64xf32, #tpu.memory_space<vmem>>, vector<32x64xf32>
    %12 = arith.addf %11, %10 : vector<32x64xf32>
    %c0_15 = arith.constant 0 : index
    %c0_16 = arith.constant 0 : index
    %13 = vector.load %arg7[%c0_15, %c0_16] : memref<32x64xf32, #tpu.memory_space<vmem>>, vector<32x64xf32>
    tpu.vector_store %arg7[%c0_15, %c0_16], %12 {strides = array<i32>} : memref<32x64xf32, #tpu.memory_space<vmem>>, vector<32x64xf32>,
    %c0_17 = arith.constant 0 : index
    %c2 = arith.constant 2 : index
    %c0_18 = arith.constant 0 : index
    %14 = vector.load %arg2[%c0_17, %c2, %c0_18] : memref<1x64x32xbf16, #tpu.memory_space<vmem>>, vector<1x32x32xbf16>
    %15 = vector.shape_cast %14 : vector<1x32x32xbf16> to vector<32x32xbf16>
    %c2_19 = arith.constant 2 : index
    %c0_20 = arith.constant 0 : index
    %c0_21 = arith.constant 0 : index
    %16 = vector.load %arg3[%c2_19, %c0_20, %c0_21] : memref<16x32x64xbf16, #tpu.memory_space<vmem>>, vector<1x32x64xbf16>
    %17 = vector.shape_cast %16 : vector<1x32x64xbf16> to vector<32x64xbf16>
    %cst_22 = arith.constant dense<0.000000e+00> : vector<32x64xf32>
    %18 = tpu.matmul %15, %17, %cst_22 {dimension_numbers = #tpu.dot_dimension_numbers<[1], [0], [0], [1], [0, 0, 1, 1], [], []>} : vector<32x32xbf16>, vector<32x64xbf16>, vector<32x64xf32> -> vector<32x64xf32>
    %c0_23 = arith.constant 0 : index
    %c0_24 = arith.constant 0 : index
    %19 = vector.load %arg7[%c0_23, %c0_24] : memref<32x64xf32, #tpu.memory_space<vmem>>, vector<32x64xf32>
    %20 = arith.addf %19, %18 : vector<32x64xf32>
    %c0_25 = arith.constant 0 : index
    %c0_26 = arith.constant 0 : index
    %21 = vector.load %arg7[%c0_25, %c0_26] : memref<32x64xf32, #tpu.memory_space<vmem>>, vector<32x64xf32>
    tpu.vector_store %arg7[%c0_25, %c0_26], %20 {strides = array<i32>} : memref<32x64xf32, #tpu.memory_space<vmem>>, vector<32x64xf32>,
    %c0_27 = arith.constant 0 : index
    %c3 = arith.constant 3 : index
    %c0_28 = arith.constant 0 : index
    %22 = vector.load %arg2[%c0_27, %c3, %c0_28] : memref<1x64x32xbf16, #tpu.memory_space<vmem>>, vector<1x32x32xbf16>
    %23 = vector.shape_cast %22 : vector<1x32x32xbf16> to vector<32x32xbf16>
    %c3_29 = arith.constant 3 : index
    %c0_30 = arith.constant 0 : index
    %c0_31 = arith.constant 0 : index
    %24 = vector.load %arg3[%c3_29, %c0_30, %c0_31] : memref<16x32x64xbf16, #tpu.memory_space<vmem>>, vector<1x32x64xbf16>
    %25 = vector.shape_cast %24 : vector<1x32x64xbf16> to vector<32x64xbf16>
    %cst_32 = arith.constant dense<0.000000e+00> : vector<32x64xf32>
    %26 = tpu.matmul %23, %25, %cst_32 {dimension_numbers = #tpu.dot_dimension_numbers<[1], [0], [0], [1], [0, 0, 1, 1], [], []>} : vector<32x32xbf16>, vector<32x64xbf16>, vector<32x64xf32> -> vector<32x64xf32>
    %c0_33 = arith.constant 0 : index
    %c0_34 = arith.constant 0 : index
    %27 = vector.load %arg7[%c0_33, %c0_34] : memref<32x64xf32, #tpu.memory_space<vmem>>, vector<32x64xf32>
    %28 = arith.addf %27, %26 : vector<32x64xf32>
    %c0_35 = arith.constant 0 : index
    %c0_36 = arith.constant 0 : index
    %29 = vector.load %arg7[%c0_35, %c0_36] : memref<32x64xf32, #tpu.memory_space<vmem>>, vector<32x64xf32>
    tpu.vector_store %arg7[%c0_35, %c0_36], %28 {strides = array<i32>} : memref<32x64xf32, #tpu.memory_space<vmem>>, vector<32x64xf32>,
    %c0_37 = arith.constant 0 : index
    %c8 = arith.constant 8 : index
    %c0_38 = arith.constant 0 : index
    %30 = vector.load %arg2[%c0_37, %c8, %c0_38] : memref<1x64x32xbf16, #tpu.memory_space<vmem>>, vector<1x32x32xbf16>
    %31 = vector.shape_cast %30 : vector<1x32x32xbf16> to vector<32x32xbf16>
    %c4 = arith.constant 4 : index
    %c0_39 = arith.constant 0 : index
    %c0_40 = arith.constant 0 : index
    %32 = vector.load %arg3[%c4, %c0_39, %c0_40] : memref<16x32x64xbf16, #tpu.memory_space<vmem>>, vector<1x32x64xbf16>
    %33 = vector.shape_cast %32 : vector<1x32x64xbf16> to vector<32x64xbf16>
    %cst_41 = arith.constant dense<0.000000e+00> : vector<32x64xf32>
    %34 = tpu.matmul %31, %33, %cst_41 {dimension_numbers = #tpu.dot_dimension_numbers<[1], [0], [0], [1], [0, 0, 1, 1], [], []>} : vector<32x32xbf16>, vector<32x64xbf16>, vector<32x64xf32> -> vector<32x64xf32>
    %c0_42 = arith.constant 0 : index
    %c0_43 = arith.constant 0 : index
    %35 = vector.load %arg7[%c0_42, %c0_43] : memref<32x64xf32, #tpu.memory_space<vmem>>, vector<32x64xf32>
    %36 = arith.addf %35, %34 : vector<32x64xf32>
    %c0_44 = arith.constant 0 : index
    %c0_45 = arith.constant 0 : index
    %37 = vector.load %arg7[%c0_44, %c0_45] : memref<32x64xf32, #tpu.memory_space<vmem>>, vector<32x64xf32>
    tpu.vector_store %arg7[%c0_44, %c0_45], %36 {strides = array<i32>} : memref<32x64xf32, #tpu.memory_space<vmem>>, vector<32x64xf32>,
    %c0_46 = arith.constant 0 : index
    %c9 = arith.constant 9 : index
    %c0_47 = arith.constant 0 : index
    %38 = vector.load %arg2[%c0_46, %c9, %c0_47] : memref<1x64x32xbf16, #tpu.memory_space<vmem>>, vector<1x32x32xbf16>
    %39 = vector.shape_cast %38 : vector<1x32x32xbf16> to vector<32x32xbf16>
    %c5 = arith.constant 5 : index
    %c0_48 = arith.constant 0 : index
    %c0_49 = arith.constant 0 : index
    %40 = vector.load %arg3[%c5, %c0_48, %c0_49] : memref<16x32x64xbf16, #tpu.memory_space<vmem>>, vector<1x32x64xbf16>
    %41 = vector.shape_cast %40 : vector<1x32x64xbf16> to vector<32x64xbf16>
    %cst_50 = arith.constant dense<0.000000e+00> : vector<32x64xf32>
    %42 = tpu.matmul %39, %41, %cst_50 {dimension_numbers = #tpu.dot_dimension_numbers<[1], [0], [0], [1], [0, 0, 1, 1], [], []>} : vector<32x32xbf16>, vector<32x64xbf16>, vector<32x64xf32> -> vector<32x64xf32>
    %c0_51 = arith.constant 0 : index
    %c0_52 = arith.constant 0 : index
    %43 = vector.load %arg7[%c0_51, %c0_52] : memref<32x64xf32, #tpu.memory_space<vmem>>, vector<32x64xf32>
    %44 = arith.addf %43, %42 : vector<32x64xf32>
    %c0_53 = arith.constant 0 : index
    %c0_54 = arith.constant 0 : index
    %45 = vector.load %arg7[%c0_53, %c0_54] : memref<32x64xf32, #tpu.memory_space<vmem>>, vector<32x64xf32>
    tpu.vector_store %arg7[%c0_53, %c0_54], %44 {strides = array<i32>} : memref<32x64xf32, #tpu.memory_space<vmem>>, vector<32x64xf32>,
    %c0_55 = arith.constant 0 : index
    %c10 = arith.constant 10 : index
    %c0_56 = arith.constant 0 : index
    %46 = vector.load %arg2[%c0_55, %c10, %c0_56] : memref<1x64x32xbf16, #tpu.memory_space<vmem>>, vector<1x32x32xbf16>
    %47 = vector.shape_cast %46 : vector<1x32x32xbf16> to vector<32x32xbf16>
    %c6 = arith.constant 6 : index
    %c0_57 = arith.constant 0 : index
    %c0_58 = arith.constant 0 : index
    %48 = vector.load %arg3[%c6, %c0_57, %c0_58] : memref<16x32x64xbf16, #tpu.memory_space<vmem>>, vector<1x32x64xbf16>
    %49 = vector.shape_cast %48 : vector<1x32x64xbf16> to vector<32x64xbf16>
    %cst_59 = arith.constant dense<0.000000e+00> : vector<32x64xf32>
    %50 = tpu.matmul %47, %49, %cst_59 {dimension_numbers = #tpu.dot_dimension_numbers<[1], [0], [0], [1], [0, 0, 1, 1], [], []>} : vector<32x32xbf16>, vector<32x64xbf16>, vector<32x64xf32> -> vector<32x64xf32>
    %c0_60 = arith.constant 0 : index
    %c0_61 = arith.constant 0 : index
    %51 = vector.load %arg7[%c0_60, %c0_61] : memref<32x64xf32, #tpu.memory_space<vmem>>, vector<32x64xf32>
    %52 = arith.addf %51, %50 : vector<32x64xf32>
    %c0_62 = arith.constant 0 : index
    %c0_63 = arith.constant 0 : index
    %53 = vector.load %arg7[%c0_62, %c0_63] : memref<32x64xf32, #tpu.memory_space<vmem>>, vector<32x64xf32>
    tpu.vector_store %arg7[%c0_62, %c0_63], %52 {strides = array<i32>} : memref<32x64xf32, #tpu.memory_space<vmem>>, vector<32x64xf32>,
    %c0_64 = arith.constant 0 : index
    %c11 = arith.constant 11 : index
    %c0_65 = arith.constant 0 : index
    %54 = vector.load %arg2[%c0_64, %c11, %c0_65] : memref<1x64x32xbf16, #tpu.memory_space<vmem>>, vector<1x32x32xbf16>
    %55 = vector.shape_cast %54 : vector<1x32x32xbf16> to vector<32x32xbf16>
    %c7 = arith.constant 7 : index
    %c0_66 = arith.constant 0 : index
    %c0_67 = arith.constant 0 : index
    %56 = vector.load %arg3[%c7, %c0_66, %c0_67] : memref<16x32x64xbf16, #tpu.memory_space<vmem>>, vector<1x32x64xbf16>
    %57 = vector.shape_cast %56 : vector<1x32x64xbf16> to vector<32x64xbf16>
    %cst_68 = arith.constant dense<0.000000e+00> : vector<32x64xf32>
    %58 = tpu.matmul %55, %57, %cst_68 {dimension_numbers = #tpu.dot_dimension_numbers<[1], [0], [0], [1], [0, 0, 1, 1], [], []>} : vector<32x32xbf16>, vector<32x64xbf16>, vector<32x64xf32> -> vector<32x64xf32>
    %c0_69 = arith.constant 0 : index
    %c0_70 = arith.constant 0 : index
    %59 = vector.load %arg7[%c0_69, %c0_70] : memref<32x64xf32, #tpu.memory_space<vmem>>, vector<32x64xf32>
    %60 = arith.addf %59, %58 : vector<32x64xf32>
    %c0_71 = arith.constant 0 : index
    %c0_72 = arith.constant 0 : index
    %61 = vector.load %arg7[%c0_71, %c0_72] : memref<32x64xf32, #tpu.memory_space<vmem>>, vector<32x64xf32>
    tpu.vector_store %arg7[%c0_71, %c0_72], %60 {strides = array<i32>} : memref<32x64xf32, #tpu.memory_space<vmem>>, vector<32x64xf32>,
    %c0_73 = arith.constant 0 : index
    %c16 = arith.constant 16 : index
    %c0_74 = arith.constant 0 : index
    %62 = vector.load %arg2[%c0_73, %c16, %c0_74] : memref<1x64x32xbf16, #tpu.memory_space<vmem>>, vector<1x32x32xbf16>
    %63 = vector.shape_cast %62 : vector<1x32x32xbf16> to vector<32x32xbf16>
    %c8_75 = arith.constant 8 : index
    %c0_76 = arith.constant 0 : index
    %c0_77 = arith.constant 0 : index
    %64 = vector.load %arg3[%c8_75, %c0_76, %c0_77] : memref<16x32x64xbf16, #tpu.memory_space<vmem>>, vector<1x32x64xbf16>
    %65 = vector.shape_cast %64 : vector<1x32x64xbf16> to vector<32x64xbf16>
    %cst_78 = arith.constant dense<0.000000e+00> : vector<32x64xf32>
    %66 = tpu.matmul %63, %65, %cst_78 {dimension_numbers = #tpu.dot_dimension_numbers<[1], [0], [0], [1], [0, 0, 1, 1], [], []>} : vector<32x32xbf16>, vector<32x64xbf16>, vector<32x64xf32> -> vector<32x64xf32>
    %c0_79 = arith.constant 0 : index
    %c0_80 = arith.constant 0 : index
    %67 = vector.load %arg7[%c0_79, %c0_80] : memref<32x64xf32, #tpu.memory_space<vmem>>, vector<32x64xf32>
    %68 = arith.addf %67, %66 : vector<32x64xf32>
    %c0_81 = arith.constant 0 : index
    %c0_82 = arith.constant 0 : index
    %69 = vector.load %arg7[%c0_81, %c0_82] : memref<32x64xf32, #tpu.memory_space<vmem>>, vector<32x64xf32>
    tpu.vector_store %arg7[%c0_81, %c0_82], %68 {strides = array<i32>} : memref<32x64xf32, #tpu.memory_space<vmem>>, vector<32x64xf32>,
    %c0_83 = arith.constant 0 : index
    %c17 = arith.constant 17 : index
    %c0_84 = arith.constant 0 : index
    %70 = vector.load %arg2[%c0_83, %c17, %c0_84] : memref<1x64x32xbf16, #tpu.memory_space<vmem>>, vector<1x32x32xbf16>
    %71 = vector.shape_cast %70 : vector<1x32x32xbf16> to vector<32x32xbf16>
    %c9_85 = arith.constant 9 : index
    %c0_86 = arith.constant 0 : index
    %c0_87 = arith.constant 0 : index
    %72 = vector.load %arg3[%c9_85, %c0_86, %c0_87] : memref<16x32x64xbf16, #tpu.memory_space<vmem>>, vector<1x32x64xbf16>
    %73 = vector.shape_cast %72 : vector<1x32x64xbf16> to vector<32x64xbf16>
    %cst_88 = arith.constant dense<0.000000e+00> : vector<32x64xf32>
    %74 = tpu.matmul %71, %73, %cst_88 {dimension_numbers = #tpu.dot_dimension_numbers<[1], [0], [0], [1], [0, 0, 1, 1], [], []>} : vector<32x32xbf16>, vector<32x64xbf16>, vector<32x64xf32> -> vector<32x64xf32>
    %c0_89 = arith.constant 0 : index
    %c0_90 = arith.constant 0 : index
    %75 = vector.load %arg7[%c0_89, %c0_90] : memref<32x64xf32, #tpu.memory_space<vmem>>, vector<32x64xf32>
    %76 = arith.addf %75, %74 : vector<32x64xf32>
    %c0_91 = arith.constant 0 : index
    %c0_92 = arith.constant 0 : index
    %77 = vector.load %arg7[%c0_91, %c0_92] : memref<32x64xf32, #tpu.memory_space<vmem>>, vector<32x64xf32>
    tpu.vector_store %arg7[%c0_91, %c0_92], %76 {strides = array<i32>} : memref<32x64xf32, #tpu.memory_space<vmem>>, vector<32x64xf32>,
    %c0_93 = arith.constant 0 : index
    %c18 = arith.constant 18 : index
    %c0_94 = arith.constant 0 : index
    %78 = vector.load %arg2[%c0_93, %c18, %c0_94] : memref<1x64x32xbf16, #tpu.memory_space<vmem>>, vector<1x32x32xbf16>
    %79 = vector.shape_cast %78 : vector<1x32x32xbf16> to vector<32x32xbf16>
    %c10_95 = arith.constant 10 : index
    %c0_96 = arith.constant 0 : index
    %c0_97 = arith.constant 0 : index
    %80 = vector.load %arg3[%c10_95, %c0_96, %c0_97] : memref<16x32x64xbf16, #tpu.memory_space<vmem>>, vector<1x32x64xbf16>
    %81 = vector.shape_cast %80 : vector<1x32x64xbf16> to vector<32x64xbf16>
    %cst_98 = arith.constant dense<0.000000e+00> : vector<32x64xf32>
    %82 = tpu.matmul %79, %81, %cst_98 {dimension_numbers = #tpu.dot_dimension_numbers<[1], [0], [0], [1], [0, 0, 1, 1], [], []>} : vector<32x32xbf16>, vector<32x64xbf16>, vector<32x64xf32> -> vector<32x64xf32>
    %c0_99 = arith.constant 0 : index
    %c0_100 = arith.constant 0 : index
    %83 = vector.load %arg7[%c0_99, %c0_100] : memref<32x64xf32, #tpu.memory_space<vmem>>, vector<32x64xf32>
    %84 = arith.addf %83, %82 : vector<32x64xf32>
    %c0_101 = arith.constant 0 : index
    %c0_102 = arith.constant 0 : index
    %85 = vector.load %arg7[%c0_101, %c0_102] : memref<32x64xf32, #tpu.memory_space<vmem>>, vector<32x64xf32>
    tpu.vector_store %arg7[%c0_101, %c0_102], %84 {strides = array<i32>} : memref<32x64xf32, #tpu.memory_space<vmem>>, vector<32x64xf32>,
    %c0_103 = arith.constant 0 : index
    %c19 = arith.constant 19 : index
    %c0_104 = arith.constant 0 : index
    %86 = vector.load %arg2[%c0_103, %c19, %c0_104] : memref<1x64x32xbf16, #tpu.memory_space<vmem>>, vector<1x32x32xbf16>
    %87 = vector.shape_cast %86 : vector<1x32x32xbf16> to vector<32x32xbf16>
    %c11_105 = arith.constant 11 : index
    %c0_106 = arith.constant 0 : index
    %c0_107 = arith.constant 0 : index
    %88 = vector.load %arg3[%c11_105, %c0_106, %c0_107] : memref<16x32x64xbf16, #tpu.memory_space<vmem>>, vector<1x32x64xbf16>
    %89 = vector.shape_cast %88 : vector<1x32x64xbf16> to vector<32x64xbf16>
    %cst_108 = arith.constant dense<0.000000e+00> : vector<32x64xf32>
    %90 = tpu.matmul %87, %89, %cst_108 {dimension_numbers = #tpu.dot_dimension_numbers<[1], [0], [0], [1], [0, 0, 1, 1], [], []>} : vector<32x32xbf16>, vector<32x64xbf16>, vector<32x64xf32> -> vector<32x64xf32>
    %c0_109 = arith.constant 0 : index
    %c0_110 = arith.constant 0 : index
    %91 = vector.load %arg7[%c0_109, %c0_110] : memref<32x64xf32, #tpu.memory_space<vmem>>, vector<32x64xf32>
    %92 = arith.addf %91, %90 : vector<32x64xf32>
    %c0_111 = arith.constant 0 : index
    %c0_112 = arith.constant 0 : index
    %93 = vector.load %arg7[%c0_111, %c0_112] : memref<32x64xf32, #tpu.memory_space<vmem>>, vector<32x64xf32>
    tpu.vector_store %arg7[%c0_111, %c0_112], %92 {strides = array<i32>} : memref<32x64xf32, #tpu.memory_space<vmem>>, vector<32x64xf32>,
    %c0_113 = arith.constant 0 : index
    %c24 = arith.constant 24 : index
    %c0_114 = arith.constant 0 : index
    %94 = vector.load %arg2[%c0_113, %c24, %c0_114] : memref<1x64x32xbf16, #tpu.memory_space<vmem>>, vector<1x32x32xbf16>
    %95 = vector.shape_cast %94 : vector<1x32x32xbf16> to vector<32x32xbf16>
    %c12 = arith.constant 12 : index
    %c0_115 = arith.constant 0 : index
    %c0_116 = arith.constant 0 : index
    %96 = vector.load %arg3[%c12, %c0_115, %c0_116] : memref<16x32x64xbf16, #tpu.memory_space<vmem>>, vector<1x32x64xbf16>
    %97 = vector.shape_cast %96 : vector<1x32x64xbf16> to vector<32x64xbf16>
    %cst_117 = arith.constant dense<0.000000e+00> : vector<32x64xf32>
    %98 = tpu.matmul %95, %97, %cst_117 {dimension_numbers = #tpu.dot_dimension_numbers<[1], [0], [0], [1], [0, 0, 1, 1], [], []>} : vector<32x32xbf16>, vector<32x64xbf16>, vector<32x64xf32> -> vector<32x64xf32>
    %c0_118 = arith.constant 0 : index
    %c0_119 = arith.constant 0 : index
    %99 = vector.load %arg7[%c0_118, %c0_119] : memref<32x64xf32, #tpu.memory_space<vmem>>, vector<32x64xf32>
    %100 = arith.addf %99, %98 : vector<32x64xf32>
    %c0_120 = arith.constant 0 : index
    %c0_121 = arith.constant 0 : index
    %101 = vector.load %arg7[%c0_120, %c0_121] : memref<32x64xf32, #tpu.memory_space<vmem>>, vector<32x64xf32>
    tpu.vector_store %arg7[%c0_120, %c0_121], %100 {strides = array<i32>} : memref<32x64xf32, #tpu.memory_space<vmem>>, vector<32x64xf32>,
    %c0_122 = arith.constant 0 : index
    %c25 = arith.constant 25 : index
    %c0_123 = arith.constant 0 : index
    %102 = vector.load %arg2[%c0_122, %c25, %c0_123] : memref<1x64x32xbf16, #tpu.memory_space<vmem>>, vector<1x32x32xbf16>
    %103 = vector.shape_cast %102 : vector<1x32x32xbf16> to vector<32x32xbf16>
    %c13 = arith.constant 13 : index
    %c0_124 = arith.constant 0 : index
    %c0_125 = arith.constant 0 : index
    %104 = vector.load %arg3[%c13, %c0_124, %c0_125] : memref<16x32x64xbf16, #tpu.memory_space<vmem>>, vector<1x32x64xbf16>
    %105 = vector.shape_cast %104 : vector<1x32x64xbf16> to vector<32x64xbf16>
    %cst_126 = arith.constant dense<0.000000e+00> : vector<32x64xf32>
    %106 = tpu.matmul %103, %105, %cst_126 {dimension_numbers = #tpu.dot_dimension_numbers<[1], [0], [0], [1], [0, 0, 1, 1], [], []>} : vector<32x32xbf16>, vector<32x64xbf16>, vector<32x64xf32> -> vector<32x64xf32>
    %c0_127 = arith.constant 0 : index
    %c0_128 = arith.constant 0 : index
    %107 = vector.load %arg7[%c0_127, %c0_128] : memref<32x64xf32, #tpu.memory_space<vmem>>, vector<32x64xf32>
    %108 = arith.addf %107, %106 : vector<32x64xf32>
    %c0_129 = arith.constant 0 : index
    %c0_130 = arith.constant 0 : index
    %109 = vector.load %arg7[%c0_129, %c0_130] : memref<32x64xf32, #tpu.memory_space<vmem>>, vector<32x64xf32>
    tpu.vector_store %arg7[%c0_129, %c0_130], %108 {strides = array<i32>} : memref<32x64xf32, #tpu.memory_space<vmem>>, vector<32x64xf32>,
    %c0_131 = arith.constant 0 : index
    %c26 = arith.constant 26 : index
    %c0_132 = arith.constant 0 : index
    %110 = vector.load %arg2[%c0_131, %c26, %c0_132] : memref<1x64x32xbf16, #tpu.memory_space<vmem>>, vector<1x32x32xbf16>
    %111 = vector.shape_cast %110 : vector<1x32x32xbf16> to vector<32x32xbf16>
    %c14 = arith.constant 14 : index
    %c0_133 = arith.constant 0 : index
    %c0_134 = arith.constant 0 : index
    %112 = vector.load %arg3[%c14, %c0_133, %c0_134] : memref<16x32x64xbf16, #tpu.memory_space<vmem>>, vector<1x32x64xbf16>
    %113 = vector.shape_cast %112 : vector<1x32x64xbf16> to vector<32x64xbf16>
    %cst_135 = arith.constant dense<0.000000e+00> : vector<32x64xf32>
    %114 = tpu.matmul %111, %113, %cst_135 {dimension_numbers = #tpu.dot_dimension_numbers<[1], [0], [0], [1], [0, 0, 1, 1], [], []>} : vector<32x32xbf16>, vector<32x64xbf16>, vector<32x64xf32> -> vector<32x64xf32>
    %c0_136 = arith.constant 0 : index
    %c0_137 = arith.constant 0 : index
    %115 = vector.load %arg7[%c0_136, %c0_137] : memref<32x64xf32, #tpu.memory_space<vmem>>, vector<32x64xf32>
    %116 = arith.addf %115, %114 : vector<32x64xf32>
    %c0_138 = arith.constant 0 : index
    %c0_139 = arith.constant 0 : index
    %117 = vector.load %arg7[%c0_138, %c0_139] : memref<32x64xf32, #tpu.memory_space<vmem>>, vector<32x64xf32>
    tpu.vector_store %arg7[%c0_138, %c0_139], %116 {strides = array<i32>} : memref<32x64xf32, #tpu.memory_space<vmem>>, vector<32x64xf32>,
    %c0_140 = arith.constant 0 : index
    %c27 = arith.constant 27 : index
    %c0_141 = arith.constant 0 : index
    %118 = vector.load %arg2[%c0_140, %c27, %c0_141] : memref<1x64x32xbf16, #tpu.memory_space<vmem>>, vector<1x32x32xbf16>
    %119 = vector.shape_cast %118 : vector<1x32x32xbf16> to vector<32x32xbf16>
    %c15 = arith.constant 15 : index
    %c0_142 = arith.constant 0 : index
    %c0_143 = arith.constant 0 : index
    %120 = vector.load %arg3[%c15, %c0_142, %c0_143] : memref<16x32x64xbf16, #tpu.memory_space<vmem>>, vector<1x32x64xbf16>
    %121 = vector.shape_cast %120 : vector<1x32x64xbf16> to vector<32x64xbf16>
    %cst_144 = arith.constant dense<0.000000e+00> : vector<32x64xf32>
    %122 = tpu.matmul %119, %121, %cst_144 {dimension_numbers = #tpu.dot_dimension_numbers<[1], [0], [0], [1], [0, 0, 1, 1], [], []>} : vector<32x32xbf16>, vector<32x64xbf16>, vector<32x64xf32> -> vector<32x64xf32>
    %c0_145 = arith.constant 0 : index
    %c0_146 = arith.constant 0 : index
    %123 = vector.load %arg7[%c0_145, %c0_146] : memref<32x64xf32, #tpu.memory_space<vmem>>, vector<32x64xf32>
    %124 = arith.addf %123, %122 : vector<32x64xf32>
    %c0_147 = arith.constant 0 : index
    %c0_148 = arith.constant 0 : index
    %125 = vector.load %arg7[%c0_147, %c0_148] : memref<32x64xf32, #tpu.memory_space<vmem>>, vector<32x64xf32>
    tpu.vector_store %arg7[%c0_147, %c0_148], %124 {strides = array<i32>} : memref<32x64xf32, #tpu.memory_space<vmem>>, vector<32x64xf32>,
    %c0_149 = arith.constant 0 : index
    %c0_150 = arith.constant 0 : index
    %126 = vector.load %arg7[%c0_149, %c0_150] : memref<32x64xf32, #tpu.memory_space<vmem>>, vector<32x64xf32>
    %127 = tpu.iota {dimensions = array<i32: 0>} : vector<32x1xi32>
    %c8_i32 = arith.constant 8 : i32
    %c0_i32 = arith.constant 0 : i32
    %128 = arith.cmpi eq, %c8_i32, %c0_i32 : i32
    %c1_i32 = arith.constant 1 : i32
    %129 = arith.select %128, %c1_i32, %c8_i32 : i32
    %130 = vector.broadcast %129 : i32 to vector<32x1xi32>
    %131 = arith.remsi %127, %130 : vector<32x1xi32>
    %c0_i32_151 = arith.constant 0 : i32
    %132 = vector.broadcast %c0_i32_151 : i32 to vector<32x1xi32>
    %133 = arith.cmpi ne, %131, %132 : vector<32x1xi32>
    %c0_i32_152 = arith.constant 0 : i32
    %134 = vector.broadcast %c0_i32_152 : i32 to vector<32x1xi32>
    %135 = arith.cmpi slt, %131, %134 : vector<32x1xi32>
    %c0_i32_153 = arith.constant 0 : i32
    %136 = arith.cmpi slt, %129, %c0_i32_153 : i32
    %137 = vector.broadcast %136 : i1 to vector<32x1xi1>
    %138 = vector.broadcast %137 : vector<32x1xi1> to vector<32x1xi1>
    %139 = arith.xori %135, %138 : vector<32x1xi1>
    %140 = arith.andi %139, %133 : vector<32x1xi1>
    %141 = vector.broadcast %129 : i32 to vector<32x1xi32>
    %142 = arith.addi %131, %141 : vector<32x1xi32>
    %143 = arith.select %140, %142, %131 : vector<32x1xi1>, vector<32x1xi32>
    %c4_i32 = arith.constant 4 : i32
    %144 = arith.muli %arg1, %c4_i32 : i32
    %c4_i32_154 = arith.constant 4 : i32
    %145 = arith.subi %c4_i32_154, %144 : i32
    %c8_i32_155 = arith.constant 8 : i32
    %146 = arith.muli %145, %c8_i32_155 : i32
    %c4_i32_156 = arith.constant 4 : i32
    %147 = vector.broadcast %c4_i32_156 : i32 to vector<32x1xi32>
    %148 = arith.cmpi slt, %143, %147 : vector<32x1xi32>
    %149 = vector.broadcast %146 : i32 to vector<32x1xi32>
    %150 = arith.cmpi slt, %127, %149 : vector<32x1xi32>
    %151 = arith.andi %148, %150 : vector<32x1xi1>
    %cst_157 = arith.constant 0.000000e+00 : f32
    %152 = vector.shape_cast %151 : vector<32x1xi1> to vector<32x1xi1>
    %153 = vector.broadcast %152 : vector<32x1xi1> to vector<32x64xi1>
    %154 = vector.broadcast %cst_157 : f32 to vector<32x64xf32>
    %155 = arith.select %153, %126, %154 : vector<32x64xi1>, vector<32x64xf32>
    %156 = arith.truncf %155 : vector<32x64xf32> to vector<32x64xbf16>
    %c0_158 = arith.constant 0 : index
    %c0_159 = arith.constant 0 : index
    %c0_160 = arith.constant 0 : index
    %157 = vector.load %arg4[%c0_158, %c0_159, %c0_160] : memref<1x32x64xbf16, #tpu.memory_space<vmem>>, vector<1x32x64xbf16>
    %158 = vector.shape_cast %157 : vector<1x32x64xbf16> to vector<32x64xbf16>
    %159 = vector.shape_cast %156 : vector<32x64xbf16> to vector<1x32x64xbf16>
    tpu.vector_store %arg4[%c0_158, %c0_159, %c0_160], %159 {strides = array<i32>} : memref<1x32x64xbf16, #tpu.memory_space<vmem>>, vector<1x32x64xbf16>,
    %cst_161 = arith.constant dense<0.000000e+00> : vector<64xf32>
    %160 = vector.multi_reduction <add>, %155, %cst_161 [0] : vector<32x64xf32> to vector<64xf32>
    %161 = vector.shape_cast %160 : vector<64xf32> to vector<1x64xf32>
    %c0_162 = arith.constant 0 : index
    %c0_163 = arith.constant 0 : index
    %c0_164 = arith.constant 0 : index
    %162 = vector.load %arg5[%c0_162, %c0_163, %c0_164] : memref<1x1x64xf32, #tpu.memory_space<vmem>>, vector<1x1x64xf32>
    %163 = vector.shape_cast %162 : vector<1x1x64xf32> to vector<1x64xf32>
    %164 = vector.shape_cast %161 : vector<1x64xf32> to vector<1x1x64xf32>
    tpu.vector_store %arg5[%c0_162, %c0_163, %c0_164], %164 {strides = array<i32>} : memref<1x1x64xf32, #tpu.memory_space<vmem>>, vector<1x1x64xf32>,
    %165 = arith.mulf %155, %155 : vector<32x64xf32>
    %cst_165 = arith.constant dense<0.000000e+00> : vector<64xf32>
    %166 = vector.multi_reduction <add>, %165, %cst_165 [0] : vector<32x64xf32> to vector<64xf32>
    %167 = vector.shape_cast %166 : vector<64xf32> to vector<1x64xf32>
    %c0_166 = arith.constant 0 : index
    %c0_167 = arith.constant 0 : index
    %c0_168 = arith.constant 0 : index
    %168 = vector.load %arg6[%c0_166, %c0_167, %c0_168] : memref<1x1x64xf32, #tpu.memory_space<vmem>>, vector<1x1x64xf32>
    %169 = vector.shape_cast %168 : vector<1x1x64xf32> to vector<1x64xf32>
    %170 = vector.shape_cast %167 : vector<1x64xf32> to vector<1x1x64xf32>
    tpu.vector_store %arg6[%c0_166, %c0_167, %c0_168], %170 {strides = array<i32>} : memref<1x1x64xf32, #tpu.memory_space<vmem>>, vector<1x1x64xf32>,
    return
  }
  func.func @transform_0(%arg0: i32, %arg1: i32) -> (i32, i32, i32) {
    %c1_i32 = arith.constant 1 : i32
    %0 = arith.muli %arg0, %c1_i32 : i32
    %1 = arith.addi %0, %arg1 : i32
    %c0_i32 = arith.constant 0 : i32
    %c0_i32_0 = arith.constant 0 : i32
    %c0_i32_1 = arith.constant 0 : i32
    return %1, %c0_i32, %c0_i32_0 : i32, i32, i32
  }
  func.func @transform_1(%arg0: i32, %arg1: i32) -> (i32, i32, i32) {
    %c0_i32 = arith.constant 0 : i32
    %c0_i32_0 = arith.constant 0 : i32
    %c0_i32_1 = arith.constant 0 : i32
    %c0_i32_2 = arith.constant 0 : i32
    return %c0_i32, %c0_i32_0, %c0_i32_1 : i32, i32, i32
  }
  func.func @transform_2(%arg0: i32, %arg1: i32) -> (i32, i32, i32) {
    %c0_i32 = arith.constant 0 : i32
    %c0_i32_0 = arith.constant 0 : i32
    return %arg0, %arg1, %c0_i32 : i32, i32, i32
  }
  func.func @transform_3(%arg0: i32, %arg1: i32) -> (i32, i32, i32) {
    %c0_i32 = arith.constant 0 : i32
    %c0_i32_0 = arith.constant 0 : i32
    return %arg0, %arg1, %c0_i32 : i32, i32, i32
  }
  func.func @transform_4(%arg0: i32, %arg1: i32) -> (i32, i32, i32) {
    %c0_i32 = arith.constant 0 : i32
    %c0_i32_0 = arith.constant 0 : i32
    return %arg0, %arg1, %c0_i32 : i32, i32, i32
  }
}

module attributes {stable_mosaic.version = 11 : i64} {
  func.func @_conv_bias_act_kernel(%arg0: i32, %arg1: i32, %arg2: memref<1x72x64xbf16, #tpu.memory_space<vmem>>, %arg3: memref<16x64x1xbf16, #tpu.memory_space<vmem>>, %arg4: memref<1x1xf32, #tpu.memory_space<vmem>>, %arg5: memref<1x40x1xbf16, #tpu.memory_space<vmem>>, %arg6: memref<40x1xf32, #tpu.memory_space<vmem>>) attributes {dimension_semantics = [#tpu.dimension_semantics<parallel>, #tpu.dimension_semantics<parallel>], iteration_bounds = array<i64: 2, 1>, scalar_prefetch = 0 : i64, scratch_operands = 1 : i64, tpu.core_type = #tpu.core_type<tc>, window_params = [{transform_indices = @transform_0, window_bounds = array<i64: 1, 72, 64>}, {pipeline_mode = #tpu.pipeline_mode<synchronous>, transform_indices = @transform_1, window_bounds = array<i64: 16, 64, 1>}, {pipeline_mode = #tpu.pipeline_mode<synchronous>, transform_indices = @transform_2, window_bounds = array<i64: 1, 1>}, {transform_indices = @transform_3, window_bounds = array<i64: 1, 40, 1>}]} {
    %c0 = arith.constant 0 : index
    %c0_0 = arith.constant 0 : index
    %c0_1 = arith.constant 0 : index
    %0 = vector.load %arg2[%c0, %c0_0, %c0_1] : memref<1x72x64xbf16, #tpu.memory_space<vmem>>, vector<1x40x64xbf16>
    %1 = vector.shape_cast %0 : vector<1x40x64xbf16> to vector<40x64xbf16>
    %c0_2 = arith.constant 0 : index
    %c0_3 = arith.constant 0 : index
    %c0_4 = arith.constant 0 : index
    %2 = vector.load %arg3[%c0_2, %c0_3, %c0_4] : memref<16x64x1xbf16, #tpu.memory_space<vmem>>, vector<1x64x1xbf16>
    %3 = vector.shape_cast %2 : vector<1x64x1xbf16> to vector<64x1xbf16>
    %cst = arith.constant dense<0.000000e+00> : vector<40x1xf32>
    %4 = tpu.matmul %1, %3, %cst {dimension_numbers = #tpu.dot_dimension_numbers<[1], [0], [0], [1], [0, 0, 1, 1], [], []>} : vector<40x64xbf16>, vector<64x1xbf16>, vector<40x1xf32> -> vector<40x1xf32>
    %c0_5 = arith.constant 0 : index
    %c0_6 = arith.constant 0 : index
    %5 = vector.load %arg6[%c0_5, %c0_6] : memref<40x1xf32, #tpu.memory_space<vmem>>, vector<40x1xf32>
    tpu.vector_store %arg6[%c0_5, %c0_6], %4 {strides = array<i32>} : memref<40x1xf32, #tpu.memory_space<vmem>>, vector<40x1xf32>,
    %c0_7 = arith.constant 0 : index
    %c1 = arith.constant 1 : index
    %c0_8 = arith.constant 0 : index
    %6 = vector.load %arg2[%c0_7, %c1, %c0_8] : memref<1x72x64xbf16, #tpu.memory_space<vmem>>, vector<1x40x64xbf16>
    %7 = vector.shape_cast %6 : vector<1x40x64xbf16> to vector<40x64xbf16>
    %c1_9 = arith.constant 1 : index
    %c0_10 = arith.constant 0 : index
    %c0_11 = arith.constant 0 : index
    %8 = vector.load %arg3[%c1_9, %c0_10, %c0_11] : memref<16x64x1xbf16, #tpu.memory_space<vmem>>, vector<1x64x1xbf16>
    %9 = vector.shape_cast %8 : vector<1x64x1xbf16> to vector<64x1xbf16>
    %cst_12 = arith.constant dense<0.000000e+00> : vector<40x1xf32>
    %10 = tpu.matmul %7, %9, %cst_12 {dimension_numbers = #tpu.dot_dimension_numbers<[1], [0], [0], [1], [0, 0, 1, 1], [], []>} : vector<40x64xbf16>, vector<64x1xbf16>, vector<40x1xf32> -> vector<40x1xf32>
    %c0_13 = arith.constant 0 : index
    %c0_14 = arith.constant 0 : index
    %11 = vector.load %arg6[%c0_13, %c0_14] : memref<40x1xf32, #tpu.memory_space<vmem>>, vector<40x1xf32>
    %12 = arith.addf %11, %10 : vector<40x1xf32>
    %c0_15 = arith.constant 0 : index
    %c0_16 = arith.constant 0 : index
    %13 = vector.load %arg6[%c0_15, %c0_16] : memref<40x1xf32, #tpu.memory_space<vmem>>, vector<40x1xf32>
    tpu.vector_store %arg6[%c0_15, %c0_16], %12 {strides = array<i32>} : memref<40x1xf32, #tpu.memory_space<vmem>>, vector<40x1xf32>,
    %c0_17 = arith.constant 0 : index
    %c2 = arith.constant 2 : index
    %c0_18 = arith.constant 0 : index
    %14 = vector.load %arg2[%c0_17, %c2, %c0_18] : memref<1x72x64xbf16, #tpu.memory_space<vmem>>, vector<1x40x64xbf16>
    %15 = vector.shape_cast %14 : vector<1x40x64xbf16> to vector<40x64xbf16>
    %c2_19 = arith.constant 2 : index
    %c0_20 = arith.constant 0 : index
    %c0_21 = arith.constant 0 : index
    %16 = vector.load %arg3[%c2_19, %c0_20, %c0_21] : memref<16x64x1xbf16, #tpu.memory_space<vmem>>, vector<1x64x1xbf16>
    %17 = vector.shape_cast %16 : vector<1x64x1xbf16> to vector<64x1xbf16>
    %cst_22 = arith.constant dense<0.000000e+00> : vector<40x1xf32>
    %18 = tpu.matmul %15, %17, %cst_22 {dimension_numbers = #tpu.dot_dimension_numbers<[1], [0], [0], [1], [0, 0, 1, 1], [], []>} : vector<40x64xbf16>, vector<64x1xbf16>, vector<40x1xf32> -> vector<40x1xf32>
    %c0_23 = arith.constant 0 : index
    %c0_24 = arith.constant 0 : index
    %19 = vector.load %arg6[%c0_23, %c0_24] : memref<40x1xf32, #tpu.memory_space<vmem>>, vector<40x1xf32>
    %20 = arith.addf %19, %18 : vector<40x1xf32>
    %c0_25 = arith.constant 0 : index
    %c0_26 = arith.constant 0 : index
    %21 = vector.load %arg6[%c0_25, %c0_26] : memref<40x1xf32, #tpu.memory_space<vmem>>, vector<40x1xf32>
    tpu.vector_store %arg6[%c0_25, %c0_26], %20 {strides = array<i32>} : memref<40x1xf32, #tpu.memory_space<vmem>>, vector<40x1xf32>,
    %c0_27 = arith.constant 0 : index
    %c3 = arith.constant 3 : index
    %c0_28 = arith.constant 0 : index
    %22 = vector.load %arg2[%c0_27, %c3, %c0_28] : memref<1x72x64xbf16, #tpu.memory_space<vmem>>, vector<1x40x64xbf16>
    %23 = vector.shape_cast %22 : vector<1x40x64xbf16> to vector<40x64xbf16>
    %c3_29 = arith.constant 3 : index
    %c0_30 = arith.constant 0 : index
    %c0_31 = arith.constant 0 : index
    %24 = vector.load %arg3[%c3_29, %c0_30, %c0_31] : memref<16x64x1xbf16, #tpu.memory_space<vmem>>, vector<1x64x1xbf16>
    %25 = vector.shape_cast %24 : vector<1x64x1xbf16> to vector<64x1xbf16>
    %cst_32 = arith.constant dense<0.000000e+00> : vector<40x1xf32>
    %26 = tpu.matmul %23, %25, %cst_32 {dimension_numbers = #tpu.dot_dimension_numbers<[1], [0], [0], [1], [0, 0, 1, 1], [], []>} : vector<40x64xbf16>, vector<64x1xbf16>, vector<40x1xf32> -> vector<40x1xf32>
    %c0_33 = arith.constant 0 : index
    %c0_34 = arith.constant 0 : index
    %27 = vector.load %arg6[%c0_33, %c0_34] : memref<40x1xf32, #tpu.memory_space<vmem>>, vector<40x1xf32>
    %28 = arith.addf %27, %26 : vector<40x1xf32>
    %c0_35 = arith.constant 0 : index
    %c0_36 = arith.constant 0 : index
    %29 = vector.load %arg6[%c0_35, %c0_36] : memref<40x1xf32, #tpu.memory_space<vmem>>, vector<40x1xf32>
    tpu.vector_store %arg6[%c0_35, %c0_36], %28 {strides = array<i32>} : memref<40x1xf32, #tpu.memory_space<vmem>>, vector<40x1xf32>,
    %c0_37 = arith.constant 0 : index
    %c8 = arith.constant 8 : index
    %c0_38 = arith.constant 0 : index
    %30 = vector.load %arg2[%c0_37, %c8, %c0_38] : memref<1x72x64xbf16, #tpu.memory_space<vmem>>, vector<1x40x64xbf16>
    %31 = vector.shape_cast %30 : vector<1x40x64xbf16> to vector<40x64xbf16>
    %c4 = arith.constant 4 : index
    %c0_39 = arith.constant 0 : index
    %c0_40 = arith.constant 0 : index
    %32 = vector.load %arg3[%c4, %c0_39, %c0_40] : memref<16x64x1xbf16, #tpu.memory_space<vmem>>, vector<1x64x1xbf16>
    %33 = vector.shape_cast %32 : vector<1x64x1xbf16> to vector<64x1xbf16>
    %cst_41 = arith.constant dense<0.000000e+00> : vector<40x1xf32>
    %34 = tpu.matmul %31, %33, %cst_41 {dimension_numbers = #tpu.dot_dimension_numbers<[1], [0], [0], [1], [0, 0, 1, 1], [], []>} : vector<40x64xbf16>, vector<64x1xbf16>, vector<40x1xf32> -> vector<40x1xf32>
    %c0_42 = arith.constant 0 : index
    %c0_43 = arith.constant 0 : index
    %35 = vector.load %arg6[%c0_42, %c0_43] : memref<40x1xf32, #tpu.memory_space<vmem>>, vector<40x1xf32>
    %36 = arith.addf %35, %34 : vector<40x1xf32>
    %c0_44 = arith.constant 0 : index
    %c0_45 = arith.constant 0 : index
    %37 = vector.load %arg6[%c0_44, %c0_45] : memref<40x1xf32, #tpu.memory_space<vmem>>, vector<40x1xf32>
    tpu.vector_store %arg6[%c0_44, %c0_45], %36 {strides = array<i32>} : memref<40x1xf32, #tpu.memory_space<vmem>>, vector<40x1xf32>,
    %c0_46 = arith.constant 0 : index
    %c9 = arith.constant 9 : index
    %c0_47 = arith.constant 0 : index
    %38 = vector.load %arg2[%c0_46, %c9, %c0_47] : memref<1x72x64xbf16, #tpu.memory_space<vmem>>, vector<1x40x64xbf16>
    %39 = vector.shape_cast %38 : vector<1x40x64xbf16> to vector<40x64xbf16>
    %c5 = arith.constant 5 : index
    %c0_48 = arith.constant 0 : index
    %c0_49 = arith.constant 0 : index
    %40 = vector.load %arg3[%c5, %c0_48, %c0_49] : memref<16x64x1xbf16, #tpu.memory_space<vmem>>, vector<1x64x1xbf16>
    %41 = vector.shape_cast %40 : vector<1x64x1xbf16> to vector<64x1xbf16>
    %cst_50 = arith.constant dense<0.000000e+00> : vector<40x1xf32>
    %42 = tpu.matmul %39, %41, %cst_50 {dimension_numbers = #tpu.dot_dimension_numbers<[1], [0], [0], [1], [0, 0, 1, 1], [], []>} : vector<40x64xbf16>, vector<64x1xbf16>, vector<40x1xf32> -> vector<40x1xf32>
    %c0_51 = arith.constant 0 : index
    %c0_52 = arith.constant 0 : index
    %43 = vector.load %arg6[%c0_51, %c0_52] : memref<40x1xf32, #tpu.memory_space<vmem>>, vector<40x1xf32>
    %44 = arith.addf %43, %42 : vector<40x1xf32>
    %c0_53 = arith.constant 0 : index
    %c0_54 = arith.constant 0 : index
    %45 = vector.load %arg6[%c0_53, %c0_54] : memref<40x1xf32, #tpu.memory_space<vmem>>, vector<40x1xf32>
    tpu.vector_store %arg6[%c0_53, %c0_54], %44 {strides = array<i32>} : memref<40x1xf32, #tpu.memory_space<vmem>>, vector<40x1xf32>,
    %c0_55 = arith.constant 0 : index
    %c10 = arith.constant 10 : index
    %c0_56 = arith.constant 0 : index
    %46 = vector.load %arg2[%c0_55, %c10, %c0_56] : memref<1x72x64xbf16, #tpu.memory_space<vmem>>, vector<1x40x64xbf16>
    %47 = vector.shape_cast %46 : vector<1x40x64xbf16> to vector<40x64xbf16>
    %c6 = arith.constant 6 : index
    %c0_57 = arith.constant 0 : index
    %c0_58 = arith.constant 0 : index
    %48 = vector.load %arg3[%c6, %c0_57, %c0_58] : memref<16x64x1xbf16, #tpu.memory_space<vmem>>, vector<1x64x1xbf16>
    %49 = vector.shape_cast %48 : vector<1x64x1xbf16> to vector<64x1xbf16>
    %cst_59 = arith.constant dense<0.000000e+00> : vector<40x1xf32>
    %50 = tpu.matmul %47, %49, %cst_59 {dimension_numbers = #tpu.dot_dimension_numbers<[1], [0], [0], [1], [0, 0, 1, 1], [], []>} : vector<40x64xbf16>, vector<64x1xbf16>, vector<40x1xf32> -> vector<40x1xf32>
    %c0_60 = arith.constant 0 : index
    %c0_61 = arith.constant 0 : index
    %51 = vector.load %arg6[%c0_60, %c0_61] : memref<40x1xf32, #tpu.memory_space<vmem>>, vector<40x1xf32>
    %52 = arith.addf %51, %50 : vector<40x1xf32>
    %c0_62 = arith.constant 0 : index
    %c0_63 = arith.constant 0 : index
    %53 = vector.load %arg6[%c0_62, %c0_63] : memref<40x1xf32, #tpu.memory_space<vmem>>, vector<40x1xf32>
    tpu.vector_store %arg6[%c0_62, %c0_63], %52 {strides = array<i32>} : memref<40x1xf32, #tpu.memory_space<vmem>>, vector<40x1xf32>,
    %c0_64 = arith.constant 0 : index
    %c11 = arith.constant 11 : index
    %c0_65 = arith.constant 0 : index
    %54 = vector.load %arg2[%c0_64, %c11, %c0_65] : memref<1x72x64xbf16, #tpu.memory_space<vmem>>, vector<1x40x64xbf16>
    %55 = vector.shape_cast %54 : vector<1x40x64xbf16> to vector<40x64xbf16>
    %c7 = arith.constant 7 : index
    %c0_66 = arith.constant 0 : index
    %c0_67 = arith.constant 0 : index
    %56 = vector.load %arg3[%c7, %c0_66, %c0_67] : memref<16x64x1xbf16, #tpu.memory_space<vmem>>, vector<1x64x1xbf16>
    %57 = vector.shape_cast %56 : vector<1x64x1xbf16> to vector<64x1xbf16>
    %cst_68 = arith.constant dense<0.000000e+00> : vector<40x1xf32>
    %58 = tpu.matmul %55, %57, %cst_68 {dimension_numbers = #tpu.dot_dimension_numbers<[1], [0], [0], [1], [0, 0, 1, 1], [], []>} : vector<40x64xbf16>, vector<64x1xbf16>, vector<40x1xf32> -> vector<40x1xf32>
    %c0_69 = arith.constant 0 : index
    %c0_70 = arith.constant 0 : index
    %59 = vector.load %arg6[%c0_69, %c0_70] : memref<40x1xf32, #tpu.memory_space<vmem>>, vector<40x1xf32>
    %60 = arith.addf %59, %58 : vector<40x1xf32>
    %c0_71 = arith.constant 0 : index
    %c0_72 = arith.constant 0 : index
    %61 = vector.load %arg6[%c0_71, %c0_72] : memref<40x1xf32, #tpu.memory_space<vmem>>, vector<40x1xf32>
    tpu.vector_store %arg6[%c0_71, %c0_72], %60 {strides = array<i32>} : memref<40x1xf32, #tpu.memory_space<vmem>>, vector<40x1xf32>,
    %c0_73 = arith.constant 0 : index
    %c16 = arith.constant 16 : index
    %c0_74 = arith.constant 0 : index
    %62 = vector.load %arg2[%c0_73, %c16, %c0_74] : memref<1x72x64xbf16, #tpu.memory_space<vmem>>, vector<1x40x64xbf16>
    %63 = vector.shape_cast %62 : vector<1x40x64xbf16> to vector<40x64xbf16>
    %c8_75 = arith.constant 8 : index
    %c0_76 = arith.constant 0 : index
    %c0_77 = arith.constant 0 : index
    %64 = vector.load %arg3[%c8_75, %c0_76, %c0_77] : memref<16x64x1xbf16, #tpu.memory_space<vmem>>, vector<1x64x1xbf16>
    %65 = vector.shape_cast %64 : vector<1x64x1xbf16> to vector<64x1xbf16>
    %cst_78 = arith.constant dense<0.000000e+00> : vector<40x1xf32>
    %66 = tpu.matmul %63, %65, %cst_78 {dimension_numbers = #tpu.dot_dimension_numbers<[1], [0], [0], [1], [0, 0, 1, 1], [], []>} : vector<40x64xbf16>, vector<64x1xbf16>, vector<40x1xf32> -> vector<40x1xf32>
    %c0_79 = arith.constant 0 : index
    %c0_80 = arith.constant 0 : index
    %67 = vector.load %arg6[%c0_79, %c0_80] : memref<40x1xf32, #tpu.memory_space<vmem>>, vector<40x1xf32>
    %68 = arith.addf %67, %66 : vector<40x1xf32>
    %c0_81 = arith.constant 0 : index
    %c0_82 = arith.constant 0 : index
    %69 = vector.load %arg6[%c0_81, %c0_82] : memref<40x1xf32, #tpu.memory_space<vmem>>, vector<40x1xf32>
    tpu.vector_store %arg6[%c0_81, %c0_82], %68 {strides = array<i32>} : memref<40x1xf32, #tpu.memory_space<vmem>>, vector<40x1xf32>,
    %c0_83 = arith.constant 0 : index
    %c17 = arith.constant 17 : index
    %c0_84 = arith.constant 0 : index
    %70 = vector.load %arg2[%c0_83, %c17, %c0_84] : memref<1x72x64xbf16, #tpu.memory_space<vmem>>, vector<1x40x64xbf16>
    %71 = vector.shape_cast %70 : vector<1x40x64xbf16> to vector<40x64xbf16>
    %c9_85 = arith.constant 9 : index
    %c0_86 = arith.constant 0 : index
    %c0_87 = arith.constant 0 : index
    %72 = vector.load %arg3[%c9_85, %c0_86, %c0_87] : memref<16x64x1xbf16, #tpu.memory_space<vmem>>, vector<1x64x1xbf16>
    %73 = vector.shape_cast %72 : vector<1x64x1xbf16> to vector<64x1xbf16>
    %cst_88 = arith.constant dense<0.000000e+00> : vector<40x1xf32>
    %74 = tpu.matmul %71, %73, %cst_88 {dimension_numbers = #tpu.dot_dimension_numbers<[1], [0], [0], [1], [0, 0, 1, 1], [], []>} : vector<40x64xbf16>, vector<64x1xbf16>, vector<40x1xf32> -> vector<40x1xf32>
    %c0_89 = arith.constant 0 : index
    %c0_90 = arith.constant 0 : index
    %75 = vector.load %arg6[%c0_89, %c0_90] : memref<40x1xf32, #tpu.memory_space<vmem>>, vector<40x1xf32>
    %76 = arith.addf %75, %74 : vector<40x1xf32>
    %c0_91 = arith.constant 0 : index
    %c0_92 = arith.constant 0 : index
    %77 = vector.load %arg6[%c0_91, %c0_92] : memref<40x1xf32, #tpu.memory_space<vmem>>, vector<40x1xf32>
    tpu.vector_store %arg6[%c0_91, %c0_92], %76 {strides = array<i32>} : memref<40x1xf32, #tpu.memory_space<vmem>>, vector<40x1xf32>,
    %c0_93 = arith.constant 0 : index
    %c18 = arith.constant 18 : index
    %c0_94 = arith.constant 0 : index
    %78 = vector.load %arg2[%c0_93, %c18, %c0_94] : memref<1x72x64xbf16, #tpu.memory_space<vmem>>, vector<1x40x64xbf16>
    %79 = vector.shape_cast %78 : vector<1x40x64xbf16> to vector<40x64xbf16>
    %c10_95 = arith.constant 10 : index
    %c0_96 = arith.constant 0 : index
    %c0_97 = arith.constant 0 : index
    %80 = vector.load %arg3[%c10_95, %c0_96, %c0_97] : memref<16x64x1xbf16, #tpu.memory_space<vmem>>, vector<1x64x1xbf16>
    %81 = vector.shape_cast %80 : vector<1x64x1xbf16> to vector<64x1xbf16>
    %cst_98 = arith.constant dense<0.000000e+00> : vector<40x1xf32>
    %82 = tpu.matmul %79, %81, %cst_98 {dimension_numbers = #tpu.dot_dimension_numbers<[1], [0], [0], [1], [0, 0, 1, 1], [], []>} : vector<40x64xbf16>, vector<64x1xbf16>, vector<40x1xf32> -> vector<40x1xf32>
    %c0_99 = arith.constant 0 : index
    %c0_100 = arith.constant 0 : index
    %83 = vector.load %arg6[%c0_99, %c0_100] : memref<40x1xf32, #tpu.memory_space<vmem>>, vector<40x1xf32>
    %84 = arith.addf %83, %82 : vector<40x1xf32>
    %c0_101 = arith.constant 0 : index
    %c0_102 = arith.constant 0 : index
    %85 = vector.load %arg6[%c0_101, %c0_102] : memref<40x1xf32, #tpu.memory_space<vmem>>, vector<40x1xf32>
    tpu.vector_store %arg6[%c0_101, %c0_102], %84 {strides = array<i32>} : memref<40x1xf32, #tpu.memory_space<vmem>>, vector<40x1xf32>,
    %c0_103 = arith.constant 0 : index
    %c19 = arith.constant 19 : index
    %c0_104 = arith.constant 0 : index
    %86 = vector.load %arg2[%c0_103, %c19, %c0_104] : memref<1x72x64xbf16, #tpu.memory_space<vmem>>, vector<1x40x64xbf16>
    %87 = vector.shape_cast %86 : vector<1x40x64xbf16> to vector<40x64xbf16>
    %c11_105 = arith.constant 11 : index
    %c0_106 = arith.constant 0 : index
    %c0_107 = arith.constant 0 : index
    %88 = vector.load %arg3[%c11_105, %c0_106, %c0_107] : memref<16x64x1xbf16, #tpu.memory_space<vmem>>, vector<1x64x1xbf16>
    %89 = vector.shape_cast %88 : vector<1x64x1xbf16> to vector<64x1xbf16>
    %cst_108 = arith.constant dense<0.000000e+00> : vector<40x1xf32>
    %90 = tpu.matmul %87, %89, %cst_108 {dimension_numbers = #tpu.dot_dimension_numbers<[1], [0], [0], [1], [0, 0, 1, 1], [], []>} : vector<40x64xbf16>, vector<64x1xbf16>, vector<40x1xf32> -> vector<40x1xf32>
    %c0_109 = arith.constant 0 : index
    %c0_110 = arith.constant 0 : index
    %91 = vector.load %arg6[%c0_109, %c0_110] : memref<40x1xf32, #tpu.memory_space<vmem>>, vector<40x1xf32>
    %92 = arith.addf %91, %90 : vector<40x1xf32>
    %c0_111 = arith.constant 0 : index
    %c0_112 = arith.constant 0 : index
    %93 = vector.load %arg6[%c0_111, %c0_112] : memref<40x1xf32, #tpu.memory_space<vmem>>, vector<40x1xf32>
    tpu.vector_store %arg6[%c0_111, %c0_112], %92 {strides = array<i32>} : memref<40x1xf32, #tpu.memory_space<vmem>>, vector<40x1xf32>,
    %c0_113 = arith.constant 0 : index
    %c24 = arith.constant 24 : index
    %c0_114 = arith.constant 0 : index
    %94 = vector.load %arg2[%c0_113, %c24, %c0_114] : memref<1x72x64xbf16, #tpu.memory_space<vmem>>, vector<1x40x64xbf16>
    %95 = vector.shape_cast %94 : vector<1x40x64xbf16> to vector<40x64xbf16>
    %c12 = arith.constant 12 : index
    %c0_115 = arith.constant 0 : index
    %c0_116 = arith.constant 0 : index
    %96 = vector.load %arg3[%c12, %c0_115, %c0_116] : memref<16x64x1xbf16, #tpu.memory_space<vmem>>, vector<1x64x1xbf16>
    %97 = vector.shape_cast %96 : vector<1x64x1xbf16> to vector<64x1xbf16>
    %cst_117 = arith.constant dense<0.000000e+00> : vector<40x1xf32>
    %98 = tpu.matmul %95, %97, %cst_117 {dimension_numbers = #tpu.dot_dimension_numbers<[1], [0], [0], [1], [0, 0, 1, 1], [], []>} : vector<40x64xbf16>, vector<64x1xbf16>, vector<40x1xf32> -> vector<40x1xf32>
    %c0_118 = arith.constant 0 : index
    %c0_119 = arith.constant 0 : index
    %99 = vector.load %arg6[%c0_118, %c0_119] : memref<40x1xf32, #tpu.memory_space<vmem>>, vector<40x1xf32>
    %100 = arith.addf %99, %98 : vector<40x1xf32>
    %c0_120 = arith.constant 0 : index
    %c0_121 = arith.constant 0 : index
    %101 = vector.load %arg6[%c0_120, %c0_121] : memref<40x1xf32, #tpu.memory_space<vmem>>, vector<40x1xf32>
    tpu.vector_store %arg6[%c0_120, %c0_121], %100 {strides = array<i32>} : memref<40x1xf32, #tpu.memory_space<vmem>>, vector<40x1xf32>,
    %c0_122 = arith.constant 0 : index
    %c25 = arith.constant 25 : index
    %c0_123 = arith.constant 0 : index
    %102 = vector.load %arg2[%c0_122, %c25, %c0_123] : memref<1x72x64xbf16, #tpu.memory_space<vmem>>, vector<1x40x64xbf16>
    %103 = vector.shape_cast %102 : vector<1x40x64xbf16> to vector<40x64xbf16>
    %c13 = arith.constant 13 : index
    %c0_124 = arith.constant 0 : index
    %c0_125 = arith.constant 0 : index
    %104 = vector.load %arg3[%c13, %c0_124, %c0_125] : memref<16x64x1xbf16, #tpu.memory_space<vmem>>, vector<1x64x1xbf16>
    %105 = vector.shape_cast %104 : vector<1x64x1xbf16> to vector<64x1xbf16>
    %cst_126 = arith.constant dense<0.000000e+00> : vector<40x1xf32>
    %106 = tpu.matmul %103, %105, %cst_126 {dimension_numbers = #tpu.dot_dimension_numbers<[1], [0], [0], [1], [0, 0, 1, 1], [], []>} : vector<40x64xbf16>, vector<64x1xbf16>, vector<40x1xf32> -> vector<40x1xf32>
    %c0_127 = arith.constant 0 : index
    %c0_128 = arith.constant 0 : index
    %107 = vector.load %arg6[%c0_127, %c0_128] : memref<40x1xf32, #tpu.memory_space<vmem>>, vector<40x1xf32>
    %108 = arith.addf %107, %106 : vector<40x1xf32>
    %c0_129 = arith.constant 0 : index
    %c0_130 = arith.constant 0 : index
    %109 = vector.load %arg6[%c0_129, %c0_130] : memref<40x1xf32, #tpu.memory_space<vmem>>, vector<40x1xf32>
    tpu.vector_store %arg6[%c0_129, %c0_130], %108 {strides = array<i32>} : memref<40x1xf32, #tpu.memory_space<vmem>>, vector<40x1xf32>,
    %c0_131 = arith.constant 0 : index
    %c26 = arith.constant 26 : index
    %c0_132 = arith.constant 0 : index
    %110 = vector.load %arg2[%c0_131, %c26, %c0_132] : memref<1x72x64xbf16, #tpu.memory_space<vmem>>, vector<1x40x64xbf16>
    %111 = vector.shape_cast %110 : vector<1x40x64xbf16> to vector<40x64xbf16>
    %c14 = arith.constant 14 : index
    %c0_133 = arith.constant 0 : index
    %c0_134 = arith.constant 0 : index
    %112 = vector.load %arg3[%c14, %c0_133, %c0_134] : memref<16x64x1xbf16, #tpu.memory_space<vmem>>, vector<1x64x1xbf16>
    %113 = vector.shape_cast %112 : vector<1x64x1xbf16> to vector<64x1xbf16>
    %cst_135 = arith.constant dense<0.000000e+00> : vector<40x1xf32>
    %114 = tpu.matmul %111, %113, %cst_135 {dimension_numbers = #tpu.dot_dimension_numbers<[1], [0], [0], [1], [0, 0, 1, 1], [], []>} : vector<40x64xbf16>, vector<64x1xbf16>, vector<40x1xf32> -> vector<40x1xf32>
    %c0_136 = arith.constant 0 : index
    %c0_137 = arith.constant 0 : index
    %115 = vector.load %arg6[%c0_136, %c0_137] : memref<40x1xf32, #tpu.memory_space<vmem>>, vector<40x1xf32>
    %116 = arith.addf %115, %114 : vector<40x1xf32>
    %c0_138 = arith.constant 0 : index
    %c0_139 = arith.constant 0 : index
    %117 = vector.load %arg6[%c0_138, %c0_139] : memref<40x1xf32, #tpu.memory_space<vmem>>, vector<40x1xf32>
    tpu.vector_store %arg6[%c0_138, %c0_139], %116 {strides = array<i32>} : memref<40x1xf32, #tpu.memory_space<vmem>>, vector<40x1xf32>,
    %c0_140 = arith.constant 0 : index
    %c27 = arith.constant 27 : index
    %c0_141 = arith.constant 0 : index
    %118 = vector.load %arg2[%c0_140, %c27, %c0_141] : memref<1x72x64xbf16, #tpu.memory_space<vmem>>, vector<1x40x64xbf16>
    %119 = vector.shape_cast %118 : vector<1x40x64xbf16> to vector<40x64xbf16>
    %c15 = arith.constant 15 : index
    %c0_142 = arith.constant 0 : index
    %c0_143 = arith.constant 0 : index
    %120 = vector.load %arg3[%c15, %c0_142, %c0_143] : memref<16x64x1xbf16, #tpu.memory_space<vmem>>, vector<1x64x1xbf16>
    %121 = vector.shape_cast %120 : vector<1x64x1xbf16> to vector<64x1xbf16>
    %cst_144 = arith.constant dense<0.000000e+00> : vector<40x1xf32>
    %122 = tpu.matmul %119, %121, %cst_144 {dimension_numbers = #tpu.dot_dimension_numbers<[1], [0], [0], [1], [0, 0, 1, 1], [], []>} : vector<40x64xbf16>, vector<64x1xbf16>, vector<40x1xf32> -> vector<40x1xf32>
    %c0_145 = arith.constant 0 : index
    %c0_146 = arith.constant 0 : index
    %123 = vector.load %arg6[%c0_145, %c0_146] : memref<40x1xf32, #tpu.memory_space<vmem>>, vector<40x1xf32>
    %124 = arith.addf %123, %122 : vector<40x1xf32>
    %c0_147 = arith.constant 0 : index
    %c0_148 = arith.constant 0 : index
    %125 = vector.load %arg6[%c0_147, %c0_148] : memref<40x1xf32, #tpu.memory_space<vmem>>, vector<40x1xf32>
    tpu.vector_store %arg6[%c0_147, %c0_148], %124 {strides = array<i32>} : memref<40x1xf32, #tpu.memory_space<vmem>>, vector<40x1xf32>,
    %c0_149 = arith.constant 0 : index
    %c0_150 = arith.constant 0 : index
    %126 = vector.load %arg6[%c0_149, %c0_150] : memref<40x1xf32, #tpu.memory_space<vmem>>, vector<40x1xf32>
    %c0_151 = arith.constant 0 : index
    %c0_152 = arith.constant 0 : index
    %127 = vector.load %arg4[%c0_151, %c0_152] : memref<1x1xf32, #tpu.memory_space<vmem>>, vector<1x1xf32>
    %128 = vector.broadcast %127 : vector<1x1xf32> to vector<40x1xf32>
    %129 = arith.addf %126, %128 : vector<40x1xf32>
    %130 = arith.truncf %129 : vector<40x1xf32> to vector<40x1xbf16>
    %c0_153 = arith.constant 0 : index
    %c0_154 = arith.constant 0 : index
    %c0_155 = arith.constant 0 : index
    %131 = vector.load %arg5[%c0_153, %c0_154, %c0_155] : memref<1x40x1xbf16, #tpu.memory_space<vmem>>, vector<1x40x1xbf16>
    %132 = vector.shape_cast %131 : vector<1x40x1xbf16> to vector<40x1xbf16>
    %133 = vector.shape_cast %130 : vector<40x1xbf16> to vector<1x40x1xbf16>
    tpu.vector_store %arg5[%c0_153, %c0_154, %c0_155], %133 {strides = array<i32>} : memref<1x40x1xbf16, #tpu.memory_space<vmem>>, vector<1x40x1xbf16>,
    return
  }
  func.func @transform_0(%arg0: i32, %arg1: i32) -> (i32, i32, i32) {
    %c1_i32 = arith.constant 1 : i32
    %0 = arith.muli %arg0, %c1_i32 : i32
    %1 = arith.addi %0, %arg1 : i32
    %c0_i32 = arith.constant 0 : i32
    %c0_i32_0 = arith.constant 0 : i32
    %c0_i32_1 = arith.constant 0 : i32
    return %1, %c0_i32, %c0_i32_0 : i32, i32, i32
  }
  func.func @transform_1(%arg0: i32, %arg1: i32) -> (i32, i32, i32) {
    %c0_i32 = arith.constant 0 : i32
    %c0_i32_0 = arith.constant 0 : i32
    %c0_i32_1 = arith.constant 0 : i32
    %c0_i32_2 = arith.constant 0 : i32
    return %c0_i32, %c0_i32_0, %c0_i32_1 : i32, i32, i32
  }
  func.func @transform_2(%arg0: i32, %arg1: i32) -> (i32, i32) {
    %c0_i32 = arith.constant 0 : i32
    %c0_i32_0 = arith.constant 0 : i32
    %c0_i32_1 = arith.constant 0 : i32
    return %c0_i32, %c0_i32_0 : i32, i32
  }
  func.func @transform_3(%arg0: i32, %arg1: i32) -> (i32, i32, i32) {
    %c0_i32 = arith.constant 0 : i32
    %c0_i32_0 = arith.constant 0 : i32
    return %arg0, %arg1, %c0_i32 : i32, i32, i32
  }
}

</mosaic_0001>

<bundles_post_ra>
// kernel: nlayer_discriminator_forward.8
= control target key start
LH: loop header
LB: loop body
LE: loop exit
PB: predicated region body
PF: predicated region fallthrough
CT: control target
= control target key end

     0   :  { %s2076_s12 = smov 0   ;;  %s2078_s13 = smov 0   ;;  %s2474_s0 = inlined_call_operand.vmem [shape: bf16[2,176,12], index: 0, kind: input, shape index: {}]   ;;  %s2475_s1 = inlined_call_operand.vmem [shape: bf16[4,12,8], index: 1, kind: input, shape index: {}]   ;;  %s2476_s2 = inlined_call_operand.vmem [shape: f32[1,8], index: 2, kind: input, shape index: {}]   ;;  %s2477_s3 = inlined_call_operand.vmem [shape: bf16[2,144,8], index: 3, kind: output, shape index: {}]  }
   0x1   :  { %s2080_s14 = smov 0  }
   0x2 LB: > { %s25_s15 = sadd.s32 1, %s2048_s13  ;;  %p1642_p0 = scmp.ge.s32.totalorder %s2052_s14, 1  ;;  %s2052_s14 = sphi %s2080_s14, %s13_s14   ;;  %s2048_s13 = sphi %s2078_s13, %s2479_s13   ;;  %s2044_s12 = sphi %s2076_s12, %s2478_s12  }
   0x3   : > { %p27_p1 = scmp.ge.s32.totalorder %s25_s15, 2  ;;  %p155_p2 = scmp.lt.s32.totalorder %s2052_s14, 3 }
   0x5   : > { %s2481_s15 = smov (%p27_p1, %s25_s15), 0  ;;  %p156_p3 = pnand %p1642_p0, %p155_p2 }
   0x6   : > { %vm300_vm0 = vcmask (!%p156_p3), 1045504   ;;  %v2054_v0 = vmov (!%p156_p3), 0.0   ;;  %v1988_v1 = vld [vmem:[%s2475_s1] sm:$0x3f] (!%p156_p3)   ;;  %p185_p4 = scmp.lt.s32.totalorder (!%p156_p3), %s2044_s12, 1  ;;  %vm2055_vm1 = vmmov (!%p156_p3), 0  }
   0x7   : > { %159 = sbr.rel (%p156_p3) target bundleno = 397 (0x18d), region = 32  ;;  %1808 = vmatprep.subr.bf16.mxu0 (!%p156_p3), %v2054_v0  ;;  %1846 = vmatprep.subr.bf16.mxu1 (!%p156_p3), %v2054_v0  ;;  %v302_v2 = vsel (!%p156_p3), %vm300_vm0, %v1988_v1, 0  ;;  %v1990_v3 = vld [vmem:[%s2475_s1 + $0x10] sm:$0x3f] (!%p156_p3)   ;;  %v1991_v4 = vld [vmem:[%s2475_s1 + $0x8] sm:$0x3f] (!%p156_p3)  }
   0x8   : > { %1810 = vmatprep.mubr.msk.bf16.mxu0 (!%p156_p3), %vm2055_vm1, %v2054_v0  ;;  %1848 = vmatprep.mubr.msk.bf16.mxu1 (!%p156_p3), %vm2055_vm1, %v2054_v0  ;;  %v608_v5 = vsel (!%p156_p3), %vm300_vm0, %v1991_v4, 0  ;;  %vm272_vm2 = vcmask (!%p156_p3), 97280   ;;  %v868_v7 = vsel (!%p156_p3), %vm300_vm0, %v1990_v3, 0  ;;  %v1995_v14 = vld [vmem:[%s2475_s1 + $0x18] sm:$0x3f] (!%p156_p3)   ;;  %vm409_vm4 = vcmask (!%p156_p3), 64512  }
   0x9   : > { %1809 = vmatpush3.bf16.msra.mxu0 (!%p156_p3), %v302_v2  ;;  %1847 = vmatpush3.bf16.msra.mxu1 (!%p156_p3), %v608_v5  ;;  %vm498_vm3 = vsmask.f32 (!%p156_p3), 7424  ;;  %v1208_v21 = vsel (!%p156_p3), %vm300_vm0, %v1995_v14, 0  ;;  %vm1538_vm6 = vcmask (!%p156_p3), 60416  }
   0xa   : > { %1884 = vmatprep.subr.bf16.mxu0 (!%p156_p3), %v2054_v0  ;;  %1922 = vmatprep.subr.bf16.mxu1 (!%p156_p3), %v2054_v0 }
   0xe   : > { %s2483_s12 = smov (!%p185_p4, %s2044_s12), 1 }
   0xf   : > { %s1960_s22 = smul.u32 88, %s2483_s12 }
  0x10   : > { %s1961_s30 = smul.u32 72, %s2483_s12 }
  0x11   : > { %s2118_s25 = scalar_lea.vmem %s2474_s0, %s1960_s22 }
  0x12   : > { %v1989_v6 = vld [vmem:[%s2118_s25] sm:$0xff]   ;;  %v1993_v9 = vld [vmem:[%s2118_s25 + $0x8] sm:$0xff]   ;;  %v1996_v13 = vld [vmem:[%s2118_s25 + $0x10] sm:$0xff]   ;;  %s2385_s6 = scalar_lea.vmem %s2477_s3, %s1961_s30 }
  0x13   : > { %1811 = vmatmul.mubr.msk.bf16.vlgmr.msra.gmra.mrb[0].mxu0 %vm272_vm2, %v1989_v6  ;;  %v1992_v8 = vld [vmem:[%s2118_s25] sm:$0xff]   ;;  %v507_v12 = vshll.u32 %v1993_v9, 16  ;;  %v1994_v17 = vld [vmem:[%s2118_s25 + $0x8] sm:$0xff]   ;;  %v511_v19 = vshrl.u32 %v1993_v9, 16  ;;  %v515_v20 = vshll.u32 %v1996_v13, 16  ;;  %v1998_v25 = vld [vmem:[%s2118_s25 + $0x18] sm:$0xff]  }
  0x14   : > { %1885 = vmatpush3.bf16.msra.mxu0 %v868_v7  ;;  %1814 = vmatprep.mubr.msk.bf16.mxu0 %vm2055_vm1, %v2054_v0  ;;  %v500_v10 = vshrl.u32 %v1992_v8, 16  ;;  %v502_v11 = vshll.u32 %v1992_v8, 16  ;;  %v1997_v26 = vld [vmem:[%s2118_s25 + $0x10] sm:$0xff]   ;;  %v519_v28 = vshrl.u32 %v1996_v13, 16  ;;  %v523_v29 = vshll.u32 %v1998_v25, 16  ;;  %v2145_v30 = vld [vmem:[%s2118_s25 + $0x20] sm:$0xff]  }
  0x15   : > { %v509_v16 = vrot.slane %v507_v12, 1  ;;  %v517_v24 = vrot.slane %v515_v20, 1  ;;  %v2008_v31 = vld [vmem:[%s2118_s25 + $0x40] sm:$0xff]   ;;  %v527_v32 = vshrl.u32 %v1998_v25, 16  ;;  %v1999_v35 = vld [vmem:[%s2118_s25 + $0x18] sm:$0xff]   ;;  %v531_v36 = vshll.u32 %v2145_v30, 16 }
  0x16   : > { %v504_v15 = vrot.slane %v502_v11, 1  ;;  %v525_v34 = vrot.slane %v523_v29, 1  ;;  %v563_v37 = vshll.u32 %v2008_v31, 16  ;;  %v2010_v38 = vld [vmem:[%s2118_s25 + $0x48] ss:$0 sps:$4 sm:$0x11]  }
  0x17   : > { %v513_v23 = vor.u32 %v511_v19, %v509_v16  ;;  %v521_v33 = vor.u32 %v519_v28, %v517_v24  ;;  %v567_v39 = vshrl.u32 %v2008_v31, 16  ;;  %v2012_v40 = vld [vmem:[%s2118_s25 + $0x8] sm:$0xff]   ;;  %v571_v42 = vshll.u32 %v2010_v38, 16  ;;  %v2013_v43 = vld [vmem:[%s2118_s25 + $0x10] sm:$0xff]   ;;  %v2015_v54 = vld [vmem:[%s2118_s25 + $0x18] sm:$0xff]  }
  0x18   : > { %v505_v18 = vor.u32 %v504_v15, %v500_v10  ;;  %v2158_v41 = vrot.slane %v563_v37, 1  ;;  %v1100_v44 = vshrl.u32 %v2012_v40, 16  ;;  %v1102_v48 = vshll.u32 %v2012_v40, 16  ;;  %v2164_v49 = vld [vmem:[%s2118_s25 + $0x28] sm:$0xff]   ;;  %v2017_v58 = vld [vmem:[%s2118_s25 + $0x20] sm:$0xff]   ;;  %v2021_v10 = vld [vmem:[%s2118_s25 + $0x30] sm:$0xff]  }
  0x19   : > { %v518_v27 = vsel %vm498_vm3, %v513_v23, %v517_v24  ;;  %v526_v45 = vsel %vm498_vm3, %v521_v33, %v525_v34  ;;  %v573_v47 = vrot.slane %v571_v42, 1  ;;  %v1107_v50 = vshll.u32 %v2013_v43, 16  ;;  %v2001_v59 = vld [vmem:[%s2118_s25 + $0x20] sm:$0xff]   ;;  %v2019_v6 = vld [vmem:[%s2118_s25 + $0x28] sm:$0xff]   ;;  %v2023_v20 = vld [vmem:[%s2118_s25 + $0x38] sm:$0xff]  }
  0x1a   : > { %v510_v22 = vsel %vm498_vm3, %v505_v18, %v509_v16  ;;  %v569_v46 = vor.u32 %v567_v39, %v2158_v41  ;;  %v533_v51 = vrot.slane %v531_v36, 1  ;;  %v1104_v53 = vrot.slane %v1102_v48, 1  ;;  %v2025_v29 = vld [vmem:[%s2118_s25 + $0x40] sm:$0xff]   ;;  %v2003_v31 = vld [vmem:[%s2118_s25 + $0x28] sm:$0xff]  }
  0x1b   : > { %1815 = vmatmul.mubr.msk.bf16.gmra.mrb[4].mxu0 %vm272_vm2, %v1994_v17  ;;  %1849 = vmatmul.mubr.msk.bf16.vlgmr.msra.gmra.mrb[0].mxu1 %vm272_vm2, %v510_v22  ;;  %v1111_v55 = vshrl.u32 %v2013_v43, 16  ;;  %v529_v56 = vor.u32 %v527_v32, %v525_v34  ;;  %v1109_v57 = vrot.slane %v1107_v50, 1  ;;  %v1115_v61 = vshll.u32 %v2015_v54, 16  ;;  %v2004_v17 = vld [vmem:[%s2118_s25 + $0x30] sm:$0xff]   ;;  %v2027_v36 = vld [vmem:[%s2118_s25 + $0x48] sm:$0xff]  }
  0x1c   : > { %1818 = vmatprep.mubr.msk.bf16.mxu0 %vm2055_vm1, %v2054_v0  ;;  %1923 = vmatpush3.bf16.msra.mxu1 %v1208_v21  ;;  %v2168_v52 = vsel %vm498_vm3, %v569_v46, %v573_v47  ;;  %v1105_v60 = vor.u32 %v1104_v53, %v1100_v44  ;;  %v1119_v62 = vshrl.u32 %v2015_v54, 16  ;;  %v535_v63 = vshrl.u32 %v2145_v30, 16  ;;  %v2006_v54 = vld [vmem:[%s2118_s25 + $0x38] sm:$0xff]  }
  0x1d   : > { %1852 = vmatprep.mubr.msk.bf16.mxu1 %vm2055_vm1, %v2054_v0  ;;  %v1113_v1 = vor.u32 %v1111_v55, %v1109_v57  ;;  %v1123_v2 = vshll.u32 %v2017_v58, 16  ;;  %v539_v3 = vshll.u32 %v2164_v49, 16  ;;  %v1117_v5 = vrot.slane %v1115_v61, 1 }
  0x1e   : > { %v2181_v4 = vsel %vm498_vm3, %v1105_v60, %v1109_v57  ;;  %v1127_v7 = vshrl.u32 %v2017_v58, 16  ;;  %v534_v8 = vsel %vm498_vm3, %v529_v56, %v533_v51  ;;  %v1131_v13 = vshll.u32 %v2019_v6, 16  ;;  %v2005_v58 = vld [vmem:[%s2118_s25 + $0x30] sm:$0xff]  }
  0x1f   : > { %v1125_v9 = vrot.slane %v1123_v2, 1  ;;  %v2187_v11 = vsel %vm498_vm3, %v1113_v1, %v1117_v5  ;;  %v1121_v12 = vor.u32 %v1119_v62, %v1117_v5  ;;  %v1135_v14 = vshrl.u32 %v2019_v6, 16  ;;  %v2007_v2 = vld [vmem:[%s2118_s25 + $0x38] sm:$0xff]  }
  0x20   : > { %v1139_v16 = vshll.u32 %v2021_v10, 16  ;;  %v1133_v19 = vrot.slane %v1131_v13, 1  ;;  %v537_v21 = vor.u32 %v535_v63, %v533_v51  ;;  %v1143_v23 = vshrl.u32 %v2021_v10, 16  ;;  %v2020_v10 = vld [vmem:[%s2118_s25 + $0x28] sm:$0xff]   ;;  %v2026_v13 = vld [vmem:[%s2118_s25 + $0x40] sm:$0xff]  }
  0x21   : > { %v1129_v15 = vor.u32 %v1127_v7, %v1125_v9  ;;  %v2192_v18 = vsel %vm498_vm3, %v1121_v12, %v1125_v9  ;;  %v541_v24 = vrot.slane %v539_v3, 1  ;;  %v1151_v30 = vshrl.u32 %v2023_v20, 16  ;;  %v2009_v7 = vld [vmem:[%s2118_s25 + $0x40] sm:$0xff]   ;;  %v2011_v9 = vld [vmem:[%s2118_s25 + $0x8] sm:$0xff]   ;;  %v2024_v12 = vld [vmem:[%s2118_s25 + $0x38] sm:$0xff]  }
  0x22   : > { %v1141_v22 = vrot.slane %v1139_v16, 1  ;;  %v543_v34 = vshrl.u32 %v2164_v49, 16  ;;  %v1159_v37 = vshrl.u32 %v2025_v29, 16  ;;  %v547_v39 = vshll.u32 %v2004_v17, 16 }
  0x23   : > { %1819 = vmatmul.mubr.msk.bf16.gmra.mrb[8].mxu0 %vm272_vm2, %v1997_v26  ;;  %1853 = vmatmul.mubr.msk.bf16.gmra.mrb[4].mxu1 %vm272_vm2, %v518_v27  ;;  %v2201_v25 = vsel %vm498_vm3, %v1129_v15, %v1133_v19  ;;  %v1137_v26 = vor.u32 %v1135_v14, %v1133_v19  ;;  %v1147_v27 = vshll.u32 %v2023_v20, 16  ;;  %v542_v38 = vsel %vm498_vm3, %v537_v21, %v541_v24  ;;  %v2028_v14 = vld [vmem:[%s2118_s25 + $0x48] sm:$0xff]  }
  0x24   : > { %1822 = vmatprep.mubr.msk.bf16.mxu0 %vm2055_vm1, %v2054_v0  ;;  %1856 = vmatprep.mubr.msk.bf16.mxu1 %vm2055_vm1, %v2054_v0  ;;  %v1145_v28 = vor.u32 %v1143_v23, %v1141_v22  ;;  %v1163_v44 = vshll.u32 %v2027_v36, 16  ;;  %v1167_v46 = vshrl.u32 %v2027_v36, 16  ;;  %v545_v51 = vor.u32 %v543_v34, %v541_v24 }
  0x25   : > { %v2206_v32 = vsel %vm498_vm3, %v1137_v26, %v1141_v22  ;;  %v1149_v33 = vrot.slane %v1147_v27, 1  ;;  %v549_v53 = vrot.slane %v547_v39, 1  ;;  %v551_v61 = vshrl.u32 %v2004_v17, 16 }
  0x26   : > { %v1165_v49 = vrot.slane %v1163_v44, 1  ;;  %v555_v62 = vshll.u32 %v2006_v54, 16  ;;  %v559_v5 = vshrl.u32 %v2006_v54, 16 }
  0x27   : > { %v2212_v40 = vsel %vm498_vm3, %v1145_v28, %v1149_v33  ;;  %v1153_v42 = vor.u32 %v1151_v30, %v1149_v33  ;;  %v550_v60 = vsel %vm498_vm3, %v545_v51, %v549_v53  ;;  %v553_v63 = vor.u32 %v551_v61, %v549_v53 }
  0x28   : > { %v1169_v56 = vor.u32 %v1167_v46, %v1165_v49  ;;  %v557_v1 = vrot.slane %v555_v62, 1 }
  0x2a   : > { %v558_v3 = vsel %vm498_vm3, %v553_v63, %v557_v1  ;;  %v561_v6 = vor.u32 %v559_v5, %v557_v1 }
  0x2b   : > { %1823 = vmatmul.mubr.msk.bf16.gmra.mrb[12].mxu0 %vm272_vm2, %v1999_v35  ;;  %1857 = vmatmul.mubr.msk.bf16.gmra.mrb[8].mxu1 %vm272_vm2, %v526_v45  ;;  %v1155_v35 = vshll.u32 %v2025_v29, 16  ;;  %v2029_v45 = vld [vmem:[%s2118_s25 + $0x50] ss:$0 sps:$4 sm:$0x11]  }
  0x2c   : > { %1826 = vmatprep.mubr.msk.bf16.mxu0 %vm2055_vm1, %v2054_v0  ;;  %1860 = vmatprep.mubr.msk.bf16.mxu1 %vm2055_vm1, %v2054_v0  ;;  %v1171_v50 = vshll.u32 %v2029_v45, 16 }
  0x2d   : > { %v1157_v43 = vrot.slane %v1155_v35, 1 }
  0x2e   : > { %v1173_v57 = vrot.slane %v1171_v50, 1 }
  0x2f   : > { %v2220_v47 = vsel %vm498_vm3, %v1153_v42, %v1157_v43  ;;  %v1161_v48 = vor.u32 %v1159_v37, %v1157_v43 }
  0x31   : > { %v2226_v55 = vsel %vm498_vm3, %v1161_v48, %v1165_v49 }
  0x33   : > { %1827 = vmatmul.mubr.msk.bf16.gmra.mrb[16].mxu0 %vm272_vm2, %v2001_v59  ;;  %1861 = vmatmul.mubr.msk.bf16.gmra.mrb[12].mxu1 %vm272_vm2, %v534_v8  ;;  %v2230_v59 = vsel %vm498_vm3, %v1169_v56, %v1173_v57  ;;  %v566_v8 = vsel %vm498_vm3, %v561_v6, %v2158_v41  ;;  %v2014_v41 = vld [vmem:[%s2118_s25 + $0x10] sm:$0xff]  }
  0x34   : > { %1830 = vmatprep.mubr.msk.bf16.mxu0 %vm2055_vm1, %v2054_v0  ;;  %1864 = vmatprep.mubr.msk.bf16.mxu1 %vm2055_vm1, %v2054_v0 }
  0x3b   : > { %1831 = vmatmul.mubr.msk.bf16.gmra.mrb[20].mxu0 %vm272_vm2, %v2003_v31  ;;  %1865 = vmatmul.mubr.msk.bf16.gmra.mrb[16].mxu1 %vm272_vm2, %v542_v38 }
  0x3c   : > { %1834 = vmatprep.mubr.msk.bf16.mxu0 %vm2055_vm1, %v2054_v0  ;;  %1868 = vmatprep.mubr.msk.bf16.mxu1 %vm2055_vm1, %v2054_v0 }
  0x43   : > { %1835 = vmatmul.mubr.msk.bf16.gmra.mrb[24].mxu0 %vm272_vm2, %v2005_v58  ;;  %1869 = vmatmul.mubr.msk.bf16.gmra.mrb[20].mxu1 %vm272_vm2, %v550_v60 }
  0x44   : > { %1838 = vmatprep.mubr.msk.bf16.mxu0 %vm2055_vm1, %v2054_v0  ;;  %1872 = vmatprep.mubr.msk.bf16.mxu1 %vm2055_vm1, %v2054_v0 }
  0x4b   : > { %1839 = vmatmul.mubr.msk.bf16.gmra.mrb[28].mxu0 %vm272_vm2, %v2007_v2  ;;  %1873 = vmatmul.mubr.msk.bf16.gmra.mrb[24].mxu1 %vm272_vm2, %v558_v3 }
  0x4c   : > { %1842 = vmatprep.mubr.msk.bf16.mxu0 %vm2055_vm1, %v2054_v0  ;;  %1876 = vmatprep.mubr.msk.bf16.mxu1 %vm2055_vm1, %v2054_v0 }
  0x53   : > { %1843 = vmatmul.mubr.msk.bf16.gmra.mrb[32].mxu0 %vm272_vm2, %v2009_v7  ;;  %1877 = vmatmul.mubr.msk.bf16.gmra.mrb[28].mxu1 %vm272_vm2, %v566_v8 }
  0x54   : > { %1886 = vmatprep.mubr.msk.bf16.mxu0 %vm2055_vm1, %v2054_v0  ;;  %1880 = vmatprep.mubr.msk.bf16.mxu1 %vm2055_vm1, %v2054_v0 }
  0x5b   : > { %1887 = vmatmul.mubr.msk.bf16.vlgmr.msra.gmra.mrb[36].mxu0 %vm272_vm2, %v2011_v9  ;;  %1881 = vmatmul.mubr.msk.bf16.gmra.mrb[32].mxu1 %vm272_vm2, %v2168_v52  ;;  %v2016_v52 = vld [vmem:[%s2118_s25 + $0x18] sm:$0xff]  }
  0x5c   : > { %1890 = vmatprep.mubr.msk.bf16.mxu0 %vm2055_vm1, %v2054_v0  ;;  %1924 = vmatprep.mubr.msk.bf16.mxu1 %vm2055_vm1, %v2054_v0 }
  0x63   : > { %1891 = vmatmul.mubr.msk.bf16.gmra.mrb[40].mxu0 %vm272_vm2, %v2014_v41  ;;  %1925 = vmatmul.mubr.msk.bf16.vlgmr.msra.gmra.mrb[36].mxu1 %vm272_vm2, %v2181_v4  ;;  %v2018_v4 = vld [vmem:[%s2118_s25 + $0x20] sm:$0xff]  }
  0x64   : > { %1894 = vmatprep.mubr.msk.bf16.mxu0 %vm2055_vm1, %v2054_v0  ;;  %1928 = vmatprep.mubr.msk.bf16.mxu1 %vm2055_vm1, %v2054_v0 }
  0x6b   : > { %1895 = vmatmul.mubr.msk.bf16.gmra.mrb[44].mxu0 %vm272_vm2, %v2016_v52  ;;  %1929 = vmatmul.mubr.msk.bf16.gmra.mrb[40].mxu1 %vm272_vm2, %v2187_v11  ;;  %v2022_v11 = vld [vmem:[%s2118_s25 + $0x30] sm:$0xff]  }
  0x6c   : > { %1898 = vmatprep.mubr.msk.bf16.mxu0 %vm2055_vm1, %v2054_v0  ;;  %1932 = vmatprep.mubr.msk.bf16.mxu1 %vm2055_vm1, %v2054_v0 }
  0x73   : > { %1899 = vmatmul.mubr.msk.bf16.gmra.mrb[48].mxu0 %vm272_vm2, %v2018_v4  ;;  %1933 = vmatmul.mubr.msk.bf16.gmra.mrb[44].mxu1 %vm272_vm2, %v2192_v18 }
  0x74   : > { %1902 = vmatprep.mubr.msk.bf16.mxu0 %vm2055_vm1, %v2054_v0  ;;  %1936 = vmatprep.mubr.msk.bf16.mxu1 %vm2055_vm1, %v2054_v0 }
  0x7b   : > { %1903 = vmatmul.mubr.msk.bf16.gmra.mrb[52].mxu0 %vm272_vm2, %v2020_v10  ;;  %1937 = vmatmul.mubr.msk.bf16.gmra.mrb[48].mxu1 %vm272_vm2, %v2201_v25 }
  0x7c   : > { %1906 = vmatprep.mubr.msk.bf16.mxu0 %vm2055_vm1, %v2054_v0  ;;  %1940 = vmatprep.mubr.msk.bf16.mxu1 %vm2055_vm1, %v2054_v0 }
  0x83   : > { %1907 = vmatmul.mubr.msk.bf16.gmra.mrb[56].mxu0 %vm272_vm2, %v2022_v11  ;;  %1941 = vmatmul.mubr.msk.bf16.gmra.mrb[52].mxu1 %vm272_vm2, %v2206_v32 }
  0x84   : > { %1910 = vmatprep.mubr.msk.bf16.mxu0 %vm2055_vm1, %v2054_v0  ;;  %1944 = vmatprep.mubr.msk.bf16.mxu1 %vm2055_vm1, %v2054_v0 }
  0x8b   : > { %1911 = vmatmul.mubr.msk.bf16.gmra.mrb[60].mxu0 %vm272_vm2, %v2024_v12  ;;  %1945 = vmatmul.mubr.msk.bf16.gmra.mrb[56].mxu1 %vm272_vm2, %v2212_v40 }
  0x8c   : > { %1914 = vmatprep.mubr.msk.bf16.mxu0 %vm2055_vm1, %v2054_v0  ;;  %1948 = vmatprep.mubr.msk.bf16.mxu1 %vm2055_vm1, %v2054_v0 }
  0x93   : > { %1915 = vmatmul.mubr.msk.bf16.gmra.mrb[64].mxu0 %vm272_vm2, %v2026_v13  ;;  %1949 = vmatmul.mubr.msk.bf16.gmra.mrb[60].mxu1 %vm272_vm2, %v2220_v47 }
  0x94   : > { %1918 = vmatprep.mubr.msk.bf16.mxu0 %vm2055_vm1, %v2054_v0  ;;  %1952 = vmatprep.mubr.msk.bf16.mxu1 %vm2055_vm1, %v2054_v0 }
  0x9b   : > { %1919 = vmatmul.mubr.msk.bf16.gmra.mrb[68].mxu0 %vm272_vm2, %v2028_v14  ;;  %1953 = vmatmul.mubr.msk.bf16.gmra.mrb[64].mxu1 %vm272_vm2, %v2226_v55 }
  0x9c   : > { %1956 = vmatprep.mubr.msk.bf16.mxu1 %vm2055_vm1, %v2054_v0 }
  0xa3   : > { %1957 = vmatmul.mubr.msk.bf16.gmra.mrb[68].mxu1 %vm272_vm2, %v2230_v59 }
  0xe6   : > { %v338_v15 = vpop.f32.mrb[0].mxu0 }
  0xe7   : > { %410 = vst.msk [vmem:[#allocation2] sm:$0xff] %vm409_vm4, %v338_v15  ;;  %v1812_v16 = vpop.f32.mrb[1].mxu0 }
  0xe8   : > { %v341_v17 = vpop.f32.mrb[2].mxu0 }
  0xe9   : > { %411 = vst.msk [vmem:[#allocation2 + $0x8] sm:$0xff] %vm409_vm4, %v341_v17  ;;  %v1813_v18 = vpop.f32.mrb[3].mxu0 }
  0xee   : > { %v715_v19 = vld [vmem:[#allocation2] sm:$0xff]  ;;  %v346_v20 = vpop.f32.mrb[4].mxu0  ;;  %v644_v21 = vpop.f32.mrb[0].mxu1 }
  0xef   : > { %412 = vst.msk [vmem:[#allocation2 + $0x10] sm:$0xff] %vm409_vm4, %v346_v20  ;;  %v1816_v22 = vpop.f32.mrb[5].mxu0  ;;  %v733_v23 = vadd.f32 %v715_v19, %v644_v21  ;;  %v1850_v0 = vpop.f32.mrb[1].mxu1 }
  0xf0   : > { %v716_v24 = vld [vmem:[#allocation2 + $0x8] sm:$0xff]  ;;  %v349_v25 = vpop.f32.mrb[6].mxu0  ;;  %v647_v26 = vpop.f32.mrb[2].mxu1 }
  0xf1   : > { %413 = vst.msk [vmem:[#allocation2 + $0x18] sm:$0xff] %vm409_vm4, %v349_v25  ;;  %v1817_v27 = vpop.f32.mrb[7].mxu0  ;;  %751 = vst.msk [vmem:[#allocation2] sm:$0xff] %vm409_vm4, %v733_v23  ;;  %v734_v28 = vadd.f32 %v716_v24, %v647_v26  ;;  %v1851_v29 = vpop.f32.mrb[3].mxu1 }
  0xf3   : > { %752 = vst.msk [vmem:[#allocation2 + $0x8] sm:$0xff] %vm409_vm4, %v734_v28 }
  0xf6   : > { %v717_v30 = vld [vmem:[#allocation2 + $0x10] sm:$0xff]  ;;  %v354_v31 = vpop.f32.mrb[8].mxu0  ;;  %v652_v32 = vpop.f32.mrb[4].mxu1 }
  0xf7   : > { %414 = vst.msk [vmem:[#allocation2 + $0x20] sm:$0xff] %vm409_vm4, %v354_v31  ;;  %v1820_v33 = vpop.f32.mrb[9].mxu0  ;;  %v735_v34 = vadd.f32 %v717_v30, %v652_v32  ;;  %v1854_v35 = vpop.f32.mrb[5].mxu1 }
  0xf8   : > { %v718_v36 = vld [vmem:[#allocation2 + $0x18] sm:$0xff]  ;;  %v357_v37 = vpop.f32.mrb[10].mxu0  ;;  %v655_v38 = vpop.f32.mrb[6].mxu1 }
  0xf9   : > { %415 = vst.msk [vmem:[#allocation2 + $0x28] sm:$0xff] %vm409_vm4, %v357_v37  ;;  %v1821_v39 = vpop.f32.mrb[11].mxu0  ;;  %753 = vst.msk [vmem:[#allocation2 + $0x10] sm:$0xff] %vm409_vm4, %v735_v34  ;;  %v736_v40 = vadd.f32 %v718_v36, %v655_v38  ;;  %v1855_v42 = vpop.f32.mrb[7].mxu1 }
  0xfb   : > { %754 = vst.msk [vmem:[#allocation2 + $0x18] sm:$0xff] %vm409_vm4, %v736_v40 }
  0xfe   : > { %v719_v43 = vld [vmem:[#allocation2 + $0x20] sm:$0xff]  ;;  %v362_v44 = vpop.f32.mrb[12].mxu0  ;;  %v660_v45 = vpop.f32.mrb[8].mxu1 }
  0xff   : > { %416 = vst.msk [vmem:[#allocation2 + $0x30] sm:$0xff] %vm409_vm4, %v362_v44  ;;  %v1824_v46 = vpop.f32.mrb[13].mxu0  ;;  %v737_v47 = vadd.f32 %v719_v43, %v660_v45  ;;  %v1858_v48 = vpop.f32.mrb[9].mxu1 }
 0x100   : > { %v720_v49 = vld [vmem:[#allocation2 + $0x28] sm:$0xff]  ;;  %v365_v50 = vpop.f32.mrb[14].mxu0  ;;  %v663_v51 = vpop.f32.mrb[10].mxu1 }
 0x101   : > { %417 = vst.msk [vmem:[#allocation2 + $0x38] sm:$0xff] %vm409_vm4, %v365_v50  ;;  %v1825_v53 = vpop.f32.mrb[15].mxu0  ;;  %755 = vst.msk [vmem:[#allocation2 + $0x20] sm:$0xff] %vm409_vm4, %v737_v47  ;;  %v738_v54 = vadd.f32 %v720_v49, %v663_v51  ;;  %v1859_v55 = vpop.f32.mrb[11].mxu1 }
 0x103   : > { %756 = vst.msk [vmem:[#allocation2 + $0x28] sm:$0xff] %vm409_vm4, %v738_v54  ;;  %v975_v54 = vld [vmem:[#allocation2] sm:$0xff] }
 0x106   : > { %v721_v56 = vld [vmem:[#allocation2 + $0x30] sm:$0xff]  ;;  %v370_v57 = vpop.f32.mrb[16].mxu0  ;;  %v668_v58 = vpop.f32.mrb[12].mxu1 }
 0x107   : > { %418 = vst.msk [vmem:[#allocation2 + $0x40] sm:$0xff] %vm409_vm4, %v370_v57  ;;  %v1828_v59 = vpop.f32.mrb[17].mxu0  ;;  %v739_v60 = vadd.f32 %v721_v56, %v668_v58  ;;  %v1862_v61 = vpop.f32.mrb[13].mxu1 }
 0x108   : > { %v722_v62 = vld [vmem:[#allocation2 + $0x38] sm:$0xff]  ;;  %v373_v63 = vpop.f32.mrb[18].mxu0  ;;  %v671_v1 = vpop.f32.mrb[14].mxu1 }
 0x109   : > { %419 = vst.msk [vmem:[#allocation2 + $0x48] sm:$0xff] %vm409_vm4, %v373_v63  ;;  %v1829_v2 = vpop.f32.mrb[19].mxu0  ;;  %757 = vst.msk [vmem:[#allocation2 + $0x30] sm:$0xff] %vm409_vm4, %v739_v60  ;;  %v740_v3 = vadd.f32 %v722_v62, %v671_v1  ;;  %v1863_v5 = vpop.f32.mrb[15].mxu1  ;;  %v976_v62 = vld [vmem:[#allocation2 + $0x8] sm:$0xff] }
 0x10b   : > { %758 = vst.msk [vmem:[#allocation2 + $0x38] sm:$0xff] %vm409_vm4, %v740_v3 }
 0x10e   : > { %v723_v6 = vld [vmem:[#allocation2 + $0x40] sm:$0xff]  ;;  %v378_v7 = vpop.f32.mrb[20].mxu0  ;;  %v676_v8 = vpop.f32.mrb[16].mxu1 }
 0x10f   : > { %420 = vst.msk [vmem:[#allocation2 + $0x50] sm:$0xff] %vm409_vm4, %v378_v7  ;;  %v1832_v9 = vpop.f32.mrb[21].mxu0  ;;  %v741_v41 = vadd.f32 %v723_v6, %v676_v8  ;;  %v1866_v52 = vpop.f32.mrb[17].mxu1  ;;  %v977_v7 = vld [vmem:[#allocation2 + $0x10] sm:$0xff] }
 0x110   : > { %v724_v4 = vld [vmem:[#allocation2 + $0x48] sm:$0xff]  ;;  %v381_v10 = vpop.f32.mrb[22].mxu0  ;;  %v679_v11 = vpop.f32.mrb[18].mxu1 }
 0x111   : > { %421 = vst.msk [vmem:[#allocation2 + $0x58] sm:$0xff] %vm409_vm4, %v381_v10  ;;  %v1833_v12 = vpop.f32.mrb[23].mxu0  ;;  %759 = vst.msk [vmem:[#allocation2 + $0x40] sm:$0xff] %vm409_vm4, %v741_v41  ;;  %v742_v13 = vadd.f32 %v724_v4, %v679_v11  ;;  %v1867_v14 = vpop.f32.mrb[19].mxu1  ;;  %v978_v11 = vld [vmem:[#allocation2 + $0x18] sm:$0xff] }
 0x113   : > { %760 = vst.msk [vmem:[#allocation2 + $0x48] sm:$0xff] %vm409_vm4, %v742_v13 }
 0x116   : > { %v725_v15 = vld [vmem:[#allocation2 + $0x50] sm:$0xff]  ;;  %v386_v16 = vpop.f32.mrb[24].mxu0  ;;  %v684_v17 = vpop.f32.mrb[20].mxu1 }
 0x117   : > { %422 = vst.msk [vmem:[#allocation2 + $0x60] sm:$0xff] %vm409_vm4, %v386_v16  ;;  %v1836_v18 = vpop.f32.mrb[25].mxu0  ;;  %v743_v19 = vadd.f32 %v725_v15, %v684_v17  ;;  %v1870_v20 = vpop.f32.mrb[21].mxu1 }
 0x118   : > { %v726_v21 = vld [vmem:[#allocation2 + $0x58] sm:$0xff]  ;;  %v389_v22 = vpop.f32.mrb[26].mxu0  ;;  %v687_v23 = vpop.f32.mrb[22].mxu1  ;;  %v979_v20 = vld [vmem:[#allocation2 + $0x20] sm:$0xff] }
 0x119   : > { %423 = vst.msk [vmem:[#allocation2 + $0x68] sm:$0xff] %vm409_vm4, %v389_v22  ;;  %v1837_v0 = vpop.f32.mrb[27].mxu0  ;;  %761 = vst.msk [vmem:[#allocation2 + $0x50] sm:$0xff] %vm409_vm4, %v743_v19  ;;  %v744_v24 = vadd.f32 %v726_v21, %v687_v23  ;;  %v1871_v25 = vpop.f32.mrb[23].mxu1 }
 0x11a   : > { %v2373_v0 = vld [vmem:[%s2476_s2] ss:$0 sm:$0xff] }
 0x11b   : > { %762 = vst.msk [vmem:[#allocation2 + $0x58] sm:$0xff] %vm409_vm4, %v744_v24 }
 0x11e   : > { %v727_v26 = vld [vmem:[#allocation2 + $0x60] sm:$0xff]  ;;  %v394_v27 = vpop.f32.mrb[28].mxu0  ;;  %v692_v28 = vpop.f32.mrb[24].mxu1 }
 0x11f   : > { %424 = vst.msk [vmem:[#allocation2 + $0x70] sm:$0xff] %vm409_vm4, %v394_v27  ;;  %v1840_v29 = vpop.f32.mrb[29].mxu0  ;;  %v745_v30 = vadd.f32 %v727_v26, %v692_v28  ;;  %v1874_v31 = vpop.f32.mrb[25].mxu1  ;;  %v980_v27 = vld [vmem:[#allocation2 + $0x28] sm:$0xff] }
 0x120   : > { %v728_v32 = vld [vmem:[#allocation2 + $0x68] sm:$0xff]  ;;  %v397_v33 = vpop.f32.mrb[30].mxu0  ;;  %v695_v34 = vpop.f32.mrb[26].mxu1 }
 0x121   : > { %425 = vst.msk [vmem:[#allocation2 + $0x78] sm:$0xff] %vm409_vm4, %v397_v33  ;;  %v1841_v35 = vpop.f32.mrb[31].mxu0  ;;  %763 = vst.msk [vmem:[#allocation2 + $0x60] sm:$0xff] %vm409_vm4, %v745_v30  ;;  %v746_v36 = vadd.f32 %v728_v32, %v695_v34  ;;  %v1875_v37 = vpop.f32.mrb[27].mxu1 }
 0x123   : > { %764 = vst.msk [vmem:[#allocation2 + $0x68] sm:$0xff] %vm409_vm4, %v746_v36 }
 0x126   : > { %v729_v38 = vld [vmem:[#allocation2 + $0x70] sm:$0xff]  ;;  %v402_v39 = vpop.f32.mrb[32].mxu0  ;;  %v700_v40 = vpop.f32.mrb[28].mxu1 }
 0x127   : > { %426 = vst.msk [vmem:[#allocation2 + $0x80] sm:$0xff] %vm409_vm4, %v402_v39  ;;  %v1844_v42 = vpop.f32.mrb[33].mxu0  ;;  %v747_v43 = vadd.f32 %v729_v38, %v700_v40  ;;  %v1878_v44 = vpop.f32.mrb[29].mxu1 }
 0x128   : > { %v730_v45 = vld [vmem:[#allocation2 + $0x78] sm:$0xff]  ;;  %v405_v46 = vpop.f32.mrb[34].mxu0  ;;  %v703_v47 = vpop.f32.mrb[30].mxu1  ;;  %v981_v42 = vld [vmem:[#allocation2 + $0x30] sm:$0xff] }
 0x129   : > { %427 = vst.msk [vmem:[#allocation2 + $0x88] sm:$0xff] %vm409_vm4, %v405_v46  ;;  %v1845_v48 = vpop.f32.mrb[35].mxu0  ;;  %765 = vst.msk [vmem:[#allocation2 + $0x70] sm:$0xff] %vm409_vm4, %v747_v43  ;;  %v748_v49 = vadd.f32 %v730_v45, %v703_v47  ;;  %v1879_v50 = vpop.f32.mrb[31].mxu1 }
 0x12b   : > { %766 = vst.msk [vmem:[#allocation2 + $0x78] sm:$0xff] %vm409_vm4, %v748_v49 }
 0x12e   : > { %v731_v51 = vld [vmem:[#allocation2 + $0x80] sm:$0xff]  ;;  %v904_v53 = vpop.f32.mrb[36].mxu0  ;;  %v708_v55 = vpop.f32.mrb[32].mxu1 }
 0x12f   : > { %v993_v56 = vadd.f32 %v975_v54, %v904_v53  ;;  %v1888_v57 = vpop.f32.mrb[37].mxu0  ;;  %v749_v58 = vadd.f32 %v731_v51, %v708_v55  ;;  %v1882_v59 = vpop.f32.mrb[33].mxu1  ;;  %v982_v53 = vld [vmem:[#allocation2 + $0x38] sm:$0xff] }
 0x130   : > { %v732_v60 = vld [vmem:[#allocation2 + $0x88] sm:$0xff]  ;;  %v907_v61 = vpop.f32.mrb[38].mxu0  ;;  %v711_v63 = vpop.f32.mrb[34].mxu1 }
 0x131   : > { %1011 = vst.msk [vmem:[#allocation2] sm:$0xff] %vm409_vm4, %v993_v56  ;;  %v994_v1 = vadd.f32 %v976_v62, %v907_v61  ;;  %v1889_v2 = vpop.f32.mrb[39].mxu0  ;;  %767 = vst.msk [vmem:[#allocation2 + $0x80] sm:$0xff] %vm409_vm4, %v749_v58  ;;  %v750_v3 = vadd.f32 %v732_v60, %v711_v63  ;;  %v1883_v5 = vpop.f32.mrb[35].mxu1 }
 0x133   : > { %1012 = vst.msk [vmem:[#allocation2 + $0x8] sm:$0xff] %vm409_vm4, %v994_v1  ;;  %768 = vst.msk [vmem:[#allocation2 + $0x88] sm:$0xff] %vm409_vm4, %v750_v3 }
 0x136   : > { %v912_v6 = vpop.f32.mrb[40].mxu0  ;;  %v1244_v8 = vpop.f32.mrb[36].mxu1 }
 0x137   : > { %v995_v9 = vadd.f32 %v977_v7, %v912_v6  ;;  %v1892_v41 = vpop.f32.mrb[41].mxu0  ;;  %v1926_v4 = vpop.f32.mrb[37].mxu1  ;;  %v983_v7 = vld [vmem:[#allocation2 + $0x40] sm:$0xff] }
 0x138   : > { %v1315_v52 = vld [vmem:[#allocation2] sm:$0xff]  ;;  %v915_v10 = vpop.f32.mrb[42].mxu0  ;;  %v1247_v13 = vpop.f32.mrb[38].mxu1 }
 0x139   : > { %v1333_v12 = vadd.f32 %v1315_v52, %v1244_v8  ;;  %1013 = vst.msk [vmem:[#allocation2 + $0x10] sm:$0xff] %vm409_vm4, %v995_v9  ;;  %v996_v14 = vadd.f32 %v978_v11, %v915_v10  ;;  %v1893_v15 = vpop.f32.mrb[43].mxu0  ;;  %v1927_v17 = vpop.f32.mrb[39].mxu1 }
 0x13a   : > { %v1316_v16 = vld [vmem:[#allocation2 + $0x8] sm:$0xff] }
 0x13b   : > { %1351 = vst.msk [vmem:[#allocation2] sm:$0xff] %vm409_vm4, %v1333_v12  ;;  %v1334_v18 = vadd.f32 %v1316_v16, %v1247_v13  ;;  %1014 = vst.msk [vmem:[#allocation2 + $0x18] sm:$0xff] %vm409_vm4, %v996_v14  ;;  %v984_v14 = vld [vmem:[#allocation2 + $0x48] sm:$0xff] }
 0x13d   : > { %1352 = vst.msk [vmem:[#allocation2 + $0x8] sm:$0xff] %vm409_vm4, %v1334_v18 }
 0x13e   : > { %v920_v19 = vpop.f32.mrb[44].mxu0  ;;  %v1252_v21 = vpop.f32.mrb[40].mxu1 }
 0x13f   : > { %v997_v22 = vadd.f32 %v979_v20, %v920_v19  ;;  %v1896_v23 = vpop.f32.mrb[45].mxu0  ;;  %v1930_v25 = vpop.f32.mrb[41].mxu1 }
 0x140   : > { %v1317_v24 = vld [vmem:[#allocation2 + $0x10] sm:$0xff]  ;;  %v923_v26 = vpop.f32.mrb[46].mxu0  ;;  %v1255_v29 = vpop.f32.mrb[42].mxu1 }
 0x141   : > { %v1335_v28 = vadd.f32 %v1317_v24, %v1252_v21  ;;  %1015 = vst.msk [vmem:[#allocation2 + $0x20] sm:$0xff] %vm409_vm4, %v997_v22  ;;  %v998_v30 = vadd.f32 %v980_v27, %v923_v26  ;;  %v1897_v31 = vpop.f32.mrb[47].mxu0  ;;  %v1931_v34 = vpop.f32.mrb[43].mxu1 }
 0x142   : > { %v1369_v32 = vld [vmem:[#allocation2] sm:$0xff]  ;;  %v1318_v33 = vld [vmem:[#allocation2 + $0x18] sm:$0xff] }
 0x143   : > { %v1394_v35 = vadd.f32 %v2373_v0, %v1369_v32  ;;  %1353 = vst.msk [vmem:[#allocation2 + $0x10] sm:$0xff] %vm409_vm4, %v1335_v28  ;;  %v1336_v36 = vadd.f32 %v1318_v33, %v1255_v29  ;;  %1016 = vst.msk [vmem:[#allocation2 + $0x28] sm:$0xff] %vm409_vm4, %v998_v30  ;;  %v985_v30 = vld [vmem:[#allocation2 + $0x50] sm:$0xff] }
 0x144   : > { %v1370_v37 = vld [vmem:[#allocation2 + $0x8] sm:$0xff] }
 0x145   : > { %vm1412_vm5 = vcmp.gt.f32.partialorder %v1394_v35, 0.0  ;;  %v1430_v38 = vmul.f32 0.2, %v1394_v35  ;;  %v1395_v39 = vadd.f32 %v2373_v0, %v1370_v37  ;;  %1354 = vst.msk [vmem:[#allocation2 + $0x18] sm:$0xff] %vm409_vm4, %v1336_v36 }
 0x146   : > { %v928_v40 = vpop.f32.mrb[48].mxu0  ;;  %v1260_v45 = vpop.f32.mrb[44].mxu1 }
 0x147   : > { %v1448_v43 = vsel %vm1412_vm5, %v1394_v35, %v1430_v38  ;;  %vm1413_vm7 = vcmp.gt.f32.partialorder %v1395_v39, 0.0  ;;  %v1431_v44 = vmul.f32 0.2, %v1395_v39  ;;  %v999_v46 = vadd.f32 %v981_v42, %v928_v40  ;;  %v1900_v47 = vpop.f32.mrb[49].mxu0  ;;  %v1934_v50 = vpop.f32.mrb[45].mxu1  ;;  %v986_v40 = vld [vmem:[#allocation2 + $0x58] sm:$0xff] }
 0x148   : > { %v1750_v48 = vpack.c.bf16 %v1448_v43, %v1448_v43  ;;  %v1319_v49 = vld [vmem:[#allocation2 + $0x20] sm:$0xff]  ;;  %v931_v51 = vpop.f32.mrb[50].mxu0  ;;  %v1263_v56 = vpop.f32.mrb[46].mxu1 }
 0x149   : > { %v1449_v54 = vsel %vm1413_vm7, %v1395_v39, %v1431_v44  ;;  %v1337_v55 = vadd.f32 %v1319_v49, %v1260_v45  ;;  %1017 = vst.msk [vmem:[#allocation2 + $0x30] sm:$0xff] %vm409_vm4, %v999_v46  ;;  %v1000_v57 = vadd.f32 %v982_v53, %v931_v51  ;;  %v1901_v58 = vpop.f32.mrb[51].mxu0  ;;  %v1935_v62 = vpop.f32.mrb[47].mxu1 }
 0x14a   : > { %1539 = vst.msk [vmem:[%s2385_s6] sm:$0xf] %vm1538_vm6, %v1750_v48  ;;  %v1751_v59 = vpack.c.bf16 %v1449_v54, %v1449_v54  ;;  %v1371_v60 = vld [vmem:[#allocation2 + $0x10] sm:$0xff]  ;;  %v1320_v61 = vld [vmem:[#allocation2 + $0x28] sm:$0xff]  ;;  %v987_v58 = vld [vmem:[#allocation2 + $0x60] sm:$0xff] }
 0x14b   : > { %v1396_v63 = vadd.f32 %v2373_v0, %v1371_v60  ;;  %1355 = vst.msk [vmem:[#allocation2 + $0x20] sm:$0xff] %vm409_vm4, %v1337_v55  ;;  %v1338_v1 = vadd.f32 %v1320_v61, %v1263_v56  ;;  %1018 = vst.msk [vmem:[#allocation2 + $0x38] sm:$0xff] %vm409_vm4, %v1000_v57 }
 0x14c   : > { %1540 = vst.msk [vmem:[%s2385_s6 + $0x4] sm:$0xf] %vm1538_vm6, %v1751_v59  ;;  %v1372_v2 = vld [vmem:[#allocation2 + $0x18] sm:$0xff] }
 0x14d   : > { %vm1414_vm8 = vcmp.gt.f32.partialorder %v1396_v63, 0.0  ;;  %v1432_v3 = vmul.f32 0.2, %v1396_v63  ;;  %v1397_v5 = vadd.f32 %v2373_v0, %v1372_v2  ;;  %1356 = vst.msk [vmem:[#allocation2 + $0x28] sm:$0xff] %vm409_vm4, %v1338_v1 }
 0x14e   : > { %v936_v6 = vpop.f32.mrb[52].mxu0  ;;  %v1268_v41 = vpop.f32.mrb[48].mxu1 }
 0x14f   : > { %v1450_v8 = vsel %vm1414_vm8, %v1396_v63, %v1432_v3  ;;  %vm1415_vm9 = vcmp.gt.f32.partialorder %v1397_v5, 0.0  ;;  %v1433_v9 = vmul.f32 0.2, %v1397_v5  ;;  %v1001_v52 = vadd.f32 %v983_v7, %v936_v6  ;;  %v1904_v4 = vpop.f32.mrb[53].mxu0  ;;  %v1938_v12 = vpop.f32.mrb[49].mxu1  ;;  %v988_v6 = vld [vmem:[#allocation2 + $0x68] sm:$0xff] }
 0x150   : > { %v1752_v10 = vpack.c.bf16 %v1450_v8, %v1450_v8  ;;  %v1321_v11 = vld [vmem:[#allocation2 + $0x30] sm:$0xff]  ;;  %v939_v13 = vpop.f32.mrb[54].mxu0  ;;  %v1271_v17 = vpop.f32.mrb[50].mxu1 }
 0x151   : > { %v1451_v15 = vsel %vm1415_vm9, %v1397_v5, %v1433_v9  ;;  %v1339_v16 = vadd.f32 %v1321_v11, %v1268_v41  ;;  %1019 = vst.msk [vmem:[#allocation2 + $0x40] sm:$0xff] %vm409_vm4, %v1001_v52  ;;  %v1002_v18 = vadd.f32 %v984_v14, %v939_v13  ;;  %v1905_v19 = vpop.f32.mrb[55].mxu0  ;;  %v1939_v23 = vpop.f32.mrb[51].mxu1 }
 0x152   : > { %1541 = vst.msk [vmem:[%s2385_s6 + $0x8] sm:$0xf] %vm1538_vm6, %v1752_v10  ;;  %v1753_v20 = vpack.c.bf16 %v1451_v15, %v1451_v15  ;;  %v1373_v21 = vld [vmem:[#allocation2 + $0x20] sm:$0xff]  ;;  %v1322_v22 = vld [vmem:[#allocation2 + $0x38] sm:$0xff]  ;;  %v989_v19 = vld [vmem:[#allocation2 + $0x70] sm:$0xff] }
 0x153   : > { %v1398_v24 = vadd.f32 %v2373_v0, %v1373_v21  ;;  %1357 = vst.msk [vmem:[#allocation2 + $0x30] sm:$0xff] %vm409_vm4, %v1339_v16  ;;  %v1340_v25 = vadd.f32 %v1322_v22, %v1271_v17  ;;  %1020 = vst.msk [vmem:[#allocation2 + $0x48] sm:$0xff] %vm409_vm4, %v1002_v18 }
 0x154   : > { %1542 = vst.msk [vmem:[%s2385_s6 + $0xc] sm:$0xf] %vm1538_vm6, %v1753_v20  ;;  %v1374_v26 = vld [vmem:[#allocation2 + $0x28] sm:$0xff] }
 0x155   : > { %vm1416_vm10 = vcmp.gt.f32.partialorder %v1398_v24, 0.0  ;;  %v1434_v27 = vmul.f32 0.2, %v1398_v24  ;;  %v1399_v28 = vadd.f32 %v2373_v0, %v1374_v26  ;;  %1358 = vst.msk [vmem:[#allocation2 + $0x38] sm:$0xff] %vm409_vm4, %v1340_v25 }
 0x156   : > { %v944_v29 = vpop.f32.mrb[56].mxu0  ;;  %v1276_v33 = vpop.f32.mrb[52].mxu1 }
 0x157   : > { %v1452_v31 = vsel %vm1416_vm10, %v1398_v24, %v1434_v27  ;;  %vm1417_vm11 = vcmp.gt.f32.partialorder %v1399_v28, 0.0  ;;  %v1435_v32 = vmul.f32 0.2, %v1399_v28  ;;  %v1003_v34 = vadd.f32 %v985_v30, %v944_v29  ;;  %v1908_v35 = vpop.f32.mrb[57].mxu0  ;;  %v1942_v38 = vpop.f32.mrb[53].mxu1  ;;  %v990_v29 = vld [vmem:[#allocation2 + $0x78] sm:$0xff] }
 0x158   : > { %v1754_v36 = vpack.c.bf16 %v1452_v31, %v1452_v31  ;;  %v1323_v37 = vld [vmem:[#allocation2 + $0x40] sm:$0xff]  ;;  %v947_v39 = vpop.f32.mrb[58].mxu0  ;;  %v1279_v44 = vpop.f32.mrb[54].mxu1 }
 0x159   : > { %v1453_v42 = vsel %vm1417_vm11, %v1399_v28, %v1435_v32  ;;  %v1341_v43 = vadd.f32 %v1323_v37, %v1276_v33  ;;  %1021 = vst.msk [vmem:[#allocation2 + $0x50] sm:$0xff] %vm409_vm4, %v1003_v34  ;;  %v1004_v45 = vadd.f32 %v986_v40, %v947_v39  ;;  %v1909_v46 = vpop.f32.mrb[59].mxu0  ;;  %v1943_v50 = vpop.f32.mrb[55].mxu1 }
 0x15a   : > { %1543 = vst.msk [vmem:[%s2385_s6 + $0x10] sm:$0xf] %vm1538_vm6, %v1754_v36  ;;  %v1755_v47 = vpack.c.bf16 %v1453_v42, %v1453_v42  ;;  %v1375_v48 = vld [vmem:[#allocation2 + $0x30] sm:$0xff]  ;;  %v1324_v49 = vld [vmem:[#allocation2 + $0x48] sm:$0xff]  ;;  %v991_v46 = vld [vmem:[#allocation2 + $0x80] sm:$0xff] }
 0x15b   : > { %v1400_v51 = vadd.f32 %v2373_v0, %v1375_v48  ;;  %1359 = vst.msk [vmem:[#allocation2 + $0x40] sm:$0xff] %vm409_vm4, %v1341_v43  ;;  %v1342_v53 = vadd.f32 %v1324_v49, %v1279_v44  ;;  %1022 = vst.msk [vmem:[#allocation2 + $0x58] sm:$0xff] %vm409_vm4, %v1004_v45 }
 0x15c   : > { %1544 = vst.msk [vmem:[%s2385_s6 + $0x14] sm:$0xf] %vm1538_vm6, %v1755_v47  ;;  %v1376_v54 = vld [vmem:[#allocation2 + $0x38] sm:$0xff] }
 0x15d   : > { %vm1418_vm12 = vcmp.gt.f32.partialorder %v1400_v51, 0.0  ;;  %v1436_v55 = vmul.f32 0.2, %v1400_v51  ;;  %v1401_v56 = vadd.f32 %v2373_v0, %v1376_v54  ;;  %1360 = vst.msk [vmem:[#allocation2 + $0x48] sm:$0xff] %vm409_vm4, %v1342_v53 }
 0x15e   : > { %v952_v57 = vpop.f32.mrb[60].mxu0  ;;  %v1284_v61 = vpop.f32.mrb[56].mxu1 }
 0x15f   : > { %v1454_v59 = vsel %vm1418_vm12, %v1400_v51, %v1436_v55  ;;  %vm1419_vm13 = vcmp.gt.f32.partialorder %v1401_v56, 0.0  ;;  %v1437_v60 = vmul.f32 0.2, %v1401_v56  ;;  %v1005_v62 = vadd.f32 %v987_v58, %v952_v57  ;;  %v1912_v63 = vpop.f32.mrb[61].mxu0  ;;  %v1946_v3 = vpop.f32.mrb[57].mxu1  ;;  %v992_v57 = vld [vmem:[#allocation2 + $0x88] sm:$0xff] }
 0x160   : > { %v1756_v1 = vpack.c.bf16 %v1454_v59, %v1454_v59  ;;  %v1325_v2 = vld [vmem:[#allocation2 + $0x50] sm:$0xff]  ;;  %v955_v5 = vpop.f32.mrb[62].mxu0  ;;  %v1287_v9 = vpop.f32.mrb[58].mxu1 }
 0x161   : > { %v1455_v7 = vsel %vm1419_vm13, %v1401_v56, %v1437_v60  ;;  %v1343_v8 = vadd.f32 %v1325_v2, %v1284_v61  ;;  %1023 = vst.msk [vmem:[#allocation2 + $0x60] sm:$0xff] %vm409_vm4, %v1005_v62  ;;  %v1006_v41 = vadd.f32 %v988_v6, %v955_v5  ;;  %v1913_v52 = vpop.f32.mrb[63].mxu0  ;;  %v1947_v12 = vpop.f32.mrb[59].mxu1 }
 0x162   : > { %1545 = vst.msk [vmem:[%s2385_s6 + $0x18] sm:$0xf] %vm1538_vm6, %v1756_v1  ;;  %v1757_v4 = vpack.c.bf16 %v1455_v7, %v1455_v7  ;;  %v1377_v10 = vld [vmem:[#allocation2 + $0x40] sm:$0xff]  ;;  %v1326_v11 = vld [vmem:[#allocation2 + $0x58] sm:$0xff] }
 0x163   : > { %v1402_v13 = vadd.f32 %v2373_v0, %v1377_v10  ;;  %1361 = vst.msk [vmem:[#allocation2 + $0x50] sm:$0xff] %vm409_vm4, %v1343_v8  ;;  %v1344_v14 = vadd.f32 %v1326_v11, %v1287_v9  ;;  %1024 = vst.msk [vmem:[#allocation2 + $0x68] sm:$0xff] %vm409_vm4, %v1006_v41 }
 0x164   : > { %1546 = vst.msk [vmem:[%s2385_s6 + $0x1c] sm:$0xf] %vm1538_vm6, %v1757_v4  ;;  %v1378_v15 = vld [vmem:[#allocation2 + $0x48] sm:$0xff] }
 0x165   : > { %vm1420_vm14 = vcmp.gt.f32.partialorder %v1402_v13, 0.0  ;;  %v1438_v16 = vmul.f32 0.2, %v1402_v13  ;;  %v1403_v17 = vadd.f32 %v2373_v0, %v1378_v15  ;;  %1362 = vst.msk [vmem:[#allocation2 + $0x58] sm:$0xff] %vm409_vm4, %v1344_v14 }
 0x166   : > { %v960_v18 = vpop.f32.mrb[64].mxu0  ;;  %v1292_v22 = vpop.f32.mrb[60].mxu1 }
 0x167   : > { %v1456_v20 = vsel %vm1420_vm14, %v1402_v13, %v1438_v16  ;;  %vm1421_vm15 = vcmp.gt.f32.partialorder %v1403_v17, 0.0  ;;  %v1439_v21 = vmul.f32 0.2, %v1403_v17  ;;  %v1007_v23 = vadd.f32 %v989_v19, %v960_v18  ;;  %v1916_v24 = vpop.f32.mrb[65].mxu0  ;;  %v1950_v27 = vpop.f32.mrb[61].mxu1 }
 0x168   : > { %v1758_v25 = vpack.c.bf16 %v1456_v20, %v1456_v20  ;;  %v1327_v26 = vld [vmem:[#allocation2 + $0x60] sm:$0xff]  ;;  %v963_v28 = vpop.f32.mrb[66].mxu0  ;;  %v1295_v32 = vpop.f32.mrb[62].mxu1 }
 0x169   : > { %v1457_v30 = vsel %vm1421_vm15, %v1403_v17, %v1439_v21  ;;  %v1345_v31 = vadd.f32 %v1327_v26, %v1292_v22  ;;  %1025 = vst.msk [vmem:[#allocation2 + $0x70] sm:$0xff] %vm409_vm4, %v1007_v23  ;;  %v1008_v33 = vadd.f32 %v990_v29, %v963_v28  ;;  %v1917_v34 = vpop.f32.mrb[67].mxu0  ;;  %v1951_v38 = vpop.f32.mrb[63].mxu1 }
 0x16a   : > { %1547 = vst.msk [vmem:[%s2385_s6 + $0x20] sm:$0xf] %vm1538_vm6, %v1758_v25  ;;  %v1759_v35 = vpack.c.bf16 %v1457_v30, %v1457_v30  ;;  %v1379_v36 = vld [vmem:[#allocation2 + $0x50] sm:$0xff]  ;;  %v1328_v37 = vld [vmem:[#allocation2 + $0x68] sm:$0xff] }
 0x16b   : > { %v1404_v39 = vadd.f32 %v2373_v0, %v1379_v36  ;;  %1363 = vst.msk [vmem:[#allocation2 + $0x60] sm:$0xff] %vm409_vm4, %v1345_v31  ;;  %v1346_v40 = vadd.f32 %v1328_v37, %v1295_v32  ;;  %1026 = vst.msk [vmem:[#allocation2 + $0x78] sm:$0xff] %vm409_vm4, %v1008_v33 }
 0x16c   : > { %1548 = vst.msk [vmem:[%s2385_s6 + $0x24] sm:$0xf] %vm1538_vm6, %v1759_v35  ;;  %v1380_v42 = vld [vmem:[#allocation2 + $0x58] sm:$0xff] }
 0x16d   : > { %vm1422_vm0 = vcmp.gt.f32.partialorder %v1404_v39, 0.0  ;;  %v1440_v43 = vmul.f32 0.2, %v1404_v39  ;;  %v1405_v44 = vadd.f32 %v2373_v0, %v1380_v42  ;;  %1364 = vst.msk [vmem:[#allocation2 + $0x68] sm:$0xff] %vm409_vm4, %v1346_v40 }
 0x16e   : > { %v968_v45 = vpop.f32.mrb[68].mxu0  ;;  %v1300_v49 = vpop.f32.mrb[64].mxu1 }
 0x16f   : > { %v1458_v47 = vsel %vm1422_vm0, %v1404_v39, %v1440_v43  ;;  %vm1423_vm1 = vcmp.gt.f32.partialorder %v1405_v44, 0.0  ;;  %v1441_v48 = vmul.f32 0.2, %v1405_v44  ;;  %v1009_v50 = vadd.f32 %v991_v46, %v968_v45  ;;  %v1920_v51 = vpop.f32.mrb[69].mxu0  ;;  %v1954_v55 = vpop.f32.mrb[65].mxu1 }
 0x170   : > { %v1760_v53 = vpack.c.bf16 %v1458_v47, %v1458_v47  ;;  %v1329_v54 = vld [vmem:[#allocation2 + $0x70] sm:$0xff]  ;;  %v971_v56 = vpop.f32.mrb[70].mxu0  ;;  %v1303_v60 = vpop.f32.mrb[66].mxu1 }
 0x171   : > { %v1459_v58 = vsel %vm1423_vm1, %v1405_v44, %v1441_v48  ;;  %v1347_v59 = vadd.f32 %v1329_v54, %v1300_v49  ;;  %1027 = vst.msk [vmem:[#allocation2 + $0x80] sm:$0xff] %vm409_vm4, %v1009_v50  ;;  %v1010_v61 = vadd.f32 %v992_v57, %v971_v56  ;;  %v1921_v62 = vpop.f32.mrb[71].mxu0  ;;  %v1955_v3 = vpop.f32.mrb[67].mxu1 }
 0x172   : > { %1549 = vst.msk [vmem:[%s2385_s6 + $0x28] sm:$0xf] %vm1538_vm6, %v1760_v53  ;;  %v1761_v63 = vpack.c.bf16 %v1459_v58, %v1459_v58  ;;  %v1381_v1 = vld [vmem:[#allocation2 + $0x60] sm:$0xff]  ;;  %v1330_v2 = vld [vmem:[#allocation2 + $0x78] sm:$0xff] }
 0x173   : > { %v1406_v5 = vadd.f32 %v2373_v0, %v1381_v1  ;;  %1365 = vst.msk [vmem:[#allocation2 + $0x70] sm:$0xff] %vm409_vm4, %v1347_v59  ;;  %v1348_v6 = vadd.f32 %v1330_v2, %v1303_v60  ;;  %1028 = vst.msk [vmem:[#allocation2 + $0x88] sm:$0xff] %vm409_vm4, %v1010_v61 }
 0x174   : > { %1550 = vst.msk [vmem:[%s2385_s6 + $0x2c] sm:$0xf] %vm1538_vm6, %v1761_v63  ;;  %v1382_v7 = vld [vmem:[#allocation2 + $0x68] sm:$0xff] }
 0x175   : > { %vm1424_vm2 = vcmp.gt.f32.partialorder %v1406_v5, 0.0  ;;  %v1442_v8 = vmul.f32 0.2, %v1406_v5  ;;  %v1407_v9 = vadd.f32 %v2373_v0, %v1382_v7  ;;  %1366 = vst.msk [vmem:[#allocation2 + $0x78] sm:$0xff] %vm409_vm4, %v1348_v6 }
 0x176   : > { %v1308_v4 = vpop.f32.mrb[68].mxu1 }
 0x177   : > { %v1460_v41 = vsel %vm1424_vm2, %v1406_v5, %v1442_v8  ;;  %vm1425_vm3 = vcmp.gt.f32.partialorder %v1407_v9, 0.0  ;;  %v1443_v52 = vmul.f32 0.2, %v1407_v9  ;;  %v1958_v12 = vpop.f32.mrb[69].mxu1 }
 0x178   : > { %v1762_v10 = vpack.c.bf16 %v1460_v41, %v1460_v41  ;;  %v1331_v11 = vld [vmem:[#allocation2 + $0x80] sm:$0xff]  ;;  %v1311_v15 = vpop.f32.mrb[70].mxu1 }
 0x179   : > { %v1461_v13 = vsel %vm1425_vm3, %v1407_v9, %v1443_v52  ;;  %v1349_v14 = vadd.f32 %v1331_v11, %v1308_v4  ;;  %v1959_v19 = vpop.f32.mrb[71].mxu1 }
 0x17a   : > { %1551 = vst.msk [vmem:[%s2385_s6 + $0x30] sm:$0xf] %vm1538_vm6, %v1762_v10  ;;  %v1763_v16 = vpack.c.bf16 %v1461_v13, %v1461_v13  ;;  %v1383_v17 = vld [vmem:[#allocation2 + $0x70] sm:$0xff]  ;;  %v1332_v18 = vld [vmem:[#allocation2 + $0x88] sm:$0xff] }
 0x17b   : > { %v1408_v20 = vadd.f32 %v2373_v0, %v1383_v17  ;;  %1367 = vst.msk [vmem:[#allocation2 + $0x80] sm:$0xff] %vm409_vm4, %v1349_v14  ;;  %v1350_v21 = vadd.f32 %v1332_v18, %v1311_v15 }
 0x17c   : > { %1552 = vst.msk [vmem:[%s2385_s6 + $0x34] sm:$0xf] %vm1538_vm6, %v1763_v16  ;;  %v1384_v22 = vld [vmem:[#allocation2 + $0x78] sm:$0xff] }
 0x17d   : > { %vm1426_vm5 = vcmp.gt.f32.partialorder %v1408_v20, 0.0  ;;  %v1444_v23 = vmul.f32 0.2, %v1408_v20  ;;  %v1409_v24 = vadd.f32 %v2373_v0, %v1384_v22  ;;  %1368 = vst.msk [vmem:[#allocation2 + $0x88] sm:$0xff] %vm409_vm4, %v1350_v21 }
 0x17f   : > { %v1462_v25 = vsel %vm1426_vm5, %v1408_v20, %v1444_v23  ;;  %vm1427_vm7 = vcmp.gt.f32.partialorder %v1409_v24, 0.0  ;;  %v1445_v26 = vmul.f32 0.2, %v1409_v24 }
 0x180   : > { %v1764_v27 = vpack.c.bf16 %v1462_v25, %v1462_v25 }
 0x181   : > { %v1463_v28 = vsel %vm1427_vm7, %v1409_v24, %v1445_v26 }
 0x182   : > { %1553 = vst.msk [vmem:[%s2385_s6 + $0x38] sm:$0xf] %vm1538_vm6, %v1764_v27  ;;  %v1765_v29 = vpack.c.bf16 %v1463_v28, %v1463_v28  ;;  %v1385_v30 = vld [vmem:[#allocation2 + $0x80] sm:$0xff] }
 0x183   : > { %v1410_v31 = vadd.f32 %v2373_v0, %v1385_v30 }
 0x184   : > { %1554 = vst.msk [vmem:[%s2385_s6 + $0x3c] sm:$0xf] %vm1538_vm6, %v1765_v29  ;;  %v1386_v32 = vld [vmem:[#allocation2 + $0x88] sm:$0xff] }
 0x185   : > { %vm1428_vm8 = vcmp.gt.f32.partialorder %v1410_v31, 0.0  ;;  %v1446_v33 = vmul.f32 0.2, %v1410_v31  ;;  %v1411_v34 = vadd.f32 %v2373_v0, %v1386_v32 }
 0x187   : > { %v1464_v35 = vsel %vm1428_vm8, %v1410_v31, %v1446_v33  ;;  %vm1429_vm4 = vcmp.gt.f32.partialorder %v1411_v34, 0.0  ;;  %v1447_v36 = vmul.f32 0.2, %v1411_v34 }
 0x188   : > { %v1766_v37 = vpack.c.bf16 %v1464_v35, %v1464_v35 }
 0x189   : > { %v1465_v38 = vsel %vm1429_vm4, %v1411_v34, %v1447_v36 }
 0x18a   : > { %1555 = vst.msk [vmem:[%s2385_s6 + $0x40] sm:$0xf] %vm1538_vm6, %v1766_v37  ;;  %v1767_v39 = vpack.c.bf16 %v1465_v38, %v1465_v38 }
 0x18c   : > { %1556 = vst.msk [vmem:[%s2385_s6 + $0x44] sm:$0xf] %vm1538_vm6, %v1767_v39 }
 0x18d PF: > { %s13_s14 = sadd.s32 1, %s2052_s14   ;;  %s2478_s12 = smov %s2048_s13 }
 0x18e   : > { %p10_p5 = scmp.ge.s32.totalorder %s13_s14, 4   ;;  %s2479_s13 = smov %s2481_s15 }
 0x190   :  { %12 = sbr.rel (!%p10_p5) target bundleno = 2 (0x2), region = 65 }

// kernel: nlayer_discriminator_forward.9
= control target key start
LH: loop header
LB: loop body
LE: loop exit
PB: predicated region body
PF: predicated region fallthrough
CT: control target
= control target key end

     0   :  { %s1333_s15 = smov 0   ;;  %s1335_s16 = smov 0   ;;  %s1506_s0 = inlined_call_operand.vmem [shape: bf16[2,56,32], index: 0, kind: input, shape index: {}]   ;;  %s1507_s1 = inlined_call_operand.vmem [shape: bf16[4,32,16], index: 1, kind: input, shape index: {}]   ;;  %s1508_s2 = inlined_call_operand.vmem [shape: bf16[2,40,16], index: 2, kind: output, shape index: {0}]   ;;  %s1509_s3 = inlined_call_operand.vmem [shape: f32[2,1,16], index: 3, kind: output, shape index: {1}]   ;;  %s1510_s4 = inlined_call_operand.vmem [shape: f32[2,1,16], index: 4, kind: output, shape index: {2}]  }
   0x1   :  { %s1337_s17 = smov 0  }
   0x2 LB: > { %s27_s18 = sadd.s32 1, %s1300_s16  ;;  %p1091_p0 = scmp.ge.s32.totalorder %s1304_s17, 1  ;;  %s1304_s17 = sphi %s1337_s17, %s15_s17   ;;  %s1300_s16 = sphi %s1335_s16, %s1512_s16   ;;  %s1296_s15 = sphi %s1333_s15, %s1511_s15  }
   0x3   : > { %p29_p1 = scmp.ge.s32.totalorder %s27_s18, 2  ;;  %p189_p2 = scmp.lt.s32.totalorder %s1304_s17, 3 }
   0x5   : > { %s1514_s18 = smov (%p29_p1, %s27_s18), 0  ;;  %p190_p3 = pnand %p1091_p0, %p189_p2 }
   0x6   : > { %v1262_v0 = vld [vmem:[%s1507_s1] sm:$0xff] (!%p190_p3)   ;;  %v1306_v1 = vmov (!%p190_p3), 0.0   ;;  %v1263_v2 = vld [vmem:[%s1507_s1 + $0x8] sm:$0xff] (!%p190_p3)   ;;  %vm1307_vm0 = vmmov (!%p190_p3), 0   ;;  %p233_p4 = scmp.lt.s32.totalorder (!%p190_p3), %s1296_s15, 1  ;;  %v1265_v3 = vld [vmem:[%s1507_s1 + $0x10] sm:$0xff] (!%p190_p3)  }
   0x7   : > { %193 = sbr.rel (%p190_p3) target bundleno = 310 (0x136), region = 28  ;;  %1170 = vmatprep.subr.bf16.mxu0 (!%p190_p3), %v1306_v1  ;;  %1186 = vmatprep.subr.bf16.mxu1 (!%p190_p3), %v1306_v1  ;;  %v1267_v4 = vld [vmem:[%s1507_s1 + $0x18] sm:$0xff] (!%p190_p3)   ;;  %vm296_vm1 = vcmask (!%p190_p3), 261120   ;;  %v1266_v5 = vld [vmem:[%s1507_s1 + $0x20] sm:$0xff] (!%p190_p3)   ;;  %v1272_v7 = vld [vmem:[%s1507_s1 + $0x28] sm:$0xff] (!%p190_p3)   ;;  %vm362_vm3 = vcmask (!%p190_p3), 130048  }
   0x8   : > { %1171 = vmatpush3.bf16.msra.mxu0 (!%p190_p3), %v1262_v0  ;;  %1174 = vmatprep.mubr.msk.bf16.mxu0 (!%p190_p3), %vm1307_vm0, %v1306_v1  ;;  %vm394_vm2 = vsmask.f32 (!%p190_p3), 7424  ;;  %v1271_v17 = vld [vmem:[%s1507_s1 + $0x30] sm:$0xff] (!%p190_p3)   ;;  %v1275_v24 = vld [vmem:[%s1507_s1 + $0x38] sm:$0xff] (!%p190_p3)   ;;  %vm892_vm6 = vcmask (!%p190_p3), 125952   ;;  %vm913_vm10 = vcmask (!%p190_p3), 122880  }
   0x9   : > { %1172 = vmatprep.subr.bf16.mxu0 (!%p190_p3), %v1306_v1  ;;  %1190 = vmatprep.mubr.msk.bf16.mxu1 (!%p190_p3), %vm1307_vm0, %v1306_v1 }
   0xa   : > { %1187 = vmatpush3.bf16.msra.mxu1 (!%p190_p3), %v1265_v3 }
   0xb   : > { %1188 = vmatprep.subr.bf16.mxu1 (!%p190_p3), %v1306_v1 }
   0xc   : > { %1173 = vmatpush3.bf16.msra.mxu0 (!%p190_p3), %v1263_v2 }
   0xd   : > { %1202 = vmatprep.subr.bf16.mxu0 (!%p190_p3), %v1306_v1 }
   0xe   : > { %s1516_s15 = smov (!%p233_p4, %s1296_s15), 1  ;;  %1189 = vmatpush3.bf16.msra.mxu1 %v1267_v4 }
   0xf   : > { %s1234_s27 = smul.u32 28, %s1516_s15  ;;  %1218 = vmatprep.subr.bf16.mxu1 %v1306_v1  ;;  %s254_s23 = scalar_lea.vmem %s1509_s3, %s1516_s15 }
  0x10   : > { %s1235_s13 = smul.u32 20, %s1516_s15  ;;  %s260_s26 = scalar_lea.vmem %s1510_s4, %s1516_s15 }
  0x11   : > { %s1378_s30 = scalar_lea.vmem %s1506_s0, %s1234_s27 }
  0x12   : > { %v1264_v6 = vld [vmem:[%s1378_s30] sm:$0xff]   ;;  %v1270_v9 = vld [vmem:[%s1378_s30 + $0x8] sm:$0xff]   ;;  %v1274_v14 = vld [vmem:[%s1378_s30 + $0x10] sm:$0x1f]   ;;  %s1464_s20 = scalar_lea.vmem %s1508_s2, %s1235_s13 }
  0x13   : > { %1175 = vmatmul.mubr.msk.bf16.vlgmr.msra.gmra.mrb[0].mxu0 %vm296_vm1, %v1264_v6  ;;  %v1269_v8 = vld [vmem:[%s1378_s30] sm:$0xff]   ;;  %v1268_v10 = vld [vmem:[%s1378_s30 + $0x8] sm:$0xff]   ;;  %v403_v13 = vshll.u32 %v1270_v9, 16  ;;  %v407_v18 = vshrl.u32 %v1270_v9, 16  ;;  %v411_v19 = vshll.u32 %v1274_v14, 16  ;;  %v415_v28 = vshrl.u32 %v1274_v14, 16 }
  0x14   : > { %1203 = vmatpush3.bf16.msra.mxu0 %v1266_v5  ;;  %1178 = vmatprep.mubr.msk.bf16.mxu0 %vm1307_vm0, %v1306_v1  ;;  %v396_v11 = vshrl.u32 %v1269_v8, 16  ;;  %v398_v12 = vshll.u32 %v1269_v8, 16  ;;  %v1273_v25 = vld [vmem:[%s1378_s30 + $0x10] ss:$0 sps:$4 sm:$0xff]   ;;  %v1278_v27 = vld [vmem:[%s1378_s30 + $0x4] sm:$0xff]  }
  0x15   : > { %1204 = vmatprep.subr.bf16.mxu0 %v1306_v1  ;;  %v405_v16 = vrot.slane %v403_v13, 1  ;;  %v413_v23 = vrot.slane %v411_v19, 1  ;;  %v1279_v29 = vld [vmem:[%s1378_s30 + $0xc] sm:$0xff]   ;;  %v654_v30 = vshll.u32 %v1278_v27, 16  ;;  %v1276_v31 = vld [vmem:[%s1378_s30 + $0x4] sm:$0xff]   ;;  %v652_v33 = vshrl.u32 %v1278_v27, 16 }
  0x16   : > { %v400_v15 = vrot.slane %v398_v12, 1  ;;  %v659_v35 = vshll.u32 %v1279_v29, 16  ;;  %v1281_v38 = vld [vmem:[%s1378_s30 + $0x14] sm:$0x1f]   ;;  %v1277_v39 = vld [vmem:[%s1378_s30 + $0xc] sm:$0xff]   ;;  %v663_v41 = vshrl.u32 %v1279_v29, 16 }
  0x17   : > { %v409_v22 = vor.u32 %v407_v18, %v405_v16  ;;  %v417_v32 = vor.u32 %v415_v28, %v413_v23  ;;  %v656_v34 = vrot.slane %v654_v30, 1  ;;  %v667_v42 = vshll.u32 %v1281_v38, 16  ;;  %v1280_v45 = vld [vmem:[%s1378_s30 + $0x14] ss:$0 sps:$4 sm:$0xff]  }
  0x18   : > { %1205 = vmatpush3.bf16.msra.mxu0 %v1272_v7  ;;  %v401_v20 = vor.u32 %v400_v15, %v396_v11  ;;  %v661_v37 = vrot.slane %v659_v35, 1  ;;  %v671_v47 = vshrl.u32 %v1281_v38, 16 }
  0x19   : > { %v414_v26 = vsel %vm394_vm2, %v409_v22, %v413_v23  ;;  %v657_v36 = vor.u32 %v656_v34, %v652_v33  ;;  %v669_v44 = vrot.slane %v667_v42, 1 }
  0x1a   : > { %v406_v21 = vsel %vm394_vm2, %v401_v20, %v405_v16  ;;  %v665_v43 = vor.u32 %v663_v41, %v661_v37 }
  0x1b   : > { %1179 = vmatmul.mubr.msk.bf16.gmra.mrb[4].mxu0 %vm296_vm1, %v1268_v10  ;;  %1191 = vmatmul.mubr.msk.bf16.vlgmr.msra.gmra.mrb[0].mxu1 %vm296_vm1, %v406_v21  ;;  %v662_v40 = vsel %vm394_vm2, %v657_v36, %v661_v37  ;;  %v673_v48 = vor.u32 %v671_v47, %v669_v44 }
  0x1c   : > { %1182 = vmatprep.mubr.msk.bf16.mxu0 %vm1307_vm0, %v1306_v1  ;;  %1219 = vmatpush3.bf16.msra.mxu1 %v1271_v17  ;;  %v670_v46 = vsel %vm394_vm2, %v665_v43, %v669_v44 }
  0x1d   : > { %1194 = vmatprep.mubr.msk.bf16.mxu1 %vm1307_vm0, %v1306_v1  ;;  %1220 = vmatprep.subr.bf16.mxu1 %v1306_v1 }
  0x20   : > { %1221 = vmatpush3.bf16.msra.mxu1 %v1275_v24 }
  0x23   : > { %1183 = vmatmul.mubr.msk.bf16.gmra.mrb[8].mxu0 %vm296_vm1, %v1273_v25  ;;  %1195 = vmatmul.mubr.msk.bf16.gmra.mrb[4].mxu1 %vm296_vm1, %v414_v26  ;;  %v771_v26 = vlaneseq }
  0x24   : > { %1206 = vmatprep.mubr.msk.bf16.mxu0 %vm1307_vm0, %v1306_v1  ;;  %1198 = vmatprep.mubr.msk.bf16.mxu1 %vm1307_vm0, %v1306_v1 }
  0x25   : > { %v772_v30 = vshrl.u32 %v771_v26, 7 }
  0x27   : > { %v773_v43 = vadd.s32 8, %v772_v30 }
  0x29   : > { %v788_v47 = vand.u32 7, %v773_v43 }
  0x2b   : > { %1207 = vmatmul.mubr.msk.bf16.vlgmr.msra.gmra.mrb[12].mxu0 %vm296_vm1, %v1276_v31  ;;  %1199 = vmatmul.mubr.msk.bf16.gmra.mrb[8].mxu1 %vm296_vm1, %v417_v32  ;;  %vm841_vm5 = vcmp.lt.s32.totalorder %v788_v47, 5 }
  0x2c   : > { %1210 = vmatprep.mubr.msk.bf16.mxu0 %vm1307_vm0, %v1306_v1  ;;  %1222 = vmatprep.mubr.msk.bf16.mxu1 %vm1307_vm0, %v1306_v1 }
  0x33   : > { %1211 = vmatmul.mubr.msk.bf16.gmra.mrb[16].mxu0 %vm296_vm1, %v1277_v39  ;;  %1223 = vmatmul.mubr.msk.bf16.vlgmr.msra.gmra.mrb[12].mxu1 %vm296_vm1, %v662_v40 }
  0x34   : > { %1214 = vmatprep.mubr.msk.bf16.mxu0 %vm1307_vm0, %v1306_v1  ;;  %1226 = vmatprep.mubr.msk.bf16.mxu1 %vm1307_vm0, %v1306_v1 }
  0x3b   : > { %1215 = vmatmul.mubr.msk.bf16.gmra.mrb[20].mxu0 %vm296_vm1, %v1280_v45  ;;  %1227 = vmatmul.mubr.msk.bf16.gmra.mrb[16].mxu1 %vm296_vm1, %v670_v46  ;;  %v781_v46 = vand.u32 7, %v772_v30 }
  0x3c   : > { %1230 = vmatprep.mubr.msk.bf16.mxu1 %vm1307_vm0, %v1306_v1 }
  0x3d   : > { %vm840_vm4 = vcmp.lt.s32.totalorder %v781_v46, 5 }
  0x43   : > { %1231 = vmatmul.mubr.msk.bf16.gmra.mrb[20].mxu1 %vm296_vm1, %v673_v48 }
  0xe6   : > { %v340_v49 = vpop.f32.mrb[0].mxu0 }
  0xe7   : > { %363 = vst.msk [vmem:[#allocation2] sm:$0xff] %vm362_vm3, %v340_v49  ;;  %v1176_v50 = vpop.f32.mrb[1].mxu0 }
  0xe8   : > { %v343_v51 = vpop.f32.mrb[2].mxu0 }
  0xe9   : > { %364 = vst.msk [vmem:[#allocation2 + $0x8] sm:$0xff] %vm362_vm3, %v343_v51  ;;  %v1177_v52 = vpop.f32.mrb[3].mxu0 }
  0xee   : > { %v348_v53 = vpop.f32.mrb[4].mxu0  ;;  %v495_v54 = vld [vmem:[#allocation2] sm:$0xff]  ;;  %v473_v56 = vpop.f32.mrb[0].mxu1 }
  0xef   : > { %365 = vst.msk [vmem:[#allocation2 + $0x10] sm:$0xff] %vm362_vm3, %v348_v53  ;;  %v1180_v55 = vpop.f32.mrb[5].mxu0  ;;  %v500_v59 = vadd.f32 %v495_v54, %v473_v56  ;;  %v1192_v60 = vpop.f32.mrb[1].mxu1  ;;  %v774_v54 = vadd.s32 16, %v772_v30 }
  0xf0   : > { %v351_v57 = vpop.f32.mrb[6].mxu0  ;;  %v496_v58 = vld [vmem:[#allocation2 + $0x8] sm:$0xff]  ;;  %v476_v62 = vpop.f32.mrb[2].mxu1 }
  0xf1   : > { %366 = vst.msk [vmem:[#allocation2 + $0x18] sm:$0xff] %vm362_vm3, %v351_v57  ;;  %v1181_v61 = vpop.f32.mrb[7].mxu0  ;;  %505 = vst.msk [vmem:[#allocation2] sm:$0xff] %vm362_vm3, %v500_v59  ;;  %v501_v63 = vadd.f32 %v496_v58, %v476_v62  ;;  %v1193_v0 = vpop.f32.mrb[3].mxu1  ;;  %v775_v62 = vadd.s32 24, %v772_v30 }
  0xf3   : > { %506 = vst.msk [vmem:[#allocation2 + $0x8] sm:$0xff] %vm362_vm3, %v501_v63 }
  0xf6   : > { %v356_v1 = vpop.f32.mrb[8].mxu0  ;;  %v497_v2 = vld [vmem:[#allocation2 + $0x10] sm:$0xff]  ;;  %v481_v4 = vpop.f32.mrb[4].mxu1 }
  0xf7   : > { %367 = vst.msk [vmem:[#allocation2 + $0x20] sm:$0xff] %vm362_vm3, %v356_v1  ;;  %v1184_v3 = vpop.f32.mrb[9].mxu0  ;;  %v502_v7 = vadd.f32 %v497_v2, %v481_v4  ;;  %v1196_v8 = vpop.f32.mrb[5].mxu1  ;;  %v795_v4 = vand.u32 7, %v774_v54 }
  0xf8   : > { %v359_v5 = vpop.f32.mrb[10].mxu0  ;;  %v498_v6 = vld [vmem:[#allocation2 + $0x18] sm:$0xff]  ;;  %v484_v10 = vpop.f32.mrb[6].mxu1  ;;  %v610_v15 = vld [vmem:[#allocation2] sm:$0xff]  ;;  %v776_v8 = vadd.s32 32, %v772_v30 }
  0xf9   : > { %v1185_v9 = vpop.f32.mrb[11].mxu0  ;;  %507 = vst.msk [vmem:[#allocation2 + $0x10] sm:$0xff] %vm362_vm3, %v502_v7  ;;  %v503_v11 = vadd.f32 %v498_v6, %v484_v10  ;;  %v1197_v12 = vpop.f32.mrb[7].mxu1  ;;  %v802_v7 = vand.u32 7, %v775_v62  ;;  %vm842_vm7 = vcmp.lt.s32.totalorder %v795_v4, 5 }
  0xfa   : > { %v611_v20 = vld [vmem:[#allocation2 + $0x8] sm:$0xff] }
  0xfb   : > { %508 = vst.msk [vmem:[#allocation2 + $0x18] sm:$0xff] %vm362_vm3, %v503_v11  ;;  %vm843_vm8 = vcmp.lt.s32.totalorder %v802_v7, 5 }
  0xfe   : > { %v499_v13 = vld [vmem:[#allocation2 + $0x20] sm:$0xff]  ;;  %v588_v14 = vpop.f32.mrb[12].mxu0  ;;  %v489_v18 = vpop.f32.mrb[8].mxu1 }
  0xff   : > { %v615_v16 = vadd.f32 %v610_v15, %v588_v14  ;;  %v1208_v17 = vpop.f32.mrb[13].mxu0  ;;  %v504_v21 = vadd.f32 %v499_v13, %v489_v18  ;;  %v1200_v22 = vpop.f32.mrb[9].mxu1 }
 0x100   : > { %v591_v19 = vpop.f32.mrb[14].mxu0  ;;  %v492_v25 = vpop.f32.mrb[10].mxu1  ;;  %v612_v29 = vld [vmem:[#allocation2 + $0x10] sm:$0xff] }
 0x101   : > { %620 = vst.msk [vmem:[#allocation2] sm:$0xff] %vm362_vm3, %v615_v16  ;;  %v616_v23 = vadd.f32 %v611_v20, %v591_v19  ;;  %v1209_v24 = vpop.f32.mrb[15].mxu0  ;;  %509 = vst.msk [vmem:[#allocation2 + $0x20] sm:$0xff] %vm362_vm3, %v504_v21  ;;  %v1201_v27 = vpop.f32.mrb[11].mxu1  ;;  %v809_v20 = vand.u32 7, %v776_v8 }
 0x102   : > { %v613_v36 = vld [vmem:[#allocation2 + $0x18] sm:$0xff] }
 0x103   : > { %621 = vst.msk [vmem:[#allocation2 + $0x8] sm:$0xff] %vm362_vm3, %v616_v23  ;;  %vm844_vm9 = vcmp.lt.s32.totalorder %v809_v20, 5 }
 0x106   : > { %v596_v28 = vpop.f32.mrb[16].mxu0  ;;  %v729_v33 = vpop.f32.mrb[12].mxu1 }
 0x107   : > { %v617_v31 = vadd.f32 %v612_v29, %v596_v28  ;;  %v1212_v32 = vpop.f32.mrb[17].mxu0  ;;  %v1224_v38 = vpop.f32.mrb[13].mxu1 }
 0x108   : > { %v751_v34 = vld [vmem:[#allocation2] sm:$0xff]  ;;  %v599_v35 = vpop.f32.mrb[18].mxu0  ;;  %v732_v41 = vpop.f32.mrb[14].mxu1 }
 0x109   : > { %622 = vst.msk [vmem:[#allocation2 + $0x10] sm:$0xff] %vm362_vm3, %v617_v31  ;;  %v756_v37 = vadd.f32 %v751_v34, %v729_v33  ;;  %v618_v39 = vadd.f32 %v613_v36, %v599_v35  ;;  %v1213_v40 = vpop.f32.mrb[19].mxu0  ;;  %v1225_v45 = vpop.f32.mrb[15].mxu1  ;;  %v614_v49 = vld [vmem:[#allocation2 + $0x20] sm:$0xff] }
 0x10a   : > { %v752_v42 = vld [vmem:[#allocation2 + $0x8] sm:$0xff] }
 0x10b   : > { %761 = vst.msk [vmem:[#allocation2] sm:$0xff] %vm362_vm3, %v756_v37  ;;  %623 = vst.msk [vmem:[#allocation2 + $0x18] sm:$0xff] %vm362_vm3, %v618_v39  ;;  %v757_v44 = vadd.f32 %v752_v42, %v732_v41 }
 0x10d   : > { %762 = vst.msk [vmem:[#allocation2 + $0x8] sm:$0xff] %vm362_vm3, %v757_v44 }
 0x10e   : > { %v604_v48 = vpop.f32.mrb[20].mxu0  ;;  %v737_v52 = vpop.f32.mrb[16].mxu1 }
 0x10f   : > { %v619_v50 = vadd.f32 %v614_v49, %v604_v48  ;;  %v1216_v51 = vpop.f32.mrb[21].mxu0  ;;  %v1228_v57 = vpop.f32.mrb[17].mxu1 }
 0x110   : > { %v753_v53 = vld [vmem:[#allocation2 + $0x10] sm:$0xff]  ;;  %v607_v55 = vpop.f32.mrb[22].mxu0  ;;  %v740_v60 = vpop.f32.mrb[18].mxu1 }
 0x111   : > { %624 = vst.msk [vmem:[#allocation2 + $0x20] sm:$0xff] %vm362_vm3, %v619_v50  ;;  %v758_v56 = vadd.f32 %v753_v53, %v737_v52  ;;  %v1217_v58 = vpop.f32.mrb[23].mxu0  ;;  %v1229_v1 = vpop.f32.mrb[19].mxu1 }
 0x112   : > { %v766_v59 = vld [vmem:[#allocation2] sm:$0xff]  ;;  %v754_v61 = vld [vmem:[#allocation2 + $0x18] sm:$0xff] }
 0x113   : > { %v866_v63 = vsel %vm840_vm4, %v766_v59, 0.0  ;;  %763 = vst.msk [vmem:[#allocation2 + $0x10] sm:$0xff] %vm362_vm3, %v758_v56  ;;  %v759_v0 = vadd.f32 %v754_v61, %v740_v60 }
 0x114   : > { %v1145_v2 = vpack.c.bf16 %v866_v63, %v866_v63  ;;  %v767_v3 = vld [vmem:[#allocation2 + $0x8] sm:$0xff]  ;;  %v915_v14 = vmul.f32 %v866_v63, %v866_v63  ;;  %v898_v18 = vsel %vm362_vm3, %v866_v63, 0.0 }
 0x115   : > { %v867_v5 = vsel %vm841_vm5, %v767_v3, 0.0  ;;  %764 = vst.msk [vmem:[#allocation2 + $0x18] sm:$0xff] %vm362_vm3, %v759_v0 }
 0x116   : > { %893 = vst.msk [vmem:[%s1464_s20] sm:$0xf] %vm892_vm6, %v1145_v2  ;;  %v1146_v6 = vpack.c.bf16 %v867_v5, %v867_v5  ;;  %v916_v9 = vmul.f32 %v867_v5, %v867_v5  ;;  %v745_v10 = vpop.f32.mrb[20].mxu1  ;;  %v899_v15 = vsel %vm362_vm3, %v867_v5, 0.0  ;;  %v920_v29 = vsel %vm362_vm3, %v915_v14, 0.0 }
 0x117   : > { %v1232_v13 = vpop.f32.mrb[21].mxu1  ;;  %v900_v27 = vadd.f32 %v899_v15, %v898_v18 }
 0x118   : > { %894 = vst.msk [vmem:[%s1464_s20 + $0x4] sm:$0xf] %vm892_vm6, %v1146_v6  ;;  %v755_v11 = vld [vmem:[#allocation2 + $0x20] sm:$0xff]  ;;  %v748_v17 = vpop.f32.mrb[22].mxu1  ;;  %v921_v22 = vsel %vm362_vm3, %v916_v9, 0.0 }
 0x119   : > { %v760_v12 = vadd.f32 %v755_v11, %v745_v10  ;;  %v1233_v21 = vpop.f32.mrb[23].mxu1  ;;  %v922_v33 = vadd.f32 %v921_v22, %v920_v29 }
 0x11a   : > { %v768_v16 = vld [vmem:[#allocation2 + $0x10] sm:$0xff] }
 0x11b   : > { %v868_v19 = vsel %vm842_vm7, %v768_v16, 0.0  ;;  %765 = vst.msk [vmem:[#allocation2 + $0x20] sm:$0xff] %vm362_vm3, %v760_v12 }
 0x11c   : > { %v1147_v23 = vpack.c.bf16 %v868_v19, %v868_v19  ;;  %v901_v24 = vsel %vm362_vm3, %v868_v19, 0.0  ;;  %v917_v25 = vmul.f32 %v868_v19, %v868_v19  ;;  %v769_v26 = vld [vmem:[#allocation2 + $0x18] sm:$0xff] }
 0x11d   : > { %v869_v28 = vsel %vm843_vm8, %v769_v26, 0.0  ;;  %v902_v34 = vadd.f32 %v901_v24, %v900_v27 }
 0x11e   : > { %895 = vst.msk [vmem:[%s1464_s20 + $0x8] sm:$0xf] %vm892_vm6, %v1147_v23  ;;  %v923_v30 = vsel %vm362_vm3, %v917_v25, 0.0  ;;  %v1148_v31 = vpack.c.bf16 %v869_v28, %v869_v28  ;;  %v918_v32 = vmul.f32 %v869_v28, %v869_v28  ;;  %v903_v35 = vsel %vm362_vm3, %v869_v28, 0.0 }
 0x11f   : > { %v924_v36 = vadd.f32 %v923_v30, %v922_v33  ;;  %v904_v39 = vadd.f32 %v903_v35, %v902_v34 }
 0x120   : > { %896 = vst.msk [vmem:[%s1464_s20 + $0xc] sm:$0xf] %vm892_vm6, %v1148_v31  ;;  %v925_v37 = vsel %vm362_vm3, %v918_v32, 0.0 }
 0x121   : > { %v926_v44 = vadd.f32 %v925_v37, %v924_v36 }
 0x122   : > { %v770_v38 = vld [vmem:[#allocation2 + $0x20] sm:$0xff] }
 0x123   : > { %v870_v40 = vsel %vm844_vm9, %v770_v38, 0.0 }
 0x124   : > { %v1149_v41 = vpack.c.bf16 %v870_v40, %v870_v40  ;;  %v905_v42 = vsel %vm362_vm3, %v870_v40, 0.0  ;;  %v919_v43 = vmul.f32 %v870_v40, %v870_v40 }
 0x125   : > { %v906_v45 = vadd.f32 %v905_v42, %v904_v39 }
 0x126   : > { %897 = vst.msk [vmem:[%s1464_s20 + $0x10] sm:$0xf] %vm892_vm6, %v1149_v41  ;;  %v927_v46 = vsel %vm362_vm3, %v919_v43, 0.0 }
 0x127   : > { %v907_v47 = vrot.slane %v906_v45, 4  ;;  %v928_v48 = vadd.f32 %v927_v46, %v926_v44 }
 0x129   : > { %v908_v49 = vadd.f32 %v907_v47, %v906_v45  ;;  %v929_v50 = vrot.slane %v928_v48, 4 }
 0x12b   : > { %v909_v51 = vrot.slane %v908_v49, 2  ;;  %v930_v52 = vadd.f32 %v929_v50, %v928_v48 }
 0x12d   : > { %v910_v53 = vadd.f32 %v909_v51, %v908_v49  ;;  %v931_v54 = vrot.slane %v930_v52, 2 }
 0x12f   : > { %v911_v55 = vrot.slane %v910_v53, 1  ;;  %v932_v56 = vadd.f32 %v931_v54, %v930_v52 }
 0x131   : > { %v912_v57 = vadd.f32 %v911_v55, %v910_v53  ;;  %v933_v58 = vrot.slane %v932_v56, 1 }
 0x133   : > { %914 = vst.msk [vmem:[%s254_s23] sm:$0x1] %vm913_vm10, %v912_v57  ;;  %v934_v59 = vadd.f32 %v933_v58, %v932_v56 }
 0x135   : > { %935 = vst.msk [vmem:[%s260_s26] sm:$0x1] %vm913_vm10, %v934_v59 }
 0x136 PF: > { %s15_s17 = sadd.s32 1, %s1304_s17   ;;  %s1511_s15 = smov %s1300_s16 }
 0x137   : > { %p12_p5 = scmp.ge.s32.totalorder %s15_s17, 4   ;;  %s1512_s16 = smov %s1514_s18 }
 0x139   :  { %14 = sbr.rel (!%p12_p5) target bundleno = 2 (0x2), region = 85 }

// kernel: nlayer_discriminator_forward.10
= control target key start
LH: loop header
LB: loop body
LE: loop exit
PB: predicated region body
PF: predicated region fallthrough
CT: control target
= control target key end

     0   :  { %s472_s12 = smov 0   ;;  %s474_s13 = smov 0   ;;  %s523_s0 = inlined_call_operand.vmem [shape: bf16[2,40,16], index: 0, kind: input, shape index: {}, may-alias: {0,3}]   ;;  %s524_s1 = inlined_call_operand.vmem [shape: f32[1,1,16], index: 1, kind: input, shape index: {}]   ;;  %s525_s2 = inlined_call_operand.vmem [shape: f32[1,1,16], index: 2, kind: input, shape index: {}]   ;;  %s526_s3 = inlined_call_operand.vmem [shape: bf16[2,40,16], index: 3, kind: output, shape index: {}, may-alias: {0,3}]  }
   0x1   :  { %s476_s14 = smov 0  }
   0x2 LB: > { %s25_s15 = sadd.s32 1, %s446_s13  ;;  %p377_p0 = scmp.ge.s32.totalorder %s450_s14, 1  ;;  %s450_s14 = sphi %s476_s14, %s13_s14   ;;  %s446_s13 = sphi %s474_s13, %s528_s13   ;;  %s442_s12 = sphi %s472_s12, %s527_s12  }
   0x3   : > { %p27_p1 = scmp.ge.s32.totalorder %s25_s15, 2  ;;  %p158_p2 = scmp.lt.s32.totalorder %s450_s14, 3 }
   0x5   : > { %s530_s15 = smov (%p27_p1, %s25_s15), 0  ;;  %p159_p3 = pnand %p377_p0, %p158_p2 }
   0x6   : > { %p191_p4 = scmp.lt.s32.totalorder (!%p159_p3), %s442_s12, 1  ;;  %v380_v0 = vld [vmem:[%s524_s1] ss:$0 sm:$0xff] (!%p159_p3)  ;;  %vm280_vm0 = vcmask (!%p159_p3), 125952  }
   0x7   : > { %162 = sbr.rel (%p159_p3) target bundleno = 33 (0x21), region = 32  ;;  %v381_v9 = vld [vmem:[%s525_s2] ss:$0 sm:$0xff] (!%p159_p3) }
   0xe   : > { %s532_s12 = smov (!%p191_p4, %s442_s12), 1 }
   0xf   : > { %s403_s16 = smul.u32 20, %s532_s12 }
  0x11   : > { %s198_s19 = scalar_lea.vmem %s523_s0, %s403_s16  ;;  %s208_s26 = scalar_lea.vmem %s526_s3, %s403_s16 }
  0x12   : > { %v395_v1 = vld [vmem:[%s198_s19] sm:$0xff]   ;;  %v402_v2 = vld [vmem:[%s198_s19 + $0x8] sm:$0xff]   ;;  %v214_v3 = vld [vmem:[%s198_s19 + $0x10] sm:$0xf] }
  0x13   : > { %v396_v4 = vunpack.c.l.bf16 %v395_v1  ;;  %v397_v5 = vunpack.c.h.bf16 %v395_v1  ;;  %v400_v6 = vunpack.c.l.bf16 %v402_v2  ;;  %v401_v7 = vunpack.c.h.bf16 %v402_v2 }
  0x14   : > { %v219_v8 = vunpack.c.l.bf16 %v214_v3 }
  0x15   : > { %v227_v10 = vmul.f32 %v396_v4, %v380_v0  ;;  %v228_v11 = vmul.f32 %v397_v5, %v380_v0  ;;  %v229_v12 = vmul.f32 %v400_v6, %v380_v0  ;;  %v230_v13 = vmul.f32 %v401_v7, %v380_v0 }
  0x16   : > { %v231_v14 = vmul.f32 %v380_v0, %v219_v8 }
  0x17   : > { %v239_v15 = vadd.f32 %v381_v9, %v227_v10  ;;  %v240_v16 = vadd.f32 %v381_v9, %v228_v11  ;;  %v241_v17 = vadd.f32 %v381_v9, %v229_v12  ;;  %v242_v18 = vadd.f32 %v381_v9, %v230_v13 }
  0x18   : > { %v243_v19 = vadd.f32 %v381_v9, %v231_v14 }
  0x19   : > { %vm244_vm1 = vcmp.gt.f32.partialorder %v239_v15, 0.0  ;;  %v249_v20 = vmul.f32 0.2, %v239_v15  ;;  %vm245_vm2 = vcmp.gt.f32.partialorder %v240_v16, 0.0  ;;  %v250_v21 = vmul.f32 0.2, %v240_v16 }
  0x1a   : > { %vm246_vm3 = vcmp.gt.f32.partialorder %v241_v17, 0.0  ;;  %v251_v22 = vmul.f32 0.2, %v241_v17  ;;  %vm247_vm4 = vcmp.gt.f32.partialorder %v242_v18, 0.0  ;;  %v252_v23 = vmul.f32 0.2, %v242_v18 }
  0x1b   : > { %v254_v24 = vsel %vm244_vm1, %v239_v15, %v249_v20  ;;  %v255_v25 = vsel %vm245_vm2, %v240_v16, %v250_v21  ;;  %vm248_vm5 = vcmp.gt.f32.partialorder %v243_v19, 0.0  ;;  %v253_v26 = vmul.f32 0.2, %v243_v19 }
  0x1c   : > { %v389_v27 = vpack.c.bf16 %v254_v24, %v254_v24  ;;  %v390_v28 = vpack.c.bf16 %v255_v25, %v255_v25  ;;  %v256_v29 = vsel %vm246_vm3, %v241_v17, %v251_v22  ;;  %v257_v30 = vsel %vm247_vm4, %v242_v18, %v252_v23 }
  0x1d   : > { %v391_v31 = vpack.c.bf16 %v256_v29, %v256_v29  ;;  %v392_v32 = vpack.c.bf16 %v257_v30, %v257_v30  ;;  %v258_v33 = vsel %vm248_vm5, %v243_v19, %v253_v26 }
  0x1e   : > { %281 = vst.msk [vmem:[%s208_s26] sm:$0xf] %vm280_vm0, %v389_v27  ;;  %282 = vst.msk [vmem:[%s208_s26 + $0x4] sm:$0xf] %vm280_vm0, %v390_v28  ;;  %v393_v34 = vpack.c.bf16 %v258_v33, %v258_v33 }
  0x1f   : > { %283 = vst.msk [vmem:[%s208_s26 + $0x8] sm:$0xf] %vm280_vm0, %v391_v31  ;;  %284 = vst.msk [vmem:[%s208_s26 + $0xc] sm:$0xf] %vm280_vm0, %v392_v32 }
  0x20   : > { %285 = vst.msk [vmem:[%s208_s26 + $0x10] sm:$0xf] %vm280_vm0, %v393_v34 }
  0x21 PF: > { %s13_s14 = sadd.s32 1, %s450_s14   ;;  %s527_s12 = smov %s446_s13 }
  0x22   : > { %p10_p5 = scmp.ge.s32.totalorder %s13_s14, 4   ;;  %s528_s13 = smov %s530_s15 }
  0x24   :  { %12 = sbr.rel (!%p10_p5) target bundleno = 2 (0x2), region = 62 }

// kernel: nlayer_discriminator_forward.12
= control target key start
LH: loop header
LB: loop body
LE: loop exit
PB: predicated region body
PF: predicated region fallthrough
CT: control target
= control target key end

     0   :  { %s439_s12 = smov 0   ;;  %s441_s13 = smov 0   ;;  %s478_s0 = inlined_call_operand.vmem [shape: bf16[2,24,32], index: 0, kind: input, shape index: {}, may-alias: {0,3}]   ;;  %s479_s1 = inlined_call_operand.vmem [shape: f32[1,1,32], index: 1, kind: input, shape index: {}]   ;;  %s480_s2 = inlined_call_operand.vmem [shape: f32[1,1,32], index: 2, kind: input, shape index: {}]   ;;  %s481_s3 = inlined_call_operand.vmem [shape: bf16[2,24,32], index: 3, kind: output, shape index: {}, may-alias: {0,3}]  }
   0x1   :  { %s443_s14 = smov 0  }
   0x2 LB: > { %s25_s15 = sadd.s32 1, %s413_s13  ;;  %p353_p0 = scmp.ge.s32.totalorder %s417_s14, 1  ;;  %s417_s14 = sphi %s443_s14, %s13_s14   ;;  %s413_s13 = sphi %s441_s13, %s483_s13   ;;  %s409_s12 = sphi %s439_s12, %s482_s12  }
   0x3   : > { %p27_p1 = scmp.ge.s32.totalorder %s25_s15, 2  ;;  %p158_p2 = scmp.lt.s32.totalorder %s417_s14, 3 }
   0x5   : > { %s485_s15 = smov (%p27_p1, %s25_s15), 0  ;;  %p159_p3 = pnand %p353_p0, %p158_p2 }
   0x6   : > { %p191_p4 = scmp.lt.s32.totalorder (!%p159_p3), %s409_s12, 1  ;;  %v356_v2 = vld [vmem:[%s479_s1] ss:$0 sm:$0xff] (!%p159_p3)  ;;  %vm258_vm3 = vcmask (!%p159_p3), 257024  }
   0x7   : > { %162 = sbr.rel (%p159_p3) target bundleno = 32 (0x20), region = 32  ;;  %v357_v6 = vld [vmem:[%s480_s2] ss:$0 sm:$0xff] (!%p159_p3) }
   0xe   : > { %s487_s12 = smov (!%p191_p4, %s409_s12), 1 }
   0xf   : > { %s370_s16 = smul.u32 12, %s487_s12 }
  0x11   : > { %s198_s19 = scalar_lea.vmem %s478_s0, %s370_s16  ;;  %s208_s26 = scalar_lea.vmem %s481_s3, %s370_s16 }
  0x12   : > { %v367_v0 = vld [vmem:[%s198_s19] sm:$0xff]   ;;  %v212_v1 = vld [vmem:[%s198_s19 + $0x8] sm:$0xf] }
  0x13   : > { %v368_v3 = vunpack.c.l.bf16 %v367_v0  ;;  %v369_v4 = vunpack.c.h.bf16 %v367_v0  ;;  %v215_v5 = vunpack.c.l.bf16 %v212_v1 }
  0x15   : > { %v223_v7 = vmul.f32 %v368_v3, %v356_v2  ;;  %v224_v8 = vmul.f32 %v369_v4, %v356_v2  ;;  %v225_v9 = vmul.f32 %v356_v2, %v215_v5 }
  0x17   : > { %v233_v10 = vadd.f32 %v357_v6, %v223_v7  ;;  %v234_v11 = vadd.f32 %v357_v6, %v224_v8  ;;  %v235_v12 = vadd.f32 %v357_v6, %v225_v9 }
  0x19   : > { %vm236_vm0 = vcmp.gt.f32.partialorder %v233_v10, 0.0  ;;  %v239_v13 = vmul.f32 0.2, %v233_v10  ;;  %vm237_vm1 = vcmp.gt.f32.partialorder %v234_v11, 0.0  ;;  %v240_v14 = vmul.f32 0.2, %v234_v11 }
  0x1a   : > { %vm238_vm2 = vcmp.gt.f32.partialorder %v235_v12, 0.0  ;;  %v241_v15 = vmul.f32 0.2, %v235_v12 }
  0x1b   : > { %v242_v16 = vsel %vm236_vm0, %v233_v10, %v239_v13  ;;  %v243_v17 = vsel %vm237_vm1, %v234_v11, %v240_v14 }
  0x1c   : > { %v363_v18 = vpack.c.bf16 %v242_v16, %v242_v16  ;;  %v364_v19 = vpack.c.bf16 %v243_v17, %v243_v17  ;;  %v244_v20 = vsel %vm238_vm2, %v235_v12, %v241_v15 }
  0x1d   : > { %v365_v21 = vpack.c.bf16 %v244_v20, %v244_v20 }
  0x1e   : > { %259 = vst.msk [vmem:[%s208_s26] sm:$0xf] %vm258_vm3, %v363_v18  ;;  %260 = vst.msk [vmem:[%s208_s26 + $0x4] sm:$0xf] %vm258_vm3, %v364_v19 }
  0x1f   : > { %261 = vst.msk [vmem:[%s208_s26 + $0x8] sm:$0xf] %vm258_vm3, %v365_v21 }
  0x20 PF: > { %s13_s14 = sadd.s32 1, %s417_s14   ;;  %s482_s12 = smov %s413_s13 }
  0x21   : > { %p10_p5 = scmp.ge.s32.totalorder %s13_s14, 4   ;;  %s483_s13 = smov %s485_s15 }
  0x23   :  { %12 = sbr.rel (!%p10_p5) target bundleno = 2 (0x2), region = 62 }

// kernel: nlayer_discriminator_forward.11
= control target key start
LH: loop header
LB: loop body
LE: loop exit
PB: predicated region body
PF: predicated region fallthrough
CT: control target
= control target key end

     0   :  { %s1225_s15 = smov 0   ;;  %s1227_s16 = smov 0   ;;  %s1359_s0 = inlined_call_operand.vmem [shape: bf16[2,40,64], index: 0, kind: input, shape index: {}]   ;;  %s1360_s1 = inlined_call_operand.vmem [shape: bf16[4,64,32], index: 1, kind: input, shape index: {}]   ;;  %s1361_s2 = inlined_call_operand.vmem [shape: bf16[2,24,32], index: 2, kind: output, shape index: {0}]   ;;  %s1362_s3 = inlined_call_operand.vmem [shape: f32[2,1,32], index: 3, kind: output, shape index: {1}]   ;;  %s1363_s4 = inlined_call_operand.vmem [shape: f32[2,1,32], index: 4, kind: output, shape index: {2}]  }
   0x1   :  { %s1229_s17 = smov 0  }
   0x2 LB: > { %s27_s18 = sadd.s32 1, %s1194_s16  ;;  %p987_p0 = scmp.ge.s32.totalorder %s1198_s17, 1  ;;  %s1198_s17 = sphi %s1229_s17, %s15_s17   ;;  %s1194_s16 = sphi %s1227_s16, %s1365_s16   ;;  %s1190_s15 = sphi %s1225_s15, %s1364_s15  }
   0x3   : > { %p29_p1 = scmp.ge.s32.totalorder %s27_s18, 2  ;;  %p189_p2 = scmp.lt.s32.totalorder %s1198_s17, 3 }
   0x5   : > { %s1367_s18 = smov (%p29_p1, %s27_s18), 0  ;;  %p190_p3 = pnand %p987_p0, %p189_p2 }
   0x6   : > { %v1152_v0 = vld [vmem:[%s1360_s1] sm:$0xff] (!%p190_p3)   ;;  %p233_p4 = scmp.lt.s32.totalorder (!%p190_p3), %s1190_s15, 1  ;;  %v1153_v1 = vld [vmem:[%s1360_s1 + $0x8] sm:$0xff] (!%p190_p3)   ;;  %v1155_v3 = vld [vmem:[%s1360_s1 + $0x10] sm:$0xff] (!%p190_p3)   ;;  %vm305_vm0 = vcmask (!%p190_p3), 523264   ;;  %vm360_vm2 = vcmask (!%p190_p3), 261120  }
   0x7   : > { %193 = sbr.rel (%p190_p3) target bundleno = 297 (0x129), region = 28  ;;  %1078 = vmatprep.subr.bf16.mxu0 (!%p190_p3), %v1152_v0  ;;  %v1154_v2 = vld [vmem:[%s1360_s1 + $0x20] sm:$0xff] (!%p190_p3)   ;;  %v1156_v4 = vld [vmem:[%s1360_s1 + $0x28] sm:$0xff] (!%p190_p3)   ;;  %v1158_v5 = vld [vmem:[%s1360_s1 + $0x30] sm:$0xff] (!%p190_p3)   ;;  %vm387_vm1 = vsmask.f32 (!%p190_p3), 7424 }
   0x8   : > { %1079 = vmatpush3.bf16.msra.mxu0 (!%p190_p3), %v1152_v0  ;;  %1090 = vmatprep.subr.bf16.mxu1 (!%p190_p3), %v1154_v2  ;;  %v1157_v7 = vld [vmem:[%s1360_s1 + $0x18] sm:$0xff] (!%p190_p3)   ;;  %v1161_v10 = vld [vmem:[%s1360_s1 + $0x40] sm:$0xff] (!%p190_p3)   ;;  %v1165_v19 = vld [vmem:[%s1360_s1 + $0x48] sm:$0xff] (!%p190_p3)   ;;  %vm800_vm5 = vcmask (!%p190_p3), 257024   ;;  %vm815_vm7 = vcmask (!%p190_p3), 253952  }
   0x9   : > { %1080 = vmatprep.subr.bf16.mxu0 (!%p190_p3), %v1153_v1  ;;  %1091 = vmatpush3.bf16.msra.mxu1 (!%p190_p3), %v1154_v2  ;;  %v1162_v8 = vld [vmem:[%s1360_s1 + $0x38] sm:$0xff] (!%p190_p3)   ;;  %v1167_v20 = vld [vmem:[%s1360_s1 + $0x60] sm:$0xff] (!%p190_p3)   ;;  %v1166_v23 = vld [vmem:[%s1360_s1 + $0x50] sm:$0xff] (!%p190_p3)  }
   0xa   : > { %1092 = vmatprep.subr.bf16.mxu1 (!%p190_p3), %v1156_v4  ;;  %v1169_v26 = vld [vmem:[%s1360_s1 + $0x68] sm:$0xff] (!%p190_p3)   ;;  %v1168_v29 = vld [vmem:[%s1360_s1 + $0x58] sm:$0xff] (!%p190_p3)   ;;  %v1172_v30 = vld [vmem:[%s1360_s1 + $0x70] sm:$0xff] (!%p190_p3)  }
   0xb   : > { %v1173_v36 = vld [vmem:[%s1360_s1 + $0x78] sm:$0xff] (!%p190_p3)  }
   0xc   : > { %1081 = vmatpush3.bf16.msra.mxu0 (!%p190_p3), %v1153_v1  ;;  %v725_v1 = vlaneseq (!%p190_p3) }
   0xd   : > { %1082 = vmatprep.subr.bf16.mxu0 (!%p190_p3), %v1155_v3  ;;  %1093 = vmatpush3.bf16.msra.mxu1 (!%p190_p3), %v1156_v4 }
   0xe   : > { %s1369_s15 = smov (!%p233_p4, %s1190_s15), 1  ;;  %1094 = vmatprep.subr.bf16.mxu1 %v1158_v5 }
   0xf   : > { %s1126_s29 = smul.u32 20, %s1369_s15  ;;  %s254_s13 = scalar_lea.vmem %s1362_s3, %s1369_s15 }
  0x10   : > { %1083 = vmatpush3.bf16.msra.mxu0 %v1155_v3  ;;  %s1127_s7 = smul.u32 12, %s1369_s15  ;;  %s260_s20 = scalar_lea.vmem %s1363_s4, %s1369_s15 }
  0x11   : > { %s1267_s8 = scalar_lea.vmem %s1359_s0, %s1126_s29  ;;  %1084 = vmatprep.subr.bf16.mxu0 %v1157_v7  ;;  %1095 = vmatpush3.bf16.msra.mxu1 %v1158_v5 }
  0x12   : > { %v1159_v6 = vld [vmem:[%s1267_s8] sm:$0xff]   ;;  %v1160_v9 = vld [vmem:[%s1267_s8 + $0x8] ss:$0 sps:$4 sm:$0xff]   ;;  %1096 = vmatprep.subr.bf16.mxu1 %v1162_v8  ;;  %v1175_v28 = vld [vmem:[%s1267_s8 + $0xc] sm:$0x1f]   ;;  %s247_s10 = scalar_lea.vmem %s1361_s2, %s1127_s7 }
  0x13   : > { %1086 = vmatprep.mubr.msk.bf16.mxu0 %vm305_vm0, %v1159_v6  ;;  %v1163_v11 = vld [vmem:[%s1267_s8] sm:$0xff]   ;;  %v1164_v12 = vld [vmem:[%s1267_s8 + $0x8] sm:$0x1f]   ;;  %v628_v33 = vshll.u32 %v1175_v28, 16  ;;  %v632_v39 = vshrl.u32 %v1175_v28, 16 }
  0x14   : > { %v389_v13 = vshrl.u32 %v1163_v11, 16  ;;  %v391_v14 = vshll.u32 %v1163_v11, 16  ;;  %v396_v15 = vshll.u32 %v1164_v12, 16  ;;  %v400_v16 = vshrl.u32 %v1164_v12, 16  ;;  %1085 = vmatpush3.bf16.msra.mxu0 %v1157_v7  ;;  %v1170_v24 = vld [vmem:[%s1267_s8 + $0x4] sm:$0xff]  }
  0x15   : > { %1102 = vmatprep.subr.bf16.mxu0 %v1161_v10  ;;  %1097 = vmatpush3.bf16.msra.mxu1 %v1162_v8  ;;  %v1174_v27 = vld [vmem:[%s1267_s8 + $0x4] sm:$0xff]   ;;  %v630_v35 = vrot.slane %v628_v33, 1  ;;  %v1171_v38 = vld [vmem:[%s1267_s8 + $0xc] ss:$0 sps:$4 sm:$0xff]   ;;  %v726_v7 = vshrl.u32 %v725_v1, 7 }
  0x16   : > { %v393_v17 = vrot.slane %v391_v14, 1  ;;  %v398_v18 = vrot.slane %v396_v15, 1  ;;  %1114 = vmatprep.subr.bf16.mxu1 %v1167_v20  ;;  %v621_v31 = vshrl.u32 %v1174_v27, 16  ;;  %v623_v32 = vshll.u32 %v1174_v27, 16 }
  0x17   : > { %1087 = vmatmul.mubr.msk.bf16.vlgmr.msra.gmra.mrb[0].mxu0 %vm305_vm0, %v1160_v9  ;;  %v634_v41 = vor.u32 %v632_v39, %v630_v35  ;;  %v728_v9 = vadd.s32 16, %v726_v7  ;;  %v727_v14 = vadd.s32 8, %v726_v7 }
  0x18   : > { %v394_v21 = vor.u32 %v393_v17, %v389_v13  ;;  %v402_v22 = vor.u32 %v400_v16, %v398_v18  ;;  %1103 = vmatpush3.bf16.msra.mxu0 %v1161_v10  ;;  %1110 = vmatprep.mubr.msk.bf16.mxu0 %vm305_vm0, %v1170_v24  ;;  %v625_v34 = vrot.slane %v623_v32, 1  ;;  %v733_v17 = vand.u32 7, %v726_v7 }
  0x19   : > { %1104 = vmatprep.subr.bf16.mxu0 %v1165_v19  ;;  %v747_v15 = vand.u32 7, %v728_v9 }
  0x1a   : > { %v399_v25 = vsel %vm387_vm1, %v394_v21, %v398_v18  ;;  %v626_v37 = vor.u32 %v625_v34, %v621_v31  ;;  %v740_v18 = vand.u32 7, %v727_v14  ;;  %vm768_vm4 = vcmp.lt.s32.totalorder %v733_v17, 3 }
  0x1b   : > { %1098 = vmatprep.mubr.msk.bf16.mxu1 %vm305_vm0, %v399_v25  ;;  %vm770_vm3 = vcmp.lt.s32.totalorder %v747_v15, 3 }
  0x1c   : > { %1099 = vmatmul.mubr.msk.bf16.vlgmr.msra.gmra.mrb[0].mxu1 %vm305_vm0, %v402_v22  ;;  %1105 = vmatpush3.bf16.msra.mxu0 %v1165_v19  ;;  %v631_v40 = vsel %vm387_vm1, %v626_v37, %v630_v35  ;;  %vm769_vm6 = vcmp.lt.s32.totalorder %v740_v18, 3 }
  0x1d   : > { %1115 = vmatpush3.bf16.msra.mxu1 %v1167_v20  ;;  %1106 = vmatprep.subr.bf16.mxu0 %v1166_v23 }
  0x1e   : > { %1116 = vmatprep.subr.bf16.mxu1 %v1169_v26  ;;  %1122 = vmatprep.mubr.msk.bf16.mxu1 %vm305_vm0, %v631_v40 }
  0x20   : > { %1107 = vmatpush3.bf16.msra.mxu0 %v1166_v23 }
  0x21   : > { %1117 = vmatpush3.bf16.msra.mxu1 %v1169_v26  ;;  %1108 = vmatprep.subr.bf16.mxu0 %v1168_v29 }
  0x22   : > { %1118 = vmatprep.subr.bf16.mxu1 %v1172_v30 }
  0x24   : > { %1109 = vmatpush3.bf16.msra.mxu0 %v1168_v29 }
  0x25   : > { %1119 = vmatpush3.bf16.msra.mxu1 %v1172_v30 }
  0x26   : > { %1120 = vmatprep.subr.bf16.mxu1 %v1173_v36 }
  0x27   : > { %1111 = vmatmul.mubr.msk.bf16.vlgmr.msra.gmra.mrb[4].mxu0 %vm305_vm0, %v1171_v38 }
  0x29   : > { %1121 = vmatpush3.bf16.msra.mxu1 %v1173_v36 }
  0x2c   : > { %1123 = vmatmul.mubr.msk.bf16.vlgmr.msra.gmra.mrb[4].mxu1 %vm305_vm0, %v634_v41 }
  0xea   : > { %v1088_v42 = vpop.f32.mrb[0].mxu0 }
  0xeb   : > { %363 = vst.msk [vmem:[#allocation2 + $0x10] sm:$0xff] %vm360_vm2, %v1088_v42  ;;  %v346_v43 = vpop.f32.mrb[1].mxu0 }
  0xec   : > { %361 = vst.msk [vmem:[#allocation2] sm:$0xff] %vm360_vm2, %v346_v43  ;;  %v1089_v44 = vpop.f32.mrb[2].mxu0 }
  0xed   : > { %v349_v45 = vpop.f32.mrb[3].mxu0 }
  0xee   : > { %362 = vst.msk [vmem:[#allocation2 + $0x8] sm:$0xff] %vm360_vm2, %v349_v45 }
  0xef   : > { %v1100_v46 = vpop.f32.mrb[0].mxu1 }
  0xf0   : > { %v467_v47 = vpop.f32.mrb[1].mxu1 }
  0xf1   : > { %v1101_v48 = vpop.f32.mrb[2].mxu1 }
  0xf2   : > { %v470_v49 = vpop.f32.mrb[3].mxu1  ;;  %v483_v50 = vld [vmem:[#allocation2 + $0x10] sm:$0xff] }
  0xf3   : > { %v486_v51 = vadd.f32 %v1100_v46, %v483_v50  ;;  %v481_v52 = vld [vmem:[#allocation2] sm:$0xff] }
  0xf4   : > { %v484_v53 = vadd.f32 %v481_v52, %v467_v47 }
  0xf5   : > { %489 = vst.msk [vmem:[#allocation2 + $0x10] sm:$0xff] %vm360_vm2, %v486_v51  ;;  %v482_v54 = vld [vmem:[#allocation2 + $0x8] sm:$0xff] }
  0xf6   : > { %487 = vst.msk [vmem:[#allocation2] sm:$0xff] %vm360_vm2, %v484_v53  ;;  %v485_v55 = vadd.f32 %v482_v54, %v470_v49 }
  0xf8   : > { %488 = vst.msk [vmem:[#allocation2 + $0x8] sm:$0xff] %vm360_vm2, %v485_v55 }
  0xfa   : > { %v1112_v56 = vpop.f32.mrb[4].mxu0 }
  0xfb   : > { %v574_v57 = vpop.f32.mrb[5].mxu0 }
  0xfc   : > { %v590_v58 = vld [vmem:[#allocation2 + $0x10] sm:$0xff]  ;;  %v1113_v59 = vpop.f32.mrb[6].mxu0 }
  0xfd   : > { %v593_v60 = vadd.f32 %v1112_v56, %v590_v58  ;;  %v588_v61 = vld [vmem:[#allocation2] sm:$0xff]  ;;  %v577_v62 = vpop.f32.mrb[7].mxu0 }
  0xfe   : > { %v591_v63 = vadd.f32 %v588_v61, %v574_v57 }
  0xff   : > { %v1124_v0 = vpop.f32.mrb[4].mxu1  ;;  %596 = vst.msk [vmem:[#allocation2 + $0x10] sm:$0xff] %vm360_vm2, %v593_v60  ;;  %v589_v2 = vld [vmem:[#allocation2 + $0x8] sm:$0xff] }
 0x100   : > { %v699_v3 = vpop.f32.mrb[5].mxu1  ;;  %594 = vst.msk [vmem:[#allocation2] sm:$0xff] %vm360_vm2, %v591_v63  ;;  %v592_v4 = vadd.f32 %v589_v2, %v577_v62 }
 0x101   : > { %v1125_v5 = vpop.f32.mrb[6].mxu1 }
 0x102   : > { %v702_v6 = vpop.f32.mrb[7].mxu1  ;;  %595 = vst.msk [vmem:[#allocation2 + $0x8] sm:$0xff] %vm360_vm2, %v592_v4 }
 0x106   : > { %v715_v8 = vld [vmem:[#allocation2 + $0x10] sm:$0xff] }
 0x107   : > { %v718_v10 = vadd.f32 %v1124_v0, %v715_v8  ;;  %v713_v11 = vld [vmem:[#allocation2] sm:$0xff] }
 0x108   : > { %v716_v12 = vadd.f32 %v713_v11, %v699_v3 }
 0x109   : > { %721 = vst.msk [vmem:[#allocation2 + $0x10] sm:$0xff] %vm360_vm2, %v718_v10  ;;  %v714_v13 = vld [vmem:[#allocation2 + $0x8] sm:$0xff] }
 0x10a   : > { %719 = vst.msk [vmem:[#allocation2] sm:$0xff] %vm360_vm2, %v716_v12  ;;  %v717_v16 = vadd.f32 %v714_v13, %v702_v6 }
 0x10c   : > { %720 = vst.msk [vmem:[#allocation2 + $0x8] sm:$0xff] %vm360_vm2, %v717_v16 }
 0x110   : > { %v724_v19 = vld [vmem:[#allocation2 + $0x10] sm:$0xff] }
 0x111   : > { %v786_v20 = vsel %vm770_vm3, %v724_v19, 0.0  ;;  %v722_v21 = vld [vmem:[#allocation2] sm:$0xff] }
 0x112   : > { %v1053_v22 = vpack.c.bf16 %v786_v20, %v786_v20  ;;  %v784_v23 = vsel %vm768_vm4, %v722_v21, 0.0  ;;  %v819_v27 = vmul.f32 %v786_v20, %v786_v20  ;;  %v807_v34 = vsel %vm360_vm2, %v786_v20, 0.0 }
 0x113   : > { %v1051_v24 = vpack.c.bf16 %v784_v23, %v784_v23  ;;  %v817_v25 = vmul.f32 %v784_v23, %v784_v23  ;;  %v723_v26 = vld [vmem:[#allocation2 + $0x8] sm:$0xff]  ;;  %v804_v29 = vsel %vm360_vm2, %v784_v23, 0.0 }
 0x114   : > { %803 = vst.msk [vmem:[%s247_s10 + $0x8] sm:$0xf] %vm800_vm5, %v1053_v22  ;;  %v785_v28 = vsel %vm769_vm6, %v723_v26, 0.0  ;;  %v823_v39 = vsel %vm360_vm2, %v819_v27, 0.0 }
 0x115   : > { %801 = vst.msk [vmem:[%s247_s10] sm:$0xf] %vm800_vm5, %v1051_v24  ;;  %v1052_v30 = vpack.c.bf16 %v785_v28, %v785_v28  ;;  %v805_v31 = vsel %vm360_vm2, %v785_v28, 0.0  ;;  %v818_v32 = vmul.f32 %v785_v28, %v785_v28  ;;  %v820_v35 = vsel %vm360_vm2, %v817_v25, 0.0 }
 0x116   : > { %v806_v33 = vadd.f32 %v805_v31, %v804_v29 }
 0x117   : > { %802 = vst.msk [vmem:[%s247_s10 + $0x4] sm:$0xf] %vm800_vm5, %v1052_v30  ;;  %v821_v36 = vsel %vm360_vm2, %v818_v32, 0.0 }
 0x118   : > { %v808_v37 = vadd.f32 %v807_v34, %v806_v33  ;;  %v822_v38 = vadd.f32 %v821_v36, %v820_v35 }
 0x11a   : > { %v809_v40 = vrot.slane %v808_v37, 4  ;;  %v824_v41 = vadd.f32 %v823_v39, %v822_v38 }
 0x11c   : > { %v810_v42 = vadd.f32 %v809_v40, %v808_v37  ;;  %v825_v43 = vrot.slane %v824_v41, 4 }
 0x11e   : > { %v811_v44 = vrot.slane %v810_v42, 2  ;;  %v826_v45 = vadd.f32 %v825_v43, %v824_v41 }
 0x120   : > { %v812_v46 = vadd.f32 %v811_v44, %v810_v42  ;;  %v827_v47 = vrot.slane %v826_v45, 2 }
 0x122   : > { %v813_v48 = vrot.slane %v812_v46, 1  ;;  %v828_v49 = vadd.f32 %v827_v47, %v826_v45 }
 0x124   : > { %v814_v50 = vadd.f32 %v813_v48, %v812_v46  ;;  %v829_v51 = vrot.slane %v828_v49, 1 }
 0x126   : > { %816 = vst.msk [vmem:[%s254_s13] sm:$0x1] %vm815_vm7, %v814_v50  ;;  %v830_v52 = vadd.f32 %v829_v51, %v828_v49 }
 0x128   : > { %831 = vst.msk [vmem:[%s260_s20] sm:$0x1] %vm815_vm7, %v830_v52 }
 0x129 PF: > { %s15_s17 = sadd.s32 1, %s1198_s17   ;;  %s1364_s15 = smov %s1194_s16 }
 0x12a   : > { %p12_p5 = scmp.ge.s32.totalorder %s15_s17, 4   ;;  %s1365_s16 = smov %s1367_s18 }
 0x12c   :  { %14 = sbr.rel (!%p12_p5) target bundleno = 2 (0x2), region = 85 }

// kernel: nlayer_discriminator_forward.14
= control target key start
LH: loop header
LB: loop body
LE: loop exit
PB: predicated region body
PF: predicated region fallthrough
CT: control target
= control target key end

     0   :  { %s460_s12 = smov 0   ;;  %s462_s13 = smov 0   ;;  %s499_s0 = inlined_call_operand.vmem [shape: bf16[2,32,64], index: 0, kind: input, shape index: {}, may-alias: {0,3}]   ;;  %s500_s1 = inlined_call_operand.vmem [shape: f32[1,1,64], index: 1, kind: input, shape index: {}]   ;;  %s501_s2 = inlined_call_operand.vmem [shape: f32[1,1,64], index: 2, kind: input, shape index: {}]   ;;  %s502_s3 = inlined_call_operand.vmem [shape: bf16[2,32,64], index: 3, kind: output, shape index: {}, may-alias: {0,3}]  }
   0x1   :  { %s464_s14 = smov 0  }
   0x2 LB: > { %s25_s15 = sadd.s32 1, %s434_s13  ;;  %p364_p0 = scmp.ge.s32.totalorder %s438_s14, 1  ;;  %s438_s14 = sphi %s464_s14, %s13_s14   ;;  %s434_s13 = sphi %s462_s13, %s504_s13   ;;  %s430_s12 = sphi %s460_s12, %s503_s12  }
   0x3   : > { %p27_p1 = scmp.ge.s32.totalorder %s25_s15, 2  ;;  %p158_p2 = scmp.lt.s32.totalorder %s438_s14, 3 }
   0x5   : > { %s506_s15 = smov (%p27_p1, %s25_s15), 0  ;;  %p159_p3 = pnand %p364_p0, %p158_p2 }
   0x6   : > { %p191_p4 = scmp.lt.s32.totalorder (!%p159_p3), %s430_s12, 1  ;;  %v369_v2 = vld [vmem:[%s500_s1] ss:$0 sm:$0xff] (!%p159_p3)  ;;  %vm268_vm4 = vcmask (!%p159_p3), 519168  }
   0x7   : > { %162 = sbr.rel (%p159_p3) target bundleno = 31 (0x1f), region = 32  ;;  %v370_v7 = vld [vmem:[%s501_s2] ss:$0 sm:$0xff] (!%p159_p3) }
   0xe   : > { %s508_s12 = smov (!%p191_p4, %s430_s12), 1 }
   0xf   : > { %s377_s16 = sshll.u32 %s508_s12, 4 }
  0x10   : > { %s198_s19 = scalar_lea.vmem %s499_s0, %s377_s16  ;;  %s208_s26 = scalar_lea.vmem %s502_s3, %s377_s16 }
  0x11   : > { %v384_v0 = vld [vmem:[%s198_s19] sm:$0xff]   ;;  %v391_v1 = vld [vmem:[%s198_s19 + $0x8] sm:$0xff]  }
  0x12   : > { %v385_v3 = vunpack.c.l.bf16 %v384_v0  ;;  %v386_v4 = vunpack.c.h.bf16 %v384_v0  ;;  %v389_v5 = vunpack.c.l.bf16 %v391_v1  ;;  %v390_v6 = vunpack.c.h.bf16 %v391_v1 }
  0x14   : > { %v225_v8 = vmul.f32 %v385_v3, %v369_v2  ;;  %v226_v9 = vmul.f32 %v386_v4, %v369_v2  ;;  %v227_v10 = vmul.f32 %v389_v5, %v369_v2  ;;  %v228_v11 = vmul.f32 %v390_v6, %v369_v2 }
  0x16   : > { %v236_v12 = vadd.f32 %v370_v7, %v225_v8  ;;  %v237_v13 = vadd.f32 %v370_v7, %v226_v9  ;;  %v238_v14 = vadd.f32 %v370_v7, %v227_v10  ;;  %v239_v15 = vadd.f32 %v370_v7, %v228_v11 }
  0x18   : > { %vm240_vm0 = vcmp.gt.f32.partialorder %v236_v12, 0.0  ;;  %v244_v16 = vmul.f32 0.2, %v236_v12  ;;  %vm241_vm1 = vcmp.gt.f32.partialorder %v237_v13, 0.0  ;;  %v245_v17 = vmul.f32 0.2, %v237_v13 }
  0x19   : > { %vm242_vm2 = vcmp.gt.f32.partialorder %v238_v14, 0.0  ;;  %v246_v18 = vmul.f32 0.2, %v238_v14  ;;  %vm243_vm3 = vcmp.gt.f32.partialorder %v239_v15, 0.0  ;;  %v247_v19 = vmul.f32 0.2, %v239_v15 }
  0x1a   : > { %v248_v20 = vsel %vm240_vm0, %v236_v12, %v244_v16  ;;  %v249_v21 = vsel %vm241_vm1, %v237_v13, %v245_v17 }
  0x1b   : > { %v379_v22 = vpack.c.bf16 %v248_v20, %v248_v20  ;;  %v380_v23 = vpack.c.bf16 %v249_v21, %v249_v21  ;;  %v250_v24 = vsel %vm242_vm2, %v238_v14, %v246_v18  ;;  %v251_v25 = vsel %vm243_vm3, %v239_v15, %v247_v19 }
  0x1c   : > { %v381_v26 = vpack.c.bf16 %v250_v24, %v250_v24  ;;  %v382_v27 = vpack.c.bf16 %v251_v25, %v251_v25 }
  0x1d   : > { %269 = vst.msk [vmem:[%s208_s26] sm:$0xf] %vm268_vm4, %v379_v22  ;;  %270 = vst.msk [vmem:[%s208_s26 + $0x4] sm:$0xf] %vm268_vm4, %v380_v23 }
  0x1e   : > { %271 = vst.msk [vmem:[%s208_s26 + $0x8] sm:$0xf] %vm268_vm4, %v381_v26  ;;  %272 = vst.msk [vmem:[%s208_s26 + $0xc] sm:$0xf] %vm268_vm4, %v382_v27 }
  0x1f PF: > { %s13_s14 = sadd.s32 1, %s438_s14   ;;  %s503_s12 = smov %s434_s13 }
  0x20   : > { %p10_p5 = scmp.ge.s32.totalorder %s13_s14, 4   ;;  %s504_s13 = smov %s506_s15 }
  0x22   :  { %12 = sbr.rel (!%p10_p5) target bundleno = 2 (0x2), region = 62 }

// kernel: nlayer_discriminator_forward.13
= control target key start
LH: loop header
LB: loop body
LE: loop exit
PB: predicated region body
PF: predicated region fallthrough
CT: control target
= control target key end

     0   :  { %s2898_s15 = smov 0   ;;  %s2900_s16 = smov 0   ;;  %s3313_s0 = inlined_call_operand.vmem [shape: bf16[2,64,32], index: 0, kind: input, shape index: {}]   ;;  %s3314_s1 = inlined_call_operand.vmem [shape: bf16[16,32,64], index: 1, kind: input, shape index: {}]   ;;  %s3315_s2 = inlined_call_operand.vmem [shape: bf16[2,32,64], index: 2, kind: output, shape index: {0}]   ;;  %s3316_s3 = inlined_call_operand.vmem [shape: f32[2,1,64], index: 3, kind: output, shape index: {1}]   ;;  %s3317_s4 = inlined_call_operand.vmem [shape: f32[2,1,64], index: 4, kind: output, shape index: {2}]  }
   0x1   :  { %s2902_s17 = smov 0  }
   0x2 LB: > { %s27_s18 = sadd.s32 1, %s2867_s16  ;;  %p2372_p0 = scmp.ge.s32.totalorder %s2871_s17, 1  ;;  %s2871_s17 = sphi %s2902_s17, %s15_s17   ;;  %s2867_s16 = sphi %s2900_s16, %s3319_s16   ;;  %s2863_s15 = sphi %s2898_s15, %s3318_s15  }
   0x3   : > { %p29_p1 = scmp.ge.s32.totalorder %s27_s18, 2  ;;  %p189_p2 = scmp.lt.s32.totalorder %s2871_s17, 3 }
   0x5   : > { %s3321_s18 = smov (%p29_p1, %s27_s18), 0  ;;  %p190_p3 = pnand %p2372_p0, %p189_p2 }
   0x6   : > { %v2773_v0 = vld [vmem:[%s3314_s1] sm:$0xff] (!%p190_p3)   ;;  %p233_p4 = scmp.lt.s32.totalorder (!%p190_p3), %s2863_s15, 1  ;;  %v2774_v1 = vld [vmem:[%s3314_s1 + $0x8] sm:$0xff] (!%p190_p3)   ;;  %v2775_v2 = vld [vmem:[%s3314_s1 + $0x10] sm:$0xff] (!%p190_p3)   ;;  %vm292_vm0 = vcmask (!%p190_p3), 261120   ;;  %vm499_vm1 = vcmask (!%p190_p3), 1046528  }
   0x7   : > { %193 = sbr.rel (%p190_p3) target bundleno = 415 (0x19f), region = 28  ;;  %2621 = vmatprep.subr.bf16.mxu0 (!%p190_p3), %v2773_v0  ;;  %v2778_v3 = vld [vmem:[%s3314_s1 + $0x18] sm:$0xff] (!%p190_p3)   ;;  %2629 = vmatprep.subr.bf16.mxu1 (!%p190_p3), %v2775_v2  ;;  %v2782_v4 = vld [vmem:[%s3314_s1 + $0x20] sm:$0xff] (!%p190_p3)   ;;  %vm376_vm2 = vsmask.f32 (!%p190_p3), 7424  ;;  %v2783_v10 = vld [vmem:[%s3314_s1 + $0x28] sm:$0xff] (!%p190_p3)  }
   0x8   : > { %2622 = vmatpush3.bf16.msra.mxu0 (!%p190_p3), %v2773_v0  ;;  %2630 = vmatpush3.bf16.msra.mxu1 (!%p190_p3), %v2775_v2  ;;  %v2787_v26 = vld [vmem:[%s3314_s1 + $0x30] sm:$0xff] (!%p190_p3)   ;;  %vm607_vm3 = vsmask.f32 (!%p190_p3), 6400  ;;  %v2788_v31 = vld [vmem:[%s3314_s1 + $0x38] sm:$0xff] (!%p190_p3)   ;;  %v2792_v42 = vld [vmem:[%s3314_s1 + $0x40] sm:$0xff] (!%p190_p3)   ;;  %vm348_vm4 = vcmask (!%p190_p3), 523264  }
   0x9   : > { %2623 = vmatprep.subr.bf16.mxu0 (!%p190_p3), %v2774_v1  ;;  %2631 = vmatprep.subr.bf16.mxu1 (!%p190_p3), %v2778_v3  ;;  %v2793_v43 = vld [vmem:[%s3314_s1 + $0x48] sm:$0xff] (!%p190_p3)   ;;  %v2796_v55 = vld [vmem:[%s3314_s1 + $0x50] sm:$0xff] (!%p190_p3)   ;;  %v2797_v58 = vld [vmem:[%s3314_s1 + $0x58] sm:$0xff] (!%p190_p3)   ;;  %vm2179_vm8 = vcmask (!%p190_p3), 519168   ;;  %vm2197_vm10 = vcmask (!%p190_p3), 516096  }
   0xa   : > { %v2801_v62 = vld [vmem:[%s3314_s1 + $0x60] sm:$0xff] (!%p190_p3)  }
   0xc   : > { %2624 = vmatpush3.bf16.msra.mxu0 (!%p190_p3), %v2774_v1  ;;  %2632 = vmatpush3.bf16.msra.mxu1 (!%p190_p3), %v2778_v3 }
   0xd   : > { %2637 = vmatprep.subr.bf16.mxu0 (!%p190_p3), %v2782_v4  ;;  %2645 = vmatprep.subr.bf16.mxu1 (!%p190_p3), %v2787_v26 }
   0xe   : > { %s3323_s15 = smov (!%p233_p4, %s2863_s15), 1 }
   0xf   : > { %s2551_s27 = sshll.u32 %s3323_s15, 5  ;;  %s254_s28 = scalar_lea.vmem %s3316_s3, %s3323_s15 }
  0x10   : > { %s2937_s6 = scalar_lea.vmem %s3313_s0, %s2551_s27  ;;  %s260_s5 = scalar_lea.vmem %s3317_s4, %s3323_s15 }
  0x11   : > { %v2776_v5 = vld [vmem:[%s2937_s6] sm:$0xff]   ;;  %v2777_v6 = vld [vmem:[%s2937_s6 + $0x8] sm:$0xff]   ;;  %v2781_v9 = vld [vmem:[%s2937_s6 + $0x10] ss:$0 sps:$4 sm:$0x11]  }
  0x12   : > { %2625 = vmatprep.mubr.msk.bf16.mxu0 %vm292_vm0, %v2776_v5  ;;  %v2779_v7 = vld [vmem:[%s2937_s6] sm:$0xff]   ;;  %v2780_v8 = vld [vmem:[%s2937_s6 + $0x8] sm:$0xff]   ;;  %v393_v15 = vshll.u32 %v2781_v9, 16  ;;  %v2786_v25 = vld [vmem:[%s2937_s6 + $0x10] ss:$0 sps:$4 sm:$0x11]  }
  0x13   : > { %2626 = vmatmul.mubr.msk.bf16.vlgmr.msra.gmra.mrb[0].mxu0 %vm292_vm0, %v2777_v6  ;;  %v378_v11 = vshrl.u32 %v2779_v7, 16  ;;  %v380_v12 = vshll.u32 %v2779_v7, 16  ;;  %v385_v13 = vshll.u32 %v2780_v8, 16  ;;  %v389_v14 = vshrl.u32 %v2780_v8, 16  ;;  %v2785_v16 = vld [vmem:[%s2937_s6 + $0x8] sm:$0xff]  }
  0x14   : > { %2638 = vmatpush3.bf16.msra.mxu0 %v2782_v4  ;;  %v2784_v19 = vld [vmem:[%s2937_s6] sm:$0xfe]   ;;  %v395_v20 = vrot.slane %v393_v15, 1  ;;  %v501_v21 = vrot.slane %v2785_v16, 1  ;;  %v503_v30 = vrot.slane %v2786_v25, 1  ;;  %v2790_v34 = vld [vmem:[%s2937_s6 + $0x8] sm:$0xff]  }
  0x15   : > { %2639 = vmatprep.subr.bf16.mxu0 %v2783_v10  ;;  %v382_v17 = vrot.slane %v380_v12, 1  ;;  %v387_v18 = vrot.slane %v385_v13, 1  ;;  %v500_v24 = vrot.slane %v2784_v19, 1  ;;  %v2789_v32 = vld [vmem:[%s2937_s6] sm:$0xfe]   ;;  %v617_v38 = vshrl.u32 %v2790_v34, 16 }
  0x16   : > { %v504_v33 = vsel %vm499_vm1, %v501_v21, %v503_v30  ;;  %v2791_v35 = vld [vmem:[%s2937_s6 + $0x10] ss:$0 sps:$4 sm:$0x33]   ;;  %v609_v36 = vshrl.u32 %v2789_v32, 16  ;;  %v612_v37 = vshll.u32 %v2789_v32, 16  ;;  %v620_v39 = vshll.u32 %v2790_v34, 16 }
  0x17   : > { %v383_v22 = vor.u32 %v382_v17, %v378_v11  ;;  %v391_v23 = vor.u32 %v389_v14, %v387_v18  ;;  %v502_v29 = vsel %vm499_vm1, %v500_v24, %v501_v21  ;;  %v626_v40 = vshrl.u32 %v2791_v35, 16  ;;  %v2794_v51 = vld [vmem:[%s2937_s6 + $0x4] sm:$0xff]   ;;  %v2795_v54 = vld [vmem:[%s2937_s6 + $0xc] sm:$0xff]   ;;  %v2800_v61 = vld [vmem:[%s2937_s6 + $0x14] ss:$0 sps:$4 sm:$0x11]  }
  0x18   : > { %2640 = vmatpush3.bf16.msra.mxu0 %v2783_v10  ;;  %2641 = vmatprep.mubr.msk.bf16.mxu0 %vm292_vm0, %v502_v29  ;;  %v629_v41 = vshll.u32 %v2791_v35, 16  ;;  %v611_v44 = vrot.slane %v609_v36, 1  ;;  %v614_v45 = vrot.slane %v612_v37, 2  ;;  %v619_v46 = vrot.slane %v617_v38, 1  ;;  %v2798_v59 = vld [vmem:[%s2937_s6 + $0x4] sm:$0xff]   ;;  %v2799_v60 = vld [vmem:[%s2937_s6 + $0xc] sm:$0xff]  }
  0x19   : > { %v388_v27 = vsel %vm376_vm2, %v383_v22, %v387_v18  ;;  %v396_v28 = vsel %vm376_vm2, %v391_v23, %v395_v20  ;;  %v622_v47 = vrot.slane %v620_v39, 2  ;;  %v628_v48 = vrot.slane %v626_v40, 1  ;;  %2653 = vmatprep.subr.bf16.mxu0 %v2792_v42  ;;  %v2802_v4 = vld [vmem:[%s3314_s1 + $0x68] sm:$0xff]   ;;  %v2805_v13 = vld [vmem:[%s2937_s6 + $0x14] ss:$0 sps:$4 sm:$0x11]  }
  0x1a   : > { %2633 = vmatprep.mubr.msk.bf16.mxu1 %vm292_vm0, %v388_v27  ;;  %v631_v49 = vrot.slane %v629_v41, 2  ;;  %v615_v50 = vor.u32 %v614_v45, %v611_v44  ;;  %v835_v63 = vshrl.u32 %v2798_v59, 16  ;;  %v837_v0 = vshll.u32 %v2798_v59, 16  ;;  %v2804_v8 = vld [vmem:[%s2937_s6 + $0xc] sm:$0xff]   ;;  %v2803_v11 = vld [vmem:[%s2937_s6 + $0x4] sm:$0xfe]  }
  0x1b   : > { %2634 = vmatmul.mubr.msk.bf16.vlgmr.msra.gmra.mrb[0].mxu1 %vm292_vm0, %v396_v28  ;;  %2642 = vmatmul.mubr.msk.bf16.vlgmr.msra.gmra.mrb[4].mxu0 %vm292_vm0, %v504_v33  ;;  %v623_v52 = vor.u32 %v622_v47, %v619_v46  ;;  %v842_v1 = vshll.u32 %v2799_v60, 16  ;;  %v846_v2 = vshrl.u32 %v2799_v60, 16  ;;  %v850_v3 = vshll.u32 %v2800_v61, 16  ;;  %v2806_v17 = vld [vmem:[%s3314_s1 + $0x70] sm:$0xff]   ;;  %v2807_v19 = vld [vmem:[%s3314_s1 + $0x78] sm:$0xff]   ;;  %v2812_v32 = vld [vmem:[%s3314_s1 + $0x88] sm:$0xff]  }
  0x1c   : > { %2646 = vmatpush3.bf16.msra.mxu1 %v2787_v26  ;;  %2654 = vmatpush3.bf16.msra.mxu0 %v2792_v42  ;;  %v632_v53 = vor.u32 %v631_v49, %v628_v48  ;;  %v839_v5 = vrot.slane %v837_v0, 1  ;;  %v957_v12 = vrot.slane %v2804_v8, 1  ;;  %v956_v16 = vrot.slane %v2803_v11, 1  ;;  %v2808_v21 = vld [vmem:[%s2937_s6 + $0x4] sm:$0xfe]   ;;  %v2809_v23 = vld [vmem:[%s2937_s6 + $0xc] sm:$0xff]  }
  0x1d   : > { %2647 = vmatprep.subr.bf16.mxu1 %v2788_v31  ;;  %2655 = vmatprep.subr.bf16.mxu0 %v2793_v43  ;;  %v624_v56 = vsel %vm607_vm3, %v615_v50, %v623_v52  ;;  %v844_v6 = vrot.slane %v842_v1, 1  ;;  %v852_v7 = vrot.slane %v850_v3, 1  ;;  %v959_v18 = vrot.slane %v2805_v13, 1  ;;  %v2810_v24 = vld [vmem:[%s2937_s6 + $0x14] ss:$0 sps:$4 sm:$0x33]  }
  0x1e   : > { %2657 = vmatprep.mubr.msk.bf16.mxu0 %vm292_vm0, %v2794_v51  ;;  %v633_v57 = vsel %vm607_vm3, %v623_v52, %v632_v53  ;;  %2649 = vmatprep.mubr.msk.bf16.mxu1 %vm292_vm0, %v624_v56  ;;  %v840_v9 = vor.u32 %v839_v5, %v835_v63  ;;  %v958_v20 = vsel %vm499_vm1, %v956_v16, %v957_v12  ;;  %v1064_v25 = vshrl.u32 %v2808_v21, 16  ;;  %v2813_v40 = vld [vmem:[%s2937_s6 + $0x8] sm:$0xff]   ;;  %v2815_v44 = vld [vmem:[%s3314_s1 + $0x90] sm:$0xff]   ;;  %v2816_v47 = vld [vmem:[%s3314_s1 + $0x98] sm:$0xff]  }
  0x1f   : > { %v848_v10 = vor.u32 %v846_v2, %v844_v6  ;;  %v960_v22 = vsel %vm499_vm1, %v957_v12, %v959_v18  ;;  %v1067_v26 = vshll.u32 %v2808_v21, 16  ;;  %v1072_v27 = vshrl.u32 %v2809_v23, 16  ;;  %v2817_v48 = vld [vmem:[%s2937_s6 + $0x8] sm:$0xff]   ;;  %v2818_v49 = vld [vmem:[%s2937_s6 + $0x10] sm:$0xff]   ;;  %v2820_v51 = vld [vmem:[%s3314_s1 + $0xa0] sm:$0xff]  }
  0x20   : > { %2648 = vmatpush3.bf16.msra.mxu1 %v2788_v31  ;;  %2656 = vmatpush3.bf16.msra.mxu0 %v2793_v43  ;;  %v845_v14 = vsel %vm376_vm2, %v840_v9, %v844_v6  ;;  %v1075_v28 = vshll.u32 %v2809_v23, 16  ;;  %v1081_v29 = vshrl.u32 %v2810_v24, 16  ;;  %v1084_v30 = vshll.u32 %v2810_v24, 16  ;;  %v2811_v31 = vld [vmem:[%s3314_s1 + $0x80] sm:$0xff]   ;;  %v2814_v43 = vld [vmem:[%s2937_s6 + $0x10] sm:$0xff]   ;;  %v2826_v8 = vld [vmem:[%s3314_s1 + $0xb8] sm:$0xff]  }
  0x21   : > { %2661 = vmatprep.subr.bf16.mxu1 %v2796_v55  ;;  %2669 = vmatprep.subr.bf16.mxu0 %v2801_v62  ;;  %v853_v15 = vsel %vm376_vm2, %v848_v10, %v852_v7  ;;  %v1066_v33 = vrot.slane %v1064_v25, 1  ;;  %v1069_v34 = vrot.slane %v1067_v26, 2  ;;  %v1074_v35 = vrot.slane %v1072_v27, 1  ;;  %v2819_v50 = vld [vmem:[%s2937_s6 + $0x18] ss:$0 sps:$4 sm:$0x11]  }
  0x22   : > { %v1077_v36 = vrot.slane %v1075_v28, 2  ;;  %v1083_v37 = vrot.slane %v1081_v29, 1  ;;  %v1086_v38 = vrot.slane %v1084_v30, 2  ;;  %v1290_v52 = vshrl.u32 %v2817_v48, 16  ;;  %v2823_v61 = vld [vmem:[%s2937_s6 + $0x10] sm:$0xff]   ;;  %v2831_v21 = vld [vmem:[%s3314_s1 + $0xc8] sm:$0xff]  }
  0x23   : > { %2650 = vmatmul.mubr.msk.bf16.vlgmr.msra.gmra.mrb[4].mxu1 %vm292_vm0, %v633_v57  ;;  %2658 = vmatmul.mubr.msk.bf16.vlgmr.msra.gmra.mrb[8].mxu0 %vm292_vm0, %v2795_v54  ;;  %v1070_v39 = vor.u32 %v1069_v34, %v1066_v33  ;;  %v1292_v53 = vshll.u32 %v2817_v48, 16  ;;  %v1297_v54 = vshll.u32 %v2818_v49, 16  ;;  %v1305_v56 = vshll.u32 %v2819_v50, 16  ;;  %v2821_v57 = vld [vmem:[%s3314_s1 + $0xa8] sm:$0xff]   ;;  %v2825_v6 = vld [vmem:[%s3314_s1 + $0xb0] sm:$0xff]  }
  0x24   : > { %2662 = vmatpush3.bf16.msra.mxu1 %v2796_v55  ;;  %2670 = vmatpush3.bf16.msra.mxu0 %v2801_v62  ;;  %v1078_v41 = vor.u32 %v1077_v36, %v1074_v35  ;;  %v1087_v42 = vor.u32 %v1086_v38, %v1083_v37  ;;  %v1301_v55 = vshrl.u32 %v2818_v49, 16  ;;  %v2822_v0 = vld [vmem:[%s2937_s6 + $0x8] sm:$0xfe]   ;;  %v1412_v1 = vrot.slane %v2823_v61, 1  ;;  %v2828_v12 = vld [vmem:[%s2937_s6 + $0x10] sm:$0xff]   ;;  %v2835_v36 = vld [vmem:[%s3314_s1 + $0xd8] sm:$0xff]  }
  0x25   : > { %2663 = vmatprep.subr.bf16.mxu1 %v2797_v58  ;;  %2671 = vmatprep.subr.bf16.mxu0 %v2802_v4  ;;  %v1299_v59 = vrot.slane %v1297_v54, 1  ;;  %v1307_v60 = vrot.slane %v1305_v56, 1  ;;  %v2824_v2 = vld [vmem:[%s2937_s6 + $0x18] ss:$0 sps:$4 sm:$0x11]   ;;  %v1411_v5 = vrot.slane %v2822_v0, 1 }
  0x26   : > { %2665 = vmatprep.mubr.msk.bf16.mxu1 %vm292_vm0, %v845_v14  ;;  %2673 = vmatprep.mubr.msk.bf16.mxu0 %vm292_vm0, %v958_v20  ;;  %v1079_v45 = vsel %vm607_vm3, %v1070_v39, %v1078_v41  ;;  %v1088_v46 = vsel %vm607_vm3, %v1078_v41, %v1087_v42  ;;  %v1414_v7 = vrot.slane %v2824_v2, 1  ;;  %v2827_v10 = vld [vmem:[%s2937_s6 + $0x8] sm:$0xfe]   ;;  %v2829_v13 = vld [vmem:[%s2937_s6 + $0x18] ss:$0 sps:$4 sm:$0x33]  }
  0x27   : > { %v1303_v63 = vor.u32 %v1301_v55, %v1299_v59  ;;  %v1413_v9 = vsel %vm499_vm1, %v1411_v5, %v1412_v1  ;;  %v1519_v14 = vshrl.u32 %v2827_v10, 16  ;;  %v1527_v16 = vshrl.u32 %v2828_v12, 16  ;;  %v2830_v20 = vld [vmem:[%s3314_s1 + $0xc0] sm:$0xff]   ;;  %v2832_v29 = vld [vmem:[%s2937_s6 + $0xc] sm:$0xff]   ;;  %v2837_v38 = vld [vmem:[%s2937_s6 + $0x14] sm:$0xff]  }
  0x28   : > { %2664 = vmatpush3.bf16.msra.mxu1 %v2797_v58  ;;  %2672 = vmatpush3.bf16.msra.mxu0 %v2802_v4  ;;  %v1294_v58 = vrot.slane %v1292_v53, 1  ;;  %v1415_v11 = vsel %vm499_vm1, %v1412_v1, %v1414_v7  ;;  %v1536_v18 = vshrl.u32 %v2829_v13, 16  ;;  %v2834_v33 = vld [vmem:[%s3314_s1 + $0xd0] sm:$0xff]   ;;  %v2838_v39 = vld [vmem:[%s2937_s6 + $0x1c] ss:$0 sps:$4 sm:$0x11]  }
  0x29   : > { %2677 = vmatprep.subr.bf16.mxu1 %v2806_v17  ;;  %2685 = vmatprep.subr.bf16.mxu0 %v2811_v31  ;;  %v1308_v4 = vsel %vm376_vm2, %v1303_v63, %v1307_v60  ;;  %v1529_v24 = vrot.slane %v1527_v16, 1  ;;  %v2836_v37 = vld [vmem:[%s2937_s6 + $0xc] sm:$0xff]   ;;  %v2842_v50 = vld [vmem:[%s2937_s6 + $0x14] sm:$0xff]   ;;  %v2843_v55 = vld [vmem:[%s2937_s6 + $0x1c] ss:$0 sps:$4 sm:$0x11]  }
  0x2a   : > { %v1295_v62 = vor.u32 %v1294_v58, %v1290_v52  ;;  %v1538_v26 = vrot.slane %v1536_v18, 1  ;;  %v1745_v41 = vshrl.u32 %v2836_v37, 16  ;;  %v1747_v42 = vshll.u32 %v2836_v37, 16  ;;  %v2841_v53 = vld [vmem:[%s2937_s6 + $0xc] sm:$0xfe]   ;;  %v2845_v61 = vld [vmem:[%s3314_s1 + $0xf8] sm:$0xff]  }
  0x2b   : > { %2666 = vmatmul.mubr.msk.bf16.vlgmr.msra.gmra.mrb[8].mxu1 %vm292_vm0, %v853_v15  ;;  %2674 = vmatmul.mubr.msk.bf16.vlgmr.msra.gmra.mrb[12].mxu0 %vm292_vm0, %v960_v22  ;;  %v1522_v15 = vshll.u32 %v2827_v10, 16  ;;  %v1521_v22 = vrot.slane %v1519_v14, 1  ;;  %v1867_v54 = vrot.slane %v2842_v50, 1  ;;  %v1866_v58 = vrot.slane %v2841_v53, 1  ;;  %v2846_v63 = vld [vmem:[%s2937_s6 + $0xc] sm:$0xfe]  }
  0x2c   : > { %2678 = vmatpush3.bf16.msra.mxu1 %v2806_v17  ;;  %2686 = vmatpush3.bf16.msra.mxu0 %v2811_v31  ;;  %v1300_v3 = vsel %vm376_vm2, %v1295_v62, %v1299_v59  ;;  %v1530_v17 = vshll.u32 %v2828_v12, 16  ;;  %v2844_v59 = vld [vmem:[%s3314_s1 + $0xf0] sm:$0xff]   ;;  %v1869_v60 = vrot.slane %v2843_v55, 1  ;;  %v2848_v2 = vld [vmem:[%s2937_s6 + $0x1c] ss:$0 sps:$4 sm:$0x33]  }
  0x2d   : > { %2679 = vmatprep.subr.bf16.mxu1 %v2807_v19  ;;  %2687 = vmatprep.subr.bf16.mxu0 %v2812_v32  ;;  %v1524_v23 = vrot.slane %v1522_v15, 2  ;;  %v1868_v62 = vsel %vm499_vm1, %v1866_v58, %v1867_v54  ;;  %v2847_v1 = vld [vmem:[%s2937_s6 + $0x14] sm:$0xff]   ;;  %v1991_v7 = vshrl.u32 %v2848_v2, 16 }
  0x2e   : > { %2689 = vmatprep.mubr.msk.bf16.mxu0 %vm292_vm0, %v2813_v40  ;;  %2681 = vmatprep.mubr.msk.bf16.mxu1 %vm292_vm0, %v1079_v45  ;;  %v1532_v25 = vrot.slane %v1530_v17, 2  ;;  %v2839_v40 = vld [vmem:[%s3314_s1 + $0xe0] sm:$0xff]   ;;  %v1760_v45 = vshll.u32 %v2838_v39, 16  ;;  %v1870_v0 = vsel %vm499_vm1, %v1867_v54, %v1869_v60  ;;  %v1982_v5 = vshrl.u32 %v2847_v1, 16 }
  0x2f   : > { %v1525_v28 = vor.u32 %v1524_v23, %v1521_v22 }
  0x30   : > { %2680 = vmatpush3.bf16.msra.mxu1 %v2807_v19  ;;  %2688 = vmatpush3.bf16.msra.mxu0 %v2812_v32  ;;  %v1539_v19 = vshll.u32 %v2829_v13, 16  ;;  %v1533_v30 = vor.u32 %v1532_v25, %v1529_v24  ;;  %v2833_v32 = vld [vmem:[%s2937_s6 + $0x14] sm:$0xff]   ;;  %v1762_v49 = vrot.slane %v1760_v45, 1  ;;  %v1993_v13 = vrot.slane %v1991_v7, 1  ;;  %s2552_s6 = sshll.u32 %s3323_s15, 4 }
  0x31   : > { %2693 = vmatprep.subr.bf16.mxu1 %v2815_v44  ;;  %2701 = vmatprep.subr.bf16.mxu0 %v2820_v51  ;;  %s247_s25 = scalar_lea.vmem %s3315_s2, %s2552_s6 }
  0x32   : > { %v1541_v27 = vrot.slane %v1539_v19, 2  ;;  %v1534_v34 = vsel %vm607_vm3, %v1525_v28, %v1533_v30 }
  0x33   : > { %2682 = vmatmul.mubr.msk.bf16.vlgmr.msra.gmra.mrb[12].mxu1 %vm292_vm0, %v1088_v46  ;;  %2690 = vmatmul.mubr.msk.bf16.vlgmr.msra.gmra.mrb[16].mxu0 %vm292_vm0, %v2814_v43  ;;  %v1752_v43 = vshll.u32 %v2837_v38, 16  ;;  %v2840_v46 = vld [vmem:[%s3314_s1 + $0xe8] sm:$0xff]  }
  0x34   : > { %2694 = vmatpush3.bf16.msra.mxu1 %v2815_v44  ;;  %2702 = vmatpush3.bf16.msra.mxu0 %v2820_v51  ;;  %v1542_v31 = vor.u32 %v1541_v27, %v1538_v26  ;;  %v1756_v44 = vshrl.u32 %v2837_v38, 16 }
  0x35   : > { %2695 = vmatprep.subr.bf16.mxu1 %v2816_v47  ;;  %2703 = vmatprep.subr.bf16.mxu0 %v2821_v57  ;;  %v1754_v48 = vrot.slane %v1752_v43, 1 }
  0x36   : > { %2697 = vmatprep.mubr.msk.bf16.mxu1 %vm292_vm0, %v1300_v3  ;;  %2705 = vmatprep.mubr.msk.bf16.mxu0 %vm292_vm0, %v1413_v9  ;;  %v1543_v35 = vsel %vm607_vm3, %v1533_v30, %v1542_v31  ;;  %v1974_v3 = vshrl.u32 %v2846_v63, 16 }
  0x37   : > { %v1758_v52 = vor.u32 %v1756_v44, %v1754_v48 }
  0x38   : > { %2696 = vmatpush3.bf16.msra.mxu1 %v2816_v47  ;;  %2704 = vmatpush3.bf16.msra.mxu0 %v2821_v57  ;;  %v1749_v47 = vrot.slane %v1747_v42, 1  ;;  %v1976_v9 = vrot.slane %v1974_v3, 1 }
  0x39   : > { %2709 = vmatprep.subr.bf16.mxu1 %v2825_v6  ;;  %2717 = vmatprep.subr.bf16.mxu0 %v2830_v20  ;;  %v1763_v57 = vsel %vm376_vm2, %v1758_v52, %v1762_v49 }
  0x3a   : > { %v1750_v51 = vor.u32 %v1749_v47, %v1745_v41 }
  0x3b   : > { %2698 = vmatmul.mubr.msk.bf16.vlgmr.msra.gmra.mrb[16].mxu1 %vm292_vm0, %v1308_v4  ;;  %2706 = vmatmul.mubr.msk.bf16.vlgmr.msra.gmra.mrb[20].mxu0 %vm292_vm0, %v1415_v11  ;;  %v1977_v4 = vshll.u32 %v2846_v63, 16  ;;  %v1984_v11 = vrot.slane %v1982_v5, 1 }
  0x3c   : > { %2710 = vmatpush3.bf16.msra.mxu1 %v2825_v6  ;;  %2718 = vmatpush3.bf16.msra.mxu0 %v2830_v20  ;;  %v1755_v56 = vsel %vm376_vm2, %v1750_v51, %v1754_v48  ;;  %v1985_v6 = vshll.u32 %v2847_v1, 16 }
  0x3d   : > { %2711 = vmatprep.subr.bf16.mxu1 %v2826_v8  ;;  %2719 = vmatprep.subr.bf16.mxu0 %v2831_v21  ;;  %v1979_v10 = vrot.slane %v1977_v4, 2 }
  0x3e   : > { %2721 = vmatprep.mubr.msk.bf16.mxu0 %vm292_vm0, %v2832_v29  ;;  %2713 = vmatprep.mubr.msk.bf16.mxu1 %vm292_vm0, %v1534_v34  ;;  %v1987_v12 = vrot.slane %v1985_v6, 2 }
  0x3f   : > { %v1980_v15 = vor.u32 %v1979_v10, %v1976_v9 }
  0x40   : > { %2712 = vmatpush3.bf16.msra.mxu1 %v2826_v8  ;;  %2720 = vmatpush3.bf16.msra.mxu0 %v2831_v21  ;;  %v1994_v8 = vshll.u32 %v2848_v2, 16  ;;  %v1988_v16 = vor.u32 %v1987_v12, %v1984_v11 }
  0x41   : > { %2725 = vmatprep.subr.bf16.mxu1 %v2834_v33  ;;  %2733 = vmatprep.subr.bf16.mxu0 %v2839_v40 }
  0x42   : > { %v1996_v14 = vrot.slane %v1994_v8, 2  ;;  %v1989_v18 = vsel %vm607_vm3, %v1980_v15, %v1988_v16 }
  0x43   : > { %2714 = vmatmul.mubr.msk.bf16.vlgmr.msra.gmra.mrb[20].mxu1 %vm292_vm0, %v1543_v35  ;;  %2722 = vmatmul.mubr.msk.bf16.vlgmr.msra.gmra.mrb[24].mxu0 %vm292_vm0, %v2833_v32 }
  0x44   : > { %2726 = vmatpush3.bf16.msra.mxu1 %v2834_v33  ;;  %2734 = vmatpush3.bf16.msra.mxu0 %v2839_v40  ;;  %v1997_v17 = vor.u32 %v1996_v14, %v1993_v13 }
  0x45   : > { %2727 = vmatprep.subr.bf16.mxu1 %v2835_v36  ;;  %2735 = vmatprep.subr.bf16.mxu0 %v2840_v46 }
  0x46   : > { %2729 = vmatprep.mubr.msk.bf16.mxu1 %vm292_vm0, %v1755_v56  ;;  %2737 = vmatprep.mubr.msk.bf16.mxu0 %vm292_vm0, %v1868_v62  ;;  %v1998_v19 = vsel %vm607_vm3, %v1988_v16, %v1997_v17 }
  0x48   : > { %2728 = vmatpush3.bf16.msra.mxu1 %v2835_v36  ;;  %2736 = vmatpush3.bf16.msra.mxu0 %v2840_v46 }
  0x49   : > { %2741 = vmatprep.subr.bf16.mxu1 %v2844_v59 }
  0x4b   : > { %2730 = vmatmul.mubr.msk.bf16.vlgmr.msra.gmra.mrb[24].mxu1 %vm292_vm0, %v1763_v57  ;;  %2738 = vmatmul.mubr.msk.bf16.vlgmr.msra.gmra.mrb[28].mxu0 %vm292_vm0, %v1870_v0 }
  0x4c   : > { %2742 = vmatpush3.bf16.msra.mxu1 %v2844_v59  ;;  %2745 = vmatprep.mubr.msk.bf16.mxu1 %vm292_vm0, %v1989_v18 }
  0x4d   : > { %2743 = vmatprep.subr.bf16.mxu1 %v2845_v61 }
  0x50   : > { %2744 = vmatpush3.bf16.msra.mxu1 %v2845_v61 }
  0x53   : > { %2746 = vmatmul.mubr.msk.bf16.vlgmr.msra.gmra.mrb[28].mxu1 %vm292_vm0, %v1998_v19 }
  0xe6   : > { %v2627_v20 = vpop.f32.mrb[0].mxu0 }
  0xe7   : > { %351 = vst.msk [vmem:[#allocation2 + $0x10] sm:$0xff] %vm348_vm4, %v2627_v20  ;;  %v333_v21 = vpop.f32.mrb[1].mxu0 }
  0xe8   : > { %349 = vst.msk [vmem:[#allocation2] sm:$0xff] %vm348_vm4, %v333_v21  ;;  %v2628_v22 = vpop.f32.mrb[2].mxu0 }
  0xe9   : > { %352 = vst.msk [vmem:[#allocation2 + $0x18] sm:$0xff] %vm348_vm4, %v2628_v22  ;;  %v336_v23 = vpop.f32.mrb[3].mxu0 }
  0xea   : > { %350 = vst.msk [vmem:[#allocation2 + $0x8] sm:$0xff] %vm348_vm4, %v336_v23 }
  0xee   : > { %v466_v24 = vld [vmem:[#allocation2 + $0x10] sm:$0xff]  ;;  %v2635_v25 = vpop.f32.mrb[0].mxu1  ;;  %v2643_v30 = vpop.f32.mrb[4].mxu0 }
  0xef   : > { %v464_v26 = vld [vmem:[#allocation2] sm:$0xff]  ;;  %v470_v27 = vadd.f32 %v2635_v25, %v466_v24  ;;  %v449_v28 = vpop.f32.mrb[1].mxu1  ;;  %v557_v34 = vpop.f32.mrb[5].mxu0 }
  0xf0   : > { %v467_v29 = vld [vmem:[#allocation2 + $0x18] sm:$0xff]  ;;  %v468_v31 = vadd.f32 %v464_v26, %v449_v28  ;;  %v2636_v32 = vpop.f32.mrb[2].mxu1  ;;  %v2644_v37 = vpop.f32.mrb[6].mxu0 }
  0xf1   : > { %v465_v33 = vld [vmem:[#allocation2 + $0x8] sm:$0xff]  ;;  %474 = vst.msk [vmem:[#allocation2 + $0x10] sm:$0xff] %vm348_vm4, %v470_v27  ;;  %v471_v35 = vadd.f32 %v2636_v32, %v467_v29  ;;  %v452_v36 = vpop.f32.mrb[3].mxu1  ;;  %v560_v39 = vpop.f32.mrb[7].mxu0 }
  0xf2   : > { %472 = vst.msk [vmem:[#allocation2] sm:$0xff] %vm348_vm4, %v468_v31  ;;  %v469_v38 = vadd.f32 %v465_v33, %v452_v36 }
  0xf3   : > { %475 = vst.msk [vmem:[#allocation2 + $0x18] sm:$0xff] %vm348_vm4, %v471_v35 }
  0xf4   : > { %473 = vst.msk [vmem:[#allocation2 + $0x8] sm:$0xff] %vm348_vm4, %v469_v38 }
  0xf6   : > { %v2651_v41 = vpop.f32.mrb[4].mxu1  ;;  %v2659_v48 = vpop.f32.mrb[8].mxu0 }
  0xf7   : > { %v686_v44 = vpop.f32.mrb[5].mxu1  ;;  %v784_v52 = vpop.f32.mrb[9].mxu0 }
  0xf8   : > { %v574_v40 = vld [vmem:[#allocation2 + $0x10] sm:$0xff]  ;;  %v2652_v47 = vpop.f32.mrb[6].mxu1  ;;  %v2660_v54 = vpop.f32.mrb[10].mxu0 }
  0xf9   : > { %v578_v42 = vadd.f32 %v2643_v30, %v574_v40  ;;  %v572_v43 = vld [vmem:[#allocation2] sm:$0xff]  ;;  %v689_v51 = vpop.f32.mrb[7].mxu1  ;;  %v787_v55 = vpop.f32.mrb[11].mxu0 }
  0xfa   : > { %v576_v45 = vadd.f32 %v572_v43, %v557_v34  ;;  %v575_v46 = vld [vmem:[#allocation2 + $0x18] sm:$0xff] }
  0xfb   : > { %582 = vst.msk [vmem:[#allocation2 + $0x10] sm:$0xff] %vm348_vm4, %v578_v42  ;;  %v579_v49 = vadd.f32 %v2644_v37, %v575_v46  ;;  %v573_v50 = vld [vmem:[#allocation2 + $0x8] sm:$0xff] }
  0xfc   : > { %580 = vst.msk [vmem:[#allocation2] sm:$0xff] %vm348_vm4, %v576_v45  ;;  %v577_v53 = vadd.f32 %v573_v50, %v560_v39 }
  0xfd   : > { %583 = vst.msk [vmem:[#allocation2 + $0x18] sm:$0xff] %vm348_vm4, %v579_v49 }
  0xfe   : > { %581 = vst.msk [vmem:[#allocation2 + $0x8] sm:$0xff] %vm348_vm4, %v577_v53  ;;  %v2667_v57 = vpop.f32.mrb[8].mxu1  ;;  %v2675_v0 = vpop.f32.mrb[12].mxu0 }
  0xff   : > { %v906_v60 = vpop.f32.mrb[9].mxu1  ;;  %v1013_v4 = vpop.f32.mrb[13].mxu0 }
 0x100   : > { %v2668_v63 = vpop.f32.mrb[10].mxu1  ;;  %v2676_v6 = vpop.f32.mrb[14].mxu0 }
 0x101   : > { %v909_v3 = vpop.f32.mrb[11].mxu1  ;;  %v1016_v7 = vpop.f32.mrb[15].mxu0 }
 0x102   : > { %v703_v56 = vld [vmem:[#allocation2 + $0x10] sm:$0xff] }
 0x103   : > { %v707_v58 = vadd.f32 %v2651_v41, %v703_v56  ;;  %v701_v59 = vld [vmem:[#allocation2] sm:$0xff] }
 0x104   : > { %v705_v61 = vadd.f32 %v701_v59, %v686_v44  ;;  %v704_v62 = vld [vmem:[#allocation2 + $0x18] sm:$0xff] }
 0x105   : > { %711 = vst.msk [vmem:[#allocation2 + $0x10] sm:$0xff] %vm348_vm4, %v707_v58  ;;  %v708_v1 = vadd.f32 %v2652_v47, %v704_v62  ;;  %v702_v2 = vld [vmem:[#allocation2 + $0x8] sm:$0xff] }
 0x106   : > { %709 = vst.msk [vmem:[#allocation2] sm:$0xff] %vm348_vm4, %v705_v61  ;;  %v706_v5 = vadd.f32 %v702_v2, %v689_v51  ;;  %v2683_v11 = vpop.f32.mrb[12].mxu1  ;;  %v3137_v18 = vpop.f32.mrb[16].mxu0 }
 0x107   : > { %712 = vst.msk [vmem:[#allocation2 + $0x18] sm:$0xff] %vm348_vm4, %v708_v1  ;;  %v1141_v14 = vpop.f32.mrb[13].mxu1  ;;  %v3140_v21 = vpop.f32.mrb[17].mxu0 }
 0x108   : > { %710 = vst.msk [vmem:[#allocation2 + $0x8] sm:$0xff] %vm348_vm4, %v706_v5  ;;  %v2684_v17 = vpop.f32.mrb[14].mxu1  ;;  %v3143_v22 = vpop.f32.mrb[18].mxu0 }
 0x109   : > { %v1144_v20 = vpop.f32.mrb[15].mxu1  ;;  %v3146_v23 = vpop.f32.mrb[19].mxu0 }
 0x10c   : > { %v801_v8 = vld [vmem:[#allocation2 + $0x10] sm:$0xff] }
 0x10d   : > { %v805_v9 = vadd.f32 %v2659_v48, %v801_v8  ;;  %v799_v10 = vld [vmem:[#allocation2] sm:$0xff] }
 0x10e   : > { %v803_v12 = vadd.f32 %v799_v10, %v784_v52  ;;  %v802_v13 = vld [vmem:[#allocation2 + $0x18] sm:$0xff]  ;;  %v3148_v27 = vpop.f32.mrb[16].mxu1  ;;  %v3155_v34 = vpop.f32.mrb[20].mxu0 }
 0x10f   : > { %809 = vst.msk [vmem:[#allocation2 + $0x10] sm:$0xff] %vm348_vm4, %v805_v9  ;;  %v806_v15 = vadd.f32 %v2660_v54, %v802_v13  ;;  %v800_v16 = vld [vmem:[#allocation2 + $0x8] sm:$0xff]  ;;  %v3150_v30 = vpop.f32.mrb[17].mxu1  ;;  %v3160_v37 = vpop.f32.mrb[21].mxu0 }
 0x110   : > { %807 = vst.msk [vmem:[#allocation2] sm:$0xff] %vm348_vm4, %v803_v12  ;;  %v804_v19 = vadd.f32 %v800_v16, %v787_v55  ;;  %v3153_v33 = vpop.f32.mrb[18].mxu1  ;;  %v3163_v38 = vpop.f32.mrb[22].mxu0 }
 0x111   : > { %810 = vst.msk [vmem:[#allocation2 + $0x18] sm:$0xff] %vm348_vm4, %v806_v15  ;;  %v3158_v36 = vpop.f32.mrb[19].mxu1  ;;  %v3166_v39 = vpop.f32.mrb[23].mxu0 }
 0x112   : > { %808 = vst.msk [vmem:[#allocation2 + $0x8] sm:$0xff] %vm348_vm4, %v804_v19 }
 0x116   : > { %v923_v24 = vld [vmem:[#allocation2 + $0x10] sm:$0xff]  ;;  %v3168_v45 = vpop.f32.mrb[20].mxu1  ;;  %v3176_v51 = vpop.f32.mrb[24].mxu0 }
 0x117   : > { %v927_v25 = vadd.f32 %v2667_v57, %v923_v24  ;;  %v921_v26 = vld [vmem:[#allocation2] sm:$0xff]  ;;  %v3171_v48 = vpop.f32.mrb[21].mxu1  ;;  %v3181_v53 = vpop.f32.mrb[25].mxu0 }
 0x118   : > { %v925_v28 = vadd.f32 %v921_v26, %v906_v60  ;;  %v924_v29 = vld [vmem:[#allocation2 + $0x18] sm:$0xff]  ;;  %v3174_v50 = vpop.f32.mrb[22].mxu1  ;;  %v3184_v54 = vpop.f32.mrb[26].mxu0 }
 0x119   : > { %931 = vst.msk [vmem:[#allocation2 + $0x10] sm:$0xff] %vm348_vm4, %v927_v25  ;;  %v928_v31 = vadd.f32 %v2668_v63, %v924_v29  ;;  %v922_v32 = vld [vmem:[#allocation2 + $0x8] sm:$0xff]  ;;  %v3179_v52 = vpop.f32.mrb[23].mxu1  ;;  %v3186_v55 = vpop.f32.mrb[27].mxu0 }
 0x11a   : > { %929 = vst.msk [vmem:[#allocation2] sm:$0xff] %vm348_vm4, %v925_v28  ;;  %v926_v35 = vadd.f32 %v922_v32, %v909_v3 }
 0x11b   : > { %932 = vst.msk [vmem:[#allocation2 + $0x18] sm:$0xff] %vm348_vm4, %v928_v31 }
 0x11c   : > { %930 = vst.msk [vmem:[#allocation2 + $0x8] sm:$0xff] %vm348_vm4, %v926_v35 }
 0x11e   : > { %v3188_v61 = vpop.f32.mrb[24].mxu1  ;;  %v3196_v3 = vpop.f32.mrb[28].mxu0 }
 0x11f   : > { %v3201_v5 = vpop.f32.mrb[29].mxu0 }
 0x120   : > { %v1030_v40 = vld [vmem:[#allocation2 + $0x10] sm:$0xff] }
 0x121   : > { %v1034_v41 = vadd.f32 %v2675_v0, %v1030_v40  ;;  %v1028_v42 = vld [vmem:[#allocation2] sm:$0xff]  ;;  %v3191_v0 = vpop.f32.mrb[25].mxu1 }
 0x122   : > { %v1032_v43 = vadd.f32 %v1028_v42, %v1013_v4  ;;  %v1031_v44 = vld [vmem:[#allocation2 + $0x18] sm:$0xff]  ;;  %v3194_v2 = vpop.f32.mrb[26].mxu1 }
 0x123   : > { %1038 = vst.msk [vmem:[#allocation2 + $0x10] sm:$0xff] %vm348_vm4, %v1034_v41  ;;  %v1035_v46 = vadd.f32 %v2676_v6, %v1031_v44  ;;  %v1029_v47 = vld [vmem:[#allocation2 + $0x8] sm:$0xff]  ;;  %v3199_v4 = vpop.f32.mrb[27].mxu1  ;;  %v3204_v6 = vpop.f32.mrb[30].mxu0 }
 0x124   : > { %1036 = vst.msk [vmem:[#allocation2] sm:$0xff] %vm348_vm4, %v1032_v43  ;;  %v1033_v49 = vadd.f32 %v1029_v47, %v1016_v7  ;;  %v3206_v7 = vpop.f32.mrb[31].mxu0 }
 0x125   : > { %1039 = vst.msk [vmem:[#allocation2 + $0x18] sm:$0xff] %vm348_vm4, %v1035_v46 }
 0x126   : > { %1037 = vst.msk [vmem:[#allocation2 + $0x8] sm:$0xff] %vm348_vm4, %v1033_v49  ;;  %v3212_v15 = vpop.f32.mrb[28].mxu1 }
 0x12a   : > { %v1158_v56 = vld [vmem:[#allocation2 + $0x10] sm:$0xff] }
 0x12b   : > { %v1162_v57 = vadd.f32 %v2683_v11, %v1158_v56  ;;  %v1156_v58 = vld [vmem:[#allocation2] sm:$0xff] }
 0x12c   : > { %v1160_v59 = vadd.f32 %v1156_v58, %v1141_v14  ;;  %v1159_v60 = vld [vmem:[#allocation2 + $0x18] sm:$0xff] }
 0x12d   : > { %1166 = vst.msk [vmem:[#allocation2 + $0x10] sm:$0xff] %vm348_vm4, %v1162_v57  ;;  %v1163_v62 = vadd.f32 %v2684_v17, %v1159_v60  ;;  %v1157_v63 = vld [vmem:[#allocation2 + $0x8] sm:$0xff]  ;;  %v3216_v17 = vpop.f32.mrb[29].mxu1 }
 0x12e   : > { %1164 = vst.msk [vmem:[#allocation2] sm:$0xff] %vm348_vm4, %v1160_v59  ;;  %v1161_v1 = vadd.f32 %v1157_v63, %v1144_v20 }
 0x12f   : > { %1167 = vst.msk [vmem:[#allocation2 + $0x18] sm:$0xff] %vm348_vm4, %v1163_v62 }
 0x130   : > { %1165 = vst.msk [vmem:[#allocation2 + $0x8] sm:$0xff] %vm348_vm4, %v1161_v1  ;;  %v2082_v1 = vlaneseq }
 0x134   : > { %v1256_v8 = vld [vmem:[#allocation2 + $0x10] sm:$0xff] }
 0x135   : > { %v1260_v9 = vadd.f32 %v3137_v18, %v1256_v8  ;;  %v1254_v10 = vld [vmem:[#allocation2] sm:$0xff]  ;;  %v3219_v18 = vpop.f32.mrb[30].mxu1 }
 0x136   : > { %v1258_v11 = vadd.f32 %v1254_v10, %v3140_v21  ;;  %v1257_v12 = vld [vmem:[#allocation2 + $0x18] sm:$0xff]  ;;  %v3222_v19 = vpop.f32.mrb[31].mxu1 }
 0x137   : > { %1264 = vst.msk [vmem:[#allocation2 + $0x10] sm:$0xff] %vm348_vm4, %v1260_v9  ;;  %v1261_v13 = vadd.f32 %v3143_v22, %v1257_v12  ;;  %v1255_v14 = vld [vmem:[#allocation2 + $0x8] sm:$0xff]  ;;  %v2083_v9 = vshrl.u32 %v2082_v1, 7 }
 0x138   : > { %1262 = vst.msk [vmem:[#allocation2] sm:$0xff] %vm348_vm4, %v1258_v11  ;;  %v1259_v16 = vadd.f32 %v1255_v14, %v3146_v23 }
 0x139   : > { %1265 = vst.msk [vmem:[#allocation2 + $0x18] sm:$0xff] %vm348_vm4, %v1261_v13  ;;  %v2085_v10 = vadd.s32 16, %v2083_v9 }
 0x13a   : > { %1263 = vst.msk [vmem:[#allocation2 + $0x8] sm:$0xff] %vm348_vm4, %v1259_v16 }
 0x13b   : > { %v2105_v16 = vand.u32 7, %v2085_v10 }
 0x13d   : > { %vm2140_vm5 = vcmp.lt.s32.totalorder %v2105_v16, 4 }
 0x13e   : > { %v1378_v20 = vld [vmem:[#allocation2 + $0x10] sm:$0xff] }
 0x13f   : > { %v1382_v21 = vadd.f32 %v3148_v27, %v1378_v20  ;;  %v1376_v22 = vld [vmem:[#allocation2] sm:$0xff] }
 0x140   : > { %v1380_v24 = vadd.f32 %v1376_v22, %v3150_v30  ;;  %v1379_v25 = vld [vmem:[#allocation2 + $0x18] sm:$0xff]  ;;  %v2091_v22 = vand.u32 7, %v2083_v9 }
 0x141   : > { %1386 = vst.msk [vmem:[#allocation2 + $0x10] sm:$0xff] %vm348_vm4, %v1382_v21  ;;  %v1383_v23 = vadd.f32 %v3153_v33, %v1379_v25  ;;  %v1377_v26 = vld [vmem:[#allocation2 + $0x8] sm:$0xff]  ;;  %v2084_v21 = vadd.s32 8, %v2083_v9 }
 0x142   : > { %1384 = vst.msk [vmem:[#allocation2] sm:$0xff] %vm348_vm4, %v1380_v24  ;;  %v1381_v28 = vadd.f32 %v1377_v26, %v3158_v36  ;;  %vm2138_vm6 = vcmp.lt.s32.totalorder %v2091_v22, 4 }
 0x143   : > { %1387 = vst.msk [vmem:[#allocation2 + $0x18] sm:$0xff] %vm348_vm4, %v1383_v23 }
 0x144   : > { %1385 = vst.msk [vmem:[#allocation2 + $0x8] sm:$0xff] %vm348_vm4, %v1381_v28 }
 0x148   : > { %v1485_v29 = vld [vmem:[#allocation2 + $0x10] sm:$0xff] }
 0x149   : > { %v1489_v27 = vadd.f32 %v3155_v34, %v1485_v29  ;;  %v1483_v31 = vld [vmem:[#allocation2] sm:$0xff] }
 0x14a   : > { %v1487_v30 = vadd.f32 %v1483_v31, %v3160_v37  ;;  %v1486_v32 = vld [vmem:[#allocation2 + $0x18] sm:$0xff] }
 0x14b   : > { %1493 = vst.msk [vmem:[#allocation2 + $0x10] sm:$0xff] %vm348_vm4, %v1489_v27  ;;  %v1490_v33 = vadd.f32 %v3163_v38, %v1486_v32  ;;  %v1484_v35 = vld [vmem:[#allocation2 + $0x8] sm:$0xff] }
 0x14c   : > { %1491 = vst.msk [vmem:[#allocation2] sm:$0xff] %vm348_vm4, %v1487_v30  ;;  %v1488_v36 = vadd.f32 %v1484_v35, %v3166_v39 }
 0x14d   : > { %1494 = vst.msk [vmem:[#allocation2 + $0x18] sm:$0xff] %vm348_vm4, %v1490_v33 }
 0x14e   : > { %1492 = vst.msk [vmem:[#allocation2 + $0x8] sm:$0xff] %vm348_vm4, %v1488_v36 }
 0x152   : > { %v1613_v40 = vld [vmem:[#allocation2 + $0x10] sm:$0xff] }
 0x153   : > { %v1617_v34 = vadd.f32 %v3168_v45, %v1613_v40  ;;  %v1611_v41 = vld [vmem:[#allocation2] sm:$0xff] }
 0x154   : > { %v1615_v37 = vadd.f32 %v1611_v41, %v3171_v48  ;;  %v1614_v42 = vld [vmem:[#allocation2 + $0x18] sm:$0xff] }
 0x155   : > { %1621 = vst.msk [vmem:[#allocation2 + $0x10] sm:$0xff] %vm348_vm4, %v1617_v34  ;;  %v1618_v38 = vadd.f32 %v3174_v50, %v1614_v42  ;;  %v1612_v43 = vld [vmem:[#allocation2 + $0x8] sm:$0xff] }
 0x156   : > { %1619 = vst.msk [vmem:[#allocation2] sm:$0xff] %vm348_vm4, %v1615_v37  ;;  %v1616_v39 = vadd.f32 %v1612_v43, %v3179_v52 }
 0x157   : > { %1622 = vst.msk [vmem:[#allocation2 + $0x18] sm:$0xff] %vm348_vm4, %v1618_v38 }
 0x158   : > { %1620 = vst.msk [vmem:[#allocation2 + $0x8] sm:$0xff] %vm348_vm4, %v1616_v39 }
 0x15c   : > { %v1711_v44 = vld [vmem:[#allocation2 + $0x10] sm:$0xff] }
 0x15d   : > { %v1715_v45 = vadd.f32 %v3176_v51, %v1711_v44  ;;  %v1709_v46 = vld [vmem:[#allocation2] sm:$0xff] }
 0x15e   : > { %v1713_v47 = vadd.f32 %v1709_v46, %v3181_v53  ;;  %v1712_v48 = vld [vmem:[#allocation2 + $0x18] sm:$0xff] }
 0x15f   : > { %1719 = vst.msk [vmem:[#allocation2 + $0x10] sm:$0xff] %vm348_vm4, %v1715_v45  ;;  %v1716_v49 = vadd.f32 %v3184_v54, %v1712_v48  ;;  %v1710_v50 = vld [vmem:[#allocation2 + $0x8] sm:$0xff] }
 0x160   : > { %1717 = vst.msk [vmem:[#allocation2] sm:$0xff] %vm348_vm4, %v1713_v47  ;;  %v1714_v52 = vadd.f32 %v1710_v50, %v3186_v55 }
 0x161   : > { %1720 = vst.msk [vmem:[#allocation2 + $0x18] sm:$0xff] %vm348_vm4, %v1716_v49 }
 0x162   : > { %1718 = vst.msk [vmem:[#allocation2 + $0x8] sm:$0xff] %vm348_vm4, %v1714_v52 }
 0x166   : > { %v1833_v56 = vld [vmem:[#allocation2 + $0x10] sm:$0xff] }
 0x167   : > { %v1837_v51 = vadd.f32 %v3188_v61, %v1833_v56  ;;  %v1831_v57 = vld [vmem:[#allocation2] sm:$0xff] }
 0x168   : > { %v1835_v53 = vadd.f32 %v1831_v57, %v3191_v0  ;;  %v1834_v58 = vld [vmem:[#allocation2 + $0x18] sm:$0xff] }
 0x169   : > { %1841 = vst.msk [vmem:[#allocation2 + $0x10] sm:$0xff] %vm348_vm4, %v1837_v51  ;;  %v1838_v54 = vadd.f32 %v3194_v2, %v1834_v58  ;;  %v1832_v59 = vld [vmem:[#allocation2 + $0x8] sm:$0xff] }
 0x16a   : > { %1839 = vst.msk [vmem:[#allocation2] sm:$0xff] %vm348_vm4, %v1835_v53  ;;  %v1836_v55 = vadd.f32 %v1832_v59, %v3199_v4 }
 0x16b   : > { %1842 = vst.msk [vmem:[#allocation2 + $0x18] sm:$0xff] %vm348_vm4, %v1838_v54 }
 0x16c   : > { %1840 = vst.msk [vmem:[#allocation2 + $0x8] sm:$0xff] %vm348_vm4, %v1836_v55 }
 0x170   : > { %v1940_v60 = vld [vmem:[#allocation2 + $0x10] sm:$0xff] }
 0x171   : > { %v1944_v61 = vadd.f32 %v3196_v3, %v1940_v60  ;;  %v1938_v62 = vld [vmem:[#allocation2] sm:$0xff] }
 0x172   : > { %v1942_v63 = vadd.f32 %v1938_v62, %v3201_v5  ;;  %v1941_v0 = vld [vmem:[#allocation2 + $0x18] sm:$0xff] }
 0x173   : > { %1948 = vst.msk [vmem:[#allocation2 + $0x10] sm:$0xff] %vm348_vm4, %v1944_v61  ;;  %v1945_v2 = vadd.f32 %v3204_v6, %v1941_v0  ;;  %v1939_v8 = vld [vmem:[#allocation2 + $0x8] sm:$0xff]  ;;  %v2086_v6 = vadd.s32 24, %v2083_v9 }
 0x174   : > { %1946 = vst.msk [vmem:[#allocation2] sm:$0xff] %vm348_vm4, %v1942_v63  ;;  %v1943_v4 = vadd.f32 %v1939_v8, %v3206_v7 }
 0x175   : > { %1949 = vst.msk [vmem:[#allocation2 + $0x18] sm:$0xff] %vm348_vm4, %v1945_v2 }
 0x176   : > { %1947 = vst.msk [vmem:[#allocation2 + $0x8] sm:$0xff] %vm348_vm4, %v1943_v4 }
 0x17a   : > { %v2068_v3 = vld [vmem:[#allocation2 + $0x10] sm:$0xff] }
 0x17b   : > { %v2072_v5 = vadd.f32 %v3212_v15, %v2068_v3  ;;  %v2066_v11 = vld [vmem:[#allocation2] sm:$0xff]  ;;  %v2112_v15 = vand.u32 7, %v2086_v6 }
 0x17c   : > { %v2070_v12 = vadd.f32 %v2066_v11, %v3216_v17  ;;  %v2069_v13 = vld [vmem:[#allocation2 + $0x18] sm:$0xff]  ;;  %v2098_v17 = vand.u32 7, %v2084_v21 }
 0x17d   : > { %2076 = vst.msk [vmem:[#allocation2 + $0x10] sm:$0xff] %vm348_vm4, %v2072_v5  ;;  %v2073_v14 = vadd.f32 %v3219_v18, %v2069_v13  ;;  %v2067_v7 = vld [vmem:[#allocation2 + $0x8] sm:$0xff]  ;;  %vm2141_vm7 = vcmp.lt.s32.totalorder %v2112_v15, 4 }
 0x17e   : > { %2074 = vst.msk [vmem:[#allocation2] sm:$0xff] %vm348_vm4, %v2070_v12  ;;  %v2071_v20 = vadd.f32 %v2067_v7, %v3222_v19  ;;  %vm2139_vm9 = vcmp.lt.s32.totalorder %v2098_v17, 4 }
 0x17f   : > { %2077 = vst.msk [vmem:[#allocation2 + $0x18] sm:$0xff] %vm348_vm4, %v2073_v14 }
 0x180   : > { %2075 = vst.msk [vmem:[#allocation2 + $0x8] sm:$0xff] %vm348_vm4, %v2071_v20 }
 0x184   : > { %v2080_v24 = vld [vmem:[#allocation2 + $0x10] sm:$0xff] }
 0x185   : > { %v2161_v18 = vsel %vm2140_vm5, %v2080_v24, 0.0  ;;  %v2078_v19 = vld [vmem:[#allocation2] sm:$0xff] }
 0x186   : > { %v2555_v25 = vpack.c.bf16 %v2161_v18, %v2161_v18  ;;  %v2159_v23 = vsel %vm2138_vm6, %v2078_v19, 0.0  ;;  %v2081_v26 = vld [vmem:[#allocation2 + $0x18] sm:$0xff]  ;;  %v2201_v32 = vmul.f32 %v2161_v18, %v2161_v18  ;;  %v2187_v37 = vsel %vm348_vm4, %v2161_v18, 0.0 }
 0x187   : > { %v2553_v28 = vpack.c.bf16 %v2159_v23, %v2159_v23  ;;  %v2162_v29 = vsel %vm2141_vm7, %v2081_v26, 0.0  ;;  %v2079_v27 = vld [vmem:[#allocation2 + $0x8] sm:$0xff]  ;;  %v2199_v31 = vmul.f32 %v2159_v23, %v2159_v23  ;;  %v2184_v35 = vsel %vm348_vm4, %v2159_v23, 0.0 }
 0x188   : > { %2182 = vst.msk [vmem:[%s247_s25 + $0x8] sm:$0xf] %vm2179_vm8, %v2555_v25  ;;  %v2556_v30 = vpack.c.bf16 %v2162_v29, %v2162_v29  ;;  %v2160_v33 = vsel %vm2139_vm9, %v2079_v27, 0.0  ;;  %v2202_v38 = vmul.f32 %v2162_v29, %v2162_v29  ;;  %v2206_v45 = vsel %vm348_vm4, %v2201_v32, 0.0 }
 0x189   : > { %2180 = vst.msk [vmem:[%s247_s25] sm:$0xf] %vm2179_vm8, %v2553_v28  ;;  %v2554_v36 = vpack.c.bf16 %v2160_v33, %v2160_v33  ;;  %v2185_v40 = vsel %vm348_vm4, %v2160_v33, 0.0  ;;  %v2200_v34 = vmul.f32 %v2160_v33, %v2160_v33  ;;  %v2203_v42 = vsel %vm348_vm4, %v2199_v31, 0.0 }
 0x18a   : > { %2183 = vst.msk [vmem:[%s247_s25 + $0xc] sm:$0xf] %vm2179_vm8, %v2556_v30  ;;  %v2186_v41 = vadd.f32 %v2185_v40, %v2184_v35  ;;  %v2189_v46 = vsel %vm348_vm4, %v2162_v29, 0.0  ;;  %v2208_v49 = vsel %vm348_vm4, %v2202_v38, 0.0 }
 0x18b   : > { %2181 = vst.msk [vmem:[%s247_s25 + $0x4] sm:$0xf] %vm2179_vm8, %v2554_v36  ;;  %v2204_v43 = vsel %vm348_vm4, %v2200_v34, 0.0 }
 0x18c   : > { %v2188_v39 = vadd.f32 %v2187_v37, %v2186_v41  ;;  %v2205_v44 = vadd.f32 %v2204_v43, %v2203_v42 }
 0x18e   : > { %v2190_v47 = vadd.f32 %v2189_v46, %v2188_v39  ;;  %v2207_v48 = vadd.f32 %v2206_v45, %v2205_v44 }
 0x190   : > { %v2191_v50 = vrot.slane %v2190_v47, 4  ;;  %v2209_v52 = vadd.f32 %v2208_v49, %v2207_v48 }
 0x192   : > { %v2192_v56 = vadd.f32 %v2191_v50, %v2190_v47  ;;  %v2210_v51 = vrot.slane %v2209_v52, 4 }
 0x194   : > { %v2193_v57 = vrot.slane %v2192_v56, 2  ;;  %v2211_v53 = vadd.f32 %v2210_v51, %v2209_v52 }
 0x196   : > { %v2194_v58 = vadd.f32 %v2193_v57, %v2192_v56  ;;  %v2212_v54 = vrot.slane %v2211_v53, 2 }
 0x198   : > { %v2195_v59 = vrot.slane %v2194_v58, 1  ;;  %v2213_v55 = vadd.f32 %v2212_v54, %v2211_v53 }
 0x19a   : > { %v2196_v60 = vadd.f32 %v2195_v59, %v2194_v58  ;;  %v2214_v61 = vrot.slane %v2213_v55, 1 }
 0x19c   : > { %2198 = vst.msk [vmem:[%s254_s28] sm:$0x1] %vm2197_vm10, %v2196_v60  ;;  %v2215_v62 = vadd.f32 %v2214_v61, %v2213_v55 }
 0x19e   : > { %2216 = vst.msk [vmem:[%s260_s5] sm:$0x1] %vm2197_vm10, %v2215_v62 }
 0x19f PF: > { %s15_s17 = sadd.s32 1, %s2871_s17   ;;  %s3318_s15 = smov %s2867_s16 }
 0x1a0   : > { %p12_p5 = scmp.ge.s32.totalorder %s15_s17, 4   ;;  %s3319_s16 = smov %s3321_s18 }
 0x1a2   :  { %14 = sbr.rel (!%p12_p5) target bundleno = 2 (0x2), region = 97 }

// kernel: nlayer_discriminator_forward.15
= control target key start
LH: loop header
LB: loop body
LE: loop exit
PB: predicated region body
PF: predicated region fallthrough
CT: control target
= control target key end

     0   :  { %s3592_s14 = smov 0   ;;  %s3594_s15 = smov 0   ;;  %s4188_s0 = inlined_call_operand.vmem [shape: bf16[2,72,64], index: 0, kind: input, shape index: {}]   ;;  %s4189_s1 = inlined_call_operand.vmem [shape: bf16[16,64,1], index: 1, kind: input, shape index: {}]   ;;  %s4190_s2 = inlined_call_operand.<no memory space> [shape: f32[1,1], index: 2, kind: input, shape index: {}]   ;;  %s4191_s3 = inlined_call_operand.vmem [shape: bf16[2,40,1], index: 3, kind: output, shape index: {}]  }
   0x1   :  { %v8_v0 = vstv %s4190_s2  ;;  %s3596_s16 = smov 0  }
   0x2   :  { %9 = vst [vmem:[#allocation3] sm:$0x1] %v8_v0 }
   0x3 LB: > { %s27_s2 = sadd.s32 1, %s3561_s15  ;;  %p2675_p0 = scmp.ge.s32.totalorder %s3565_s16, 1  ;;  %s3565_s16 = sphi %s3596_s16, %s15_s16   ;;  %s3561_s15 = sphi %s3594_s15, %s4193_s15   ;;  %s3557_s14 = sphi %s3592_s14, %s4192_s14  }
   0x4   : > { %p29_p1 = scmp.ge.s32.totalorder %s27_s2, 2  ;;  %p157_p2 = scmp.lt.s32.totalorder %s3565_s16, 3 }
   0x6   : > { %s4195_s2 = smov (%p29_p1, %s27_s2), 0  ;;  %p158_p3 = pnand %p2675_p0, %p157_p2 }
   0x7   : > { %v3431_v1 = vld [vmem:[%s4189_s1] sm:$0xff] (!%p158_p3)   ;;  %v3567_v2 = vmov (!%p158_p3), 0.0   ;;  %v3432_v3 = vld [vmem:[%s4189_s1 + $0x8] sm:$0xff] (!%p158_p3)   ;;  %vm3568_vm0 = vmmov (!%p158_p3), 0   ;;  %p187_p4 = scmp.lt.s32.totalorder (!%p158_p3), %s3557_s14, 1  ;;  %v3433_v6 = vld [vmem:[%s4189_s1 + $0x10] sm:$0xff] (!%p158_p3)  }
   0x8   : > { %161 = sbr.rel (%p158_p3) target bundleno = 445 (0x1bd), region = 32  ;;  %3083 = vmatprep.subr.bf16.mxu0 (!%p158_p3), %v3567_v2  ;;  %3103 = vmatprep.subr.bf16.mxu1 (!%p158_p3), %v3567_v2  ;;  %v3434_v4 = vld [vmem:[%s4189_s1 + $0x20] sm:$0xff] (!%p158_p3)   ;;  %v3436_v5 = vld [vmem:[%s4189_s1 + $0x28] sm:$0xff] (!%p158_p3)   ;;  %v3438_v7 = vld [vmem:[%s4189_s1 + $0x30] sm:$0xff] (!%p158_p3)   ;;  %vm254_vm1 = vcmask (!%p158_p3), 523264   ;;  %vm514_vm3 = vcmask (!%p158_p3), 1046528  }
   0x9   : > { %3084 = vmatpush3.bf16.msra.mxu0 (!%p158_p3), %v3431_v1  ;;  %3091 = vmatprep.mubr.msk.bf16.mxu0 (!%p158_p3), %vm3568_vm0, %v3567_v2  ;;  %v3435_v8 = vld [vmem:[%s4189_s1 + $0x18] sm:$0xff] (!%p158_p3)   ;;  %v3439_v13 = vld [vmem:[%s4189_s1 + $0x40] sm:$0xff] (!%p158_p3)   ;;  %v3441_v17 = vld [vmem:[%s4189_s1 + $0x48] sm:$0xff] (!%p158_p3)   ;;  %vm356_vm2 = vsmask.f32 (!%p158_p3), 7424  ;;  %vm320_vm5 = vcmask (!%p158_p3), 7168  }
   0xa   : > { %3085 = vmatprep.subr.bf16.mxu0 (!%p158_p3), %v3567_v2  ;;  %3111 = vmatprep.mubr.msk.bf16.mxu1 (!%p158_p3), %vm3568_vm0, %v3567_v2  ;;  %v3440_v10 = vld [vmem:[%s4189_s1 + $0x38] sm:$0xff] (!%p158_p3)   ;;  %v3445_v20 = vld [vmem:[%s4189_s1 + $0x60] sm:$0xff] (!%p158_p3)   ;;  %v3446_v27 = vld [vmem:[%s4189_s1 + $0x50] sm:$0xff] (!%p158_p3)   ;;  %vm654_vm4 = vsmask.f32 (!%p158_p3), 6400  ;;  %vm2584_vm6 = vcmask (!%p158_p3), 3072  }
   0xb   : > { %3104 = vmatpush3.bf16.msra.mxu1 (!%p158_p3), %v3434_v4  ;;  %v3449_v30 = vld [vmem:[%s4189_s1 + $0x68] sm:$0xff] (!%p158_p3)   ;;  %v3450_v31 = vld [vmem:[%s4189_s1 + $0x58] sm:$0xff] (!%p158_p3)   ;;  %v3451_v32 = vld [vmem:[%s4189_s1 + $0x70] sm:$0xff] (!%p158_p3)  }
   0xc   : > { %3105 = vmatprep.subr.bf16.mxu1 (!%p158_p3), %v3567_v2  ;;  %v3455_v40 = vld [vmem:[%s4189_s1 + $0x78] sm:$0xff] (!%p158_p3)   ;;  %v3454_v53 = vld [vmem:[%s4189_s1 + $0x80] sm:$0xff] (!%p158_p3)   ;;  %v3456_v60 = vld [vmem:[%s4189_s1 + $0x88] sm:$0xff] (!%p158_p3)  }
   0xd   : > { %3086 = vmatpush3.bf16.msra.mxu0 (!%p158_p3), %v3432_v3  ;;  %v3460_v63 = vld [vmem:[%s4189_s1 + $0xa0] sm:$0xff] (!%p158_p3)   ;;  %v3461_v4 = vld [vmem:[%s4189_s1 + $0x90] sm:$0xff] (!%p158_p3)  }
   0xe   : > { %3087 = vmatprep.subr.bf16.mxu0 (!%p158_p3), %v3567_v2 }
   0xf   : > { %s4197_s14 = smov (!%p187_p4, %s3557_s14), 1  ;;  %3106 = vmatpush3.bf16.msra.mxu1 %v3436_v5 }
  0x10   : > { %s3403_s27 = smul.u32 36, %s4197_s14  ;;  %3107 = vmatprep.subr.bf16.mxu1 %v3567_v2 }
  0x11   : > { %3088 = vmatpush3.bf16.msra.mxu0 %v3433_v6  ;;  %v3463_v6 = vld [vmem:[%s4189_s1 + $0xa8] sm:$0xff]  }
  0x12   : > { %s3640_s30 = scalar_lea.vmem %s4188_s0, %s3403_s27  ;;  %3089 = vmatprep.subr.bf16.mxu0 %v3567_v2 }
  0x13   : > { %v3437_v9 = vld [vmem:[%s3640_s30] sm:$0xff]   ;;  %3108 = vmatpush3.bf16.msra.mxu1 %v3438_v7  ;;  %v3444_v12 = vld [vmem:[%s3640_s30 + $0x8] sm:$0xff]   ;;  %v3448_v21 = vld [vmem:[%s3640_s30 + $0x10] sm:$0x1f]  }
  0x14   : > { %v3443_v11 = vld [vmem:[%s3640_s30] sm:$0xff]   ;;  %3109 = vmatprep.subr.bf16.mxu1 %v3567_v2  ;;  %v365_v16 = vshll.u32 %v3444_v12, 16  ;;  %v369_v22 = vshrl.u32 %v3444_v12, 16  ;;  %v373_v24 = vshll.u32 %v3448_v21, 16  ;;  %v3442_v25 = vld [vmem:[%s3640_s30 + $0x8] sm:$0xff]   ;;  %v377_v39 = vshrl.u32 %v3448_v21, 16 }
  0x15   : > { %3090 = vmatpush3.bf16.msra.mxu0 %v3435_v8  ;;  %v358_v14 = vshrl.u32 %v3443_v11, 16  ;;  %v360_v15 = vshll.u32 %v3443_v11, 16  ;;  %v3447_v33 = vld [vmem:[%s3640_s30 + $0x10] ss:$0 sps:$4 sm:$0xff]   ;;  %v3453_v35 = vld [vmem:[%s3640_s30 + $0x8] sm:$0xff]   ;;  %v3464_v7 = vld [vmem:[%s4189_s1 + $0x98] sm:$0xff]  }
  0x16   : > { %3123 = vmatprep.subr.bf16.mxu0 %v3567_v2  ;;  %v367_v19 = vrot.slane %v365_v16, 1  ;;  %v375_v29 = vrot.slane %v373_v24, 1  ;;  %v3458_v36 = vld [vmem:[%s3640_s30] sm:$0xfe]   ;;  %v3459_v38 = vld [vmem:[%s3640_s30 + $0x8] sm:$0xff]   ;;  %v516_v46 = vrot.slane %v3453_v35, 1 }
  0x17   : > { %3110 = vmatpush3.bf16.msra.mxu1 %v3440_v10  ;;  %v362_v18 = vrot.slane %v360_v15, 1  ;;  %v3452_v37 = vld [vmem:[%s3640_s30] sm:$0xfe]   ;;  %v656_v41 = vshrl.u32 %v3458_v36, 16  ;;  %v659_v42 = vshll.u32 %v3458_v36, 16  ;;  %v664_v43 = vshrl.u32 %v3459_v38, 16 }
  0x18   : > { %3092 = vmatmul.mubr.msk.bf16.vlgmr.msra.gmra.mrb[0].mxu0 %vm254_vm1, %v3437_v9  ;;  %3143 = vmatprep.subr.bf16.mxu1 %v3567_v2  ;;  %v371_v28 = vor.u32 %v369_v22, %v367_v19  ;;  %v667_v44 = vshll.u32 %v3459_v38, 16  ;;  %v515_v45 = vrot.slane %v3452_v37, 1  ;;  %v379_v47 = vor.u32 %v377_v39, %v375_v29  ;;  %v3462_v52 = vld [vmem:[%s3640_s30 + $0x10] sm:$0x3f]   ;;  %v3471_v10 = vld [vmem:[%s3640_s30 + $0x4] sm:$0xff]   ;;  %v3468_v11 = vld [vmem:[%s4189_s1 + $0xb8] sm:$0xff]  }
  0x19   : > { %3124 = vmatpush3.bf16.msra.mxu0 %v3439_v13  ;;  %3095 = vmatprep.mubr.msk.bf16.mxu0 %vm3568_vm0, %v3567_v2  ;;  %v363_v23 = vor.u32 %v362_v18, %v358_v14  ;;  %v658_v48 = vrot.slane %v656_v41, 1  ;;  %v661_v49 = vrot.slane %v659_v42, 2  ;;  %v666_v50 = vrot.slane %v664_v43, 1  ;;  %v3457_v54 = vld [vmem:[%s3640_s30 + $0x10] sm:$0x1f]   ;;  %v3467_v18 = vld [vmem:[%s4189_s1 + $0xc0] sm:$0xff]  }
  0x1a   : > { %3125 = vmatprep.subr.bf16.mxu0 %v3567_v2  ;;  %v376_v34 = vsel %vm356_vm2, %v371_v28, %v375_v29  ;;  %v669_v51 = vrot.slane %v667_v44, 2  ;;  %v517_v55 = vsel %vm514_vm3, %v515_v45, %v516_v46  ;;  %v673_v58 = vshrl.u32 %v3462_v52, 16  ;;  %v3465_v8 = vld [vmem:[%s4189_s1 + $0xb0] sm:$0xff]   ;;  %v3469_v22 = vld [vmem:[%s4189_s1 + $0xc8] sm:$0xff]   ;;  %v3483_v45 = vld [vmem:[%s4189_s1 + $0xf8] sm:$0xff]  }
  0x1b   : > { %v368_v26 = vsel %vm356_vm2, %v363_v23, %v367_v19  ;;  %v662_v56 = vor.u32 %v661_v49, %v658_v48  ;;  %v676_v59 = vshll.u32 %v3462_v52, 16  ;;  %v518_v61 = vrot.slane %v3457_v54, 1  ;;  %v3472_v12 = vld [vmem:[%s3640_s30 + $0xc] sm:$0xff]   ;;  %v3476_v21 = vld [vmem:[%s3640_s30 + $0x14] sm:$0x1f]   ;;  %v3473_v23 = vld [vmem:[%s4189_s1 + $0xe0] sm:$0xff]  }
  0x1c   : > { %3112 = vmatmul.mubr.msk.bf16.vlgmr.msra.gmra.mrb[0].mxu1 %vm254_vm1, %v368_v26  ;;  %v670_v57 = vor.u32 %v669_v51, %v666_v50  ;;  %v675_v0 = vrot.slane %v673_v58, 1  ;;  %v949_v13 = vshll.u32 %v3471_v10, 16  ;;  %v947_v14 = vshrl.u32 %v3471_v10, 16  ;;  %v3474_v28 = vld [vmem:[%s4189_s1 + $0xd0] sm:$0xff]   ;;  %v3480_v39 = vld [vmem:[%s3640_s30 + $0x4] sm:$0xfe]  }
  0x1d   : > { %3126 = vmatpush3.bf16.msra.mxu0 %v3441_v17  ;;  %3144 = vmatpush3.bf16.msra.mxu1 %v3445_v20  ;;  %v678_v1 = vrot.slane %v676_v59, 2  ;;  %v519_v3 = vsel %vm514_vm3, %v516_v46, %v518_v61  ;;  %v954_v16 = vshll.u32 %v3472_v12, 16  ;;  %v3466_v17 = vld [vmem:[%s3640_s30 + $0x4] sm:$0xff]   ;;  %v962_v26 = vshll.u32 %v3476_v21, 16  ;;  %v3475_v35 = vld [vmem:[%s3640_s30 + $0x14] ss:$0 sps:$4 sm:$0xff]  }
  0x1e   : > { %3127 = vmatprep.subr.bf16.mxu0 %v3567_v2  ;;  %3115 = vmatprep.mubr.msk.bf16.mxu1 %vm3568_vm0, %v3567_v2  ;;  %v671_v62 = vsel %vm654_vm4, %v662_v56, %v670_v57  ;;  %v951_v15 = vrot.slane %v949_v13, 1  ;;  %v3479_v37 = vld [vmem:[%s4189_s1 + $0xf0] sm:$0xff]   ;;  %v966_v38 = vshrl.u32 %v3476_v21, 16  ;;  %v1103_v46 = vrot.slane %v3480_v39, 1  ;;  %v3482_v54 = vld [vmem:[%s4189_s1 + $0x100] sm:$0xff]  }
  0x1f   : > { %3145 = vmatprep.subr.bf16.mxu1 %v3567_v2  ;;  %v679_v5 = vor.u32 %v678_v1, %v675_v0  ;;  %v956_v20 = vrot.slane %v954_v16, 1  ;;  %v3485_v56 = vld [vmem:[%s3640_s30 + $0x14] sm:$0x1f]   ;;  %v3488_v0 = vld [vmem:[%s4189_s1 + $0x120] sm:$0xff]  }
  0x20   : > { %3096 = vmatmul.mubr.msk.bf16.gmra.mrb[4].mxu0 %vm254_vm1, %v3442_v25  ;;  %v952_v19 = vor.u32 %v951_v15, %v947_v14  ;;  %v958_v25 = vshrl.u32 %v3472_v12, 16  ;;  %v3500_v12 = vld [vmem:[%s3640_s30 + $0x10] sm:$0xff]   ;;  %v3496_v14 = vld [vmem:[%s4189_s1 + $0x138] sm:$0xff]  }
  0x21   : > { %3128 = vmatpush3.bf16.msra.mxu0 %v3446_v27  ;;  %3099 = vmatprep.mubr.msk.bf16.mxu0 %vm3568_vm0, %v3567_v2  ;;  %v680_v9 = vsel %vm654_vm4, %v670_v57, %v679_v5  ;;  %v3470_v27 = vld [vmem:[%s3640_s30 + $0xc] sm:$0xff]  }
  0x22   : > { %3146 = vmatpush3.bf16.msra.mxu1 %v3449_v30  ;;  %3129 = vmatprep.subr.bf16.mxu0 %v3567_v2  ;;  %v957_v24 = vsel %vm356_vm2, %v952_v19, %v956_v20  ;;  %v960_v29 = vor.u32 %v958_v25, %v956_v20  ;;  %v964_v30 = vrot.slane %v962_v26, 1  ;;  %v3495_v19 = vld [vmem:[%s4189_s1 + $0x140] sm:$0xff]   ;;  %v1545_v26 = vshrl.u32 %v3500_v12, 16 }
  0x23   : > { %3147 = vmatprep.subr.bf16.mxu1 %v3567_v2  ;;  %v3501_v25 = vld [vmem:[%s4189_s1 + $0x160] sm:$0xff]  }
  0x24   : > { %3116 = vmatmul.mubr.msk.bf16.gmra.mrb[4].mxu1 %vm254_vm1, %v376_v34  ;;  %v3478_v34 = vld [vmem:[%s4189_s1 + $0xd8] sm:$0xff]   ;;  %v965_v36 = vsel %vm356_vm2, %v960_v29, %v964_v30  ;;  %v968_v50 = vor.u32 %v966_v38, %v964_v30  ;;  %v3502_v29 = vld [vmem:[%s4189_s1 + $0x150] sm:$0xff]  }
  0x25   : > { %3130 = vmatpush3.bf16.msra.mxu0 %v3450_v31  ;;  %3119 = vmatprep.mubr.msk.bf16.mxu1 %vm3568_vm0, %v3567_v2  ;;  %v3477_v31 = vld [vmem:[%s4189_s1 + $0xe8] sm:$0xff]   ;;  %v3503_v38 = vld [vmem:[%s3640_s30 + $0x18] ss:$0 sps:$4 sm:$0xff]  }
  0x26   : > { %3148 = vmatpush3.bf16.msra.mxu1 %v3451_v32  ;;  %3163 = vmatprep.subr.bf16.mxu0 %v3567_v2  ;;  %v3486_v32 = vld [vmem:[%s3640_s30 + $0x4] sm:$0xfe]  }
  0x27   : > { %3149 = vmatprep.subr.bf16.mxu1 %v3567_v2  ;;  %v1243_v41 = vshrl.u32 %v3486_v32, 16  ;;  %v1246_v42 = vshll.u32 %v3486_v32, 16  ;;  %v3505_v32 = vld [vmem:[%s4189_s1 + $0x168] sm:$0xff]  }
  0x28   : > { %3100 = vmatmul.mubr.msk.bf16.gmra.mrb[8].mxu0 %vm254_vm1, %v3447_v33  ;;  %v3487_v33 = vld [vmem:[%s3640_s30 + $0xc] sm:$0xff]  }
  0x29   : > { %3131 = vmatprep.mubr.msk.bf16.mxu0 %vm3568_vm0, %v3567_v2  ;;  %v1251_v43 = vshrl.u32 %v3487_v33, 16  ;;  %v1254_v44 = vshll.u32 %v3487_v33, 16  ;;  %v1245_v48 = vrot.slane %v1243_v41, 1  ;;  %v1248_v49 = vrot.slane %v1246_v42, 2  ;;  %v3506_v33 = vld [vmem:[%s4189_s1 + $0x158] sm:$0xff]   ;;  %v3509_v41 = vld [vmem:[%s3640_s30 + $0x10] sm:$0xff]  }
  0x2a   : > { %3150 = vmatpush3.bf16.msra.mxu1 %v3455_v40  ;;  %v3481_v40 = vld [vmem:[%s3640_s30 + $0xc] sm:$0xff]   ;;  %v3511_v42 = vld [vmem:[%s4189_s1 + $0x178] sm:$0xff]  }
  0x2b   : > { %3183 = vmatprep.subr.bf16.mxu1 %v3567_v2  ;;  %v1253_v51 = vrot.slane %v1251_v43, 1  ;;  %v1256_v52 = vrot.slane %v1254_v44, 2  ;;  %v1249_v57 = vor.u32 %v1248_v49, %v1245_v48  ;;  %v1691_v49 = vrot.slane %v3509_v41, 1  ;;  %v3536_v41 = vld [vmem:[%s3640_s30 + $0xc] sm:$0xfe]  }
  0x2c   : > { %3120 = vmatmul.mubr.msk.bf16.gmra.mrb[8].mxu1 %vm254_vm1, %v379_v47  ;;  %v1104_v47 = vrot.slane %v3481_v40, 1  ;;  %v3508_v40 = vld [vmem:[%s3640_s30 + $0x8] sm:$0xfe]  }
  0x2d   : > { %3151 = vmatprep.mubr.msk.bf16.mxu1 %vm3568_vm0, %v3567_v2  ;;  %v1257_v58 = vor.u32 %v1256_v52, %v1253_v51  ;;  %v1690_v48 = vrot.slane %v3508_v40, 1 }
  0x30   : > { %3132 = vmatmul.mubr.msk.bf16.vlgmr.msra.gmra.mrb[12].mxu0 %vm254_vm1, %v517_v55  ;;  %v1105_v55 = vsel %vm514_vm3, %v1103_v46, %v1104_v47 }
  0x31   : > { %3164 = vmatpush3.bf16.msra.mxu0 %v3454_v53  ;;  %3135 = vmatprep.mubr.msk.bf16.mxu0 %vm3568_vm0, %v3567_v2  ;;  %v3490_v53 = vld [vmem:[%s3640_s30 + $0x14] sm:$0x3f]  }
  0x32   : > { %3165 = vmatprep.subr.bf16.mxu0 %v3567_v2  ;;  %v1260_v59 = vshrl.u32 %v3490_v53, 16 }
  0x34   : > { %3152 = vmatmul.mubr.msk.bf16.vlgmr.msra.gmra.mrb[12].mxu1 %vm254_vm1, %v671_v62  ;;  %v1106_v62 = vrot.slane %v3485_v56, 1  ;;  %v1262_v1 = vrot.slane %v1260_v59, 1  ;;  %v3510_v56 = vld [vmem:[%s4189_s1 + $0x180] sm:$0xff]  }
  0x35   : > { %3166 = vmatpush3.bf16.msra.mxu0 %v3456_v60  ;;  %3184 = vmatpush3.bf16.msra.mxu1 %v3460_v63  ;;  %v1263_v60 = vshll.u32 %v3490_v53, 16  ;;  %v1258_v63 = vsel %vm654_vm4, %v1249_v57, %v1257_v58  ;;  %v3513_v57 = vld [vmem:[%s3640_s30 + $0x18] sm:$0x1f]  }
  0x36   : > { %3167 = vmatprep.subr.bf16.mxu0 %v3567_v2  ;;  %3155 = vmatprep.mubr.msk.bf16.mxu1 %vm3568_vm0, %v3567_v2 }
  0x37   : > { %3185 = vmatprep.subr.bf16.mxu1 %v3567_v2 }
  0x38   : > { %3136 = vmatmul.mubr.msk.bf16.gmra.mrb[16].mxu0 %vm254_vm1, %v519_v3  ;;  %v1265_v3 = vrot.slane %v1263_v60, 2 }
  0x39   : > { %3168 = vmatpush3.bf16.msra.mxu0 %v3461_v4  ;;  %3139 = vmatprep.mubr.msk.bf16.mxu0 %vm3568_vm0, %v3567_v2  ;;  %v3489_v4 = vld [vmem:[%s4189_s1 + $0x110] sm:$0xff]  }
  0x3a   : > { %3186 = vmatpush3.bf16.msra.mxu1 %v3463_v6  ;;  %3169 = vmatprep.subr.bf16.mxu0 %v3567_v2  ;;  %v1266_v6 = vor.u32 %v1265_v3, %v1262_v1  ;;  %v3516_v1 = vld [vmem:[%s4189_s1 + $0x1a0] sm:$0xff]  }
  0x3b   : > { %3187 = vmatprep.subr.bf16.mxu1 %v3567_v2 }
  0x3c   : > { %3156 = vmatmul.mubr.msk.bf16.gmra.mrb[16].mxu1 %vm254_vm1, %v680_v9  ;;  %v3499_v9 = vld [vmem:[%s3640_s30 + $0x8] sm:$0xff]   ;;  %v1267_v10 = vsel %vm654_vm4, %v1257_v58, %v1266_v6 }
  0x3d   : > { %3170 = vmatpush3.bf16.msra.mxu0 %v3464_v7  ;;  %3159 = vmatprep.mubr.msk.bf16.mxu1 %vm3568_vm0, %v3567_v2  ;;  %v3491_v7 = vld [vmem:[%s4189_s1 + $0x128] sm:$0xff]   ;;  %v1536_v13 = vshll.u32 %v3499_v9, 16  ;;  %v1534_v15 = vshrl.u32 %v3499_v9, 16  ;;  %v3520_v9 = vld [vmem:[%s4189_s1 + $0x198] sm:$0xff]  }
  0x3e   : > { %3188 = vmatpush3.bf16.msra.mxu1 %v3465_v8  ;;  %3203 = vmatprep.subr.bf16.mxu0 %v3567_v2  ;;  %v3492_v8 = vld [vmem:[%s4189_s1 + $0x118] sm:$0xff]  }
  0x3f   : > { %3189 = vmatprep.subr.bf16.mxu1 %v3567_v2  ;;  %v1538_v16 = vrot.slane %v1536_v13, 1  ;;  %v3524_v13 = vld [vmem:[%s4189_s1 + $0x1b8] sm:$0xff]  }
  0x40   : > { %3140 = vmatmul.mubr.msk.bf16.gmra.mrb[20].mxu0 %vm254_vm1, %v518_v61  ;;  %v3484_v61 = vld [vmem:[%s4189_s1 + $0x108] sm:$0xff]  }
  0x41   : > { %3171 = vmatprep.mubr.msk.bf16.mxu0 %vm3568_vm0, %v3567_v2  ;;  %v1539_v20 = vor.u32 %v1538_v16, %v1534_v15 }
  0x42   : > { %3190 = vmatpush3.bf16.msra.mxu1 %v3468_v11  ;;  %v3493_v11 = vld [vmem:[%s4189_s1 + $0x130] sm:$0xff]  }
  0x43   : > { %3223 = vmatprep.subr.bf16.mxu1 %v3567_v2 }
  0x44   : > { %3160 = vmatmul.mubr.msk.bf16.gmra.mrb[20].mxu1 %vm254_vm1, %v679_v5  ;;  %v1107_v5 = vsel %vm514_vm3, %v1104_v47, %v1106_v62 }
  0x45   : > { %3191 = vmatprep.mubr.msk.bf16.mxu1 %vm3568_vm0, %v3567_v2 }
  0x48   : > { %3172 = vmatmul.mubr.msk.bf16.vlgmr.msra.gmra.mrb[24].mxu0 %vm254_vm1, %v3466_v17  ;;  %v1541_v17 = vshll.u32 %v3500_v12, 16  ;;  %v3527_v12 = vld [vmem:[%s3640_s30 + $0xc] sm:$0xff]  }
  0x49   : > { %3204 = vmatpush3.bf16.msra.mxu0 %v3467_v18  ;;  %3175 = vmatprep.mubr.msk.bf16.mxu0 %vm3568_vm0, %v3567_v2  ;;  %v3494_v18 = vld [vmem:[%s3640_s30 + $0x8] sm:$0xff]   ;;  %v2123_v15 = vshll.u32 %v3527_v12, 16  ;;  %v2121_v16 = vshrl.u32 %v3527_v12, 16 }
  0x4a   : > { %3205 = vmatprep.subr.bf16.mxu0 %v3567_v2  ;;  %v1543_v21 = vrot.slane %v1541_v17, 1 }
  0x4b   : > { %v2125_v17 = vrot.slane %v2123_v15, 1 }
  0x4c   : > { %3192 = vmatmul.mubr.msk.bf16.vlgmr.msra.gmra.mrb[24].mxu1 %vm254_vm1, %v957_v24  ;;  %v1544_v24 = vsel %vm356_vm2, %v1539_v20, %v1543_v21  ;;  %v1547_v30 = vor.u32 %v1545_v26, %v1543_v21  ;;  %v3523_v20 = vld [vmem:[%s4189_s1 + $0x1c0] sm:$0xff]  }
  0x4d   : > { %3206 = vmatpush3.bf16.msra.mxu0 %v3469_v22  ;;  %3224 = vmatpush3.bf16.msra.mxu1 %v3473_v23  ;;  %v3504_v22 = vld [vmem:[%s3640_s30 + $0x18] sm:$0x1f]   ;;  %v3497_v23 = vld [vmem:[%s4189_s1 + $0x148] sm:$0xff]   ;;  %v2126_v21 = vor.u32 %v2125_v17, %v2121_v16  ;;  %v3529_v26 = vld [vmem:[%s4189_s1 + $0x1e0] sm:$0xff]  }
  0x4e   : > { %3207 = vmatprep.subr.bf16.mxu0 %v3567_v2  ;;  %3195 = vmatprep.mubr.msk.bf16.mxu1 %vm3568_vm0, %v3567_v2  ;;  %v1553_v39 = vshrl.u32 %v3504_v22, 16 }
  0x4f   : > { %3225 = vmatprep.subr.bf16.mxu1 %v3567_v2 }
  0x50   : > { %3176 = vmatmul.mubr.msk.bf16.gmra.mrb[28].mxu0 %vm254_vm1, %v3470_v27  ;;  %v1549_v27 = vshll.u32 %v3504_v22, 16 }
  0x51   : > { %3208 = vmatpush3.bf16.msra.mxu0 %v3474_v28  ;;  %3179 = vmatprep.mubr.msk.bf16.mxu0 %vm3568_vm0, %v3567_v2  ;;  %v3498_v28 = vld [vmem:[%s3640_s30 + $0x10] sm:$0xff]  }
  0x52   : > { %3226 = vmatpush3.bf16.msra.mxu1 %v3477_v31  ;;  %3209 = vmatprep.subr.bf16.mxu0 %v3567_v2  ;;  %v1551_v31 = vrot.slane %v1549_v27, 1 }
  0x53   : > { %3227 = vmatprep.subr.bf16.mxu1 %v3567_v2 }
  0x54   : > { %3196 = vmatmul.mubr.msk.bf16.gmra.mrb[28].mxu1 %vm254_vm1, %v965_v36  ;;  %v3514_v36 = vld [vmem:[%s3640_s30 + $0x8] sm:$0xfe]   ;;  %v1555_v47 = vor.u32 %v1553_v39, %v1551_v31  ;;  %v3531_v39 = vld [vmem:[%s3640_s30 + $0x1c] ss:$0 sps:$4 sm:$0xff]  }
  0x55   : > { %3210 = vmatpush3.bf16.msra.mxu0 %v3478_v34  ;;  %3199 = vmatprep.mubr.msk.bf16.mxu1 %vm3568_vm0, %v3567_v2  ;;  %v1552_v34 = vsel %vm356_vm2, %v1547_v30, %v1551_v31  ;;  %v1830_v43 = vshrl.u32 %v3514_v36, 16  ;;  %v1833_v44 = vshll.u32 %v3514_v36, 16  ;;  %v3530_v30 = vld [vmem:[%s4189_s1 + $0x1d0] sm:$0xff]  }
  0x56   : > { %3228 = vmatpush3.bf16.msra.mxu1 %v3479_v37  ;;  %3243 = vmatprep.subr.bf16.mxu0 %v3567_v2  ;;  %v3515_v37 = vld [vmem:[%s3640_s30 + $0x10] sm:$0xff]  }
  0x57   : > { %3229 = vmatprep.subr.bf16.mxu1 %v3567_v2  ;;  %v1841_v46 = vshll.u32 %v3515_v37, 16  ;;  %v1835_v51 = vrot.slane %v1833_v44, 2  ;;  %v3535_v36 = vld [vmem:[%s4189_s1 + $0x1f0] sm:$0xff]  }
  0x58   : > { %3180 = vmatmul.mubr.msk.bf16.gmra.mrb[32].mxu0 %vm254_vm1, %v3475_v35  ;;  %v3507_v35 = vld [vmem:[%s4189_s1 + $0x170] sm:$0xff]  }
  0x59   : > { %3211 = vmatprep.mubr.msk.bf16.mxu0 %vm3568_vm0, %v3567_v2  ;;  %v1843_v53 = vrot.slane %v1841_v46, 2 }
  0x5a   : > { %3230 = vmatpush3.bf16.msra.mxu1 %v3483_v45  ;;  %v1838_v45 = vshrl.u32 %v3515_v37, 16  ;;  %v3540_v37 = vld [vmem:[%s3640_s30 + $0xc] sm:$0xfe]  }
  0x5b   : > { %3263 = vmatprep.subr.bf16.mxu1 %v3567_v2  ;;  %v2417_v44 = vshrl.u32 %v3540_v37, 16 }
  0x5c   : > { %3200 = vmatmul.mubr.msk.bf16.gmra.mrb[32].mxu1 %vm254_vm1, %v968_v50  ;;  %v1832_v50 = vrot.slane %v1830_v43, 1  ;;  %v1840_v52 = vrot.slane %v1838_v45, 1  ;;  %v3538_v43 = vld [vmem:[%s4189_s1 + $0x1f8] sm:$0xff]   ;;  %v2420_v45 = vshll.u32 %v3540_v37, 16 }
  0x5d   : > { %3231 = vmatprep.mubr.msk.bf16.mxu1 %vm3568_vm0, %v3567_v2 }
  0x5e   : > { %v1836_v58 = vor.u32 %v1835_v51, %v1832_v50  ;;  %v1844_v59 = vor.u32 %v1843_v53, %v1840_v52  ;;  %v2419_v51 = vrot.slane %v2417_v44, 1  ;;  %v2422_v52 = vrot.slane %v2420_v45, 2 }
  0x60   : > { %3212 = vmatmul.mubr.msk.bf16.vlgmr.msra.gmra.mrb[36].mxu0 %vm254_vm1, %v1105_v55  ;;  %v1692_v55 = vsel %vm514_vm3, %v1690_v48, %v1691_v49 }
  0x61   : > { %3244 = vmatpush3.bf16.msra.mxu0 %v3482_v54  ;;  %3215 = vmatprep.mubr.msk.bf16.mxu0 %vm3568_vm0, %v3567_v2  ;;  %v3518_v54 = vld [vmem:[%s3640_s30 + $0x18] sm:$0x3f]  }
  0x62   : > { %3245 = vmatprep.subr.bf16.mxu0 %v3567_v2  ;;  %v1847_v60 = vshrl.u32 %v3518_v54, 16 }
  0x64   : > { %3232 = vmatmul.mubr.msk.bf16.vlgmr.msra.gmra.mrb[36].mxu1 %vm254_vm1, %v1258_v63  ;;  %v1693_v63 = vrot.slane %v3513_v57, 1  ;;  %v1849_v3 = vrot.slane %v1847_v60, 1  ;;  %v3539_v57 = vld [vmem:[%s3640_s30 + $0x1c] sm:$0x1f]  }
  0x65   : > { %3246 = vmatpush3.bf16.msra.mxu0 %v3484_v61  ;;  %3264 = vmatpush3.bf16.msra.mxu1 %v3488_v0  ;;  %v1850_v61 = vshll.u32 %v3518_v54, 16  ;;  %v1845_v0 = vsel %vm654_vm4, %v1836_v58, %v1844_v59  ;;  %v2423_v58 = vor.u32 %v2422_v52, %v2419_v51 }
  0x66   : > { %3247 = vmatprep.subr.bf16.mxu0 %v3567_v2  ;;  %3235 = vmatprep.mubr.msk.bf16.mxu1 %vm3568_vm0, %v3567_v2 }
  0x67   : > { %3265 = vmatprep.subr.bf16.mxu1 %v3567_v2 }
  0x68   : > { %3216 = vmatmul.mubr.msk.bf16.gmra.mrb[40].mxu0 %vm254_vm1, %v1107_v5  ;;  %v1694_v5 = vsel %vm514_vm3, %v1691_v49, %v1693_v63  ;;  %v2277_v49 = vrot.slane %v3536_v41, 1 }
  0x69   : > { %3248 = vmatpush3.bf16.msra.mxu0 %v3489_v4  ;;  %3219 = vmatprep.mubr.msk.bf16.mxu0 %vm3568_vm0, %v3567_v2  ;;  %v1852_v4 = vrot.slane %v1850_v61, 2 }
  0x6a   : > { %3266 = vmatpush3.bf16.msra.mxu1 %v3491_v7  ;;  %3249 = vmatprep.subr.bf16.mxu0 %v3567_v2 }
  0x6b   : > { %3267 = vmatprep.subr.bf16.mxu1 %v3567_v2  ;;  %v1853_v7 = vor.u32 %v1852_v4, %v1849_v3 }
  0x6c   : > { %3236 = vmatmul.mubr.msk.bf16.gmra.mrb[40].mxu1 %vm254_vm1, %v1267_v10 }
  0x6d   : > { %3250 = vmatpush3.bf16.msra.mxu0 %v3492_v8  ;;  %3239 = vmatprep.mubr.msk.bf16.mxu1 %vm3568_vm0, %v3567_v2  ;;  %v3519_v8 = vld [vmem:[%s4189_s1 + $0x1a8] sm:$0xff]   ;;  %v1854_v10 = vsel %vm654_vm4, %v1844_v59, %v1853_v7 }
  0x6e   : > { %3268 = vmatpush3.bf16.msra.mxu1 %v3493_v11  ;;  %3283 = vmatprep.subr.bf16.mxu0 %v3567_v2  ;;  %v3521_v11 = vld [vmem:[%s4189_s1 + $0x1b0] sm:$0xff]  }
  0x6f   : > { %3269 = vmatprep.subr.bf16.mxu1 %v3567_v2 }
  0x70   : > { %3220 = vmatmul.mubr.msk.bf16.gmra.mrb[44].mxu0 %vm254_vm1, %v1106_v62  ;;  %v3512_v62 = vld [vmem:[%s4189_s1 + $0x188] sm:$0xff]  }
  0x71   : > { %3251 = vmatprep.mubr.msk.bf16.mxu0 %vm3568_vm0, %v3567_v2 }
  0x72   : > { %3270 = vmatpush3.bf16.msra.mxu1 %v3496_v14  ;;  %v3528_v14 = vld [vmem:[%s3640_s30 + $0x14] sm:$0xff]  }
  0x73   : > { %3303 = vmatprep.subr.bf16.mxu1 %v3567_v2  ;;  %v2132_v27 = vshrl.u32 %v3528_v14, 16 }
  0x74   : > { %3240 = vmatmul.mubr.msk.bf16.gmra.mrb[44].mxu1 %vm254_vm1, %v1266_v6  ;;  %v3517_v6 = vld [vmem:[%s4189_s1 + $0x190] sm:$0xff]  }
  0x75   : > { %3271 = vmatprep.mubr.msk.bf16.mxu1 %vm3568_vm0, %v3567_v2 }
  0x78   : > { %3252 = vmatmul.mubr.msk.bf16.vlgmr.msra.gmra.mrb[48].mxu0 %vm254_vm1, %v3494_v18  ;;  %v2128_v18 = vshll.u32 %v3528_v14, 16 }
  0x79   : > { %3284 = vmatpush3.bf16.msra.mxu0 %v3495_v19  ;;  %3255 = vmatprep.mubr.msk.bf16.mxu0 %vm3568_vm0, %v3567_v2  ;;  %v3522_v19 = vld [vmem:[%s3640_s30 + $0xc] sm:$0xff]  }
  0x7a   : > { %3285 = vmatprep.subr.bf16.mxu0 %v3567_v2  ;;  %v2130_v22 = vrot.slane %v2128_v18, 1 }
  0x7c   : > { %3272 = vmatmul.mubr.msk.bf16.vlgmr.msra.gmra.mrb[48].mxu1 %vm254_vm1, %v1544_v24  ;;  %v3525_v24 = vld [vmem:[%s4189_s1 + $0x1c8] sm:$0xff]   ;;  %v2134_v31 = vor.u32 %v2132_v27, %v2130_v22 }
  0x7d   : > { %3286 = vmatpush3.bf16.msra.mxu0 %v3497_v23  ;;  %3304 = vmatpush3.bf16.msra.mxu1 %v3501_v25  ;;  %v3532_v23 = vld [vmem:[%s3640_s30 + $0x1c] sm:$0x1f]   ;;  %v2131_v25 = vsel %vm356_vm2, %v2126_v21, %v2130_v22 }
  0x7e   : > { %3287 = vmatprep.subr.bf16.mxu0 %v3567_v2  ;;  %3275 = vmatprep.mubr.msk.bf16.mxu1 %vm3568_vm0, %v3567_v2  ;;  %v2140_v40 = vshrl.u32 %v3532_v23, 16 }
  0x7f   : > { %3305 = vmatprep.subr.bf16.mxu1 %v3567_v2 }
  0x80   : > { %3256 = vmatmul.mubr.msk.bf16.gmra.mrb[52].mxu0 %vm254_vm1, %v3498_v28  ;;  %v2136_v28 = vshll.u32 %v3532_v23, 16 }
  0x81   : > { %3288 = vmatpush3.bf16.msra.mxu0 %v3502_v29  ;;  %3259 = vmatprep.mubr.msk.bf16.mxu0 %vm3568_vm0, %v3567_v2  ;;  %v3526_v29 = vld [vmem:[%s3640_s30 + $0x14] sm:$0xff]  }
  0x82   : > { %3306 = vmatpush3.bf16.msra.mxu1 %v3505_v32  ;;  %3289 = vmatprep.subr.bf16.mxu0 %v3567_v2  ;;  %v2138_v32 = vrot.slane %v2136_v28, 1 }
  0x83   : > { %3307 = vmatprep.subr.bf16.mxu1 %v3567_v2 }
  0x84   : > { %3276 = vmatmul.mubr.msk.bf16.gmra.mrb[52].mxu1 %vm254_vm1, %v1552_v34  ;;  %v3534_v34 = vld [vmem:[%s4189_s1 + $0x1d8] sm:$0xff]   ;;  %v2142_v48 = vor.u32 %v2140_v40, %v2138_v32 }
  0x85   : > { %3290 = vmatpush3.bf16.msra.mxu0 %v3506_v33  ;;  %3279 = vmatprep.mubr.msk.bf16.mxu1 %vm3568_vm0, %v3567_v2  ;;  %v3533_v33 = vld [vmem:[%s4189_s1 + $0x1e8] sm:$0xff]  }
  0x86   : > { %3308 = vmatpush3.bf16.msra.mxu1 %v3507_v35  ;;  %3323 = vmatprep.subr.bf16.mxu0 %v3567_v2  ;;  %v2139_v35 = vsel %vm356_vm2, %v2134_v31, %v2138_v32 }
  0x87   : > { %3309 = vmatprep.subr.bf16.mxu1 %v3567_v2 }
  0x88   : > { %3260 = vmatmul.mubr.msk.bf16.gmra.mrb[56].mxu0 %vm254_vm1, %v3503_v38  ;;  %v3541_v38 = vld [vmem:[%s3640_s30 + $0x14] sm:$0xff]  }
  0x89   : > { %3291 = vmatprep.mubr.msk.bf16.mxu0 %vm3568_vm0, %v3567_v2  ;;  %v2425_v46 = vshrl.u32 %v3541_v38, 16 }
  0x8a   : > { %3310 = vmatpush3.bf16.msra.mxu1 %v3511_v42  ;;  %v3537_v42 = vld [vmem:[%s3640_s30 + $0x14] sm:$0xff]  }
  0x8b   : > { %3343 = vmatprep.subr.bf16.mxu1 %v3567_v2  ;;  %v2278_v50 = vrot.slane %v3537_v42, 1  ;;  %v2427_v53 = vrot.slane %v2425_v46, 1 }
  0x8c   : > { %3280 = vmatmul.mubr.msk.bf16.gmra.mrb[56].mxu1 %vm254_vm1, %v1555_v47  ;;  %v2428_v47 = vshll.u32 %v3541_v38, 16 }
  0x8d   : > { %3311 = vmatprep.mubr.msk.bf16.mxu1 %vm3568_vm0, %v3567_v2 }
  0x8e   : > { %v2430_v54 = vrot.slane %v2428_v47, 2 }
  0x90   : > { %3292 = vmatmul.mubr.msk.bf16.vlgmr.msra.gmra.mrb[60].mxu0 %vm254_vm1, %v1692_v55  ;;  %v3542_v55 = vld [vmem:[%s3640_s30 + $0x1c] sm:$0x3f]   ;;  %v2431_v59 = vor.u32 %v2430_v54, %v2427_v53  ;;  %s3404_s30 = smul.u32 20, %s4197_s14 }
  0x91   : > { %3324 = vmatpush3.bf16.msra.mxu0 %v3510_v56  ;;  %3295 = vmatprep.mubr.msk.bf16.mxu0 %vm3568_vm0, %v3567_v2  ;;  %v2279_v56 = vsel %vm514_vm3, %v2277_v49, %v2278_v50  ;;  %v2434_v60 = vshrl.u32 %v3542_v55, 16  ;;  %v2437_v61 = vshll.u32 %v3542_v55, 16 }
  0x92   : > { %3325 = vmatprep.subr.bf16.mxu0 %v3567_v2  ;;  %s201_s9 = scalar_lea.vmem %s4191_s3, %s3404_s30 }
  0x94   : > { %3312 = vmatmul.mubr.msk.bf16.vlgmr.msra.gmra.mrb[60].mxu1 %vm254_vm1, %v1845_v0  ;;  %v2436_v0 = vrot.slane %v2434_v60, 1 }
  0x95   : > { %3326 = vmatpush3.bf16.msra.mxu0 %v3512_v62  ;;  %3344 = vmatpush3.bf16.msra.mxu1 %v3516_v1  ;;  %v2280_v62 = vrot.slane %v3539_v57, 1  ;;  %v2439_v1 = vrot.slane %v2437_v61, 2 }
  0x96   : > { %3327 = vmatprep.subr.bf16.mxu0 %v3567_v2  ;;  %3315 = vmatprep.mubr.msk.bf16.mxu1 %vm3568_vm0, %v3567_v2 }
  0x97   : > { %3345 = vmatprep.subr.bf16.mxu1 %v3567_v2  ;;  %v2281_v3 = vsel %vm514_vm3, %v2278_v50, %v2280_v62  ;;  %v2440_v4 = vor.u32 %v2439_v1, %v2436_v0 }
  0x98   : > { %3296 = vmatmul.mubr.msk.bf16.gmra.mrb[64].mxu0 %vm254_vm1, %v1694_v5 }
  0x99   : > { %3328 = vmatpush3.bf16.msra.mxu0 %v3517_v6  ;;  %3299 = vmatprep.mubr.msk.bf16.mxu0 %vm3568_vm0, %v3567_v2  ;;  %v2441_v5 = vsel %vm654_vm4, %v2431_v59, %v2440_v4 }
  0x9a   : > { %3346 = vmatpush3.bf16.msra.mxu1 %v3519_v8  ;;  %3329 = vmatprep.subr.bf16.mxu0 %v3567_v2 }
  0x9b   : > { %3347 = vmatprep.subr.bf16.mxu1 %v3567_v2 }
  0x9c   : > { %3316 = vmatmul.mubr.msk.bf16.gmra.mrb[64].mxu1 %vm254_vm1, %v1854_v10 }
  0x9d   : > { %3330 = vmatpush3.bf16.msra.mxu0 %v3520_v9  ;;  %3319 = vmatprep.mubr.msk.bf16.mxu1 %vm3568_vm0, %v3567_v2 }
  0x9e   : > { %3348 = vmatpush3.bf16.msra.mxu1 %v3521_v11  ;;  %3363 = vmatprep.subr.bf16.mxu0 %v3567_v2 }
  0x9f   : > { %3349 = vmatprep.subr.bf16.mxu1 %v3567_v2 }
  0xa0   : > { %3300 = vmatmul.mubr.msk.bf16.gmra.mrb[68].mxu0 %vm254_vm1, %v1693_v63  ;;  %v2432_v63 = vsel %vm654_vm4, %v2423_v58, %v2431_v59 }
  0xa1   : > { %3331 = vmatprep.mubr.msk.bf16.mxu0 %vm3568_vm0, %v3567_v2 }
  0xa2   : > { %3350 = vmatpush3.bf16.msra.mxu1 %v3524_v13 }
  0xa3   : > { %3383 = vmatprep.subr.bf16.mxu1 %v3567_v2 }
  0xa4   : > { %3320 = vmatmul.mubr.msk.bf16.gmra.mrb[68].mxu1 %vm254_vm1, %v1853_v7 }
  0xa5   : > { %3351 = vmatprep.mubr.msk.bf16.mxu1 %vm3568_vm0, %v3567_v2 }
  0xa8   : > { %3332 = vmatmul.mubr.msk.bf16.vlgmr.msra.gmra.mrb[72].mxu0 %vm254_vm1, %v3522_v19 }
  0xa9   : > { %3364 = vmatpush3.bf16.msra.mxu0 %v3523_v20  ;;  %3335 = vmatprep.mubr.msk.bf16.mxu0 %vm3568_vm0, %v3567_v2 }
  0xaa   : > { %3365 = vmatprep.subr.bf16.mxu0 %v3567_v2 }
  0xac   : > { %3352 = vmatmul.mubr.msk.bf16.vlgmr.msra.gmra.mrb[72].mxu1 %vm254_vm1, %v2131_v25 }
  0xad   : > { %3366 = vmatpush3.bf16.msra.mxu0 %v3525_v24  ;;  %3384 = vmatpush3.bf16.msra.mxu1 %v3529_v26 }
  0xae   : > { %3367 = vmatprep.subr.bf16.mxu0 %v3567_v2  ;;  %3355 = vmatprep.mubr.msk.bf16.mxu1 %vm3568_vm0, %v3567_v2 }
  0xaf   : > { %3385 = vmatprep.subr.bf16.mxu1 %v3567_v2 }
  0xb0   : > { %3336 = vmatmul.mubr.msk.bf16.gmra.mrb[76].mxu0 %vm254_vm1, %v3526_v29 }
  0xb1   : > { %3368 = vmatpush3.bf16.msra.mxu0 %v3530_v30  ;;  %3339 = vmatprep.mubr.msk.bf16.mxu0 %vm3568_vm0, %v3567_v2 }
  0xb2   : > { %3386 = vmatpush3.bf16.msra.mxu1 %v3533_v33  ;;  %3369 = vmatprep.subr.bf16.mxu0 %v3567_v2 }
  0xb3   : > { %3387 = vmatprep.subr.bf16.mxu1 %v3567_v2 }
  0xb4   : > { %3356 = vmatmul.mubr.msk.bf16.gmra.mrb[76].mxu1 %vm254_vm1, %v2139_v35 }
  0xb5   : > { %3370 = vmatpush3.bf16.msra.mxu0 %v3534_v34  ;;  %3359 = vmatprep.mubr.msk.bf16.mxu1 %vm3568_vm0, %v3567_v2 }
  0xb6   : > { %3388 = vmatpush3.bf16.msra.mxu1 %v3535_v36 }
  0xb7   : > { %3389 = vmatprep.subr.bf16.mxu1 %v3567_v2 }
  0xb8   : > { %3340 = vmatmul.mubr.msk.bf16.gmra.mrb[80].mxu0 %vm254_vm1, %v3531_v39 }
  0xb9   : > { %3371 = vmatprep.mubr.msk.bf16.mxu0 %vm3568_vm0, %v3567_v2 }
  0xba   : > { %3390 = vmatpush3.bf16.msra.mxu1 %v3538_v43 }
  0xbc   : > { %3360 = vmatmul.mubr.msk.bf16.gmra.mrb[80].mxu1 %vm254_vm1, %v2142_v48 }
  0xbd   : > { %3391 = vmatprep.mubr.msk.bf16.mxu1 %vm3568_vm0, %v3567_v2 }
  0xc0   : > { %3372 = vmatmul.mubr.msk.bf16.vlgmr.msra.gmra.mrb[84].mxu0 %vm254_vm1, %v2279_v56 }
  0xc1   : > { %3375 = vmatprep.mubr.msk.bf16.mxu0 %vm3568_vm0, %v3567_v2 }
  0xc4   : > { %3392 = vmatmul.mubr.msk.bf16.vlgmr.msra.gmra.mrb[84].mxu1 %vm254_vm1, %v2432_v63 }
  0xc5   : > { %3395 = vmatprep.mubr.msk.bf16.mxu1 %vm3568_vm0, %v3567_v2 }
  0xc8   : > { %3376 = vmatmul.mubr.msk.bf16.gmra.mrb[88].mxu0 %vm254_vm1, %v2281_v3 }
  0xc9   : > { %3379 = vmatprep.mubr.msk.bf16.mxu0 %vm3568_vm0, %v3567_v2 }
  0xcc   : > { %3396 = vmatmul.mubr.msk.bf16.gmra.mrb[88].mxu1 %vm254_vm1, %v2441_v5 }
  0xcd   : > { %3399 = vmatprep.mubr.msk.bf16.mxu1 %vm3568_vm0, %v3567_v2 }
  0xd0   : > { %3380 = vmatmul.mubr.msk.bf16.gmra.mrb[92].mxu0 %vm254_vm1, %v2280_v62 }
  0xd4   : > { %3400 = vmatmul.mubr.msk.bf16.gmra.mrb[92].mxu1 %vm254_vm1, %v2440_v4 }
  0xeb   : > { %v298_v6 = vpop.f32.mrb[0].mxu0 }
  0xec   : > { %321 = vst.msk [vmem:[#allocation2] sm:$0xff] %vm320_vm5, %v298_v6  ;;  %v3093_v7 = vpop.f32.mrb[1].mxu0 }
  0xed   : > { %v301_v8 = vpop.f32.mrb[2].mxu0 }
  0xee   : > { %322 = vst.msk [vmem:[#allocation2 + $0x8] sm:$0xff] %vm320_vm5, %v301_v8  ;;  %v3094_v9 = vpop.f32.mrb[3].mxu0 }
  0xef   : > { %v447_v10 = vpop.f32.mrb[0].mxu1 }
  0xf0   : > { %v3113_v11 = vpop.f32.mrb[1].mxu1 }
  0xf1   : > { %v450_v12 = vpop.f32.mrb[2].mxu1 }
  0xf2   : > { %v3114_v15 = vpop.f32.mrb[3].mxu1 }
  0xf3   : > { %v306_v13 = vpop.f32.mrb[4].mxu0  ;;  %v469_v14 = vld [vmem:[#allocation2] sm:$0xff] }
  0xf4   : > { %323 = vst.msk [vmem:[#allocation2 + $0x10] sm:$0xff] %vm320_vm5, %v306_v13  ;;  %v474_v2 = vadd.f32 %v469_v14, %v447_v10  ;;  %v3097_v16 = vpop.f32.mrb[5].mxu0 }
  0xf5   : > { %v309_v17 = vpop.f32.mrb[6].mxu0  ;;  %v470_v18 = vld [vmem:[#allocation2 + $0x8] sm:$0xff] }
  0xf6   : > { %479 = vst.msk [vmem:[#allocation2] sm:$0xff] %vm320_vm5, %v474_v2  ;;  %324 = vst.msk [vmem:[#allocation2 + $0x18] sm:$0xff] %vm320_vm5, %v309_v17  ;;  %v475_v19 = vadd.f32 %v470_v18, %v450_v12  ;;  %v3098_v20 = vpop.f32.mrb[7].mxu0 }
  0xf7   : > { %v455_v21 = vpop.f32.mrb[4].mxu1 }
  0xf8   : > { %480 = vst.msk [vmem:[#allocation2 + $0x8] sm:$0xff] %vm320_vm5, %v475_v19  ;;  %v3117_v22 = vpop.f32.mrb[5].mxu1 }
  0xf9   : > { %v458_v23 = vpop.f32.mrb[6].mxu1 }
  0xfa   : > { %v3118_v26 = vpop.f32.mrb[7].mxu1 }
  0xfb   : > { %v314_v24 = vpop.f32.mrb[8].mxu0  ;;  %v471_v25 = vld [vmem:[#allocation2 + $0x10] sm:$0xff] }
  0xfc   : > { %325 = vst.msk [vmem:[#allocation2 + $0x20] sm:$0xff] %vm320_vm5, %v314_v24  ;;  %v476_v27 = vadd.f32 %v471_v25, %v455_v21  ;;  %v3101_v28 = vpop.f32.mrb[9].mxu0 }
  0xfd   : > { %v317_v29 = vpop.f32.mrb[10].mxu0  ;;  %v472_v30 = vld [vmem:[#allocation2 + $0x18] sm:$0xff]  ;;  %v609_v38 = vld [vmem:[#allocation2] sm:$0xff] }
  0xfe   : > { %481 = vst.msk [vmem:[#allocation2 + $0x10] sm:$0xff] %vm320_vm5, %v476_v27  ;;  %v477_v31 = vadd.f32 %v472_v30, %v458_v23  ;;  %v3102_v32 = vpop.f32.mrb[11].mxu0 }
  0xff   : > { %v463_v33 = vpop.f32.mrb[8].mxu1  ;;  %v610_v44 = vld [vmem:[#allocation2 + $0x8] sm:$0xff] }
 0x100   : > { %482 = vst.msk [vmem:[#allocation2 + $0x18] sm:$0xff] %vm320_vm5, %v477_v31  ;;  %v3121_v34 = vpop.f32.mrb[9].mxu1 }
 0x101   : > { %v466_v35 = vpop.f32.mrb[10].mxu1 }
 0x102   : > { %v3122_v39 = vpop.f32.mrb[11].mxu1 }
 0x103   : > { %v473_v36 = vld [vmem:[#allocation2 + $0x20] sm:$0xff]  ;;  %v587_v37 = vpop.f32.mrb[12].mxu0 }
 0x104   : > { %v478_v40 = vadd.f32 %v473_v36, %v463_v33  ;;  %v614_v41 = vadd.f32 %v609_v38, %v587_v37  ;;  %v3133_v42 = vpop.f32.mrb[13].mxu0 }
 0x105   : > { %v590_v43 = vpop.f32.mrb[14].mxu0  ;;  %v611_v51 = vld [vmem:[#allocation2 + $0x10] sm:$0xff] }
 0x106   : > { %483 = vst.msk [vmem:[#allocation2 + $0x20] sm:$0xff] %vm320_vm5, %v478_v40  ;;  %619 = vst.msk [vmem:[#allocation2] sm:$0xff] %vm320_vm5, %v614_v41  ;;  %v615_v45 = vadd.f32 %v610_v44, %v590_v43  ;;  %v3134_v46 = vpop.f32.mrb[15].mxu0 }
 0x107   : > { %v748_v47 = vpop.f32.mrb[12].mxu1  ;;  %v612_v57 = vld [vmem:[#allocation2 + $0x18] sm:$0xff] }
 0x108   : > { %620 = vst.msk [vmem:[#allocation2 + $0x8] sm:$0xff] %vm320_vm5, %v615_v45  ;;  %v3153_v48 = vpop.f32.mrb[13].mxu1 }
 0x109   : > { %v751_v49 = vpop.f32.mrb[14].mxu1 }
 0x10a   : > { %v3154_v52 = vpop.f32.mrb[15].mxu1 }
 0x10b   : > { %v595_v50 = vpop.f32.mrb[16].mxu0 }
 0x10c   : > { %v616_v53 = vadd.f32 %v611_v51, %v595_v50  ;;  %v3137_v54 = vpop.f32.mrb[17].mxu0 }
 0x10d   : > { %v770_v55 = vld [vmem:[#allocation2] sm:$0xff]  ;;  %v598_v56 = vpop.f32.mrb[18].mxu0 }
 0x10e   : > { %621 = vst.msk [vmem:[#allocation2 + $0x10] sm:$0xff] %vm320_vm5, %v616_v53  ;;  %v775_v58 = vadd.f32 %v770_v55, %v748_v47  ;;  %v617_v59 = vadd.f32 %v612_v57, %v598_v56  ;;  %v3138_v60 = vpop.f32.mrb[19].mxu0  ;;  %v613_v4 = vld [vmem:[#allocation2 + $0x20] sm:$0xff] }
 0x10f   : > { %v771_v61 = vld [vmem:[#allocation2 + $0x8] sm:$0xff]  ;;  %v756_v63 = vpop.f32.mrb[16].mxu1 }
 0x110   : > { %780 = vst.msk [vmem:[#allocation2] sm:$0xff] %vm320_vm5, %v775_v58  ;;  %622 = vst.msk [vmem:[#allocation2 + $0x18] sm:$0xff] %vm320_vm5, %v617_v59  ;;  %v776_v62 = vadd.f32 %v771_v61, %v751_v49  ;;  %v3157_v0 = vpop.f32.mrb[17].mxu1 }
 0x111   : > { %v759_v1 = vpop.f32.mrb[18].mxu1 }
 0x112   : > { %781 = vst.msk [vmem:[#allocation2 + $0x8] sm:$0xff] %vm320_vm5, %v776_v62  ;;  %v3158_v5 = vpop.f32.mrb[19].mxu1 }
 0x113   : > { %v603_v3 = vpop.f32.mrb[20].mxu0 }
 0x114   : > { %v618_v6 = vadd.f32 %v613_v4, %v603_v3  ;;  %v3141_v7 = vpop.f32.mrb[21].mxu0 }
 0x115   : > { %v772_v8 = vld [vmem:[#allocation2 + $0x10] sm:$0xff]  ;;  %v606_v9 = vpop.f32.mrb[22].mxu0 }
 0x116   : > { %623 = vst.msk [vmem:[#allocation2 + $0x20] sm:$0xff] %vm320_vm5, %v618_v6  ;;  %v777_v10 = vadd.f32 %v772_v8, %v756_v63  ;;  %v3142_v11 = vpop.f32.mrb[23].mxu0 }
 0x117   : > { %v773_v12 = vld [vmem:[#allocation2 + $0x18] sm:$0xff]  ;;  %v764_v14 = vpop.f32.mrb[20].mxu1  ;;  %v901_v17 = vld [vmem:[#allocation2] sm:$0xff] }
 0x118   : > { %782 = vst.msk [vmem:[#allocation2 + $0x10] sm:$0xff] %vm320_vm5, %v777_v10  ;;  %v778_v13 = vadd.f32 %v773_v12, %v759_v1  ;;  %v3161_v15 = vpop.f32.mrb[21].mxu1 }
 0x119   : > { %v767_v2 = vpop.f32.mrb[22].mxu1  ;;  %v902_v23 = vld [vmem:[#allocation2 + $0x8] sm:$0xff] }
 0x11a   : > { %783 = vst.msk [vmem:[#allocation2 + $0x18] sm:$0xff] %vm320_vm5, %v778_v13  ;;  %v3162_v18 = vpop.f32.mrb[23].mxu1 }
 0x11b   : > { %v879_v16 = vpop.f32.mrb[24].mxu0 }
 0x11c   : > { %v906_v19 = vadd.f32 %v901_v17, %v879_v16  ;;  %v3173_v20 = vpop.f32.mrb[25].mxu0 }
 0x11d   : > { %v774_v21 = vld [vmem:[#allocation2 + $0x20] sm:$0xff]  ;;  %v882_v22 = vpop.f32.mrb[26].mxu0 }
 0x11e   : > { %v779_v24 = vadd.f32 %v774_v21, %v764_v14  ;;  %911 = vst.msk [vmem:[#allocation2] sm:$0xff] %vm320_vm5, %v906_v19  ;;  %v907_v25 = vadd.f32 %v902_v23, %v882_v22  ;;  %v3174_v26 = vpop.f32.mrb[27].mxu0 }
 0x11f   : > { %v1036_v27 = vpop.f32.mrb[24].mxu1  ;;  %v903_v31 = vld [vmem:[#allocation2 + $0x10] sm:$0xff] }
 0x120   : > { %784 = vst.msk [vmem:[#allocation2 + $0x20] sm:$0xff] %vm320_vm5, %v779_v24  ;;  %912 = vst.msk [vmem:[#allocation2 + $0x8] sm:$0xff] %vm320_vm5, %v907_v25  ;;  %v3193_v28 = vpop.f32.mrb[25].mxu1 }
 0x121   : > { %v1039_v29 = vpop.f32.mrb[26].mxu1  ;;  %v904_v37 = vld [vmem:[#allocation2 + $0x18] sm:$0xff] }
 0x122   : > { %v3194_v32 = vpop.f32.mrb[27].mxu1 }
 0x123   : > { %v887_v30 = vpop.f32.mrb[28].mxu0 }
 0x124   : > { %v908_v33 = vadd.f32 %v903_v31, %v887_v30  ;;  %v3177_v34 = vpop.f32.mrb[29].mxu0 }
 0x125   : > { %v1058_v35 = vld [vmem:[#allocation2] sm:$0xff]  ;;  %v890_v36 = vpop.f32.mrb[30].mxu0 }
 0x126   : > { %913 = vst.msk [vmem:[#allocation2 + $0x10] sm:$0xff] %vm320_vm5, %v908_v33  ;;  %v1063_v38 = vadd.f32 %v1058_v35, %v1036_v27  ;;  %v909_v39 = vadd.f32 %v904_v37, %v890_v36  ;;  %v3178_v40 = vpop.f32.mrb[31].mxu0 }
 0x127   : > { %v1059_v41 = vld [vmem:[#allocation2 + $0x8] sm:$0xff]  ;;  %v1044_v43 = vpop.f32.mrb[28].mxu1  ;;  %v905_v47 = vld [vmem:[#allocation2 + $0x20] sm:$0xff] }
 0x128   : > { %1068 = vst.msk [vmem:[#allocation2] sm:$0xff] %vm320_vm5, %v1063_v38  ;;  %914 = vst.msk [vmem:[#allocation2 + $0x18] sm:$0xff] %vm320_vm5, %v909_v39  ;;  %v1064_v42 = vadd.f32 %v1059_v41, %v1039_v29  ;;  %v3197_v44 = vpop.f32.mrb[29].mxu1 }
 0x129   : > { %v1047_v45 = vpop.f32.mrb[30].mxu1 }
 0x12a   : > { %1069 = vst.msk [vmem:[#allocation2 + $0x8] sm:$0xff] %vm320_vm5, %v1064_v42  ;;  %v3198_v48 = vpop.f32.mrb[31].mxu1 }
 0x12b   : > { %v895_v46 = vpop.f32.mrb[32].mxu0 }
 0x12c   : > { %v910_v49 = vadd.f32 %v905_v47, %v895_v46  ;;  %v3181_v50 = vpop.f32.mrb[33].mxu0 }
 0x12d   : > { %v1060_v51 = vld [vmem:[#allocation2 + $0x10] sm:$0xff]  ;;  %v898_v52 = vpop.f32.mrb[34].mxu0 }
 0x12e   : > { %915 = vst.msk [vmem:[#allocation2 + $0x20] sm:$0xff] %vm320_vm5, %v910_v49  ;;  %v1065_v53 = vadd.f32 %v1060_v51, %v1044_v43  ;;  %v3182_v54 = vpop.f32.mrb[35].mxu0 }
 0x12f   : > { %v1061_v55 = vld [vmem:[#allocation2 + $0x18] sm:$0xff]  ;;  %v1052_v57 = vpop.f32.mrb[32].mxu1  ;;  %v1197_v61 = vld [vmem:[#allocation2] sm:$0xff] }
 0x130   : > { %1070 = vst.msk [vmem:[#allocation2 + $0x10] sm:$0xff] %vm320_vm5, %v1065_v53  ;;  %v1066_v56 = vadd.f32 %v1061_v55, %v1047_v45  ;;  %v3201_v58 = vpop.f32.mrb[33].mxu1 }
 0x131   : > { %v1055_v59 = vpop.f32.mrb[34].mxu1  ;;  %v1198_v4 = vld [vmem:[#allocation2 + $0x8] sm:$0xff] }
 0x132   : > { %1071 = vst.msk [vmem:[#allocation2 + $0x18] sm:$0xff] %vm320_vm5, %v1066_v56  ;;  %v3202_v62 = vpop.f32.mrb[35].mxu1 }
 0x133   : > { %v1175_v60 = vpop.f32.mrb[36].mxu0 }
 0x134   : > { %v1202_v63 = vadd.f32 %v1197_v61, %v1175_v60  ;;  %v3213_v0 = vpop.f32.mrb[37].mxu0 }
 0x135   : > { %v1062_v1 = vld [vmem:[#allocation2 + $0x20] sm:$0xff]  ;;  %v1178_v3 = vpop.f32.mrb[38].mxu0 }
 0x136   : > { %v1067_v5 = vadd.f32 %v1062_v1, %v1052_v57  ;;  %1207 = vst.msk [vmem:[#allocation2] sm:$0xff] %vm320_vm5, %v1202_v63  ;;  %v1203_v6 = vadd.f32 %v1198_v4, %v1178_v3  ;;  %v3214_v7 = vpop.f32.mrb[39].mxu0 }
 0x137   : > { %v1335_v8 = vpop.f32.mrb[36].mxu1  ;;  %v1199_v12 = vld [vmem:[#allocation2 + $0x10] sm:$0xff] }
 0x138   : > { %1072 = vst.msk [vmem:[#allocation2 + $0x20] sm:$0xff] %vm320_vm5, %v1067_v5  ;;  %1208 = vst.msk [vmem:[#allocation2 + $0x8] sm:$0xff] %vm320_vm5, %v1203_v6  ;;  %v3233_v9 = vpop.f32.mrb[37].mxu1 }
 0x139   : > { %v1338_v10 = vpop.f32.mrb[38].mxu1  ;;  %v1200_v17 = vld [vmem:[#allocation2 + $0x18] sm:$0xff] }
 0x13a   : > { %v3234_v13 = vpop.f32.mrb[39].mxu1 }
 0x13b   : > { %v1183_v11 = vpop.f32.mrb[40].mxu0 }
 0x13c   : > { %v1204_v14 = vadd.f32 %v1199_v12, %v1183_v11  ;;  %v3217_v15 = vpop.f32.mrb[41].mxu0 }
 0x13d   : > { %v1357_v2 = vld [vmem:[#allocation2] sm:$0xff]  ;;  %v1186_v16 = vpop.f32.mrb[42].mxu0 }
 0x13e   : > { %1209 = vst.msk [vmem:[#allocation2 + $0x10] sm:$0xff] %vm320_vm5, %v1204_v14  ;;  %v1362_v18 = vadd.f32 %v1357_v2, %v1335_v8  ;;  %v1205_v19 = vadd.f32 %v1200_v17, %v1186_v16  ;;  %v3218_v20 = vpop.f32.mrb[43].mxu0 }
 0x13f   : > { %v1358_v21 = vld [vmem:[#allocation2 + $0x8] sm:$0xff]  ;;  %v1343_v23 = vpop.f32.mrb[40].mxu1  ;;  %v1201_v27 = vld [vmem:[#allocation2 + $0x20] sm:$0xff] }
 0x140   : > { %1367 = vst.msk [vmem:[#allocation2] sm:$0xff] %vm320_vm5, %v1362_v18  ;;  %1210 = vst.msk [vmem:[#allocation2 + $0x18] sm:$0xff] %vm320_vm5, %v1205_v19  ;;  %v1363_v22 = vadd.f32 %v1358_v21, %v1338_v10  ;;  %v3237_v24 = vpop.f32.mrb[41].mxu1 }
 0x141   : > { %v1346_v25 = vpop.f32.mrb[42].mxu1 }
 0x142   : > { %1368 = vst.msk [vmem:[#allocation2 + $0x8] sm:$0xff] %vm320_vm5, %v1363_v22  ;;  %v3238_v28 = vpop.f32.mrb[43].mxu1 }
 0x143   : > { %v1191_v26 = vpop.f32.mrb[44].mxu0 }
 0x144   : > { %v1206_v29 = vadd.f32 %v1201_v27, %v1191_v26  ;;  %v3221_v30 = vpop.f32.mrb[45].mxu0 }
 0x145   : > { %v1359_v31 = vld [vmem:[#allocation2 + $0x10] sm:$0xff]  ;;  %v1194_v32 = vpop.f32.mrb[46].mxu0 }
 0x146   : > { %1211 = vst.msk [vmem:[#allocation2 + $0x20] sm:$0xff] %vm320_vm5, %v1206_v29  ;;  %v1364_v33 = vadd.f32 %v1359_v31, %v1343_v23  ;;  %v3222_v34 = vpop.f32.mrb[47].mxu0 }
 0x147   : > { %v1360_v35 = vld [vmem:[#allocation2 + $0x18] sm:$0xff]  ;;  %v1351_v37 = vpop.f32.mrb[44].mxu1  ;;  %v1488_v41 = vld [vmem:[#allocation2] sm:$0xff] }
 0x148   : > { %1369 = vst.msk [vmem:[#allocation2 + $0x10] sm:$0xff] %vm320_vm5, %v1364_v33  ;;  %v1365_v36 = vadd.f32 %v1360_v35, %v1346_v25  ;;  %v3241_v38 = vpop.f32.mrb[45].mxu1 }
 0x149   : > { %v1354_v39 = vpop.f32.mrb[46].mxu1  ;;  %v1489_v47 = vld [vmem:[#allocation2 + $0x8] sm:$0xff] }
 0x14a   : > { %1370 = vst.msk [vmem:[#allocation2 + $0x18] sm:$0xff] %vm320_vm5, %v1365_v36  ;;  %v3242_v42 = vpop.f32.mrb[47].mxu1 }
 0x14b   : > { %v1466_v40 = vpop.f32.mrb[48].mxu0 }
 0x14c   : > { %v1493_v43 = vadd.f32 %v1488_v41, %v1466_v40  ;;  %v3253_v44 = vpop.f32.mrb[49].mxu0 }
 0x14d   : > { %v1361_v45 = vld [vmem:[#allocation2 + $0x20] sm:$0xff]  ;;  %v1469_v46 = vpop.f32.mrb[50].mxu0 }
 0x14e   : > { %v1366_v48 = vadd.f32 %v1361_v45, %v1351_v37  ;;  %1498 = vst.msk [vmem:[#allocation2] sm:$0xff] %vm320_vm5, %v1493_v43  ;;  %v1494_v49 = vadd.f32 %v1489_v47, %v1469_v46  ;;  %v3254_v50 = vpop.f32.mrb[51].mxu0 }
 0x14f   : > { %v1623_v51 = vpop.f32.mrb[48].mxu1  ;;  %v1490_v55 = vld [vmem:[#allocation2 + $0x10] sm:$0xff] }
 0x150   : > { %1371 = vst.msk [vmem:[#allocation2 + $0x20] sm:$0xff] %vm320_vm5, %v1366_v48  ;;  %1499 = vst.msk [vmem:[#allocation2 + $0x8] sm:$0xff] %vm320_vm5, %v1494_v49  ;;  %v3273_v52 = vpop.f32.mrb[49].mxu1 }
 0x151   : > { %v1626_v53 = vpop.f32.mrb[50].mxu1  ;;  %v1491_v61 = vld [vmem:[#allocation2 + $0x18] sm:$0xff] }
 0x152   : > { %v3274_v56 = vpop.f32.mrb[51].mxu1 }
 0x153   : > { %v1474_v54 = vpop.f32.mrb[52].mxu0 }
 0x154   : > { %v1495_v57 = vadd.f32 %v1490_v55, %v1474_v54  ;;  %v3257_v58 = vpop.f32.mrb[53].mxu0 }
 0x155   : > { %v1645_v59 = vld [vmem:[#allocation2] sm:$0xff]  ;;  %v1477_v60 = vpop.f32.mrb[54].mxu0 }
 0x156   : > { %1500 = vst.msk [vmem:[#allocation2 + $0x10] sm:$0xff] %vm320_vm5, %v1495_v57  ;;  %v1650_v62 = vadd.f32 %v1645_v59, %v1623_v51  ;;  %v1496_v63 = vadd.f32 %v1491_v61, %v1477_v60  ;;  %v3258_v0 = vpop.f32.mrb[55].mxu0 }
 0x157   : > { %v1646_v1 = vld [vmem:[#allocation2 + $0x8] sm:$0xff]  ;;  %v1631_v4 = vpop.f32.mrb[52].mxu1  ;;  %v1492_v8 = vld [vmem:[#allocation2 + $0x20] sm:$0xff] }
 0x158   : > { %1655 = vst.msk [vmem:[#allocation2] sm:$0xff] %vm320_vm5, %v1650_v62  ;;  %1501 = vst.msk [vmem:[#allocation2 + $0x18] sm:$0xff] %vm320_vm5, %v1496_v63  ;;  %v1651_v3 = vadd.f32 %v1646_v1, %v1626_v53  ;;  %v3277_v5 = vpop.f32.mrb[53].mxu1 }
 0x159   : > { %v1634_v6 = vpop.f32.mrb[54].mxu1 }
 0x15a   : > { %1656 = vst.msk [vmem:[#allocation2 + $0x8] sm:$0xff] %vm320_vm5, %v1651_v3  ;;  %v3278_v9 = vpop.f32.mrb[55].mxu1 }
 0x15b   : > { %v1482_v7 = vpop.f32.mrb[56].mxu0 }
 0x15c   : > { %v1497_v10 = vadd.f32 %v1492_v8, %v1482_v7  ;;  %v3261_v11 = vpop.f32.mrb[57].mxu0 }
 0x15d   : > { %v1647_v12 = vld [vmem:[#allocation2 + $0x10] sm:$0xff]  ;;  %v1485_v13 = vpop.f32.mrb[58].mxu0 }
 0x15e   : > { %1502 = vst.msk [vmem:[#allocation2 + $0x20] sm:$0xff] %vm320_vm5, %v1497_v10  ;;  %v1652_v14 = vadd.f32 %v1647_v12, %v1631_v4  ;;  %v3262_v15 = vpop.f32.mrb[59].mxu0 }
 0x15f   : > { %v1648_v2 = vld [vmem:[#allocation2 + $0x18] sm:$0xff]  ;;  %v1639_v17 = vpop.f32.mrb[56].mxu1  ;;  %v1784_v21 = vld [vmem:[#allocation2] sm:$0xff] }
 0x160   : > { %1657 = vst.msk [vmem:[#allocation2 + $0x10] sm:$0xff] %vm320_vm5, %v1652_v14  ;;  %v1653_v16 = vadd.f32 %v1648_v2, %v1634_v6  ;;  %v3281_v18 = vpop.f32.mrb[57].mxu1 }
 0x161   : > { %v1642_v19 = vpop.f32.mrb[58].mxu1  ;;  %v1785_v27 = vld [vmem:[#allocation2 + $0x8] sm:$0xff] }
 0x162   : > { %1658 = vst.msk [vmem:[#allocation2 + $0x18] sm:$0xff] %vm320_vm5, %v1653_v16  ;;  %v3282_v22 = vpop.f32.mrb[59].mxu1 }
 0x163   : > { %v1762_v20 = vpop.f32.mrb[60].mxu0 }
 0x164   : > { %v1789_v23 = vadd.f32 %v1784_v21, %v1762_v20  ;;  %v3293_v24 = vpop.f32.mrb[61].mxu0 }
 0x165   : > { %v1649_v25 = vld [vmem:[#allocation2 + $0x20] sm:$0xff]  ;;  %v1765_v26 = vpop.f32.mrb[62].mxu0 }
 0x166   : > { %v1654_v28 = vadd.f32 %v1649_v25, %v1639_v17  ;;  %1794 = vst.msk [vmem:[#allocation2] sm:$0xff] %vm320_vm5, %v1789_v23  ;;  %v1790_v29 = vadd.f32 %v1785_v27, %v1765_v26  ;;  %v3294_v30 = vpop.f32.mrb[63].mxu0 }
 0x167   : > { %v1922_v31 = vpop.f32.mrb[60].mxu1  ;;  %v1786_v35 = vld [vmem:[#allocation2 + $0x10] sm:$0xff] }
 0x168   : > { %1659 = vst.msk [vmem:[#allocation2 + $0x20] sm:$0xff] %vm320_vm5, %v1654_v28  ;;  %1795 = vst.msk [vmem:[#allocation2 + $0x8] sm:$0xff] %vm320_vm5, %v1790_v29  ;;  %v3313_v32 = vpop.f32.mrb[61].mxu1 }
 0x169   : > { %v1925_v33 = vpop.f32.mrb[62].mxu1  ;;  %v1787_v41 = vld [vmem:[#allocation2 + $0x18] sm:$0xff] }
 0x16a   : > { %v3314_v36 = vpop.f32.mrb[63].mxu1 }
 0x16b   : > { %v1770_v34 = vpop.f32.mrb[64].mxu0 }
 0x16c   : > { %v1791_v37 = vadd.f32 %v1786_v35, %v1770_v34  ;;  %v3297_v38 = vpop.f32.mrb[65].mxu0 }
 0x16d   : > { %v1944_v39 = vld [vmem:[#allocation2] sm:$0xff]  ;;  %v1773_v40 = vpop.f32.mrb[66].mxu0 }
 0x16e   : > { %1796 = vst.msk [vmem:[#allocation2 + $0x10] sm:$0xff] %vm320_vm5, %v1791_v37  ;;  %v1949_v42 = vadd.f32 %v1944_v39, %v1922_v31  ;;  %v1792_v43 = vadd.f32 %v1787_v41, %v1773_v40  ;;  %v3298_v44 = vpop.f32.mrb[67].mxu0 }
 0x16f   : > { %v1945_v45 = vld [vmem:[#allocation2 + $0x8] sm:$0xff]  ;;  %v1930_v47 = vpop.f32.mrb[64].mxu1  ;;  %v1788_v51 = vld [vmem:[#allocation2 + $0x20] sm:$0xff] }
 0x170   : > { %1954 = vst.msk [vmem:[#allocation2] sm:$0xff] %vm320_vm5, %v1949_v42  ;;  %1797 = vst.msk [vmem:[#allocation2 + $0x18] sm:$0xff] %vm320_vm5, %v1792_v43  ;;  %v1950_v46 = vadd.f32 %v1945_v45, %v1925_v33  ;;  %v3317_v48 = vpop.f32.mrb[65].mxu1 }
 0x171   : > { %v1933_v49 = vpop.f32.mrb[66].mxu1 }
 0x172   : > { %1955 = vst.msk [vmem:[#allocation2 + $0x8] sm:$0xff] %vm320_vm5, %v1950_v46  ;;  %v3318_v52 = vpop.f32.mrb[67].mxu1 }
 0x173   : > { %v1778_v50 = vpop.f32.mrb[68].mxu0 }
 0x174   : > { %v1793_v53 = vadd.f32 %v1788_v51, %v1778_v50  ;;  %v3301_v54 = vpop.f32.mrb[69].mxu0 }
 0x175   : > { %v1946_v55 = vld [vmem:[#allocation2 + $0x10] sm:$0xff]  ;;  %v1781_v56 = vpop.f32.mrb[70].mxu0 }
 0x176   : > { %1798 = vst.msk [vmem:[#allocation2 + $0x20] sm:$0xff] %vm320_vm5, %v1793_v53  ;;  %v1951_v57 = vadd.f32 %v1946_v55, %v1930_v47  ;;  %v3302_v58 = vpop.f32.mrb[71].mxu0 }
 0x177   : > { %v1947_v59 = vld [vmem:[#allocation2 + $0x18] sm:$0xff]  ;;  %v1938_v61 = vpop.f32.mrb[68].mxu1  ;;  %v2075_v1 = vld [vmem:[#allocation2] sm:$0xff] }
 0x178   : > { %1956 = vst.msk [vmem:[#allocation2 + $0x10] sm:$0xff] %vm320_vm5, %v1951_v57  ;;  %v1952_v60 = vadd.f32 %v1947_v59, %v1933_v49  ;;  %v3321_v62 = vpop.f32.mrb[69].mxu1 }
 0x179   : > { %v1941_v63 = vpop.f32.mrb[70].mxu1  ;;  %v2076_v8 = vld [vmem:[#allocation2 + $0x8] sm:$0xff] }
 0x17a   : > { %1957 = vst.msk [vmem:[#allocation2 + $0x18] sm:$0xff] %vm320_vm5, %v1952_v60  ;;  %v3322_v3 = vpop.f32.mrb[71].mxu1 }
 0x17b   : > { %v2053_v0 = vpop.f32.mrb[72].mxu0 }
 0x17c   : > { %v2080_v4 = vadd.f32 %v2075_v1, %v2053_v0  ;;  %v3333_v5 = vpop.f32.mrb[73].mxu0 }
 0x17d   : > { %v1948_v6 = vld [vmem:[#allocation2 + $0x20] sm:$0xff]  ;;  %v2056_v7 = vpop.f32.mrb[74].mxu0 }
 0x17e   : > { %v1953_v9 = vadd.f32 %v1948_v6, %v1938_v61  ;;  %2085 = vst.msk [vmem:[#allocation2] sm:$0xff] %vm320_vm5, %v2080_v4  ;;  %v2081_v10 = vadd.f32 %v2076_v8, %v2056_v7  ;;  %v3334_v11 = vpop.f32.mrb[75].mxu0 }
 0x17f   : > { %v2210_v12 = vpop.f32.mrb[72].mxu1  ;;  %v2077_v2 = vld [vmem:[#allocation2 + $0x10] sm:$0xff] }
 0x180   : > { %1958 = vst.msk [vmem:[#allocation2 + $0x20] sm:$0xff] %vm320_vm5, %v1953_v9  ;;  %2086 = vst.msk [vmem:[#allocation2 + $0x8] sm:$0xff] %vm320_vm5, %v2081_v10  ;;  %v3353_v13 = vpop.f32.mrb[73].mxu1 }
 0x181   : > { %v2213_v14 = vpop.f32.mrb[74].mxu1  ;;  %v2078_v21 = vld [vmem:[#allocation2 + $0x18] sm:$0xff] }
 0x182   : > { %v3354_v16 = vpop.f32.mrb[75].mxu1 }
 0x183   : > { %v2061_v15 = vpop.f32.mrb[76].mxu0 }
 0x184   : > { %v2082_v17 = vadd.f32 %v2077_v2, %v2061_v15  ;;  %v3337_v18 = vpop.f32.mrb[77].mxu0  ;;  %v2958_v2 = vld [vmem:[#allocation3] ss:$0 sm:$0xff] }
 0x185   : > { %v2232_v19 = vld [vmem:[#allocation2] sm:$0xff]  ;;  %v2064_v20 = vpop.f32.mrb[78].mxu0 }
 0x186   : > { %2087 = vst.msk [vmem:[#allocation2 + $0x10] sm:$0xff] %vm320_vm5, %v2082_v17  ;;  %v2237_v22 = vadd.f32 %v2232_v19, %v2210_v12  ;;  %v2083_v23 = vadd.f32 %v2078_v21, %v2064_v20  ;;  %v3338_v24 = vpop.f32.mrb[79].mxu0 }
 0x187   : > { %v2233_v25 = vld [vmem:[#allocation2 + $0x8] sm:$0xff]  ;;  %v2218_v27 = vpop.f32.mrb[76].mxu1  ;;  %v2079_v31 = vld [vmem:[#allocation2 + $0x20] sm:$0xff] }
 0x188   : > { %2242 = vst.msk [vmem:[#allocation2] sm:$0xff] %vm320_vm5, %v2237_v22  ;;  %2088 = vst.msk [vmem:[#allocation2 + $0x18] sm:$0xff] %vm320_vm5, %v2083_v23  ;;  %v2238_v26 = vadd.f32 %v2233_v25, %v2213_v14  ;;  %v3357_v28 = vpop.f32.mrb[77].mxu1 }
 0x189   : > { %v2221_v29 = vpop.f32.mrb[78].mxu1 }
 0x18a   : > { %2243 = vst.msk [vmem:[#allocation2 + $0x8] sm:$0xff] %vm320_vm5, %v2238_v26  ;;  %v3358_v32 = vpop.f32.mrb[79].mxu1 }
 0x18b   : > { %v2069_v30 = vpop.f32.mrb[80].mxu0 }
 0x18c   : > { %v2084_v33 = vadd.f32 %v2079_v31, %v2069_v30  ;;  %v3341_v34 = vpop.f32.mrb[81].mxu0 }
 0x18d   : > { %v2234_v35 = vld [vmem:[#allocation2 + $0x10] sm:$0xff]  ;;  %v2072_v36 = vpop.f32.mrb[82].mxu0 }
 0x18e   : > { %2089 = vst.msk [vmem:[#allocation2 + $0x20] sm:$0xff] %vm320_vm5, %v2084_v33  ;;  %v2239_v37 = vadd.f32 %v2234_v35, %v2218_v27  ;;  %v3342_v38 = vpop.f32.mrb[83].mxu0 }
 0x18f   : > { %v2235_v39 = vld [vmem:[#allocation2 + $0x18] sm:$0xff]  ;;  %v2226_v41 = vpop.f32.mrb[80].mxu1  ;;  %v2371_v45 = vld [vmem:[#allocation2] sm:$0xff] }
 0x190   : > { %2244 = vst.msk [vmem:[#allocation2 + $0x10] sm:$0xff] %vm320_vm5, %v2239_v37  ;;  %v2240_v40 = vadd.f32 %v2235_v39, %v2221_v29  ;;  %v3361_v42 = vpop.f32.mrb[81].mxu1 }
 0x191   : > { %v2229_v43 = vpop.f32.mrb[82].mxu1  ;;  %v2372_v51 = vld [vmem:[#allocation2 + $0x8] sm:$0xff] }
 0x192   : > { %2245 = vst.msk [vmem:[#allocation2 + $0x18] sm:$0xff] %vm320_vm5, %v2240_v40  ;;  %v3362_v46 = vpop.f32.mrb[83].mxu1 }
 0x193   : > { %v2349_v44 = vpop.f32.mrb[84].mxu0 }
 0x194   : > { %v2376_v47 = vadd.f32 %v2371_v45, %v2349_v44  ;;  %v3373_v48 = vpop.f32.mrb[85].mxu0 }
 0x195   : > { %v2236_v49 = vld [vmem:[#allocation2 + $0x20] sm:$0xff]  ;;  %v2352_v50 = vpop.f32.mrb[86].mxu0 }
 0x196   : > { %v2241_v52 = vadd.f32 %v2236_v49, %v2226_v41  ;;  %2381 = vst.msk [vmem:[#allocation2] sm:$0xff] %vm320_vm5, %v2376_v47  ;;  %v2377_v53 = vadd.f32 %v2372_v51, %v2352_v50  ;;  %v3374_v54 = vpop.f32.mrb[87].mxu0 }
 0x197   : > { %v2509_v55 = vpop.f32.mrb[84].mxu1  ;;  %v2373_v59 = vld [vmem:[#allocation2 + $0x10] sm:$0xff] }
 0x198   : > { %2246 = vst.msk [vmem:[#allocation2 + $0x20] sm:$0xff] %vm320_vm5, %v2241_v52  ;;  %2382 = vst.msk [vmem:[#allocation2 + $0x8] sm:$0xff] %vm320_vm5, %v2377_v53  ;;  %v3393_v56 = vpop.f32.mrb[85].mxu1 }
 0x199   : > { %v2512_v57 = vpop.f32.mrb[86].mxu1  ;;  %v2374_v1 = vld [vmem:[#allocation2 + $0x18] sm:$0xff] }
 0x19a   : > { %v3394_v60 = vpop.f32.mrb[87].mxu1 }
 0x19b   : > { %v2357_v58 = vpop.f32.mrb[88].mxu0 }
 0x19c   : > { %v2378_v61 = vadd.f32 %v2373_v59, %v2357_v58  ;;  %v3377_v62 = vpop.f32.mrb[89].mxu0 }
 0x19d   : > { %v2531_v63 = vld [vmem:[#allocation2] sm:$0xff]  ;;  %v2360_v0 = vpop.f32.mrb[90].mxu0 }
 0x19e   : > { %2383 = vst.msk [vmem:[#allocation2 + $0x10] sm:$0xff] %vm320_vm5, %v2378_v61  ;;  %v2536_v3 = vadd.f32 %v2531_v63, %v2509_v55  ;;  %v2379_v4 = vadd.f32 %v2374_v1, %v2360_v0  ;;  %v3378_v5 = vpop.f32.mrb[91].mxu0 }
 0x19f   : > { %v2532_v6 = vld [vmem:[#allocation2 + $0x8] sm:$0xff]  ;;  %v2517_v8 = vpop.f32.mrb[88].mxu1  ;;  %v2375_v12 = vld [vmem:[#allocation2 + $0x20] sm:$0xff] }
 0x1a0   : > { %2541 = vst.msk [vmem:[#allocation2] sm:$0xff] %vm320_vm5, %v2536_v3  ;;  %2384 = vst.msk [vmem:[#allocation2 + $0x18] sm:$0xff] %vm320_vm5, %v2379_v4  ;;  %v2537_v7 = vadd.f32 %v2532_v6, %v2512_v57  ;;  %v3397_v9 = vpop.f32.mrb[89].mxu1 }
 0x1a1   : > { %v2520_v10 = vpop.f32.mrb[90].mxu1 }
 0x1a2   : > { %2542 = vst.msk [vmem:[#allocation2 + $0x8] sm:$0xff] %vm320_vm5, %v2537_v7  ;;  %v3398_v13 = vpop.f32.mrb[91].mxu1 }
 0x1a3   : > { %v2365_v11 = vpop.f32.mrb[92].mxu0 }
 0x1a4   : > { %v2380_v14 = vadd.f32 %v2375_v12, %v2365_v11  ;;  %v3381_v15 = vpop.f32.mrb[93].mxu0 }
 0x1a5   : > { %v2533_v16 = vld [vmem:[#allocation2 + $0x10] sm:$0xff]  ;;  %v2368_v17 = vpop.f32.mrb[94].mxu0 }
 0x1a6   : > { %2385 = vst.msk [vmem:[#allocation2 + $0x20] sm:$0xff] %vm320_vm5, %v2380_v14  ;;  %v2538_v18 = vadd.f32 %v2533_v16, %v2517_v8  ;;  %v3382_v19 = vpop.f32.mrb[95].mxu0 }
 0x1a7   : > { %v2546_v20 = vld [vmem:[#allocation2] sm:$0xff]  ;;  %v2534_v21 = vld [vmem:[#allocation2 + $0x18] sm:$0xff]  ;;  %v2525_v24 = vpop.f32.mrb[92].mxu1 }
 0x1a8   : > { %v2558_v22 = vadd.f32 %v2958_v2, %v2546_v20  ;;  %2543 = vst.msk [vmem:[#allocation2 + $0x10] sm:$0xff] %vm320_vm5, %v2538_v18  ;;  %v2539_v23 = vadd.f32 %v2534_v21, %v2520_v10  ;;  %v3401_v26 = vpop.f32.mrb[93].mxu1 }
 0x1a9   : > { %v2547_v25 = vld [vmem:[#allocation2 + $0x8] sm:$0xff]  ;;  %v2528_v29 = vpop.f32.mrb[94].mxu1 }
 0x1aa   : > { %v2966_v27 = vpack.c.bf16 %v2558_v22, %v2558_v22  ;;  %v2559_v28 = vadd.f32 %v2958_v2, %v2547_v25  ;;  %2544 = vst.msk [vmem:[#allocation2 + $0x18] sm:$0xff] %vm320_vm5, %v2539_v23  ;;  %v3402_v30 = vpop.f32.mrb[95].mxu1 }
 0x1ac   : > { %2585 = vst.msk [vmem:[%s201_s9] sm:$0xf] %vm2584_vm6, %v2966_v27  ;;  %v2967_v31 = vpack.c.bf16 %v2559_v28, %v2559_v28 }
 0x1ad   : > { %v2535_v32 = vld [vmem:[#allocation2 + $0x20] sm:$0xff] }
 0x1ae   : > { %2586 = vst.msk [vmem:[%s201_s9 + $0x4] sm:$0xf] %vm2584_vm6, %v2967_v31  ;;  %v2540_v33 = vadd.f32 %v2535_v32, %v2525_v24 }
 0x1af   : > { %v2548_v34 = vld [vmem:[#allocation2 + $0x10] sm:$0xff] }
 0x1b0   : > { %v2560_v35 = vadd.f32 %v2958_v2, %v2548_v34  ;;  %2545 = vst.msk [vmem:[#allocation2 + $0x20] sm:$0xff] %vm320_vm5, %v2540_v33 }
 0x1b1   : > { %v2549_v36 = vld [vmem:[#allocation2 + $0x18] sm:$0xff] }
 0x1b2   : > { %v2968_v37 = vpack.c.bf16 %v2560_v35, %v2560_v35  ;;  %v2561_v38 = vadd.f32 %v2958_v2, %v2549_v36 }
 0x1b4   : > { %2587 = vst.msk [vmem:[%s201_s9 + $0x8] sm:$0xf] %vm2584_vm6, %v2968_v37  ;;  %v2969_v39 = vpack.c.bf16 %v2561_v38, %v2561_v38 }
 0x1b6   : > { %2588 = vst.msk [vmem:[%s201_s9 + $0xc] sm:$0xf] %vm2584_vm6, %v2969_v39 }
 0x1b7   : > { %v2550_v40 = vld [vmem:[#allocation2 + $0x20] sm:$0xff] }
 0x1b8   : > { %v2562_v41 = vadd.f32 %v2958_v2, %v2550_v40 }
 0x1ba   : > { %v2970_v42 = vpack.c.bf16 %v2562_v41, %v2562_v41 }
 0x1bc   : > { %2589 = vst.msk [vmem:[%s201_s9 + $0x10] sm:$0xf] %vm2584_vm6, %v2970_v42 }
 0x1bd PF: > { %s15_s16 = sadd.s32 1, %s3565_s16   ;;  %s4192_s14 = smov %s3561_s15 }
 0x1be   : > { %p12_p5 = scmp.ge.s32.totalorder %s15_s16, 4   ;;  %s4193_s15 = smov %s4195_s2 }
 0x1c0   :  { %14 = sbr.rel (!%p12_p5) target bundleno = 3 (0x3), region = 77 }

</bundles_post_ra>
